<compile_context>
chip_gen: v7x
topology: tpu7x:2x2x1
jax: 0.10.0
libtpu: 0.0.40
codegen_flags: <defaults>
</compile_context>

<pallas_src>
import functools

import numpy as np

import jax
import jax.numpy as jnp
from jax.experimental import pallas as pl
from jax.experimental.pallas import tpu as pltpu

# Static geometry implied by the module (width=80, height=19, channels=3).
C_IN = 3
H_IN, W_IN = 19, 80
K1, S1 = 8, 4                       # conv1 kernel / stride
K2 = 3                              # conv2 kernel (stride 1)
OH1, OW1 = 3, 19                    # conv1 output spatial
OH2, OW2 = 1, 17                    # conv2 output spatial
FEAT_IN = C_IN * H_IN * W_IN        # 4560 flattened input features (NCHW order)
SLICE_K = K1 * W_IN                 # 640  contiguous input slice per (oh, ci)
CONV1_N = 384                       # conv1 cols per output row: 19*16=304 -> 384
FEAT1_PAD = OH1 * CONV1_N           # 1152 padded conv1 feature width
FLAT = 16 * OH2 * OW2               # 272  PyTorch x.view(-1, 272) width
FLAT_PAD = 384                      # padded conv2 feature width
FC3_PAD = 128                       # fc3 hidden 16 -> one full lane tile
ACT_DIM = 3
LANE_OUT = 128                      # lane-dense (padded) output width
NEG_SLOPE = 0.01

DEFAULT_TB = 256                    # samples per grid step (multiple of 8)


def _leaky(v):
    return jnp.where(v >= 0, v, NEG_SLOPE * v)


def _round_up(v, m):
    return (v + m - 1) // m * m


def taiko_kernel(x_ref, w1_ref, b1_ref, w2_ref, b2_ref,
                 w3_ref, b3_ref, w4_ref, b4_ref, out_ref):
    """Whole forward pass for one batch tile: 12 MXU matmuls + VPU bias/leaky.

    x_ref is the f32 flattened NCHW input tile (TB, 4560); the bf16 cast happens
    here (per slice) so the f32 HBM load is fully pipelined with compute.
    """
    # conv1: per output row oh, per input channel ci, the needed input features
    # are the contiguous 640-wide slab x[:, ci*1520 + oh*320 : +640].
    h1_parts = []
    for oh in range(OH1):                                  # static unroll (3)
        acc = None
        for ci in range(C_IN):                             # static unroll (3)
            start = ci * (H_IN * W_IN) + oh * (S1 * W_IN)
            xs = x_ref[:, start:start + SLICE_K].astype(jnp.bfloat16)  # (TB,640)
            d = jnp.dot(xs, w1_ref[ci], preferred_element_type=jnp.float32)
            acc = d if acc is None else acc + d            # (TB, 384) f32
        h1_parts.append(_leaky(acc + b1_ref[...]).astype(jnp.bfloat16))
    h1 = jnp.concatenate(h1_parts, axis=-1)                # (TB, 1152) bf16

    h2 = jnp.dot(h1, w2_ref[...], preferred_element_type=jnp.float32)
    h2 = _leaky(h2 + b2_ref[...]).astype(jnp.bfloat16)     # (TB, 384)

    h3 = jnp.dot(h2, w3_ref[...], preferred_element_type=jnp.float32)
    h3 = _leaky(h3 + b3_ref[...]).astype(jnp.bfloat16)     # (TB, 128)

    out_ref[...] = (jnp.dot(h3, w4_ref[...], preferred_element_type=jnp.float32)
                    + b4_ref[...])                         # (TB, 128) f32


@functools.partial(jax.jit, static_argnames=("tb",))
def _taiko_forward_impl(x, params, tb):
    w1b, b1r, w2d, b2r, w3p, b3r, w4p, b4p = params
    n = x.shape[0]
    # Free flatten of NCHW (pure HBM view); dtype stays f32 — cast is in-kernel.
    x_flat = x.reshape(n, FEAT_IN)

    out = pl.pallas_call(
        taiko_kernel,
        out_shape=jax.ShapeDtypeStruct((n, LANE_OUT), jnp.float32),
        grid=(pl.cdiv(n, tb),),                            # ragged last tile OK
        in_specs=[
            pl.BlockSpec((tb, FEAT_IN), lambda i: (i, 0)),            # input tile
            pl.BlockSpec((C_IN, SLICE_K, CONV1_N), lambda i: (0, 0, 0)),  # conv1 w
            pl.BlockSpec((1, CONV1_N), lambda i: (0, 0)),             # conv1 bias
            pl.BlockSpec((FEAT1_PAD, FLAT_PAD), lambda i: (0, 0)),    # conv2 w
            pl.BlockSpec((1, FLAT_PAD), lambda i: (0, 0)),            # conv2 bias
            pl.BlockSpec((FLAT_PAD, FC3_PAD), lambda i: (0, 0)),      # fc3 w^T (pad)
            pl.BlockSpec((1, FC3_PAD), lambda i: (0, 0)),             # fc3 bias
            pl.BlockSpec((FC3_PAD, LANE_OUT), lambda i: (0, 0)),      # fc4 (padded)
            pl.BlockSpec((1, LANE_OUT), lambda i: (0, 0)),            # fc4 bias
        ],
        out_specs=pl.BlockSpec((tb, LANE_OUT), lambda i: (i, 0)),
        compiler_params=pltpu.CompilerParams(
            dimension_semantics=("parallel",),
            vmem_limit_bytes=40 * 1024 * 1024),
    )(x_flat, w1b, b1r, w2d, b2r, w3p, b3r, w4p, b4p)
    # Garbage rows from the ragged last tile never exist in `out` (masked write);
    # only the zero-padded lanes are sliced away here.
    return out[:, :ACT_DIM]                                            # (N, 3) f32


def taiko_forward(x, params, tb=None):
    """Public entry: picks a batch tile (multiple of 8, >= 2 grid steps if possible)."""
    n = x.shape[0]
    tb = DEFAULT_TB if tb is None else int(tb)
    tb = max(8, min(_round_up(tb, 8), _round_up(n, 8)))
    # v7x megacore: ensure the grid has >= 2 steps whenever the batch can split,
    # so dimension_semantics=("parallel",) can use both TensorCores.
    if n >= 16 and pl.cdiv(n, tb) < 2:
        tb = _round_up(pl.cdiv(n, 2), 8)
    return _taiko_forward_impl(x, params, tb)


def init_raw_params(key):
    """Deterministic synthetic parameters (same shapes as the PyTorch module)."""
    ks = jax.random.split(key, 8)
    scale = 0.05
    w1 = jax.random.normal(ks[0], (16, C_IN, K1, K1), jnp.float32) * scale
    b1 = jax.random.normal(ks[1], (16,), jnp.float32) * scale
    w2 = jax.random.normal(ks[2], (16, 16, K2, K2), jnp.float32) * scale
    b2 = jax.random.normal(ks[3], (16,), jnp.float32) * scale
    w3 = jax.random.normal(ks[4], (16, FLAT), jnp.float32) * scale
    b3 = jax.random.normal(ks[5], (16,), jnp.float32) * scale
    w4 = jax.random.normal(ks[6], (ACT_DIM, 16), jnp.float32) * scale
    b4 = jax.random.normal(ks[7], (ACT_DIM,), jnp.float32) * scale
    return w1, b1, w2, b2, w3, b3, w4, b4


def prep_params(raw):
    """Densify PyTorch-shaped weights into matmul weights (one-time host glue).

    Flatten orders (must all be consistent):
      input : f  = ci*1520 + ih*80 + iw            (== x.reshape(N, -1), NCHW)
      conv1 : q' = oh*384 + ow*16 + co             (cols >= 304 per row are pad)
      conv2 : r  = co*17 + ow2                     (== PyTorch x.view(-1, 272)),
              padded to 384 columns.
    All pads are zero (weights and biases), so leaky(0)=0 keeps results exact.
    """
    w1, b1, w2, b2, w3, b3, w4, b4 = [np.asarray(a, np.float32) for a in raw]

    # conv1 -> per-input-channel dense blocks (3, 640, 384); identical for every
    # output row oh because the 640-slice is taken relative to oh.
    w1b = np.zeros((C_IN, SLICE_K, CONV1_N), np.float32)
    for ci in range(C_IN):
        for kh in range(K1):
            for kw in range(K1):
                for ow in range(OW1):
                    j = kh * W_IN + ow * S1 + kw            # offset inside slice
                    w1b[ci, j, ow * 16:ow * 16 + 16] = w1[:, ci, kh, kw]  # over co
    b1r = np.zeros((1, CONV1_N), np.float32)
    b1r[0, :OW1 * 16] = np.tile(b1, OW1)                    # col -> b1[col % 16]

    # conv2 -> dense (1152, 384); output columns already in PyTorch flatten order.
    w2d = np.zeros((FEAT1_PAD, FLAT_PAD), np.float32)
    for kh in range(K2):
        for kw in range(K2):
            for ow2 in range(OW2):
                rows = kh * CONV1_N + (ow2 + kw) * 16 + np.arange(16)   # ci2
                cols = np.arange(16) * OW2 + ow2                        # co2*17+ow2
                w2d[np.ix_(rows, cols)] = w2[:, :, kh, kw].T            # (ci2, co2)
    b2r = np.zeros((1, FLAT_PAD), np.float32)
    b2r[0, :FLAT] = np.repeat(b2, OW2)                      # r -> b2[r // 17]

    # fc3: (272, 16) -> zero-padded (384, 128)
    w3p = np.zeros((FLAT_PAD, FC3_PAD), np.float32)
    w3p[:FLAT, :16] = w3.T
    b3r = np.zeros((1, FC3_PAD), np.float32)
    b3r[0, :16] = b3

    # fc4: (16, 3) -> zero-padded (128, 128); wrapper slices lanes :3.
    w4p = np.zeros((FC3_PAD, LANE_OUT), np.float32)
    w4p[:16, :ACT_DIM] = w4.T
    b4p = np.zeros((1, LANE_OUT), np.float32)
    b4p[0, :ACT_DIM] = b4

    bf16, f32 = jnp.bfloat16, jnp.float32
    return (jnp.asarray(w1b, bf16), jnp.asarray(b1r, f32),
            jnp.asarray(w2d, bf16), jnp.asarray(b2r, f32),
            jnp.asarray(w3p, bf16), jnp.asarray(b3r, f32),
            jnp.asarray(w4p, bf16), jnp.asarray(b4p, f32))


def reference_forward(x, raw):
    """Pure-JAX f32 reference with PyTorch semantics (for validation)."""
    w1, b1, w2, b2, w3, b3, w4, b4 = raw
    y1 = jax.lax.conv_general_dilated(
        x, w1, (S1, S1), "VALID",
        dimension_numbers=("NCHW", "OIHW", "NCHW")) + b1[None, :, None, None]
    y1 = _leaky(y1)
    y2 = jax.lax.conv_general_dilated(
        y1, w2, (1, 1), "VALID",
        dimension_numbers=("NCHW", "OIHW", "NCHW")) + b2[None, :, None, None]
    y2 = _leaky(y2)
    flat = y2.reshape(y2.shape[0], -1)                      # (N, 272)
    h3 = _leaky(flat @ w3.T + b3)
    return h3 @ w4.T + b4


if __name__ == "__main__":
    key = jax.random.PRNGKey(0)
    kx, kp = jax.random.split(key)

    raw = init_raw_params(kp)
    params = prep_params(raw)

    # Small batch (single under-sized tile), a ragged batch with an explicit
    # tile (multiple grid steps + partial last tile), and a batch that exercises
    # DEFAULT_TB clamping / the >=2-grid-step megacore split.
    for batch, tb in ((2, None), (37, 16), (300, None)):
        x = jax.random.normal(jax.random.fold_in(kx, batch),
                              (batch, C_IN, H_IN, W_IN), jnp.float32)
        out = jax.block_until_ready(taiko_forward(x, params, tb=tb))
        ref = reference_forward(x, raw)
        assert out.shape == (batch, ACT_DIM), out.shape
        assert jnp.allclose(out, ref, atol=2e-2, rtol=2e-2), (out, ref)

    print("KERNEL_OK")
</pallas_src>

<mosaic_0001>
module attributes {stable_mosaic.version = 11 : i64} {
  func.func @taiko_kernel(%arg0: i32, %arg1: memref<8x4560xf32, #tpu.memory_space<vmem>>, %arg2: memref<3x640x384xbf16, #tpu.memory_space<vmem>>, %arg3: memref<1x384xf32, #tpu.memory_space<vmem>>, %arg4: memref<1152x384xbf16, #tpu.memory_space<vmem>>, %arg5: memref<1x384xf32, #tpu.memory_space<vmem>>, %arg6: memref<384x128xbf16, #tpu.memory_space<vmem>>, %arg7: memref<1x128xf32, #tpu.memory_space<vmem>>, %arg8: memref<128x128xbf16, #tpu.memory_space<vmem>>, %arg9: memref<1x128xf32, #tpu.memory_space<vmem>>, %arg10: memref<8x128xf32, #tpu.memory_space<vmem>>) attributes {dimension_semantics = [#tpu.dimension_semantics<parallel>], iteration_bounds = array<i64: 1>, scalar_prefetch = 0 : i64, scratch_operands = 0 : i64, tpu.core_type = #tpu.core_type<tc>, window_params = [{transform_indices = @transform_0, window_bounds = array<i64: 8, 4560>}, {pipeline_mode = #tpu.pipeline_mode<synchronous>, transform_indices = @transform_1, window_bounds = array<i64: 3, 640, 384>}, {pipeline_mode = #tpu.pipeline_mode<synchronous>, transform_indices = @transform_2, window_bounds = array<i64: 1, 384>}, {pipeline_mode = #tpu.pipeline_mode<synchronous>, transform_indices = @transform_3, window_bounds = array<i64: 1152, 384>}, {pipeline_mode = #tpu.pipeline_mode<synchronous>, transform_indices = @transform_4, window_bounds = array<i64: 1, 384>}, {pipeline_mode = #tpu.pipeline_mode<synchronous>, transform_indices = @transform_5, window_bounds = array<i64: 384, 128>}, {pipeline_mode = #tpu.pipeline_mode<synchronous>, transform_indices = @transform_6, window_bounds = array<i64: 1, 128>}, {pipeline_mode = #tpu.pipeline_mode<synchronous>, transform_indices = @transform_7, window_bounds = array<i64: 128, 128>}, {pipeline_mode = #tpu.pipeline_mode<synchronous>, transform_indices = @transform_8, window_bounds = array<i64: 1, 128>}, {transform_indices = @transform_9, window_bounds = array<i64: 8, 128>}]} {
    %c0 = arith.constant 0 : index
    %c0_0 = arith.constant 0 : index
    %0 = vector.load %arg1[%c0, %c0_0] : memref<8x4560xf32, #tpu.memory_space<vmem>>, vector<8x640xf32>
    %1 = arith.truncf %0 : vector<8x640xf32> to vector<8x640xbf16>
    %c0_1 = arith.constant 0 : index
    %c0_2 = arith.constant 0 : index
    %c0_3 = arith.constant 0 : index
    %2 = vector.load %arg2[%c0_1, %c0_2, %c0_3] : memref<3x640x384xbf16, #tpu.memory_space<vmem>>, vector<1x640x384xbf16>
    %3 = vector.shape_cast %2 : vector<1x640x384xbf16> to vector<640x384xbf16>
    %cst = arith.constant dense<0.000000e+00> : vector<8x384xf32>
    %4 = tpu.matmul %1, %3, %cst {dimension_numbers = #tpu.dot_dimension_numbers<[1], [0], [0], [1], [0, 0, 1, 1], [], []>} : vector<8x640xbf16>, vector<640x384xbf16>, vector<8x384xf32> -> vector<8x384xf32>
    %c0_4 = arith.constant 0 : index
    %c1520 = arith.constant 1520 : index
    %5 = vector.load %arg1[%c0_4, %c1520] : memref<8x4560xf32, #tpu.memory_space<vmem>>, vector<8x640xf32>
    %6 = arith.truncf %5 : vector<8x640xf32> to vector<8x640xbf16>
    %c1 = arith.constant 1 : index
    %c0_5 = arith.constant 0 : index
    %c0_6 = arith.constant 0 : index
    %7 = vector.load %arg2[%c1, %c0_5, %c0_6] : memref<3x640x384xbf16, #tpu.memory_space<vmem>>, vector<1x640x384xbf16>
    %8 = vector.shape_cast %7 : vector<1x640x384xbf16> to vector<640x384xbf16>
    %cst_7 = arith.constant dense<0.000000e+00> : vector<8x384xf32>
    %9 = tpu.matmul %6, %8, %cst_7 {dimension_numbers = #tpu.dot_dimension_numbers<[1], [0], [0], [1], [0, 0, 1, 1], [], []>} : vector<8x640xbf16>, vector<640x384xbf16>, vector<8x384xf32> -> vector<8x384xf32>
    %10 = arith.addf %4, %9 : vector<8x384xf32>
    %c0_8 = arith.constant 0 : index
    %c3040 = arith.constant 3040 : index
    %11 = vector.load %arg1[%c0_8, %c3040] : memref<8x4560xf32, #tpu.memory_space<vmem>>, vector<8x640xf32>
    %12 = arith.truncf %11 : vector<8x640xf32> to vector<8x640xbf16>
    %c2 = arith.constant 2 : index
    %c0_9 = arith.constant 0 : index
    %c0_10 = arith.constant 0 : index
    %13 = vector.load %arg2[%c2, %c0_9, %c0_10] : memref<3x640x384xbf16, #tpu.memory_space<vmem>>, vector<1x640x384xbf16>
    %14 = vector.shape_cast %13 : vector<1x640x384xbf16> to vector<640x384xbf16>
    %cst_11 = arith.constant dense<0.000000e+00> : vector<8x384xf32>
    %15 = tpu.matmul %12, %14, %cst_11 {dimension_numbers = #tpu.dot_dimension_numbers<[1], [0], [0], [1], [0, 0, 1, 1], [], []>} : vector<8x640xbf16>, vector<640x384xbf16>, vector<8x384xf32> -> vector<8x384xf32>
    %16 = arith.addf %10, %15 : vector<8x384xf32>
    %c0_12 = arith.constant 0 : index
    %c0_13 = arith.constant 0 : index
    %17 = vector.load %arg3[%c0_12, %c0_13] : memref<1x384xf32, #tpu.memory_space<vmem>>, vector<1x384xf32>
    %18 = vector.broadcast %17 : vector<1x384xf32> to vector<8x384xf32>
    %19 = arith.addf %16, %18 : vector<8x384xf32>
    %cst_14 = arith.constant 0.000000e+00 : f32
    %20 = vector.broadcast %cst_14 : f32 to vector<8x384xf32>
    %21 = arith.cmpf oge, %19, %20 : vector<8x384xf32>
    %cst_15 = arith.constant 0.00999999977 : f32
    %22 = vector.broadcast %cst_15 : f32 to vector<8x384xf32>
    %23 = arith.mulf %22, %19 : vector<8x384xf32>
    %24 = arith.select %21, %19, %23 : vector<8x384xi1>, vector<8x384xf32>
    %25 = arith.truncf %24 : vector<8x384xf32> to vector<8x384xbf16>
    %c0_16 = arith.constant 0 : index
    %c320 = arith.constant 320 : index
    %26 = vector.load %arg1[%c0_16, %c320] : memref<8x4560xf32, #tpu.memory_space<vmem>>, vector<8x640xf32>
    %27 = arith.truncf %26 : vector<8x640xf32> to vector<8x640xbf16>
    %c0_17 = arith.constant 0 : index
    %c0_18 = arith.constant 0 : index
    %c0_19 = arith.constant 0 : index
    %28 = vector.load %arg2[%c0_17, %c0_18, %c0_19] : memref<3x640x384xbf16, #tpu.memory_space<vmem>>, vector<1x640x384xbf16>
    %29 = vector.shape_cast %28 : vector<1x640x384xbf16> to vector<640x384xbf16>
    %cst_20 = arith.constant dense<0.000000e+00> : vector<8x384xf32>
    %30 = tpu.matmul %27, %29, %cst_20 {dimension_numbers = #tpu.dot_dimension_numbers<[1], [0], [0], [1], [0, 0, 1, 1], [], []>} : vector<8x640xbf16>, vector<640x384xbf16>, vector<8x384xf32> -> vector<8x384xf32>
    %c0_21 = arith.constant 0 : index
    %c1840 = arith.constant 1840 : index
    %31 = vector.load %arg1[%c0_21, %c1840] : memref<8x4560xf32, #tpu.memory_space<vmem>>, vector<8x640xf32>
    %32 = arith.truncf %31 : vector<8x640xf32> to vector<8x640xbf16>
    %c1_22 = arith.constant 1 : index
    %c0_23 = arith.constant 0 : index
    %c0_24 = arith.constant 0 : index
    %33 = vector.load %arg2[%c1_22, %c0_23, %c0_24] : memref<3x640x384xbf16, #tpu.memory_space<vmem>>, vector<1x640x384xbf16>
    %34 = vector.shape_cast %33 : vector<1x640x384xbf16> to vector<640x384xbf16>
    %cst_25 = arith.constant dense<0.000000e+00> : vector<8x384xf32>
    %35 = tpu.matmul %32, %34, %cst_25 {dimension_numbers = #tpu.dot_dimension_numbers<[1], [0], [0], [1], [0, 0, 1, 1], [], []>} : vector<8x640xbf16>, vector<640x384xbf16>, vector<8x384xf32> -> vector<8x384xf32>
    %36 = arith.addf %30, %35 : vector<8x384xf32>
    %c0_26 = arith.constant 0 : index
    %c3360 = arith.constant 3360 : index
    %37 = vector.load %arg1[%c0_26, %c3360] : memref<8x4560xf32, #tpu.memory_space<vmem>>, vector<8x640xf32>
    %38 = arith.truncf %37 : vector<8x640xf32> to vector<8x640xbf16>
    %c2_27 = arith.constant 2 : index
    %c0_28 = arith.constant 0 : index
    %c0_29 = arith.constant 0 : index
    %39 = vector.load %arg2[%c2_27, %c0_28, %c0_29] : memref<3x640x384xbf16, #tpu.memory_space<vmem>>, vector<1x640x384xbf16>
    %40 = vector.shape_cast %39 : vector<1x640x384xbf16> to vector<640x384xbf16>
    %cst_30 = arith.constant dense<0.000000e+00> : vector<8x384xf32>
    %41 = tpu.matmul %38, %40, %cst_30 {dimension_numbers = #tpu.dot_dimension_numbers<[1], [0], [0], [1], [0, 0, 1, 1], [], []>} : vector<8x640xbf16>, vector<640x384xbf16>, vector<8x384xf32> -> vector<8x384xf32>
    %42 = arith.addf %36, %41 : vector<8x384xf32>
    %c0_31 = arith.constant 0 : index
    %c0_32 = arith.constant 0 : index
    %43 = vector.load %arg3[%c0_31, %c0_32] : memref<1x384xf32, #tpu.memory_space<vmem>>, vector<1x384xf32>
    %44 = vector.broadcast %43 : vector<1x384xf32> to vector<8x384xf32>
    %45 = arith.addf %42, %44 : vector<8x384xf32>
    %cst_33 = arith.constant 0.000000e+00 : f32
    %46 = vector.broadcast %cst_33 : f32 to vector<8x384xf32>
    %47 = arith.cmpf oge, %45, %46 : vector<8x384xf32>
    %cst_34 = arith.constant 0.00999999977 : f32
    %48 = vector.broadcast %cst_34 : f32 to vector<8x384xf32>
    %49 = arith.mulf %48, %45 : vector<8x384xf32>
    %50 = arith.select %47, %45, %49 : vector<8x384xi1>, vector<8x384xf32>
    %51 = arith.truncf %50 : vector<8x384xf32> to vector<8x384xbf16>
    %c0_35 = arith.constant 0 : index
    %c640 = arith.constant 640 : index
    %52 = vector.load %arg1[%c0_35, %c640] : memref<8x4560xf32, #tpu.memory_space<vmem>>, vector<8x640xf32>
    %53 = arith.truncf %52 : vector<8x640xf32> to vector<8x640xbf16>
    %c0_36 = arith.constant 0 : index
    %c0_37 = arith.constant 0 : index
    %c0_38 = arith.constant 0 : index
    %54 = vector.load %arg2[%c0_36, %c0_37, %c0_38] : memref<3x640x384xbf16, #tpu.memory_space<vmem>>, vector<1x640x384xbf16>
    %55 = vector.shape_cast %54 : vector<1x640x384xbf16> to vector<640x384xbf16>
    %cst_39 = arith.constant dense<0.000000e+00> : vector<8x384xf32>
    %56 = tpu.matmul %53, %55, %cst_39 {dimension_numbers = #tpu.dot_dimension_numbers<[1], [0], [0], [1], [0, 0, 1, 1], [], []>} : vector<8x640xbf16>, vector<640x384xbf16>, vector<8x384xf32> -> vector<8x384xf32>
    %c0_40 = arith.constant 0 : index
    %c2160 = arith.constant 2160 : index
    %57 = vector.load %arg1[%c0_40, %c2160] : memref<8x4560xf32, #tpu.memory_space<vmem>>, vector<8x640xf32>
    %58 = arith.truncf %57 : vector<8x640xf32> to vector<8x640xbf16>
    %c1_41 = arith.constant 1 : index
    %c0_42 = arith.constant 0 : index
    %c0_43 = arith.constant 0 : index
    %59 = vector.load %arg2[%c1_41, %c0_42, %c0_43] : memref<3x640x384xbf16, #tpu.memory_space<vmem>>, vector<1x640x384xbf16>
    %60 = vector.shape_cast %59 : vector<1x640x384xbf16> to vector<640x384xbf16>
    %cst_44 = arith.constant dense<0.000000e+00> : vector<8x384xf32>
    %61 = tpu.matmul %58, %60, %cst_44 {dimension_numbers = #tpu.dot_dimension_numbers<[1], [0], [0], [1], [0, 0, 1, 1], [], []>} : vector<8x640xbf16>, vector<640x384xbf16>, vector<8x384xf32> -> vector<8x384xf32>
    %62 = arith.addf %56, %61 : vector<8x384xf32>
    %c0_45 = arith.constant 0 : index
    %c3680 = arith.constant 3680 : index
    %63 = vector.load %arg1[%c0_45, %c3680] : memref<8x4560xf32, #tpu.memory_space<vmem>>, vector<8x640xf32>
    %64 = arith.truncf %63 : vector<8x640xf32> to vector<8x640xbf16>
    %c2_46 = arith.constant 2 : index
    %c0_47 = arith.constant 0 : index
    %c0_48 = arith.constant 0 : index
    %65 = vector.load %arg2[%c2_46, %c0_47, %c0_48] : memref<3x640x384xbf16, #tpu.memory_space<vmem>>, vector<1x640x384xbf16>
    %66 = vector.shape_cast %65 : vector<1x640x384xbf16> to vector<640x384xbf16>
    %cst_49 = arith.constant dense<0.000000e+00> : vector<8x384xf32>
    %67 = tpu.matmul %64, %66, %cst_49 {dimension_numbers = #tpu.dot_dimension_numbers<[1], [0], [0], [1], [0, 0, 1, 1], [], []>} : vector<8x640xbf16>, vector<640x384xbf16>, vector<8x384xf32> -> vector<8x384xf32>
    %68 = arith.addf %62, %67 : vector<8x384xf32>
    %c0_50 = arith.constant 0 : index
    %c0_51 = arith.constant 0 : index
    %69 = vector.load %arg3[%c0_50, %c0_51] : memref<1x384xf32, #tpu.memory_space<vmem>>, vector<1x384xf32>
    %70 = vector.broadcast %69 : vector<1x384xf32> to vector<8x384xf32>
    %71 = arith.addf %68, %70 : vector<8x384xf32>
    %cst_52 = arith.constant 0.000000e+00 : f32
    %72 = vector.broadcast %cst_52 : f32 to vector<8x384xf32>
    %73 = arith.cmpf oge, %71, %72 : vector<8x384xf32>
    %cst_53 = arith.constant 0.00999999977 : f32
    %74 = vector.broadcast %cst_53 : f32 to vector<8x384xf32>
    %75 = arith.mulf %74, %71 : vector<8x384xf32>
    %76 = arith.select %73, %71, %75 : vector<8x384xi1>, vector<8x384xf32>
    %77 = arith.truncf %76 : vector<8x384xf32> to vector<8x384xbf16>
    %78 = tpu.concatenate %25, %51, %77 in 1 : vector<8x384xbf16>, vector<8x384xbf16>, vector<8x384xbf16> -> vector<8x1152xbf16>
    %c0_54 = arith.constant 0 : index
    %c0_55 = arith.constant 0 : index
    %79 = vector.load %arg4[%c0_54, %c0_55] : memref<1152x384xbf16, #tpu.memory_space<vmem>>, vector<1152x384xbf16>
    %cst_56 = arith.constant dense<0.000000e+00> : vector<8x384xf32>
    %80 = tpu.matmul %78, %79, %cst_56 {dimension_numbers = #tpu.dot_dimension_numbers<[1], [0], [0], [1], [0, 0, 1, 1], [], []>} : vector<8x1152xbf16>, vector<1152x384xbf16>, vector<8x384xf32> -> vector<8x384xf32>
    %c0_57 = arith.constant 0 : index
    %c0_58 = arith.constant 0 : index
    %81 = vector.load %arg5[%c0_57, %c0_58] : memref<1x384xf32, #tpu.memory_space<vmem>>, vector<1x384xf32>
    %82 = vector.broadcast %81 : vector<1x384xf32> to vector<8x384xf32>
    %83 = arith.addf %80, %82 : vector<8x384xf32>
    %cst_59 = arith.constant 0.000000e+00 : f32
    %84 = vector.broadcast %cst_59 : f32 to vector<8x384xf32>
    %85 = arith.cmpf oge, %83, %84 : vector<8x384xf32>
    %cst_60 = arith.constant 0.00999999977 : f32
    %86 = vector.broadcast %cst_60 : f32 to vector<8x384xf32>
    %87 = arith.mulf %86, %83 : vector<8x384xf32>
    %88 = arith.select %85, %83, %87 : vector<8x384xi1>, vector<8x384xf32>
    %89 = arith.truncf %88 : vector<8x384xf32> to vector<8x384xbf16>
    %c0_61 = arith.constant 0 : index
    %c0_62 = arith.constant 0 : index
    %90 = vector.load %arg6[%c0_61, %c0_62] : memref<384x128xbf16, #tpu.memory_space<vmem>>, vector<384x128xbf16>
    %cst_63 = arith.constant dense<0.000000e+00> : vector<8x128xf32>
    %91 = tpu.matmul %89, %90, %cst_63 {dimension_numbers = #tpu.dot_dimension_numbers<[1], [0], [0], [1], [0, 0, 1, 1], [], []>} : vector<8x384xbf16>, vector<384x128xbf16>, vector<8x128xf32> -> vector<8x128xf32>
    %c0_64 = arith.constant 0 : index
    %c0_65 = arith.constant 0 : index
    %92 = vector.load %arg7[%c0_64, %c0_65] : memref<1x128xf32, #tpu.memory_space<vmem>>, vector<1x128xf32>
    %93 = vector.broadcast %92 : vector<1x128xf32> to vector<8x128xf32>
    %94 = arith.addf %91, %93 : vector<8x128xf32>
    %cst_66 = arith.constant 0.000000e+00 : f32
    %95 = vector.broadcast %cst_66 : f32 to vector<8x128xf32>
    %96 = arith.cmpf oge, %94, %95 : vector<8x128xf32>
    %cst_67 = arith.constant 0.00999999977 : f32
    %97 = vector.broadcast %cst_67 : f32 to vector<8x128xf32>
    %98 = arith.mulf %97, %94 : vector<8x128xf32>
    %99 = arith.select %96, %94, %98 : vector<8x128xi1>, vector<8x128xf32>
    %100 = arith.truncf %99 : vector<8x128xf32> to vector<8x128xbf16>
    %c0_68 = arith.constant 0 : index
    %c0_69 = arith.constant 0 : index
    %101 = vector.load %arg8[%c0_68, %c0_69] : memref<128x128xbf16, #tpu.memory_space<vmem>>, vector<128x128xbf16>
    %cst_70 = arith.constant dense<0.000000e+00> : vector<8x128xf32>
    %102 = tpu.matmul %100, %101, %cst_70 {dimension_numbers = #tpu.dot_dimension_numbers<[1], [0], [0], [1], [0, 0, 1, 1], [], []>} : vector<8x128xbf16>, vector<128x128xbf16>, vector<8x128xf32> -> vector<8x128xf32>
    %c0_71 = arith.constant 0 : index
    %c0_72 = arith.constant 0 : index
    %103 = vector.load %arg9[%c0_71, %c0_72] : memref<1x128xf32, #tpu.memory_space<vmem>>, vector<1x128xf32>
    %104 = vector.broadcast %103 : vector<1x128xf32> to vector<8x128xf32>
    %105 = arith.addf %102, %104 : vector<8x128xf32>
    %c0_73 = arith.constant 0 : index
    %c0_74 = arith.constant 0 : index
    %106 = vector.load %arg10[%c0_73, %c0_74] : memref<8x128xf32, #tpu.memory_space<vmem>>, vector<8x128xf32>
    tpu.vector_store %arg10[%c0_73, %c0_74], %105 {strides = array<i32>} : memref<8x128xf32, #tpu.memory_space<vmem>>, vector<8x128xf32>,
    return
  }
  func.func @transform_0(%arg0: i32) -> (i32, i32) {
    %c0_i32 = arith.constant 0 : i32
    %c0_i32_0 = arith.constant 0 : i32
    return %arg0, %c0_i32 : i32, i32
  }
  func.func @transform_1(%arg0: i32) -> (i32, i32, i32) {
    %c0_i32 = arith.constant 0 : i32
    %c0_i32_0 = arith.constant 0 : i32
    %c0_i32_1 = arith.constant 0 : i32
    %c0_i32_2 = arith.constant 0 : i32
    return %c0_i32, %c0_i32_0, %c0_i32_1 : i32, i32, i32
  }
  func.func @transform_2(%arg0: i32) -> (i32, i32) {
    %c0_i32 = arith.constant 0 : i32
    %c0_i32_0 = arith.constant 0 : i32
    %c0_i32_1 = arith.constant 0 : i32
    return %c0_i32, %c0_i32_0 : i32, i32
  }
  func.func @transform_3(%arg0: i32) -> (i32, i32) {
    %c0_i32 = arith.constant 0 : i32
    %c0_i32_0 = arith.constant 0 : i32
    %c0_i32_1 = arith.constant 0 : i32
    return %c0_i32, %c0_i32_0 : i32, i32
  }
  func.func @transform_4(%arg0: i32) -> (i32, i32) {
    %c0_i32 = arith.constant 0 : i32
    %c0_i32_0 = arith.constant 0 : i32
    %c0_i32_1 = arith.constant 0 : i32
    return %c0_i32, %c0_i32_0 : i32, i32
  }
  func.func @transform_5(%arg0: i32) -> (i32, i32) {
    %c0_i32 = arith.constant 0 : i32
    %c0_i32_0 = arith.constant 0 : i32
    %c0_i32_1 = arith.constant 0 : i32
    return %c0_i32, %c0_i32_0 : i32, i32
  }
  func.func @transform_6(%arg0: i32) -> (i32, i32) {
    %c0_i32 = arith.constant 0 : i32
    %c0_i32_0 = arith.constant 0 : i32
    %c0_i32_1 = arith.constant 0 : i32
    return %c0_i32, %c0_i32_0 : i32, i32
  }
  func.func @transform_7(%arg0: i32) -> (i32, i32) {
    %c0_i32 = arith.constant 0 : i32
    %c0_i32_0 = arith.constant 0 : i32
    %c0_i32_1 = arith.constant 0 : i32
    return %c0_i32, %c0_i32_0 : i32, i32
  }
  func.func @transform_8(%arg0: i32) -> (i32, i32) {
    %c0_i32 = arith.constant 0 : i32
    %c0_i32_0 = arith.constant 0 : i32
    %c0_i32_1 = arith.constant 0 : i32
    return %c0_i32, %c0_i32_0 : i32, i32
  }
  func.func @transform_9(%arg0: i32) -> (i32, i32) {
    %c0_i32 = arith.constant 0 : i32
    %c0_i32_0 = arith.constant 0 : i32
    return %arg0, %c0_i32 : i32, i32
  }
}

</mosaic_0001>

<bundles_post_ra>
// kernel: _taiko_forward_impl.1
= control target key start
LH: loop header
LB: loop body
LE: loop exit
PB: predicated region body
PF: predicated region fallthrough
CT: control target
= control target key end

     0   :  { %14 = vsyncpa [#allocation3], 0  ;;  %s12482_s0 = inlined_call_operand.vmem [shape: f32[2,4560], index: 0, kind: input, shape index: {}]   ;;  %s12483_s1 = inlined_call_operand.hbm [shape: bf16[3,640,384], index: 1, kind: input, shape index: {}]   ;;  %s12484_s2 = inlined_call_operand.hbm [shape: f32[1,384], index: 2, kind: input, shape index: {}]   ;;  %s12485_s3 = inlined_call_operand.hbm [shape: bf16[1152,384], index: 3, kind: input, shape index: {}]   ;;  %s12486_s4 = inlined_call_operand.hbm [shape: f32[1,384], index: 4, kind: input, shape index: {}]   ;;  %s12487_s5 = inlined_call_operand.hbm [shape: bf16[384,128], index: 5, kind: input, shape index: {}]   ;;  %s12488_s6 = inlined_call_operand.hbm [shape: f32[1,128], index: 6, kind: input, shape index: {}]   ;;  %s12489_s7 = inlined_call_operand.hbm [shape: bf16[128,128], index: 7, kind: input, shape index: {}]   ;;  %s12490_s8 = inlined_call_operand.hbm [shape: f32[1,128], index: 8, kind: input, shape index: {}]   ;;  %s12491_s9 = inlined_call_operand.hbm [shape: f32[2,128], index: 9, kind: output, shape index: {}]  }
   0x1   :  { %15 = vsyncpa [#allocation6], 0 }
   0x2   :  { %16 = vsyncpa [#allocation9], 0 }
   0x3   :  { %17 = vsyncpa [#allocation12], 0 }
   0x4   :  { %18 = vsyncpa [#allocation15], 0 }
   0x5   :  { %19 = vsyncpa [#allocation4], 0  ;;  %s11324_s30 = smov [#allocation5]   ;;  %s11325_s11 = smov [#allocation8]  }
   0x6   :  { %s40_s10 = sshll.u32 %s11324_s30, 4  ;;  %s62_s12 = sshll.u32 %s11325_s11, 4  ;;  %s41_s10 = int_to_ptr.vmem [resolvable:$true] %s40_s10  ;;  %s63_s12 = int_to_ptr.vmem [resolvable:$true] %s62_s12 }
   0x7   :  { %s11114_s15 = scalar_lea.hbm %s12484_s2, 48 }
   0x8   :  { %p11115_p0 = scmp.ne.s32.totalorder %s12484_s2, %s11114_s15  ;;  %p11118_p1 = scmp.lt.u32.totalorder %s11114_s15, %s12484_s2 }
   0xa   :  { %p11120_p2 = pnand %p11118_p1, %p11115_p0 }
   0xc   :  { %11123 = shalt.err (!%p11120_p2)
}
   0xd   :  { %s11124_s20 = scalar_lea.vmem %s41_s10, 48  ;;  %s11128_s21 = scalar_lea.vmem %s41_s10, 64 }
   0xe   :  { %p11125_p3 = scmp.ne.s32.totalorder %s41_s10, %s11124_s20  ;;  %p11129_p4 = scmp.lt.s32.totalorder %s41_s10, %s41_s10 }
   0xf   :  { %p11130_p5 = scmp.lt.s32.totalorder %s11128_s21, %s11124_s20 }
  0x11   :  { %p11131_p6 = por %p11130_p5, %p11129_p4 }
  0x13   :  { %p11132_p7 = pnand %p11131_p6, %p11125_p3 }
  0x15   :  { %11135 = shalt.err (!%p11132_p7)
}
  0x16   :  { %43 = dma.hbm_to_vmem [thread:$0]  %s12484_s2, 48, %s41_s10, [#allocation6]  }
  0x17   :  { %s11136_s26 = scalar_lea.hbm %s12486_s4, 48 }
  0x18   :  { %p11137_p8 = scmp.ne.s32.totalorder %s12486_s4, %s11136_s26  ;;  %p11140_p9 = scmp.lt.u32.totalorder %s11136_s26, %s12486_s4 }
  0x1a   :  { %p11142_p10 = pnand %p11140_p9, %p11137_p8 }
  0x1c   :  { %11145 = shalt.err (!%p11142_p10)
}
  0x1d   :  { %s11146_s11 = scalar_lea.vmem %s63_s12, 48  ;;  %s11150_s13 = scalar_lea.vmem %s63_s12, 64 }
  0x1e   :  { %p11147_p11 = scmp.ne.s32.totalorder %s63_s12, %s11146_s11  ;;  %p11151_p12 = scmp.lt.s32.totalorder %s63_s12, %s63_s12 }
  0x1f   :  { %p11152_p13 = scmp.lt.s32.totalorder %s11150_s13, %s11146_s11 }
  0x21   :  { %p11153_p0 = por %p11152_p13, %p11151_p12 }
  0x23   :  { %p11154_p1 = pnand %p11153_p0, %p11147_p11 }
  0x25   :  { %11157 = shalt.err (!%p11154_p1)
}
  0x26   :  { %65 = dma.hbm_to_vmem [thread:$0]  %s12486_s4, 48, %s63_s12, [#allocation9]  }
  0x27   :  { %s11326_s14 = smov [#allocation11]   ;;  %s11327_s16 = smov [#allocation2]  }
  0x28   :  { %s84_s15 = sshll.u32 %s11326_s14, 4  ;;  %s27_s17 = sshll.u32 %s11327_s16, 4  ;;  %s85_s15 = int_to_ptr.vmem [resolvable:$true] %s84_s15  ;;  %s11420_s17 = int_to_ptr.vmem [resolvable:$true] %s27_s17 }
  0x29   :  { %s11158_s20 = scalar_lea.hbm %s12488_s6, 16 }
  0x2a   :  { %p11159_p2 = scmp.ne.s32.totalorder %s12488_s6, %s11158_s20  ;;  %p11162_p3 = scmp.lt.u32.totalorder %s11158_s20, %s12488_s6 }
  0x2c   :  { %p11164_p4 = pnand %p11162_p3, %p11159_p2 }
  0x2e   :  { %11167 = shalt.err (!%p11164_p4)
}
  0x2f   :  { %s11168_s4 = scalar_lea.vmem %s85_s15, 16  ;;  %s11172_s12 = scalar_lea.vmem %s85_s15, 32 }
  0x30   :  { %p11169_p5 = scmp.ne.s32.totalorder %s85_s15, %s11168_s4  ;;  %p11173_p6 = scmp.lt.s32.totalorder %s85_s15, %s85_s15 }
  0x31   :  { %p11174_p7 = scmp.lt.s32.totalorder %s11172_s12, %s11168_s4 }
  0x33   :  { %p11175_p8 = por %p11174_p7, %p11173_p6 }
  0x35   :  { %p11176_p9 = pnand %p11175_p8, %p11169_p5 }
  0x37   :  { %11179 = shalt.err (!%p11176_p9)
}
  0x38   :  { %87 = dma.hbm_to_vmem [thread:$0]  %s12488_s6, 16, %s85_s15, [#allocation12]  }
  0x39   :  { %s11180_s29 = scalar_lea.hbm %s12483_s1, 46080 }
  0x3a   :  { %p11181_p10 = scmp.ne.s32.totalorder %s12483_s1, %s11180_s29  ;;  %p11184_p11 = scmp.lt.u32.totalorder %s11180_s29, %s12483_s1 }
  0x3c   :  { %p11186_p12 = pnand %p11184_p11, %p11181_p10 }
  0x3e   :  { %11189 = shalt.err (!%p11186_p12)
}
  0x3f   :  { %s11190_s10 = scalar_lea.vmem %s11420_s17, 46080  ;;  %p11195_p0 = scmp.lt.s32.totalorder %s11420_s17, %s11420_s17 }
  0x40   :  { %p11191_p13 = scmp.ne.s32.totalorder %s11420_s17, %s11190_s10  ;;  %p11196_p1 = scmp.lt.s32.totalorder %s11190_s10, %s11190_s10 }
  0x42   :  { %p11197_p2 = por %p11196_p1, %p11195_p0 }
  0x44   :  { %p11198_p3 = pnand %p11197_p2, %p11191_p13 }
  0x46   :  { %11201 = shalt.err (!%p11198_p3)
}
  0x47   :  { %s11328_s6 = smov 192   ;;  %s11329_s14 = smov 12  }
  0x48   :  { %33 = dma.hbm_to_vmem [thread:$0]  %s12483_s1, 46080, %s11420_s17, [#allocation3], %s11328_s6, %s11328_s6, %s11329_s14  }
  0x49   :  { %s11330_s18 = smov [#allocation7]   ;;  %s11331_s20 = smov [#allocation10]  }
  0x4a   :  { %s49_s19 = sshll.u32 %s11330_s18, 4  ;;  %s71_s21 = sshll.u32 %s11331_s20, 4  ;;  %s50_s19 = int_to_ptr.vmem [resolvable:$true] %s49_s19  ;;  %s11451_s21 = int_to_ptr.vmem [resolvable:$true] %s71_s21 }
  0x4b   :  { %s11202_s24 = scalar_lea.hbm %s12485_s3, 27648 }
  0x4c   :  { %p11203_p4 = scmp.ne.s32.totalorder %s12485_s3, %s11202_s24  ;;  %p11206_p5 = scmp.lt.u32.totalorder %s11202_s24, %s12485_s3 }
  0x4e   :  { %p11208_p6 = pnand %p11206_p5, %p11203_p4 }
  0x50   :  { %11211 = shalt.err (!%p11208_p6)
}
  0x51   :  { %s11212_s1 = scalar_lea.vmem %s50_s19, 27648  ;;  %p11217_p8 = scmp.lt.s32.totalorder %s50_s19, %s50_s19 }
  0x52   :  { %p11213_p7 = scmp.ne.s32.totalorder %s50_s19, %s11212_s1  ;;  %p11218_p9 = scmp.lt.s32.totalorder %s11212_s1, %s11212_s1 }
  0x54   :  { %p11219_p10 = por %p11218_p9, %p11217_p8 }
  0x56   :  { %p11220_p11 = pnand %p11219_p10, %p11213_p7 }
  0x58   :  { %11223 = shalt.err (!%p11220_p11)
}
  0x59   :  { %55 = dma.hbm_to_vmem [thread:$0]  %s12485_s3, 27648, %s50_s19, [#allocation6], %s11328_s6, %s11328_s6, %s11329_s14  }
  0x5a   :  { %s11224_s30 = scalar_lea.hbm %s12487_s5, 3072 }
  0x5b   :  { %p11225_p12 = scmp.ne.s32.totalorder %s12487_s5, %s11224_s30  ;;  %p11228_p13 = scmp.lt.u32.totalorder %s11224_s30, %s12487_s5 }
  0x5d   :  { %p11230_p0 = pnand %p11228_p13, %p11225_p12 }
  0x5f   :  { %11233 = shalt.err (!%p11230_p0)
}
  0x60   :  { %s11234_s15 = scalar_lea.vmem %s11451_s21, 3072  ;;  %p11239_p2 = scmp.lt.s32.totalorder %s11451_s21, %s11451_s21 }
  0x61   :  { %p11235_p1 = scmp.ne.s32.totalorder %s11451_s21, %s11234_s15  ;;  %p11240_p3 = scmp.lt.s32.totalorder %s11234_s15, %s11234_s15 }
  0x63   :  { %p11241_p4 = por %p11240_p3, %p11239_p2 }
  0x65   :  { %p11242_p5 = pnand %p11241_p4, %p11235_p1 }
  0x67   :  { %11245 = shalt.err (!%p11242_p5)
}
  0x68   :  { %s11332_s3 = smov 64   ;;  %s11333_s6 = smov 4  }
  0x69   :  { %77 = dma.hbm_to_vmem [thread:$0]  %s12487_s5, 3072, %s11451_s21, [#allocation9], %s11332_s3, %s11332_s3, %s11333_s6  }
  0x6a   :  { %s11334_s18 = smov [#allocation13]   ;;  %s11335_s20 = smov [#allocation14]  }
  0x6b   :  { %s93_s19 = sshll.u32 %s11334_s18, 4  ;;  %s106_s22 = sshll.u32 %s11335_s20, 4  ;;  %s94_s19 = int_to_ptr.vmem [resolvable:$true] %s93_s19  ;;  %s107_s22 = int_to_ptr.vmem [resolvable:$true] %s106_s22 }
  0x6c   :  { %s11246_s4 = scalar_lea.hbm %s12489_s7, 1024 }
  0x6d   :  { %p11247_p6 = scmp.ne.s32.totalorder %s12489_s7, %s11246_s4  ;;  %p11250_p7 = scmp.lt.u32.totalorder %s11246_s4, %s12489_s7 }
  0x6f   :  { %p11252_p8 = pnand %p11250_p7, %p11247_p6 }
  0x71   :  { %11255 = shalt.err (!%p11252_p8)
}
  0x72   :  { %s11256_s5 = scalar_lea.vmem %s94_s19, 1024  ;;  %p11261_p10 = scmp.lt.s32.totalorder %s94_s19, %s94_s19 }
  0x73   :  { %p11257_p9 = scmp.ne.s32.totalorder %s94_s19, %s11256_s5  ;;  %p11262_p11 = scmp.lt.s32.totalorder %s11256_s5, %s11256_s5 }
  0x75   :  { %p11263_p12 = por %p11262_p11, %p11261_p10 }
  0x77   :  { %p11264_p13 = pnand %p11263_p12, %p11257_p9 }
  0x79   :  { %11267 = shalt.err (!%p11264_p13)
}
  0x7a   :  { %99 = dma.hbm_to_vmem [thread:$0]  %s12489_s7, 1024, %s94_s19, [#allocation12], %s11332_s3, %s11332_s3, %s11333_s6  }
  0x7b   :  { %s11268_s29 = scalar_lea.hbm %s12490_s8, 16 }
  0x7c   :  { %p11269_p0 = scmp.ne.s32.totalorder %s12490_s8, %s11268_s29  ;;  %p11272_p1 = scmp.lt.u32.totalorder %s11268_s29, %s12490_s8 }
  0x7e   :  { %p11274_p2 = pnand %p11272_p1, %p11269_p0 }
  0x80   :  { %11277 = shalt.err (!%p11274_p2)
}
  0x81   :  { %s11278_s10 = scalar_lea.vmem %s107_s22, 16  ;;  %s11282_s15 = scalar_lea.vmem %s107_s22, 32 }
  0x82   :  { %p11279_p3 = scmp.ne.s32.totalorder %s107_s22, %s11278_s10  ;;  %p11283_p4 = scmp.lt.s32.totalorder %s107_s22, %s107_s22 }
  0x83   :  { %p11284_p5 = scmp.lt.s32.totalorder %s11282_s15, %s11278_s10 }
  0x85   :  { %p11285_p6 = por %p11284_p5, %p11283_p4 }
  0x87   :  { %p11286_p7 = pnand %p11285_p6, %p11279_p3 }
  0x89   :  { %11289 = shalt.err (!%p11286_p7)
}
  0x8a   :  { %109 = dma.hbm_to_vmem [thread:$0]  %s12490_s8, 16, %s107_s22, [#allocation15]  }
  0x8b   :  { %11312 = dma.done.wait [#allocation3], 46080  }
  0x8c   :  { %11313 = vsyncadd [#allocation3], 4294921216 }
  0x8d   :  { %11314 = dma.done.wait [#allocation6], 27696  }
  0x8e   :  { %11315 = vsyncadd [#allocation6], 4294939600 }
  0x8f   :  { %11316 = dma.done.wait [#allocation9], 3120  }
  0x90   :  { %11317 = vsyncadd [#allocation9], 4294964176 }
  0x91   :  { %11318 = dma.done.wait [#allocation12], 1040  }
  0x92   :  { %11319 = vsyncadd [#allocation12], 4294966256 }
  0x93   :  { %11320 = dma.done.wait [#allocation15], 16  }
  0x94   :  { %11321 = vsyncadd [#allocation15], 4294967280  ;;  %v158_v0 = vlaneseq  ;;  %v11336_v1 = vmov 1983009808   ;;  %v9522_v6 = vld [vmem:[%s12482_s0 + $0x16] ss:$72 sps:$4 sm:$0xff]  }
  0x95   :  { %v156_v2 = vunpack.c.l.s4 %v11336_v1  ;;  %v9524_v7 = vld [vmem:[%s12482_s0 + $0x1a] ss:$72 sps:$4 sm:$0xff]   ;;  %v9525_v8 = vld [vmem:[%s12482_s0 + $0xa6] ss:$72 sps:$4 sm:$0xff]   ;;  %v9527_v9 = vld [vmem:[%s12482_s0 + $0xaa] ss:$72 sps:$4 sm:$0xff]  }
  0x96   :  { %v11510_v3 = vshrl.u32 %v158_v0, 7  ;;  %v9528_v14 = vld [vmem:[%s12482_s0 + $0x1e] ss:$72 sps:$4 sm:$0xff]   ;;  %v9529_v15 = vld [vmem:[%s12482_s0 + $0xae] ss:$72 sps:$4 sm:$0xff]   ;;  %s11337_s26 = smov 16  }
  0x97   :  { %v157_v4 = vunpack.c.0.s8 %v156_v2  ;;  %v9530_v16 = vld [vmem:[#allocation2 + $0x3c4] ss:$12 sps:$4 sm:$0xff]   ;;  %v9532_v17 = vld [vmem:[#allocation2 + $0x3c0] ss:$12 sps:$4 sm:$0xff]   ;;  %v9533_v22 = vld [vmem:[#allocation2 + $0x3dc] ss:$12 sps:$4 sm:$0xff]  }
  0x98   :  { %1286 = vmatprep.subr.bf16.mxu0 %v9530_v16  ;;  %v9535_v24 = vld [vmem:[#allocation2 + $0x544] ss:$12 sps:$4 sm:$0xff]   ;;  %v9538_v28 = vld [vmem:[#allocation2 + $0x540] ss:$12 sps:$4 sm:$0xff]   ;;  %v9541_v34 = vld [vmem:[#allocation2 + $0x55c] ss:$12 sps:$4 sm:$0xff]  }
  0x99   :  { %v11513_v5 = vsub.s32 %v157_v4, %v11510_v3  ;;  %1287 = vmatpush1.bf16.msra.mxu0 %v9532_v17  ;;  %v9537_v27 = vld [vmem:[#allocation2 + $0x3d8] ss:$12 sps:$4 sm:$0xff]   ;;  %1327 = vmatprep.subr.bf16.mxu1 %v9535_v24  ;;  %v9539_v30 = vld [vmem:[#allocation2 + $0x3f4] ss:$12 sps:$4 sm:$0xff]   ;;  %v9543_v37 = vld [vmem:[#allocation2 + $0x3f0] ss:$12 sps:$4 sm:$0xff]  }
  0x9a   :  { %1288 = vmatprep.subr.bf16.mxu0 %v9533_v22  ;;  %1328 = vmatpush1.bf16.msra.mxu1 %v9538_v28  ;;  %v9544_v36 = vld [vmem:[#allocation2 + $0x558] ss:$12 sps:$4 sm:$0xff]   ;;  %v9547_v39 = vld [vmem:[#allocation2 + $0x574] ss:$12 sps:$4 sm:$0xff]   ;;  %v9550_v42 = vld [vmem:[#allocation2 + $0x570] ss:$12 sps:$4 sm:$0xff]  }
  0x9b   :  { %v400_v10 = vrot.slane %v9522_v6, %v11513_v5  ;;  %v407_v11 = vrot.slane %v9524_v7, %v11513_v5  ;;  %v414_v12 = vrot.slane %v9525_v8, %v11513_v5  ;;  %v421_v13 = vrot.slane %v9527_v9, %v11513_v5  ;;  %1329 = vmatprep.subr.bf16.mxu1 %v9541_v34  ;;  %v9545_v38 = vld [vmem:[#allocation2 + $0x40c] ss:$12 sps:$4 sm:$0xff]   ;;  %v9549_v43 = vld [vmem:[#allocation2 + $0x408] ss:$12 sps:$4 sm:$0xff]   ;;  %v9551_v45 = vld [vmem:[#allocation2 + $0x424] ss:$12 sps:$4 sm:$0xff]  }
  0x9c   :  { %v434_v21 = vrot.slane %v9528_v14, %v11513_v5  ;;  %v441_v23 = vrot.slane %v9529_v15, %v11513_v5  ;;  %v9553_v44 = vld [vmem:[#allocation2 + $0x58c] ss:$12 sps:$4 sm:$0xff]   ;;  %v9556_v47 = vld [vmem:[#allocation2 + $0x588] ss:$12 sps:$4 sm:$0xff]   ;;  %v9559_v48 = vld [vmem:[#allocation2 + $0x5a4] ss:$12 sps:$4 sm:$0xff]  }
  0x9d   :  { %v423_v18 = vcombine.high %v400_v10, %v414_v12  ;;  %v422_v19 = vcombine.low %v400_v10, %v414_v12  ;;  %v424_v20 = vcombine.low %v407_v11, %v421_v13  ;;  %v425_v32 = vcombine.high %v407_v11, %v421_v13  ;;  %1289 = vmatpush1.bf16.msra.mxu0 %v9537_v27  ;;  %v9555_v46 = vld [vmem:[#allocation2 + $0x420] ss:$12 sps:$4 sm:$0xff]   ;;  %v9557_v49 = vld [vmem:[#allocation2 + $0x43c] ss:$12 sps:$4 sm:$0xff]   ;;  %v9561_v51 = vld [vmem:[#allocation2 + $0x438] ss:$12 sps:$4 sm:$0xff]  }
  0x9e   :  { %v442_v29 = vcombine.low %v434_v21, %v441_v23  ;;  %v443_v33 = vcombine.high %v434_v21, %v441_v23  ;;  %1290 = vmatprep.subr.bf16.mxu0 %v9539_v30  ;;  %1330 = vmatpush1.bf16.msra.mxu1 %v9544_v36  ;;  %v9562_v50 = vld [vmem:[#allocation2 + $0x5a0] ss:$12 sps:$4 sm:$0xff]   ;;  %v9565_v52 = vld [vmem:[#allocation2 + $0x5bc] ss:$12 sps:$4 sm:$0xff]   ;;  %v9568_v55 = vld [vmem:[#allocation2 + $0x5b8] ss:$12 sps:$4 sm:$0xff]  }
  0x9f   :  { %v451_v25 = vpack.c.bf16 %v423_v18, %v423_v18  ;;  %v450_v26 = vpack.c.bf16 %v422_v19, %v422_v19  ;;  %v452_v31 = vpack.c.bf16 %v424_v20, %v424_v20  ;;  %v453_v40 = vpack.c.bf16 %v425_v32, %v425_v32  ;;  %1331 = vmatprep.subr.bf16.mxu1 %v9547_v39  ;;  %v9563_v53 = vld [vmem:[#allocation2 + $0x454] ss:$12 sps:$4 sm:$0xff]   ;;  %v9567_v54 = vld [vmem:[#allocation2 + $0x450] ss:$12 sps:$4 sm:$0xff]   ;;  %v9569_v57 = vld [vmem:[#allocation2 + $0x46c] ss:$12 sps:$4 sm:$0xff]  }
  0xa0   :  { %v454_v35 = vpack.c.bf16 %v442_v29, %v442_v29  ;;  %v455_v41 = vpack.c.bf16 %v443_v33, %v443_v33  ;;  %v9571_v56 = vld [vmem:[#allocation2 + $0x5d4] ss:$12 sps:$4 sm:$0xff]   ;;  %v9574_v58 = vld [vmem:[#allocation2 + $0x5d0] ss:$12 sps:$4 sm:$0xff]   ;;  %v9577_v60 = vld [vmem:[#allocation2 + $0x5ec] ss:$12 sps:$4 sm:$0xff]  }
  0xa1   :  { %625 = vrot.lane.b32.xlu0 %v451_v25, %s11337_s26  ;;  %623 = vrot.lane.b32.xlu1 %v450_v26, %s11337_s26  ;;  %v9573_v59 = vld [vmem:[#allocation2 + $0x468] ss:$12 sps:$4 sm:$0xff]   ;;  %v9575_v61 = vld [vmem:[#allocation2 + $0x484] ss:$12 sps:$4 sm:$0xff]   ;;  %v9579_v62 = vld [vmem:[#allocation2 + $0x480] ss:$12 sps:$4 sm:$0xff]  }
  0xa2   :  { %1291 = vmatpush1.bf16.msra.mxu0 %v9543_v37  ;;  %1332 = vmatpush1.bf16.msra.mxu1 %v9550_v42  ;;  %v9580_v63 = vld [vmem:[#allocation2 + $0x5e8] ss:$12 sps:$4 sm:$0xff]   ;;  %v9583_v0 = vld [vmem:[#allocation2 + $0x604] ss:$12 sps:$4 sm:$0xff]   ;;  %v9586_v2 = vld [vmem:[#allocation2 + $0x600] ss:$12 sps:$4 sm:$0xff]  }
  0xa3   :  { %1292 = vmatprep.subr.bf16.mxu0 %v9545_v38  ;;  %1333 = vmatprep.subr.bf16.mxu1 %v9553_v44  ;;  %v9581_v1 = vld [vmem:[#allocation2 + $0x49c] ss:$12 sps:$4 sm:$0xff]   ;;  %v9585_v4 = vld [vmem:[#allocation2 + $0x498] ss:$12 sps:$4 sm:$0xff]   ;;  %v9587_v7 = vld [vmem:[#allocation2 + $0x4b4] ss:$12 sps:$4 sm:$0xff]  }
  0xa4   :  { %v9589_v6 = vld [vmem:[#allocation2 + $0x61c] ss:$12 sps:$4 sm:$0xff]   ;;  %v9592_v9 = vld [vmem:[#allocation2 + $0x618] ss:$12 sps:$4 sm:$0xff]   ;;  %v9595_v10 = vld [vmem:[#allocation2 + $0x634] ss:$12 sps:$4 sm:$0xff]  }
  0xa5   :  { %627 = vrot.lane.b32.xlu0 %v452_v31, %s11337_s26  ;;  %631 = vrot.lane.b32.xlu1 %v454_v35, %s11337_s26  ;;  %v9591_v8 = vld [vmem:[#allocation2 + $0x4b0] ss:$12 sps:$4 sm:$0xff]   ;;  %v9593_v11 = vld [vmem:[#allocation2 + $0x4cc] ss:$12 sps:$4 sm:$0xff]   ;;  %v9597_v13 = vld [vmem:[#allocation2 + $0x4c8] ss:$12 sps:$4 sm:$0xff]  }
  0xa6   :  { %1293 = vmatpush1.bf16.msra.mxu0 %v9549_v43  ;;  %1334 = vmatpush1.bf16.msra.mxu1 %v9556_v47  ;;  %v9598_v12 = vld [vmem:[#allocation2 + $0x630] ss:$12 sps:$4 sm:$0xff]   ;;  %v9601_v14 = vld [vmem:[#allocation2 + $0x64c] ss:$12 sps:$4 sm:$0xff]   ;;  %v9604_v17 = vld [vmem:[#allocation2 + $0x648] ss:$12 sps:$4 sm:$0xff]  }
  0xa7   :  { %1294 = vmatprep.subr.bf16.mxu0 %v9551_v45  ;;  %1335 = vmatprep.subr.bf16.mxu1 %v9559_v48  ;;  %v9599_v15 = vld [vmem:[#allocation2 + $0x4e4] ss:$12 sps:$4 sm:$0xff]   ;;  %v9603_v16 = vld [vmem:[#allocation2 + $0x4e0] ss:$12 sps:$4 sm:$0xff]   ;;  %v9605_v19 = vld [vmem:[#allocation2 + $0x4fc] ss:$12 sps:$4 sm:$0xff]  }
  0xa8   :  { %v9607_v18 = vld [vmem:[#allocation2 + $0x664] ss:$12 sps:$4 sm:$0xff]   ;;  %v9610_v20 = vld [vmem:[#allocation2 + $0x660] ss:$12 sps:$4 sm:$0xff]   ;;  %v9613_v22 = vld [vmem:[#allocation2 + $0x67c] ss:$12 sps:$4 sm:$0xff]  }
  0xa9   :  { %629 = vrot.lane.b32.xlu1 %v453_v40, %s11337_s26  ;;  %633 = vrot.lane.b32.xlu0 %v455_v41, %s11337_s26  ;;  %v9609_v21 = vld [vmem:[#allocation2 + $0x4f8] ss:$12 sps:$4 sm:$0xff]   ;;  %v9611_v23 = vld [vmem:[#allocation2 + $0x514] ss:$12 sps:$4 sm:$0xff]   ;;  %v9615_v24 = vld [vmem:[#allocation2 + $0x510] ss:$12 sps:$4 sm:$0xff]  }
  0xaa   :  { %1295 = vmatpush1.bf16.msra.mxu0 %v9555_v46  ;;  %1336 = vmatpush1.bf16.msra.mxu1 %v9562_v50  ;;  %v9616_v25 = vld [vmem:[#allocation2 + $0x678] ss:$12 sps:$4 sm:$0xff]   ;;  %v9619_v26 = vld [vmem:[#allocation2 + $0x694] ss:$12 sps:$4 sm:$0xff]   ;;  %v9622_v29 = vld [vmem:[#allocation2 + $0x690] ss:$12 sps:$4 sm:$0xff]  }
  0xab   :  { %1296 = vmatprep.subr.bf16.mxu0 %v9557_v49  ;;  %1337 = vmatprep.subr.bf16.mxu1 %v9565_v52  ;;  %v9617_v27 = vld [vmem:[#allocation2 + $0x52c] ss:$12 sps:$4 sm:$0xff]   ;;  %v9621_v28 = vld [vmem:[#allocation2 + $0x528] ss:$12 sps:$4 sm:$0xff]   ;;  %v9627_v31 = vld [vmem:[#allocation2 + $0x6c4] ss:$12 sps:$4 sm:$0xff]  }
  0xac   :  { %v9623_v30 = vld [vmem:[#allocation2 + $0x6ac] ss:$12 sps:$4 sm:$0xff]   ;;  %v9628_v32 = vld [vmem:[#allocation2 + $0x6a8] ss:$12 sps:$4 sm:$0xff]   ;;  %vm635_vm0 = vcmask 130048   ;;  %v11338_v45 = vmov 0  }
  0xad   :  { %v9632_v33 = vld [vmem:[#allocation2 + $0x488] ss:$12 sps:$4 sm:$0xff]   ;;  %v9625_v38 = vld [vmem:[#allocation2 + $0x6c0] ss:$12 sps:$4 sm:$0xff]   ;;  %v9629_v43 = vld [vmem:[#allocation2 + $0x6d8] ss:$12 sps:$4 sm:$0xff]  }
  0xae   :  { %1297 = vmatpush1.bf16.msra.mxu0 %v9561_v51  ;;  %1338 = vmatpush1.bf16.msra.mxu1 %v9568_v55  ;;  %v9631_v40 = vld [vmem:[#allocation2 + $0x6dc] ss:$12 sps:$4 sm:$0xff]   ;;  %v9636_v48 = vld [vmem:[#allocation2 + $0x6f4] ss:$12 sps:$4 sm:$0xff]   ;;  %v9641_v52 = vld [vmem:[#allocation2 + $0x70c] ss:$12 sps:$4 sm:$0xff]  }
  0xaf   :  { %1298 = vmatprep.subr.bf16.mxu0 %v9563_v53  ;;  %1339 = vmatprep.subr.bf16.mxu1 %v9571_v56  ;;  %v9633_v44 = vld [vmem:[#allocation2 + $0x3c8] ss:$12 sps:$4 sm:$0xff]   ;;  %v9637_v49 = vld [vmem:[#allocation2 + $0x4a0] ss:$12 sps:$4 sm:$0xff]   ;;  %v9634_v50 = vld [vmem:[#allocation2 + $0x6f0] ss:$12 sps:$4 sm:$0xff]  }
  0xb0   :  { %v9638_v51 = vld [vmem:[#allocation2 + $0x3e0] ss:$12 sps:$4 sm:$0xff]   ;;  %v9642_v53 = vld [vmem:[#allocation2 + $0x4b8] ss:$12 sps:$4 sm:$0xff]   ;;  %s11339_s15 = smov 32   ;;  %vm11341_vm1 = vmmov 0  }
  0xb1   :  { %v9643_v55 = vld [vmem:[#allocation2 + $0x3f8] ss:$12 sps:$4 sm:$0xff]   ;;  %s11342_s29 = smov 80   ;;  %vm2673_vm2 = vcmask 261120   ;;  %vm3784_vm3 = vcmask 654336   ;;  %vm4056_vm4 = vcmask 523264  }
  0xb2   :  { %1299 = vmatpush1.bf16.msra.mxu0 %v9567_v54  ;;  %1340 = vmatpush1.bf16.msra.mxu1 %v9574_v58  ;;  %v9639_v54 = vld [vmem:[#allocation2 + $0x708] ss:$12 sps:$4 sm:$0xff]   ;;  %v9646_v56 = vld [vmem:[#allocation2 + $0x724] ss:$12 sps:$4 sm:$0xff]   ;;  %v9644_v58 = vld [vmem:[#allocation2 + $0x720] ss:$12 sps:$4 sm:$0xff]  }
  0xb3   :  { %1300 = vmatprep.subr.bf16.mxu0 %v9569_v57  ;;  %1341 = vmatprep.subr.bf16.mxu1 %v9577_v60  ;;  %v9647_v57 = vld [vmem:[#allocation2 + $0x4d0] ss:$12 sps:$4 sm:$0xff]   ;;  %s11343_s11 = smov 96   ;;  %vm4410_vm5 = vcmask 785408  }
  0xb4   :  { %v9651_v60 = vld [vmem:[#allocation2 + $0x73c] ss:$12 sps:$4 sm:$0xff]  }
  0xb6   :  { %1301 = vmatpush1.bf16.msra.mxu0 %v9573_v59  ;;  %1342 = vmatpush1.bf16.msra.mxu1 %v9580_v63  ;;  %v9648_v59 = vld [vmem:[#allocation2 + $0x410] ss:$12 sps:$4 sm:$0xff]  }
  0xb7   :  { %1302 = vmatprep.subr.bf16.mxu0 %v9575_v61  ;;  %1343 = vmatprep.subr.bf16.mxu1 %v9583_v0  ;;  %v9652_v61 = vld [vmem:[#allocation2 + $0x4e8] ss:$12 sps:$4 sm:$0xff]  }
  0xb8   :  { %v9795_v63 = vld [vmem:[%s12482_s0 + $0x32] ss:$72 sps:$4 sm:$0xff]   ;;  %v9797_v0 = vld [vmem:[%s12482_s0 + $0xc2] ss:$72 sps:$4 sm:$0xff]  }
  0xba   :  { %1303 = vmatpush1.bf16.msra.mxu0 %v9579_v62  ;;  %1344 = vmatpush1.bf16.msra.mxu1 %v9586_v2  ;;  %v9649_v62 = vld [vmem:[#allocation2 + $0x738] ss:$12 sps:$4 sm:$0xff]   ;;  %v9656_v2 = vld [vmem:[#allocation2 + $0x754] ss:$12 sps:$4 sm:$0xff]  }
  0xbb   :  { %1304 = vmatprep.subr.bf16.mxu0 %v9581_v1  ;;  %1345 = vmatprep.subr.bf16.mxu1 %v9589_v6  ;;  %v9653_v1 = vld [vmem:[#allocation2 + $0x428] ss:$12 sps:$4 sm:$0xff]   ;;  %v2445_v6 = vrot.slane %v9795_v63, %v11513_v5  ;;  %v9686_v63 = vld [vmem:[#allocation2 + $0x6b0] ss:$12 sps:$4 sm:$0xff]  }
  0xbe   :  { %1305 = vmatpush1.bf16.msra.mxu0 %v9585_v4  ;;  %1346 = vmatpush1.bf16.msra.mxu1 %v9592_v9  ;;  %v9657_v4 = vld [vmem:[#allocation2 + $0x500] ss:$12 sps:$4 sm:$0xff]  }
  0xbf   :  { %1306 = vmatprep.subr.bf16.mxu0 %v9587_v7  ;;  %1347 = vmatprep.subr.bf16.mxu1 %v9595_v10  ;;  %v2459_v7 = vrot.slane %v9797_v0, %v11513_v5  ;;  %v9804_v9 = vld [vmem:[%s12482_s0 + $0xbe] ss:$72 sps:$4 sm:$0xff]  }
  0xc0   :  { %v9654_v10 = vld [vmem:[#allocation2 + $0x750] ss:$12 sps:$4 sm:$0xff]   ;;  %v9793_v0 = vld [vmem:[%s12482_s0 + $0x4] ss:$72 sps:$4 sm:$0xff]  }
  0xc2   :  { %1307 = vmatpush1.bf16.msra.mxu0 %v9591_v8  ;;  %1348 = vmatpush1.bf16.msra.mxu1 %v9598_v12  ;;  %v9803_v8 = vld [vmem:[%s12482_s0 + $0x2e] ss:$72 sps:$4 sm:$0xff]   ;;  %v2462_v12 = vcombine.low %v2445_v6, %v2459_v7 }
  0xc3   :  { %1308 = vmatprep.subr.bf16.mxu0 %v9593_v11  ;;  %1349 = vmatprep.subr.bf16.mxu1 %v9601_v14  ;;  %v9658_v11 = vld [vmem:[#allocation2 + $0x440] ss:$12 sps:$4 sm:$0xff]   ;;  %v2452_v14 = vrot.slane %v9804_v9, %v11513_v5 }
  0xc4   :  { %v9689_v9 = vld [vmem:[#allocation2] ss:$12 sps:$4 sm:$0xff]  }
  0xc6   :  { %1309 = vmatpush1.bf16.msra.mxu0 %v9597_v13  ;;  %1350 = vmatpush1.bf16.msra.mxu1 %v9604_v17  ;;  %v2438_v13 = vrot.slane %v9803_v8, %v11513_v5  ;;  %v9807_v17 = vld [vmem:[%s12482_s0 + $0xc6] ss:$72 sps:$4 sm:$0xff]  }
  0xc7   :  { %1310 = vmatprep.subr.bf16.mxu0 %v9599_v15  ;;  %1351 = vmatprep.subr.bf16.mxu1 %v9607_v18  ;;  %v2490_v15 = vpack.c.bf16 %v2462_v12, %v2462_v12  ;;  %v9661_v18 = vld [vmem:[#allocation2 + $0x76c] ss:$12 sps:$4 sm:$0xff]   ;;  %v9691_v8 = vld [vmem:[#allocation2 + $0x4] ss:$12 sps:$4 sm:$0xff]  }
  0xc9   :  { %2665 = vrot.lane.b32.xlu1 %v2490_v15, %s11339_s15  ;;  %v9698_v15 = vld [vmem:[#allocation2 + $0x184] ss:$12 sps:$4 sm:$0xff]  }
  0xca   :  { %1311 = vmatpush1.bf16.msra.mxu0 %v9603_v16  ;;  %1352 = vmatpush1.bf16.msra.mxu1 %v9610_v20  ;;  %v9806_v16 = vld [vmem:[%s12482_s0 + $0x36] ss:$72 sps:$4 sm:$0xff]   ;;  %v2461_v20 = vcombine.high %v2438_v13, %v2452_v14 }
  0xcb   :  { %1312 = vmatprep.subr.bf16.mxu0 %v9605_v19  ;;  %1353 = vmatprep.subr.bf16.mxu1 %v9613_v22  ;;  %v9662_v19 = vld [vmem:[#allocation2 + $0x518] ss:$12 sps:$4 sm:$0xff]   ;;  %v2472_v22 = vrot.slane %v9806_v16, %v11513_v5 }
  0xcc   :  { %v9693_v16 = vld [vmem:[#allocation2 + $0x18] ss:$12 sps:$4 sm:$0xff]  }
  0xce   :  { %1313 = vmatpush1.bf16.msra.mxu0 %v9609_v21  ;;  %1354 = vmatpush1.bf16.msra.mxu1 %v9616_v25  ;;  %v9659_v21 = vld [vmem:[#allocation2 + $0x768] ss:$12 sps:$4 sm:$0xff]   ;;  %v9663_v25 = vld [vmem:[#allocation2 + $0x458] ss:$12 sps:$4 sm:$0xff]  }
  0xcf   :  { %1314 = vmatprep.subr.bf16.mxu0 %v9611_v23  ;;  %1355 = vmatprep.subr.bf16.mxu1 %v9619_v26  ;;  %v2479_v23 = vrot.slane %v9807_v17, %v11513_v5  ;;  %v2489_v26 = vpack.c.bf16 %v2461_v20, %v2461_v20  ;;  %v9701_v20 = vld [vmem:[#allocation2 + $0x34] ss:$12 sps:$4 sm:$0xff]  }
  0xd1   :  { %2663 = vrot.lane.b32.xlu0 %v2489_v26, %s11339_s15  ;;  %v9705_v26 = vld [vmem:[#allocation2 + $0x48] ss:$12 sps:$4 sm:$0xff]  }
  0xd2   :  { %1315 = vmatpush1.bf16.msra.mxu0 %v9615_v24  ;;  %1356 = vmatpush1.bf16.msra.mxu1 %v9622_v29  ;;  %v2460_v24 = vcombine.low %v2438_v13, %v2452_v14  ;;  %v9692_v13 = vld [vmem:[#allocation2 + $0x770] ss:$12 sps:$4 sm:$0xff]  }
  0xd3   :  { %1316 = vmatprep.subr.bf16.mxu0 %v9617_v27  ;;  %1357 = vmatprep.subr.bf16.mxu1 %v9623_v30  ;;  %v9664_v27 = vld [vmem:[#allocation2 + $0x530] ss:$12 sps:$4 sm:$0xff]   ;;  %v9665_v30 = vld [vmem:[#allocation2 + $0x608] ss:$12 sps:$4 sm:$0xff]  }
  0xd4   :  { %v9695_v14 = vld [vmem:[#allocation2 + $0x1c] ss:$12 sps:$4 sm:$0xff]  }
  0xd6   :  { %1317 = vmatpush1.bf16.msra.mxu0 %v9621_v28  ;;  %1358 = vmatpush1.bf16.msra.mxu1 %v9628_v32  ;;  %v2480_v28 = vcombine.low %v2472_v22, %v2479_v23  ;;  %v2488_v32 = vpack.c.bf16 %v2460_v24, %v2460_v24  ;;  %v9702_v24 = vld [vmem:[#allocation2 + $0x198] ss:$12 sps:$4 sm:$0xff]  }
  0xd7   :  { %1368 = vmatprep.subr.bf16.mxu0 %v9627_v31  ;;  %8628 = vmatprep.subr.bf16.mxu1 %v9632_v33  ;;  %v2463_v33 = vcombine.high %v2445_v6, %v2459_v7  ;;  %v9687_v6 = vld [vmem:[#allocation2 + $0x5f0] ss:$12 sps:$4 sm:$0xff]   ;;  %v9688_v7 = vld [vmem:[#allocation2 + $0x758] ss:$12 sps:$4 sm:$0xff]  }
  0xd8   :  { %v2492_v31 = vpack.c.bf16 %v2480_v28, %v2480_v28  ;;  %2661 = vrot.lane.b32.xlu0 %v2488_v32, %s11339_s15  ;;  %v9713_v28 = vld [vmem:[#allocation2 + $0x64] ss:$12 sps:$4 sm:$0xff]   ;;  %v9719_v32 = vld [vmem:[#allocation2 + $0x7c] ss:$12 sps:$4 sm:$0xff]  }
  0xda   :  { %2669 = vrot.lane.b32.xlu1 %v2492_v31, %s11339_s15  ;;  %v9714_v31 = vld [vmem:[#allocation2 + $0x1c8] ss:$12 sps:$4 sm:$0xff]  }
 0x113   :  { %v626_v34 = vpop.permute.xlu0 %625  ;;  %v624_v35 = vpop.permute.xlu1 %623 }
 0x114   :  { %v11549_v41 = vsel %vm635_vm0, %v624_v35, %v626_v34  ;;  %v9666_v35 = vld [vmem:[#allocation2 + $0x470] ss:$12 sps:$4 sm:$0xff]  }
 0x117   :  { %v628_v36 = vpop.permute.xlu0 %627  ;;  %v11545_v37 = vpop.permute.xlu1 %631 }
 0x118   :  { %v637_v39 = vsel %vm635_vm0, %v626_v34, %v628_v36 }
 0x119   :  { %1318 = vmatprep.mubr.bf16.mxu0 %v637_v39 }
 0x11a   :  { %1319 = vmatmul.mubr.bf16.vlgmr.msra.gmra.mrb[0].mxu0 %v11549_v41 }
 0x11b   :  { %1369 = vmatpush1.bf16.msra.mxu0 %v9625_v38  ;;  %v630_v42 = vpop.permute.xlu1 %629  ;;  %1400 = vmatprep.mubr.bf16.mxu0 %v11338_v45  ;;  %v634_v29 = vpop.permute.xlu0 %633  ;;  %v9668_v38 = vld [vmem:[#allocation2 + $0x620] ss:$12 sps:$4 sm:$0xff]  }
 0x11c   :  { %v11555_v46 = vsel %vm635_vm0, %v630_v42, %v11545_v37  ;;  %1370 = vmatprep.subr.bf16.mxu0 %v9631_v40  ;;  %v11558_v47 = vsel %vm635_vm0, %v628_v36, %v630_v42  ;;  %v11590_v34 = vsel %vm635_vm0, %v11545_v37, %v634_v29  ;;  %v9667_v36 = vld [vmem:[#allocation2 + $0x548] ss:$12 sps:$4 sm:$0xff]   ;;  %v9669_v40 = vld [vmem:[#allocation2 + $0x560] ss:$12 sps:$4 sm:$0xff]   ;;  %v9671_v37 = vld [vmem:[#allocation2 + $0x638] ss:$12 sps:$4 sm:$0xff]  }
 0x11d   :  { %1359 = vmatprep.mubr.bf16.mxu1 %v11555_v46  ;;  %v9670_v42 = vld [vmem:[#allocation2 + $0x6c8] ss:$12 sps:$4 sm:$0xff]   ;;  %v9716_v29 = vld [vmem:[#allocation2 + $0x1cc] ss:$12 sps:$4 sm:$0xff]  }
 0x11e   :  { %1360 = vmatmul.mubr.bf16.vlgmr.msra.gmra.mrb[0].mxu1 %v11558_v47 }
 0x11f   :  { %1371 = vmatpush1.bf16.msra.mxu0 %v9629_v43  ;;  %8629 = vmatpush3.bf16.msra.mxu1 %v9633_v44  ;;  %v11340_v43 = vmov 0.0   ;;  %v9672_v44 = vld [vmem:[#allocation2 + $0x578] ss:$12 sps:$4 sm:$0xff]  }
 0x120   :  { %1441 = vmatprep.mubr.bf16.mxu1 %v637_v39  ;;  %1372 = vmatprep.subr.bf16.mxu0 %v9636_v48  ;;  %v2491_v39 = vpack.c.bf16 %v2463_v33, %v2463_v33  ;;  %v9673_v48 = vld [vmem:[#allocation2 + $0x6e0] ss:$12 sps:$4 sm:$0xff]   ;;  %v9722_v33 = vld [vmem:[#allocation2 + $0x1e4] ss:$12 sps:$4 sm:$0xff]  }
 0x121   :  { %8630 = vmatprep.subr.bf16.mxu1 %v9637_v49  ;;  %v9674_v49 = vld [vmem:[#allocation2 + $0x650] ss:$12 sps:$4 sm:$0xff]  }
 0x122   :  { %2667 = vrot.lane.b32.xlu1 %v2491_v39, %s11339_s15  ;;  %v9723_v39 = vld [vmem:[#allocation2 + $0x90] ss:$12 sps:$4 sm:$0xff]  }
 0x123   :  { %1373 = vmatpush1.bf16.msra.mxu0 %v9634_v50  ;;  %8631 = vmatpush3.bf16.msra.mxu1 %v9638_v51  ;;  %v9675_v50 = vld [vmem:[#allocation2 + $0x590] ss:$12 sps:$4 sm:$0xff]   ;;  %v9677_v51 = vld [vmem:[#allocation2 + $0x668] ss:$12 sps:$4 sm:$0xff]  }
 0x124   :  { %1374 = vmatprep.subr.bf16.mxu0 %v9641_v52  ;;  %8632 = vmatprep.subr.bf16.mxu1 %v9642_v53  ;;  %v2481_v52 = vcombine.high %v2472_v22, %v2479_v23  ;;  %v9678_v53 = vld [vmem:[#allocation2 + $0x5a8] ss:$12 sps:$4 sm:$0xff]   ;;  %v9699_v22 = vld [vmem:[#allocation2 + $0x30] ss:$12 sps:$4 sm:$0xff]  }
 0x127   :  { %1375 = vmatpush1.bf16.msra.mxu0 %v9639_v54  ;;  %8633 = vmatpush3.bf16.msra.mxu1 %v9643_v55  ;;  %v9679_v54 = vld [vmem:[#allocation2 + $0x710] ss:$12 sps:$4 sm:$0xff]   ;;  %v9680_v55 = vld [vmem:[#allocation2 + $0x680] ss:$12 sps:$4 sm:$0xff]  }
 0x128   :  { %1376 = vmatprep.subr.bf16.mxu0 %v9646_v56  ;;  %8634 = vmatprep.subr.bf16.mxu1 %v9647_v57  ;;  %v9681_v56 = vld [vmem:[#allocation2 + $0x5c0] ss:$12 sps:$4 sm:$0xff]   ;;  %v9682_v57 = vld [vmem:[#allocation2 + $0x728] ss:$12 sps:$4 sm:$0xff]  }
 0x12b   :  { %1377 = vmatpush1.bf16.msra.mxu0 %v9644_v58  ;;  %8635 = vmatpush3.bf16.msra.mxu1 %v9648_v59  ;;  %v9683_v58 = vld [vmem:[#allocation2 + $0x698] ss:$12 sps:$4 sm:$0xff]   ;;  %v9783_v59 = vld [vmem:[%s12482_s0] ss:$72 sps:$4 sm:$0xff]  }
 0x12c   :  { %1378 = vmatprep.subr.bf16.mxu0 %v9651_v60  ;;  %8636 = vmatprep.subr.bf16.mxu1 %v9652_v61  ;;  %v9684_v60 = vld [vmem:[#allocation2 + $0x5d8] ss:$12 sps:$4 sm:$0xff]  }
 0x12d   :  { %v9785_v61 = vld [vmem:[%s12482_s0 + $0x90] ss:$72 sps:$4 sm:$0xff]  }
 0x12f   :  { %1379 = vmatpush1.bf16.msra.mxu0 %v9649_v62  ;;  %8637 = vmatpush3.bf16.msra.mxu1 %v9653_v1  ;;  %v9685_v62 = vld [vmem:[#allocation2 + $0x740] ss:$12 sps:$4 sm:$0xff]   ;;  %v11617_v1 = vrot.slane %v9783_v59, %v11513_v5 }
 0x130   :  { %1380 = vmatprep.subr.bf16.mxu0 %v9656_v2  ;;  %8638 = vmatprep.subr.bf16.mxu1 %v9657_v4  ;;  %v11620_v2 = vrot.slane %v9785_v61, %v11513_v5  ;;  %v9794_v4 = vld [vmem:[%s12482_s0 + $0x94] ss:$72 sps:$4 sm:$0xff]   ;;  %v9755_v59 = vld [vmem:[#allocation2 + $0x10c] ss:$12 sps:$4 sm:$0xff]  }
 0x131   :  { %v11632_v12 = vrot.slane %v9794_v4, %v11513_v5  ;;  %v9753_v61 = vld [vmem:[#allocation2 + $0x108] ss:$12 sps:$4 sm:$0xff]   ;;  %v9759_v4 = vld [vmem:[#allocation2 + $0x120] ss:$12 sps:$4 sm:$0xff]  }
 0x133   :  { %1381 = vmatpush1.bf16.msra.mxu0 %v9654_v10  ;;  %8639 = vmatpush3.bf16.msra.mxu1 %v9658_v11  ;;  %v184_v10 = vcombine.high %v11617_v1, %v11620_v2  ;;  %v11629_v11 = vrot.slane %v9793_v0, %v11513_v5  ;;  %v9764_v0 = vld [vmem:[#allocation2 + $0x28c] ss:$12 sps:$4 sm:$0xff]  }
 0x134   :  { %1382 = vmatprep.subr.bf16.mxu0 %v9661_v18  ;;  %8640 = vmatprep.subr.bf16.mxu1 %v9662_v19  ;;  %v9696_v19 = vld [vmem:[#allocation2 + $0x180] ss:$12 sps:$4 sm:$0xff]  }
 0x135   :  { %v11635_v17 = vpack.c.bf16 %v184_v10, %v184_v10  ;;  %v186_v18 = vcombine.high %v11629_v11, %v11632_v12  ;;  %v9768_v10 = vld [vmem:[#allocation2 + $0x2a0] ss:$12 sps:$4 sm:$0xff]  }
 0x137   :  { %1383 = vmatpush1.bf16.msra.mxu0 %v9659_v21  ;;  %8641 = vmatpush3.bf16.msra.mxu1 %v9663_v25  ;;  %v9704_v21 = vld [vmem:[#allocation2 + $0x19c] ss:$12 sps:$4 sm:$0xff]   ;;  %v11641_v23 = vpack.c.bf16 %v186_v18, %v186_v18  ;;  %v9707_v25 = vld [vmem:[#allocation2 + $0x4c] ss:$12 sps:$4 sm:$0xff]  }
 0x138   :  { %8642 = vmatprep.subr.bf16.mxu1 %v9664_v27  ;;  %8650 = vmatprep.subr.bf16.mxu0 %v9665_v30  ;;  %v9708_v27 = vld [vmem:[#allocation2 + $0x1b0] ss:$12 sps:$4 sm:$0xff]   ;;  %v9711_v30 = vld [vmem:[#allocation2 + $0x60] ss:$12 sps:$4 sm:$0xff]  }
 0x139   :  { %v9779_v18 = vld [vmem:[#allocation2 + $0x16c] ss:$12 sps:$4 sm:$0xff]  }
 0x13a   :  { %1401 = vmatmul.mubr.bf16.vlgmr.msra.gmra.mrb[4].mxu0 %v11590_v34 }
 0x13b   :  { %8643 = vmatpush3.bf16.msra.mxu1 %v9666_v35  ;;  %8651 = vmatpush3.bf16.msra.mxu0 %v9667_v36  ;;  %v9720_v35 = vld [vmem:[#allocation2 + $0x1e0] ss:$12 sps:$4 sm:$0xff]  }
 0x13c   :  { %1481 = vmatprep.mubr.bf16.mxu0 %v11555_v46  ;;  %8652 = vmatprep.subr.bf16.mxu0 %v9668_v38  ;;  %v9676_v46 = vld [vmem:[#allocation2 + $0x6f8] ss:$12 sps:$4 sm:$0xff]   ;;  %v9725_v36 = vld [vmem:[#allocation2 + $0x94] ss:$12 sps:$4 sm:$0xff]   ;;  %v9728_v38 = vld [vmem:[#allocation2 + $0x1fc] ss:$12 sps:$4 sm:$0xff]  }
 0x13d   :  { %9242 = vmatprep.subr.bf16.mxu1 %v11340_v43 }
 0x13e   :  { %1442 = vmatmul.mubr.bf16.vlgmr.msra.gmra.mrb[4].mxu1 %v11549_v41  ;;  %v2493_v41 = vpack.c.bf16 %v2481_v52, %v2481_v52  ;;  %v9743_v52 = vld [vmem:[#allocation2 + $0xdc] ss:$12 sps:$4 sm:$0xff]  }
 0x13f   :  { %8653 = vmatpush3.bf16.msra.mxu0 %v9669_v40  ;;  %9243 = vmatpush3.bf16.msra.mxu1 %v9670_v42  ;;  %v9726_v40 = vld [vmem:[#allocation2 + $0x1f8] ss:$12 sps:$4 sm:$0xff]  }
 0x140   :  { %8654 = vmatprep.subr.bf16.mxu0 %v9671_v37  ;;  %9244 = vmatprep.subr.bf16.mxu1 %v11340_v43  ;;  %v9731_v42 = vld [vmem:[#allocation2 + $0xac] ss:$12 sps:$4 sm:$0xff]   ;;  %v9734_v37 = vld [vmem:[#allocation2 + $0x214] ss:$12 sps:$4 sm:$0xff]  }
 0x141   :  { %9258 = vmatprep.mubr.msk.bf16.mxu1 %vm11341_vm1, %v11340_v43  ;;  %2671 = vrot.lane.b32.xlu0 %v2493_v41, %s11339_s15  ;;  %v9746_v41 = vld [vmem:[#allocation2 + $0x244] ss:$12 sps:$4 sm:$0xff]  }
 0x143   :  { %8655 = vmatpush3.bf16.msra.mxu0 %v9672_v44  ;;  %9245 = vmatpush3.bf16.msra.mxu1 %v9673_v48  ;;  %v9729_v44 = vld [vmem:[#allocation2 + $0xa8] ss:$12 sps:$4 sm:$0xff]   ;;  %v9732_v48 = vld [vmem:[#allocation2 + $0x210] ss:$12 sps:$4 sm:$0xff]  }
 0x144   :  { %8656 = vmatprep.subr.bf16.mxu0 %v9674_v49  ;;  %9246 = vmatprep.subr.bf16.mxu1 %v11340_v43  ;;  %v9737_v49 = vld [vmem:[#allocation2 + $0xc4] ss:$12 sps:$4 sm:$0xff]  }
 0x147   :  { %8657 = vmatpush3.bf16.msra.mxu0 %v9675_v50  ;;  %9247 = vmatpush3.bf16.msra.mxu1 %v9676_v46  ;;  %v9740_v50 = vld [vmem:[#allocation2 + $0x22c] ss:$12 sps:$4 sm:$0xff]  }
 0x148   :  { %8658 = vmatprep.subr.bf16.mxu0 %v9677_v51  ;;  %9248 = vmatprep.subr.bf16.mxu1 %v11340_v43  ;;  %v9735_v46 = vld [vmem:[#allocation2 + $0xc0] ss:$12 sps:$4 sm:$0xff]   ;;  %v9738_v51 = vld [vmem:[#allocation2 + $0x228] ss:$12 sps:$4 sm:$0xff]  }
 0x14b   :  { %8659 = vmatpush3.bf16.msra.mxu0 %v9678_v53  ;;  %9249 = vmatpush3.bf16.msra.mxu1 %v9679_v54  ;;  %v9741_v53 = vld [vmem:[#allocation2 + $0xd8] ss:$12 sps:$4 sm:$0xff]   ;;  %v9744_v54 = vld [vmem:[#allocation2 + $0x240] ss:$12 sps:$4 sm:$0xff]  }
 0x14c   :  { %8660 = vmatprep.subr.bf16.mxu0 %v9680_v55  ;;  %9250 = vmatprep.subr.bf16.mxu1 %v11340_v43  ;;  %v9749_v55 = vld [vmem:[#allocation2 + $0xf4] ss:$12 sps:$4 sm:$0xff]  }
 0x14f   :  { %8661 = vmatpush3.bf16.msra.mxu0 %v9681_v56  ;;  %9251 = vmatpush3.bf16.msra.mxu1 %v9682_v57  ;;  %v9752_v56 = vld [vmem:[#allocation2 + $0x25c] ss:$12 sps:$4 sm:$0xff]  }
 0x150   :  { %8662 = vmatprep.subr.bf16.mxu0 %v9683_v58  ;;  %9252 = vmatprep.subr.bf16.mxu1 %v11340_v43  ;;  %v9747_v57 = vld [vmem:[#allocation2 + $0xf0] ss:$12 sps:$4 sm:$0xff]   ;;  %v9750_v58 = vld [vmem:[#allocation2 + $0x258] ss:$12 sps:$4 sm:$0xff]  }
 0x153   :  { %8663 = vmatpush3.bf16.msra.mxu0 %v9684_v60  ;;  %9253 = vmatpush3.bf16.msra.mxu1 %v9685_v62  ;;  %v9758_v60 = vld [vmem:[#allocation2 + $0x274] ss:$12 sps:$4 sm:$0xff]   ;;  %v9756_v62 = vld [vmem:[#allocation2 + $0x270] ss:$12 sps:$4 sm:$0xff]  }
 0x154   :  { %8664 = vmatprep.subr.bf16.mxu0 %v9686_v63  ;;  %9254 = vmatprep.subr.bf16.mxu1 %v11340_v43  ;;  %v9761_v63 = vld [vmem:[#allocation2 + $0x124] ss:$12 sps:$4 sm:$0xff]  }
 0x157   :  { %8665 = vmatpush3.bf16.msra.mxu0 %v9687_v6  ;;  %9255 = vmatpush3.bf16.msra.mxu1 %v9688_v7  ;;  %v9762_v6 = vld [vmem:[#allocation2 + $0x288] ss:$12 sps:$4 sm:$0xff]  }
 0x158   :  { %9256 = vmatprep.subr.bf16.mxu1 %v11340_v43  ;;  %2169 = vmatprep.subr.bf16.mxu0 %v9691_v8  ;;  %v9767_v7 = vld [vmem:[#allocation2 + $0x13c] ss:$12 sps:$4 sm:$0xff]   ;;  %v9770_v8 = vld [vmem:[#allocation2 + $0x2a4] ss:$12 sps:$4 sm:$0xff]  }
 0x15a   :  { %1482 = vmatmul.mubr.bf16.vlgmr.msra.gmra.mrb[8].mxu0 %v11558_v47  ;;  %v9710_v47 = vld [vmem:[#allocation2 + $0x1b4] ss:$12 sps:$4 sm:$0xff]  }
 0x15b   :  { %9257 = vmatpush3.bf16.msra.mxu1 %v9692_v13  ;;  %2170 = vmatpush1.bf16.msra.mxu0 %v9689_v9  ;;  %v9765_v9 = vld [vmem:[#allocation2 + $0x138] ss:$12 sps:$4 sm:$0xff]   ;;  %v9773_v13 = vld [vmem:[#allocation2 + $0x154] ss:$12 sps:$4 sm:$0xff]  }
 0x15c   :  { %2171 = vmatprep.subr.bf16.mxu0 %v9695_v14  ;;  %2210 = vmatprep.subr.bf16.mxu1 %v9698_v15  ;;  %v9776_v14 = vld [vmem:[#allocation2 + $0x2bc] ss:$12 sps:$4 sm:$0xff]  }
 0x15d   :  { %2201 = vmatprep.mubr.bf16.mxu0 %v11635_v17  ;;  %v9771_v15 = vld [vmem:[#allocation2 + $0x150] ss:$12 sps:$4 sm:$0xff]  }
 0x15e   :  { %9259 = vmatmul.mubr.bf16.vlgmr.msra.gmra.mrb[8].mxu1 %v11590_v34  ;;  %v9717_v34 = vld [vmem:[#allocation2 + $0x78] ss:$12 sps:$4 sm:$0xff]  }
 0x15f   :  { %2172 = vmatpush1.bf16.msra.mxu0 %v9693_v16  ;;  %2211 = vmatpush1.bf16.msra.mxu1 %v9696_v19  ;;  %v9774_v16 = vld [vmem:[#allocation2 + $0x2b8] ss:$12 sps:$4 sm:$0xff]   ;;  %v9782_v19 = vld [vmem:[#allocation2 + $0x2d4] ss:$12 sps:$4 sm:$0xff]  }
 0x160   :  { %2173 = vmatprep.subr.bf16.mxu0 %v9701_v20  ;;  %2212 = vmatprep.subr.bf16.mxu1 %v9704_v21  ;;  %v9777_v20 = vld [vmem:[#allocation2 + $0x168] ss:$12 sps:$4 sm:$0xff]   ;;  %v9780_v21 = vld [vmem:[#allocation2 + $0x2d0] ss:$12 sps:$4 sm:$0xff]  }
 0x161   :  { %2242 = vmatprep.mubr.bf16.mxu1 %v11641_v23 }
 0x163   :  { %2174 = vmatpush1.bf16.msra.mxu0 %v9699_v22  ;;  %2213 = vmatpush1.bf16.msra.mxu1 %v9702_v24  ;;  %v183_v22 = vcombine.low %v11617_v1, %v11620_v2  ;;  %v9789_v24 = vld [vmem:[#allocation2 + $0x2ec] ss:$12 sps:$4 sm:$0xff]   ;;  %v9965_v1 = vld [vmem:[%s12482_s0 + $0x20] ss:$72 sps:$4 sm:$0xff]  }
 0x164   :  { %2175 = vmatprep.subr.bf16.mxu0 %v9707_v25  ;;  %2214 = vmatprep.subr.bf16.mxu1 %v9710_v47  ;;  %v9792_v25 = vld [vmem:[#allocation2 + $0x304] ss:$12 sps:$4 sm:$0xff]   ;;  %v9787_v47 = vld [vmem:[#allocation2 + $0x2e8] ss:$12 sps:$4 sm:$0xff]  }
 0x165   :  { %v9967_v2 = vld [vmem:[%s12482_s0 + $0xb0] ss:$72 sps:$4 sm:$0xff]  }
 0x167   :  { %2176 = vmatpush1.bf16.msra.mxu0 %v9705_v26  ;;  %2215 = vmatpush1.bf16.msra.mxu1 %v9708_v27  ;;  %v9790_v26 = vld [vmem:[#allocation2 + $0x300] ss:$12 sps:$4 sm:$0xff]   ;;  %v11647_v27 = vpack.c.bf16 %v183_v22, %v183_v22 }
 0x168   :  { %2177 = vmatprep.subr.bf16.mxu0 %v9713_v28  ;;  %2216 = vmatprep.subr.bf16.mxu1 %v9716_v29  ;;  %v185_v28 = vcombine.low %v11629_v11, %v11632_v12  ;;  %v9801_v29 = vld [vmem:[#allocation2 + $0x31c] ss:$12 sps:$4 sm:$0xff]   ;;  %v9974_v11 = vld [vmem:[%s12482_s0 + $0xac] ss:$72 sps:$4 sm:$0xff]   ;;  %v9799_v12 = vld [vmem:[#allocation2 + $0x318] ss:$12 sps:$4 sm:$0xff]  }
 0x16b   :  { %2178 = vmatpush1.bf16.msra.mxu0 %v9711_v30  ;;  %2217 = vmatpush1.bf16.msra.mxu1 %v9714_v31  ;;  %v9802_v30 = vld [vmem:[#allocation2 + $0xc8] ss:$12 sps:$4 sm:$0xff]   ;;  %v9973_v31 = vld [vmem:[%s12482_s0 + $0x1c] ss:$72 sps:$4 sm:$0xff]  }
 0x16c   :  { %2179 = vmatprep.subr.bf16.mxu0 %v9719_v32  ;;  %2218 = vmatprep.subr.bf16.mxu1 %v9722_v33  ;;  %v9805_v32 = vld [vmem:[#allocation2 + $0x8] ss:$12 sps:$4 sm:$0xff]   ;;  %v3717_v33 = vrot.slane %v9965_v1, %v11513_v5 }
 0x16f   :  { %2180 = vmatpush1.bf16.msra.mxu0 %v9717_v34  ;;  %2219 = vmatpush1.bf16.msra.mxu1 %v9720_v35  ;;  %v3731_v34 = vrot.slane %v9967_v2, %v11513_v5  ;;  %v11666_v35 = vpack.c.bf16 %v185_v28, %v185_v28  ;;  %v9841_v28 = vld [vmem:[#allocation2 + $0x248] ss:$12 sps:$4 sm:$0xff]   ;;  %v9844_v2 = vld [vmem:[#allocation2 + $0x260] ss:$12 sps:$4 sm:$0xff]  }
 0x170   :  { %2181 = vmatprep.subr.bf16.mxu0 %v9725_v36  ;;  %2220 = vmatprep.subr.bf16.mxu1 %v9728_v38  ;;  %v9810_v36 = vld [vmem:[#allocation2 + $0x334] ss:$12 sps:$4 sm:$0xff]  }
 0x171   :  { %v9811_v38 = vld [vmem:[#allocation2 + $0xe0] ss:$12 sps:$4 sm:$0xff]  }
 0x173   :  { %2182 = vmatpush1.bf16.msra.mxu0 %v9723_v39  ;;  %2221 = vmatpush1.bf16.msra.mxu1 %v9726_v40  ;;  %v3710_v39 = vrot.slane %v9973_v31, %v11513_v5  ;;  %v3724_v40 = vrot.slane %v9974_v11, %v11513_v5  ;;  %v9845_v31 = vld [vmem:[#allocation2 + $0x1a0] ss:$12 sps:$4 sm:$0xff]   ;;  %v9846_v11 = vld [vmem:[#allocation2 + $0x308] ss:$12 sps:$4 sm:$0xff]  }
 0x174   :  { %2183 = vmatprep.subr.bf16.mxu0 %v9731_v42  ;;  %2222 = vmatprep.subr.bf16.mxu1 %v9734_v37  ;;  %v3734_v42 = vcombine.low %v3717_v33, %v3731_v34  ;;  %v9976_v37 = vld [vmem:[%s12482_s0 + $0x24] ss:$72 sps:$4 sm:$0xff]  }
 0x177   :  { %2184 = vmatpush1.bf16.msra.mxu0 %v9729_v44  ;;  %2223 = vmatpush1.bf16.msra.mxu1 %v9732_v48  ;;  %v9977_v44 = vld [vmem:[%s12482_s0 + $0xb4] ss:$72 sps:$4 sm:$0xff]   ;;  %v3733_v48 = vcombine.high %v3710_v39, %v3724_v40 }
 0x178   :  { %2185 = vmatprep.subr.bf16.mxu0 %v9737_v49  ;;  %2224 = vmatprep.subr.bf16.mxu1 %v9740_v50  ;;  %v9808_v49 = vld [vmem:[#allocation2 + $0x330] ss:$12 sps:$4 sm:$0xff]   ;;  %v3762_v50 = vpack.c.bf16 %v3734_v42, %v3734_v42 }
 0x179   :  { %v9855_v42 = vld [vmem:[#allocation2 + $0x350] ss:$12 sps:$4 sm:$0xff]  }
 0x17a   :  { %3776 = vrot.lane.b32.xlu1 %v3762_v50, %s11342_s29  ;;  %v9860_v50 = vld [vmem:[#allocation2 + $0x218] ss:$12 sps:$4 sm:$0xff]  }
 0x17b   :  { %2186 = vmatpush1.bf16.msra.mxu0 %v9735_v46  ;;  %2225 = vmatpush1.bf16.msra.mxu1 %v9738_v51  ;;  %v11678_v46 = vrot.slane %v9976_v37, %v11513_v5  ;;  %v11681_v51 = vrot.slane %v9977_v44, %v11513_v5  ;;  %v9856_v37 = vld [vmem:[#allocation2 + $0x2c0] ss:$12 sps:$4 sm:$0xff]  }
 0x17c   :  { %2187 = vmatprep.subr.bf16.mxu0 %v9743_v52  ;;  %2226 = vmatprep.subr.bf16.mxu1 %v9746_v41  ;;  %v9812_v52 = vld [vmem:[#allocation2 + $0x20] ss:$12 sps:$4 sm:$0xff]   ;;  %v3761_v41 = vpack.c.bf16 %v3733_v48, %v3733_v48  ;;  %v9858_v48 = vld [vmem:[#allocation2 + $0x368] ss:$12 sps:$4 sm:$0xff]  }
 0x17d   :  { %v9857_v44 = vld [vmem:[#allocation2 + $0x200] ss:$12 sps:$4 sm:$0xff]  }
 0x17e   :  { %3774 = vrot.lane.b32.xlu0 %v3761_v41, %s11342_s29  ;;  %v9863_v41 = vld [vmem:[#allocation2 + $0x230] ss:$12 sps:$4 sm:$0xff]  }
 0x17f   :  { %2188 = vmatpush1.bf16.msra.mxu0 %v9741_v53  ;;  %2227 = vmatpush1.bf16.msra.mxu1 %v9744_v54  ;;  %v3752_v53 = vcombine.low %v11678_v46, %v11681_v51  ;;  %v9815_v54 = vld [vmem:[#allocation2 + $0x34c] ss:$12 sps:$4 sm:$0xff]  }
 0x180   :  { %2189 = vmatprep.subr.bf16.mxu0 %v9749_v55  ;;  %2228 = vmatprep.subr.bf16.mxu1 %v9752_v56  ;;  %v9816_v55 = vld [vmem:[#allocation2 + $0xf8] ss:$12 sps:$4 sm:$0xff]   ;;  %v3732_v56 = vcombine.low %v3710_v39, %v3724_v40  ;;  %v9854_v40 = vld [vmem:[#allocation2 + $0x1e8] ss:$12 sps:$4 sm:$0xff]  }
 0x183   :  { %2190 = vmatpush1.bf16.msra.mxu0 %v9747_v57  ;;  %2229 = vmatpush1.bf16.msra.mxu1 %v9750_v58  ;;  %v3764_v57 = vpack.c.bf16 %v3752_v53, %v3752_v53  ;;  %v9813_v58 = vld [vmem:[#allocation2 + $0x348] ss:$12 sps:$4 sm:$0xff]   ;;  %v9864_v53 = vld [vmem:[#allocation2 + $0x398] ss:$12 sps:$4 sm:$0xff]  }
 0x184   :  { %2191 = vmatprep.subr.bf16.mxu0 %v9755_v59  ;;  %2230 = vmatprep.subr.bf16.mxu1 %v9758_v60  ;;  %v3760_v59 = vpack.c.bf16 %v3732_v56, %v3732_v56  ;;  %v9817_v60 = vld [vmem:[#allocation2 + $0x38] ss:$12 sps:$4 sm:$0xff]   ;;  %v9868_v56 = vld [vmem:[#allocation2 + $0x3b0] ss:$12 sps:$4 sm:$0xff]  }
 0x185   :  { %3780 = vrot.lane.b32.xlu1 %v3764_v57, %s11342_s29  ;;  %v9871_v57 = vld [vmem:[#allocation2 + $0x79c] ss:$12 sps:$4 sm:$0xff]  }
 0x186   :  { %3772 = vrot.lane.b32.xlu0 %v3760_v59, %s11342_s29 }
 0x187   :  { %2192 = vmatpush1.bf16.msra.mxu0 %v9753_v61  ;;  %2231 = vmatpush1.bf16.msra.mxu1 %v9756_v62  ;;  %v9820_v61 = vld [vmem:[#allocation2 + $0x364] ss:$12 sps:$4 sm:$0xff]   ;;  %v3735_v62 = vcombine.high %v3717_v33, %v3731_v34  ;;  %v9849_v33 = vld [vmem:[#allocation2 + $0x320] ss:$12 sps:$4 sm:$0xff]  }
 0x188   :  { %2193 = vmatprep.subr.bf16.mxu0 %v9761_v63  ;;  %2232 = vmatprep.subr.bf16.mxu1 %v9764_v0  ;;  %v9821_v63 = vld [vmem:[#allocation2 + $0x110] ss:$12 sps:$4 sm:$0xff]  }
 0x189   :  { %v3763_v0 = vpack.c.bf16 %v3735_v62, %v3735_v62  ;;  %v9850_v34 = vld [vmem:[#allocation2 + $0x290] ss:$12 sps:$4 sm:$0xff]   ;;  %v11722_v62 = vpop.permute.xlu0 %2663 }
 0x18b   :  { %2194 = vmatpush1.bf16.msra.mxu0 %v9759_v4  ;;  %2233 = vmatpush1.bf16.msra.mxu1 %v9762_v6  ;;  %v9822_v4 = vld [vmem:[#allocation2 + $0x50] ss:$12 sps:$4 sm:$0xff]  }
 0x18c   :  { %2195 = vmatprep.subr.bf16.mxu0 %v9767_v7  ;;  %2234 = vmatprep.subr.bf16.mxu1 %v9770_v8  ;;  %v9825_v6 = vld [vmem:[#allocation2 + $0x37c] ss:$12 sps:$4 sm:$0xff]  }
 0x18d   :  { %v9826_v7 = vld [vmem:[#allocation2 + $0x128] ss:$12 sps:$4 sm:$0xff]   ;;  %3778 = vrot.lane.b32.xlu1 %v3763_v0, %s11342_s29 }
 0x18e   :  { %v9838_v8 = vld [vmem:[%s12482_s0 + $0x8] ss:$72 sps:$4 sm:$0x33]  }
 0x18f   :  { %2196 = vmatpush1.bf16.msra.mxu0 %v9765_v9  ;;  %2235 = vmatpush1.bf16.msra.mxu1 %v9768_v10  ;;  %v9839_v9 = vld [vmem:[%s12482_s0 + $0x98] ss:$72 sps:$4 sm:$0x33]   ;;  %v9880_v0 = vld [vmem:[#allocation2 + $0x91c] ss:$12 sps:$4 sm:$0xff]  }
 0x190   :  { %2197 = vmatprep.subr.bf16.mxu0 %v9773_v13  ;;  %2236 = vmatprep.subr.bf16.mxu1 %v9776_v14  ;;  %v9823_v10 = vld [vmem:[#allocation2 + $0x378] ss:$12 sps:$4 sm:$0xff]   ;;  %v9827_v13 = vld [vmem:[#allocation2 + $0x68] ss:$12 sps:$4 sm:$0xff]   ;;  %v202_v22 = vrot.slane %v9839_v9, %v11513_v5 }
 0x191   :  { %v9830_v14 = vld [vmem:[#allocation2 + $0x394] ss:$12 sps:$4 sm:$0xff]  }
 0x193   :  { %2198 = vmatpush1.bf16.msra.mxu0 %v9771_v15  ;;  %2237 = vmatpush1.bf16.msra.mxu1 %v9774_v16  ;;  %v9831_v15 = vld [vmem:[#allocation2 + $0x140] ss:$12 sps:$4 sm:$0xff]   ;;  %v9828_v16 = vld [vmem:[#allocation2 + $0x390] ss:$12 sps:$4 sm:$0xff]  }
 0x194   :  { %2199 = vmatprep.subr.bf16.mxu0 %v9779_v18  ;;  %2238 = vmatprep.subr.bf16.mxu1 %v9782_v19  ;;  %v9832_v18 = vld [vmem:[#allocation2 + $0x80] ss:$12 sps:$4 sm:$0xff]  }
 0x195   :  { %v9835_v19 = vld [vmem:[#allocation2 + $0x3ac] ss:$12 sps:$4 sm:$0xff]  }
 0x197   :  { %2200 = vmatpush1.bf16.msra.mxu0 %v9777_v20  ;;  %2239 = vmatpush1.bf16.msra.mxu1 %v9780_v21  ;;  %v9836_v20 = vld [vmem:[#allocation2 + $0x158] ss:$12 sps:$4 sm:$0xff]   ;;  %v195_v21 = vrot.slane %v9838_v8, %v11513_v5  ;;  %v9886_v8 = vld [vmem:[#allocation2 + $0x934] ss:$12 sps:$4 sm:$0xff]  }
 0x198   :  { %2240 = vmatprep.subr.bf16.mxu1 %v9789_v24  ;;  %2251 = vmatprep.subr.bf16.mxu0 %v9792_v25  ;;  %v9833_v24 = vld [vmem:[#allocation2 + $0x3a8] ss:$12 sps:$4 sm:$0xff]   ;;  %v9837_v25 = vld [vmem:[#allocation2 + $0x98] ss:$12 sps:$4 sm:$0xff]  }
 0x19a   :  { %2202 = vmatmul.mubr.bf16.vlgmr.msra.gmra.mrb[12].mxu0 %v11647_v27 }
 0x19b   :  { %2241 = vmatpush1.bf16.msra.mxu1 %v9787_v47  ;;  %2252 = vmatpush1.bf16.msra.mxu0 %v9790_v26  ;;  %v203_v47 = vcombine.low %v195_v21, %v202_v22  ;;  %v9840_v26 = vld [vmem:[#allocation2 + $0x170] ss:$12 sps:$4 sm:$0xff]   ;;  %v9893_v21 = vld [vmem:[#allocation2 + $0x7f8] ss:$12 sps:$4 sm:$0xff]   ;;  %v9896_v22 = vld [vmem:[#allocation2 + $0x960] ss:$12 sps:$4 sm:$0xff]  }
 0x19c   :  { %2253 = vmatprep.subr.bf16.mxu0 %v9801_v29  ;;  %8681 = vmatprep.subr.bf16.mxu1 %v9802_v30  ;;  %v9842_v29 = vld [vmem:[#allocation2 + $0xb0] ss:$12 sps:$4 sm:$0xff]   ;;  %v9843_v30 = vld [vmem:[#allocation2 + $0x188] ss:$12 sps:$4 sm:$0xff]  }
 0x19d   :  { %2283 = vmatprep.mubr.bf16.mxu0 %v11338_v45  ;;  %v11700_v1 = vpack.c.bf16 %v203_v47, %v203_v47 }
 0x19e   :  { %2243 = vmatmul.mubr.bf16.vlgmr.msra.gmra.mrb[12].mxu1 %v11666_v35 }
 0x19f   :  { %2254 = vmatpush1.bf16.msra.mxu0 %v9799_v12  ;;  %8682 = vmatpush3.bf16.msra.mxu1 %v9805_v32  ;;  %v9847_v12 = vld [vmem:[#allocation2 + $0x278] ss:$12 sps:$4 sm:$0xff]  }
 0x1a0   :  { %2255 = vmatprep.subr.bf16.mxu0 %v9810_v36  ;;  %8683 = vmatprep.subr.bf16.mxu1 %v9811_v38  ;;  %v9848_v32 = vld [vmem:[#allocation2 + $0x1b8] ss:$12 sps:$4 sm:$0xff]   ;;  %v9851_v36 = vld [vmem:[#allocation2 + $0x1d0] ss:$12 sps:$4 sm:$0xff]  }
 0x1a1   :  { %2324 = vmatprep.mubr.bf16.mxu1 %v11635_v17  ;;  %v9818_v17 = vld [vmem:[#allocation2 + $0x360] ss:$12 sps:$4 sm:$0xff]   ;;  %v9852_v38 = vld [vmem:[#allocation2 + $0x338] ss:$12 sps:$4 sm:$0xff]  }
 0x1a3   :  { %2256 = vmatpush1.bf16.msra.mxu0 %v9808_v49  ;;  %8684 = vmatpush3.bf16.msra.mxu1 %v9812_v52  ;;  %v9859_v49 = vld [vmem:[#allocation2 + $0x2d8] ss:$12 sps:$4 sm:$0xff]   ;;  %v11716_v52 = vpop.permute.xlu1 %2665 }
 0x1a4   :  { %2257 = vmatprep.subr.bf16.mxu0 %v9815_v54  ;;  %8685 = vmatprep.subr.bf16.mxu1 %v9816_v55  ;;  %v9867_v54 = vld [vmem:[#allocation2 + $0x784] ss:$12 sps:$4 sm:$0xff]   ;;  %v9865_v55 = vld [vmem:[#allocation2 + $0x780] ss:$12 sps:$4 sm:$0xff]  }
 0x1a7   :  { %2258 = vmatpush1.bf16.msra.mxu0 %v9813_v58  ;;  %8686 = vmatpush3.bf16.msra.mxu1 %v9817_v60  ;;  %v9874_v58 = vld [vmem:[#allocation2 + $0x904] ss:$12 sps:$4 sm:$0xff]   ;;  %v11719_v59 = vpop.permute.xlu1 %2669 }
 0x1a8   :  { %2259 = vmatprep.subr.bf16.mxu0 %v9820_v61  ;;  %8687 = vmatprep.subr.bf16.mxu1 %v9821_v63  ;;  %v9869_v60 = vld [vmem:[#allocation2 + $0x798] ss:$12 sps:$4 sm:$0xff]   ;;  %v9872_v61 = vld [vmem:[#allocation2 + $0x900] ss:$12 sps:$4 sm:$0xff]  }
 0x1a9   :  { %v9877_v63 = vld [vmem:[#allocation2 + $0x7b4] ss:$12 sps:$4 sm:$0xff]  }
 0x1ab   :  { %2260 = vmatpush1.bf16.msra.mxu0 %v9818_v17  ;;  %8688 = vmatpush3.bf16.msra.mxu1 %v9822_v4  ;;  %v11728_v17 = vsel %vm2673_vm2, %v11722_v62, %v11716_v52  ;;  %v9875_v4 = vld [vmem:[#allocation2 + $0x7b0] ss:$12 sps:$4 sm:$0xff]  }
 0x1ac   :  { %2261 = vmatprep.subr.bf16.mxu0 %v9825_v6  ;;  %8689 = vmatprep.subr.bf16.mxu1 %v9826_v7  ;;  %v9878_v6 = vld [vmem:[#allocation2 + $0x918] ss:$12 sps:$4 sm:$0xff]   ;;  %v11731_v7 = vpop.permute.xlu1 %2667 }
 0x1ad   :  { %v11737_v9 = vsel %vm2673_vm2, %v11731_v7, %v11719_v59 }
 0x1af   :  { %2262 = vmatpush1.bf16.msra.mxu0 %v9823_v10  ;;  %8690 = vmatpush3.bf16.msra.mxu1 %v9827_v13  ;;  %v9881_v10 = vld [vmem:[#allocation2 + $0x7c8] ss:$12 sps:$4 sm:$0xff]   ;;  %v9884_v13 = vld [vmem:[#allocation2 + $0x930] ss:$12 sps:$4 sm:$0xff]  }
 0x1b0   :  { %2263 = vmatprep.subr.bf16.mxu0 %v9830_v14  ;;  %8691 = vmatprep.subr.bf16.mxu1 %v9831_v15  ;;  %v9889_v14 = vld [vmem:[#allocation2 + $0x7e4] ss:$12 sps:$4 sm:$0xff]   ;;  %v9892_v15 = vld [vmem:[#allocation2 + $0x94c] ss:$12 sps:$4 sm:$0xff]  }
 0x1b3   :  { %2264 = vmatpush1.bf16.msra.mxu0 %v9828_v16  ;;  %8692 = vmatpush3.bf16.msra.mxu1 %v9832_v18  ;;  %v9887_v16 = vld [vmem:[#allocation2 + $0x7e0] ss:$12 sps:$4 sm:$0xff]   ;;  %v9890_v18 = vld [vmem:[#allocation2 + $0x948] ss:$12 sps:$4 sm:$0xff]  }
 0x1b4   :  { %2265 = vmatprep.subr.bf16.mxu0 %v9835_v19  ;;  %8693 = vmatprep.subr.bf16.mxu1 %v9836_v20  ;;  %v9895_v19 = vld [vmem:[#allocation2 + $0x7fc] ss:$12 sps:$4 sm:$0xff]   ;;  %v9898_v20 = vld [vmem:[#allocation2 + $0x964] ss:$12 sps:$4 sm:$0xff]  }
 0x1b7   :  { %2266 = vmatpush1.bf16.msra.mxu0 %v9833_v24  ;;  %8694 = vmatpush3.bf16.msra.mxu1 %v9837_v25  ;;  %v9901_v24 = vld [vmem:[#allocation2 + $0x814] ss:$12 sps:$4 sm:$0xff]   ;;  %v9904_v25 = vld [vmem:[#allocation2 + $0x97c] ss:$12 sps:$4 sm:$0xff]  }
 0x1b8   :  { %8695 = vmatprep.subr.bf16.mxu1 %v9840_v26  ;;  %8703 = vmatprep.subr.bf16.mxu0 %v9841_v28  ;;  %v9899_v26 = vld [vmem:[#allocation2 + $0x810] ss:$12 sps:$4 sm:$0xff]   ;;  %v9902_v28 = vld [vmem:[#allocation2 + $0x978] ss:$12 sps:$4 sm:$0xff]  }
 0x1ba   :  { %2284 = vmatmul.mubr.bf16.vlgmr.msra.gmra.mrb[16].mxu0 %v11700_v1 }
 0x1bb   :  { %8696 = vmatpush3.bf16.msra.mxu1 %v9842_v29  ;;  %8704 = vmatpush3.bf16.msra.mxu0 %v9843_v30  ;;  %v9907_v30 = vld [vmem:[#allocation2 + $0x82c] ss:$12 sps:$4 sm:$0xff]  }
 0x1bc   :  { %8705 = vmatprep.subr.bf16.mxu0 %v9844_v2  ;;  %9262 = vmatprep.subr.bf16.mxu1 %v11340_v43 }
 0x1bd   :  { %2364 = vmatprep.mubr.bf16.mxu0 %v11641_v23  ;;  %v3753_v23 = vcombine.high %v11678_v46, %v11681_v51  ;;  %v9861_v46 = vld [vmem:[#allocation2 + $0x380] ss:$12 sps:$4 sm:$0xff]   ;;  %v9862_v51 = vld [vmem:[#allocation2 + $0x2f0] ss:$12 sps:$4 sm:$0xff]  }
 0x1be   :  { %2325 = vmatmul.mubr.bf16.vlgmr.msra.gmra.mrb[16].mxu1 %v11647_v27  ;;  %v9853_v27 = vld [vmem:[#allocation2 + $0x2a8] ss:$12 sps:$4 sm:$0xff]  }
 0x1bf   :  { %8706 = vmatpush3.bf16.msra.mxu0 %v9845_v31  ;;  %9263 = vmatpush3.bf16.msra.mxu1 %v9846_v11  ;;  %v3765_v39 = vpack.c.bf16 %v3753_v23, %v3753_v23 }
 0x1c0   :  { %8707 = vmatprep.subr.bf16.mxu0 %v9847_v12  ;;  %9264 = vmatprep.subr.bf16.mxu1 %v11340_v43  ;;  %v9905_v12 = vld [vmem:[#allocation2 + $0x828] ss:$12 sps:$4 sm:$0xff]  }
 0x1c1   :  { %9278 = vmatprep.mubr.msk.bf16.mxu1 %vm11341_vm1, %v11340_v43  ;;  %3782 = vrot.lane.b32.xlu0 %v3765_v39, %s11342_s29 }
 0x1c3   :  { %8708 = vmatpush3.bf16.msra.mxu0 %v9848_v32  ;;  %9265 = vmatpush3.bf16.msra.mxu1 %v9849_v33  ;;  %v9908_v32 = vld [vmem:[#allocation2 + $0x990] ss:$12 sps:$4 sm:$0xff]  }
 0x1c4   :  { %8709 = vmatprep.subr.bf16.mxu0 %v9850_v34  ;;  %9266 = vmatprep.subr.bf16.mxu1 %v11340_v43 }
 0x1c7   :  { %8710 = vmatpush3.bf16.msra.mxu0 %v9851_v36  ;;  %9267 = vmatpush3.bf16.msra.mxu1 %v9852_v38  ;;  %v9913_v36 = vld [vmem:[#allocation2 + $0x844] ss:$12 sps:$4 sm:$0xff]   ;;  %v9916_v38 = vld [vmem:[#allocation2 + $0x9ac] ss:$12 sps:$4 sm:$0xff]  }
 0x1c8   :  { %8711 = vmatprep.subr.bf16.mxu0 %v9853_v27  ;;  %9268 = vmatprep.subr.bf16.mxu1 %v11340_v43 }
 0x1cb   :  { %8712 = vmatpush3.bf16.msra.mxu0 %v9854_v40  ;;  %9269 = vmatpush3.bf16.msra.mxu1 %v9855_v42  ;;  %v9911_v40 = vld [vmem:[#allocation2 + $0x840] ss:$12 sps:$4 sm:$0xff]   ;;  %v9914_v42 = vld [vmem:[#allocation2 + $0x9a8] ss:$12 sps:$4 sm:$0xff]  }
 0x1cc   :  { %8713 = vmatprep.subr.bf16.mxu0 %v9856_v37  ;;  %9270 = vmatprep.subr.bf16.mxu1 %v11340_v43  ;;  %v9919_v37 = vld [vmem:[#allocation2 + $0x85c] ss:$12 sps:$4 sm:$0xff]  }
 0x1cf   :  { %8714 = vmatpush3.bf16.msra.mxu0 %v9857_v44  ;;  %9271 = vmatpush3.bf16.msra.mxu1 %v9858_v48  ;;  %v9922_v44 = vld [vmem:[#allocation2 + $0x9c4] ss:$12 sps:$4 sm:$0xff]  }
 0x1d0   :  { %8715 = vmatprep.subr.bf16.mxu0 %v9859_v49  ;;  %9272 = vmatprep.subr.bf16.mxu1 %v11340_v43  ;;  %v9917_v48 = vld [vmem:[#allocation2 + $0x858] ss:$12 sps:$4 sm:$0xff]   ;;  %v9920_v49 = vld [vmem:[#allocation2 + $0x9c0] ss:$12 sps:$4 sm:$0xff]  }
 0x1d3   :  { %8716 = vmatpush3.bf16.msra.mxu0 %v9860_v50  ;;  %9273 = vmatpush3.bf16.msra.mxu1 %v9861_v46  ;;  %v9925_v50 = vld [vmem:[#allocation2 + $0x874] ss:$12 sps:$4 sm:$0xff]   ;;  %v9928_v46 = vld [vmem:[#allocation2 + $0x9dc] ss:$12 sps:$4 sm:$0xff]  }
 0x1d4   :  { %8717 = vmatprep.subr.bf16.mxu0 %v9862_v51  ;;  %9274 = vmatprep.subr.bf16.mxu1 %v11340_v43  ;;  %v9923_v51 = vld [vmem:[#allocation2 + $0x870] ss:$12 sps:$4 sm:$0xff]  }
 0x1d7   :  { %8718 = vmatpush3.bf16.msra.mxu0 %v9863_v41  ;;  %9275 = vmatpush3.bf16.msra.mxu1 %v9864_v53  ;;  %v9926_v41 = vld [vmem:[#allocation2 + $0x9d8] ss:$12 sps:$4 sm:$0xff]  }
 0x1d8   :  { %9276 = vmatprep.subr.bf16.mxu1 %v11340_v43  ;;  %3324 = vmatprep.subr.bf16.mxu0 %v9867_v54  ;;  %v9931_v53 = vld [vmem:[#allocation2 + $0x88c] ss:$12 sps:$4 sm:$0xff]   ;;  %v9934_v54 = vld [vmem:[#allocation2 + $0x9f4] ss:$12 sps:$4 sm:$0xff]  }
 0x1da   :  { %2365 = vmatmul.mubr.bf16.vlgmr.msra.gmra.mrb[20].mxu0 %v11666_v35  ;;  %v9883_v35 = vld [vmem:[#allocation2 + $0x7cc] ss:$12 sps:$4 sm:$0xff]  }
 0x1db   :  { %9277 = vmatpush3.bf16.msra.mxu1 %v9868_v56  ;;  %3325 = vmatpush1.bf16.msra.mxu0 %v9865_v55  ;;  %v9929_v55 = vld [vmem:[#allocation2 + $0x888] ss:$12 sps:$4 sm:$0xff]   ;;  %v9932_v56 = vld [vmem:[#allocation2 + $0x9f0] ss:$12 sps:$4 sm:$0xff]  }
 0x1dc   :  { %3326 = vmatprep.subr.bf16.mxu0 %v9871_v57  ;;  %3365 = vmatprep.subr.bf16.mxu1 %v9874_v58  ;;  %v9937_v57 = vld [vmem:[#allocation2 + $0x8a4] ss:$12 sps:$4 sm:$0xff]   ;;  %v9940_v58 = vld [vmem:[#allocation2 + $0xa0c] ss:$12 sps:$4 sm:$0xff]  }
 0x1dd   :  { %3356 = vmatprep.mubr.bf16.mxu0 %v11728_v17 }
 0x1de   :  { %9279 = vmatmul.mubr.bf16.vlgmr.msra.gmra.mrb[20].mxu1 %v11700_v1  ;;  %v9910_v1 = vld [vmem:[#allocation2 + $0x994] ss:$12 sps:$4 sm:$0xff]  }
 0x1df   :  { %3327 = vmatpush1.bf16.msra.mxu0 %v9869_v60  ;;  %3366 = vmatpush1.bf16.msra.mxu1 %v9872_v61  ;;  %v9935_v60 = vld [vmem:[#allocation2 + $0x8a0] ss:$12 sps:$4 sm:$0xff]   ;;  %v9938_v61 = vld [vmem:[#allocation2 + $0xa08] ss:$12 sps:$4 sm:$0xff]  }
 0x1e0   :  { %3328 = vmatprep.subr.bf16.mxu0 %v9877_v63  ;;  %3367 = vmatprep.subr.bf16.mxu1 %v9880_v0  ;;  %v9943_v63 = vld [vmem:[#allocation2 + $0x8bc] ss:$12 sps:$4 sm:$0xff]   ;;  %v9946_v0 = vld [vmem:[#allocation2 + $0xa24] ss:$12 sps:$4 sm:$0xff]  }
 0x1e1   :  { %3397 = vmatprep.mubr.bf16.mxu1 %v11737_v9 }
 0x1e3   :  { %3329 = vmatpush1.bf16.msra.mxu0 %v9875_v4  ;;  %3368 = vmatpush1.bf16.msra.mxu1 %v9878_v6  ;;  %v9941_v4 = vld [vmem:[#allocation2 + $0x8b8] ss:$12 sps:$4 sm:$0xff]   ;;  %v9944_v6 = vld [vmem:[#allocation2 + $0xa20] ss:$12 sps:$4 sm:$0xff]  }
 0x1e4   :  { %3330 = vmatprep.subr.bf16.mxu0 %v9883_v35  ;;  %3369 = vmatprep.subr.bf16.mxu1 %v9886_v8  ;;  %v9949_v35 = vld [vmem:[#allocation2 + $0x8d4] ss:$12 sps:$4 sm:$0xff]   ;;  %v9952_v8 = vld [vmem:[#allocation2 + $0xa3c] ss:$12 sps:$4 sm:$0xff]  }
 0x1e7   :  { %3331 = vmatpush1.bf16.msra.mxu0 %v9881_v10  ;;  %3370 = vmatpush1.bf16.msra.mxu1 %v9884_v13  ;;  %v9947_v13 = vld [vmem:[#allocation2 + $0x8d0] ss:$12 sps:$4 sm:$0xff]  }
 0x1e8   :  { %3332 = vmatprep.subr.bf16.mxu0 %v9889_v14  ;;  %3371 = vmatprep.subr.bf16.mxu1 %v9892_v15  ;;  %v9950_v14 = vld [vmem:[#allocation2 + $0xa38] ss:$12 sps:$4 sm:$0xff]  }
 0x1eb   :  { %3333 = vmatpush1.bf16.msra.mxu0 %v9887_v16  ;;  %3372 = vmatpush1.bf16.msra.mxu1 %v9890_v18  ;;  %v9955_v18 = vld [vmem:[#allocation2 + $0x8ec] ss:$12 sps:$4 sm:$0xff]  }
 0x1ec   :  { %3334 = vmatprep.subr.bf16.mxu0 %v9895_v19  ;;  %3373 = vmatprep.subr.bf16.mxu1 %v9898_v20  ;;  %v9958_v19 = vld [vmem:[#allocation2 + $0xa54] ss:$12 sps:$4 sm:$0xff]  }
 0x1ed   :  { %v1320_v47 = vpop.f32.mrb[0].mxu0 }
 0x1ee   :  { %v1322_v29 = vpop.f32.mrb[1].mxu0 }
 0x1ef   :  { %3335 = vmatpush1.bf16.msra.mxu0 %v9893_v21  ;;  %3374 = vmatpush1.bf16.msra.mxu1 %v9896_v22  ;;  %v1324_v2 = vpop.f32.mrb[2].mxu0 }
 0x1f0   :  { %v1325_v31 = vpop.f32.mrb[3].mxu0  ;;  %3336 = vmatprep.subr.bf16.mxu0 %v9901_v24  ;;  %3375 = vmatprep.subr.bf16.mxu1 %v9904_v25  ;;  %v9953_v25 = vld [vmem:[#allocation2 + $0x8e8] ss:$12 sps:$4 sm:$0xff]   ;;  %v11746_v2 = vpop.permute.xlu1 %3776 }
 0x1f1   :  { %v1361_v11 = vpop.f32.mrb[0].mxu1 }
 0x1f2   :  { %v1362_v33 = vadd.f32 %v1361_v11, %v1320_v47  ;;  %v1363_v34 = vpop.f32.mrb[1].mxu1  ;;  %v9956_v47 = vld [vmem:[#allocation2 + $0xa50] ss:$12 sps:$4 sm:$0xff]   ;;  %v9959_v11 = vld [vmem:[#allocation2 + $0xa68] ss:$12 sps:$4 sm:$0xff]  }
 0x1f3   :  { %v1364_v23 = vadd.f32 %v1363_v34, %v1322_v29  ;;  %3337 = vmatpush1.bf16.msra.mxu0 %v9899_v26  ;;  %3376 = vmatpush1.bf16.msra.mxu1 %v9902_v28  ;;  %v1365_v27 = vpop.f32.mrb[2].mxu1  ;;  %v9961_v28 = vld [vmem:[#allocation2 + $0xa6c] ss:$12 sps:$4 sm:$0xff]   ;;  %v9964_v29 = vld [vmem:[#allocation2 + $0xa84] ss:$12 sps:$4 sm:$0xff]  }
 0x1f4   :  { %v1366_v39 = vpop.f32.mrb[3].mxu1  ;;  %3338 = vmatprep.subr.bf16.mxu0 %v9907_v30  ;;  %3377 = vmatprep.subr.bf16.mxu1 %v9910_v1  ;;  %v9972_v34 = vld [vmem:[#allocation2 + $0x848] ss:$12 sps:$4 sm:$0xff]   ;;  %v10038_v27 = vld [vmem:[%s12482_s0 + $0x4] ss:$72 sps:$4 sm:$0xff]  }
 0x1f5   :  { %v10039_v39 = vld [vmem:[%s12482_s0 + $0x94] ss:$72 sps:$4 sm:$0xff]  }
 0x1f7   :  { %3339 = vmatpush1.bf16.msra.mxu0 %v9905_v12  ;;  %3378 = vmatpush1.bf16.msra.mxu1 %v9908_v32  ;;  %v9962_v12 = vld [vmem:[#allocation2 + $0xa80] ss:$12 sps:$4 sm:$0xff]   ;;  %v2662_v32 = vpop.permute.xlu0 %2661 }
 0x1f8   :  { %3340 = vmatprep.subr.bf16.mxu0 %v9913_v36  ;;  %3379 = vmatprep.subr.bf16.mxu1 %v9916_v38  ;;  %v11748_v36 = vpop.permute.xlu1 %3780  ;;  %v10034_v38 = vld [vmem:[%s12482_s0 + $0x8] ss:$72 sps:$4 sm:$0xff]  }
 0x1fb   :  { %3341 = vmatpush1.bf16.msra.mxu0 %v9911_v40  ;;  %3380 = vmatpush1.bf16.msra.mxu1 %v9914_v42  ;;  %v11764_v40 = vsel %vm2673_vm2, %v2662_v32, %v11722_v62  ;;  %v9969_v42 = vld [vmem:[#allocation2 + $0xa98] ss:$12 sps:$4 sm:$0xff]  }
 0x1fc   :  { %3342 = vmatprep.subr.bf16.mxu0 %v9919_v37  ;;  %3381 = vmatprep.subr.bf16.mxu1 %v9922_v44  ;;  %v9975_v37 = vld [vmem:[#allocation2 + $0x788] ss:$12 sps:$4 sm:$0xff]   ;;  %v3635_v44 = vrot.slane %v10034_v38, %v11513_v5 }
 0x1ff   :  { %3343 = vmatpush1.bf16.msra.mxu0 %v9917_v48  ;;  %3382 = vmatpush1.bf16.msra.mxu1 %v9920_v49  ;;  %v9980_v49 = vld [vmem:[#allocation2 + $0xab4] ss:$12 sps:$4 sm:$0xff]  }
 0x200   :  { %3344 = vmatprep.subr.bf16.mxu0 %v9925_v50  ;;  %3383 = vmatprep.subr.bf16.mxu1 %v9928_v46  ;;  %v3628_v50 = vrot.slane %v10038_v27, %v11513_v5  ;;  %v3642_v46 = vrot.slane %v10039_v39, %v11513_v5 }
 0x203   :  { %3345 = vmatpush1.bf16.msra.mxu0 %v9923_v51  ;;  %3384 = vmatpush1.bf16.msra.mxu1 %v9926_v41  ;;  %v9981_v51 = vld [vmem:[#allocation2 + $0x860] ss:$12 sps:$4 sm:$0xff]   ;;  %v11771_v41 = vpop.permute.xlu1 %3778 }
 0x204   :  { %3346 = vmatprep.subr.bf16.mxu0 %v9931_v53  ;;  %3385 = vmatprep.subr.bf16.mxu1 %v9934_v54  ;;  %v10040_v53 = vld [vmem:[%s12482_s0 + $0xc] ss:$72 sps:$4 sm:$0xff]   ;;  %v10041_v54 = vld [vmem:[%s12482_s0 + $0x9c] ss:$72 sps:$4 sm:$0xff]  }
 0x207   :  { %3347 = vmatpush1.bf16.msra.mxu0 %v9929_v55  ;;  %3386 = vmatpush1.bf16.msra.mxu1 %v9932_v56  ;;  %v11782_v55 = vsel %vm3784_vm3, %v11746_v2, %v11771_v41  ;;  %v3651_v56 = vcombine.high %v3628_v50, %v3642_v46 }
 0x208   :  { %3348 = vmatprep.subr.bf16.mxu0 %v9937_v57  ;;  %3387 = vmatprep.subr.bf16.mxu1 %v9940_v58  ;;  %v11787_v57 = vsel %vm2673_vm2, %v11716_v52, %v11731_v7  ;;  %v9978_v58 = vld [vmem:[#allocation2 + $0xab0] ss:$12 sps:$4 sm:$0xff]   ;;  %v3650_v7 = vcombine.low %v3628_v50, %v3642_v46  ;;  %v10009_v46 = vld [vmem:[#allocation2 + $0x9c8] ss:$12 sps:$4 sm:$0xff]  }
 0x209   :  { %v10008_v50 = vld [vmem:[#allocation2 + $0x8f0] ss:$12 sps:$4 sm:$0xff]  }
 0x20b   :  { %3349 = vmatpush1.bf16.msra.mxu0 %v9935_v60  ;;  %3388 = vmatpush1.bf16.msra.mxu1 %v9938_v61  ;;  %v9982_v60 = vld [vmem:[#allocation2 + $0x7a0] ss:$12 sps:$4 sm:$0xff]  }
 0x20c   :  { %3350 = vmatprep.subr.bf16.mxu0 %v9943_v63  ;;  %3389 = vmatprep.subr.bf16.mxu1 %v9946_v0  ;;  %v11791_v63 = vrot.slane %v10040_v53, %v11513_v5  ;;  %v11794_v0 = vrot.slane %v10041_v54, %v11513_v5  ;;  %v10010_v54 = vld [vmem:[#allocation2 + $0x830] ss:$12 sps:$4 sm:$0xff]  }
 0x20d   :  { %v1402_v10 = vpop.f32.mrb[4].mxu0 }
 0x20e   :  { %v11740_v15 = vadd.f32 %v1402_v10, %v1362_v33  ;;  %v1404_v16 = vpop.f32.mrb[5].mxu0  ;;  %v9971_v33 = vld [vmem:[#allocation2 + $0xa9c] ss:$12 sps:$4 sm:$0xff]   ;;  %v3670_v52 = vcombine.low %v11791_v63, %v11794_v0  ;;  %v9987_v10 = vld [vmem:[#allocation2 + $0x7b8] ss:$12 sps:$4 sm:$0xff]  }
 0x20f   :  { %v11742_v20 = vadd.f32 %v1404_v16, %v1364_v23  ;;  %v1406_v21 = vpop.f32.mrb[6].mxu0  ;;  %3351 = vmatpush1.bf16.msra.mxu0 %v9941_v4  ;;  %3390 = vmatpush1.bf16.msra.mxu1 %v9944_v6  ;;  %v10036_v23 = vld [vmem:[%s12482_s0 + $0x98] ss:$72 sps:$4 sm:$0xff]   ;;  %v9991_v16 = vld [vmem:[#allocation2 + $0x890] ss:$12 sps:$4 sm:$0xff]  }
 0x210   :  { %v1407_v22 = vpop.f32.mrb[7].mxu0  ;;  %3352 = vmatprep.subr.bf16.mxu0 %v9949_v35  ;;  %3391 = vmatprep.subr.bf16.mxu1 %v9952_v8  ;;  %v3649_v48 = vrot.slane %v10036_v23, %v11513_v5  ;;  %v9985_v4 = vld [vmem:[#allocation2 + $0xacc] ss:$12 sps:$4 sm:$0xff]   ;;  %v3679_v35 = vpack.c.bf16 %v3651_v56, %v3651_v56  ;;  %v9983_v8 = vld [vmem:[#allocation2 + $0xac8] ss:$12 sps:$4 sm:$0xff]  }
 0x211   :  { %v8644_v24 = vpop.f32.mrb[4].mxu1  ;;  %v9986_v6 = vld [vmem:[#allocation2 + $0x878] ss:$12 sps:$4 sm:$0xff]   ;;  %v9988_v21 = vld [vmem:[#allocation2 + $0xae0] ss:$12 sps:$4 sm:$0xff]  }
 0x212   :  { %v8645_v26 = vpop.f32.mrb[5].mxu1  ;;  %v3652_v62 = vcombine.low %v3635_v44, %v3649_v48  ;;  %4046 = vrot.lane.b32.xlu0 %v3679_v35, %s11332_s3  ;;  %v10011_v56 = vld [vmem:[#allocation2 + $0x908] ss:$12 sps:$4 sm:$0xff]  }
 0x213   :  { %v11744_v30 = vadd.f32 %v8645_v26, %v8644_v24  ;;  %v8647_v1 = vpop.f32.mrb[6].mxu1  ;;  %3353 = vmatpush1.bf16.msra.mxu0 %v9947_v13  ;;  %3392 = vmatpush1.bf16.msra.mxu1 %v9950_v14  ;;  %v3682_v13 = vpack.c.bf16 %v3670_v52, %v3670_v52  ;;  %v9990_v14 = vld [vmem:[#allocation2 + $0xae4] ss:$12 sps:$4 sm:$0xff]   ;;  %v9995_v24 = vld [vmem:[#allocation2 + $0xafc] ss:$12 sps:$4 sm:$0xff]  }
 0x214   :  { %v8648_v31 = vpop.f32.mrb[7].mxu1  ;;  %3354 = vmatprep.subr.bf16.mxu0 %v9955_v18  ;;  %3393 = vmatprep.subr.bf16.mxu1 %v9958_v19  ;;  %v3680_v61 = vpack.c.bf16 %v3652_v62, %v3652_v62  ;;  %v3678_v18 = vpack.c.bf16 %v3650_v7, %v3650_v7  ;;  %v3653_v19 = vcombine.high %v3635_v44, %v3649_v48  ;;  %v9997_v26 = vld [vmem:[#allocation2 + $0x7e8] ss:$12 sps:$4 sm:$0xff]   ;;  %v10007_v44 = vld [vmem:[#allocation2 + $0x818] ss:$12 sps:$4 sm:$0xff]  }
 0x215   :  { %v9998_v31 = vld [vmem:[#allocation2 + $0xb10] ss:$12 sps:$4 sm:$0xff]   ;;  %v10017_v7 = vld [vmem:[#allocation2 + $0xaa0] ss:$12 sps:$4 sm:$0xff]  }
 0x216   :  { %4048 = vrot.lane.b32.xlu1 %v3680_v61, %s11332_s3  ;;  %v3681_v22 = vpack.c.bf16 %v3653_v19, %v3653_v19  ;;  %4044 = vrot.lane.b32.xlu0 %v3678_v18, %s11332_s3  ;;  %v10013_v61 = vld [vmem:[#allocation2 + $0x920] ss:$12 sps:$4 sm:$0xff]   ;;  %v10023_v18 = vld [vmem:[#allocation2 + $0xad0] ss:$12 sps:$4 sm:$0xff]  }
 0x217   :  { %3355 = vmatpush1.bf16.msra.mxu0 %v9953_v25  ;;  %3394 = vmatpush1.bf16.msra.mxu1 %v9956_v47  ;;  %v9996_v25 = vld [vmem:[#allocation2 + $0x8a8] ss:$12 sps:$4 sm:$0xff]   ;;  %v9993_v47 = vld [vmem:[#allocation2 + $0xaf8] ss:$12 sps:$4 sm:$0xff]   ;;  %v10024_v19 = vld [vmem:[#allocation2 + $0xa40] ss:$12 sps:$4 sm:$0xff]  }
 0x218   :  { %3395 = vmatprep.subr.bf16.mxu1 %v9961_v28  ;;  %3406 = vmatprep.subr.bf16.mxu0 %v9964_v29  ;;  %v10000_v28 = vld [vmem:[#allocation2 + $0xb14] ss:$12 sps:$4 sm:$0xff]  }
 0x219   :  { %v10001_v29 = vld [vmem:[#allocation2 + $0x8c0] ss:$12 sps:$4 sm:$0xff]  }
 0x21a   :  { %3357 = vmatmul.mubr.bf16.vlgmr.msra.gmra.mrb[24].mxu0 %v11764_v40  ;;  %4052 = vrot.lane.b32.xlu1 %v3682_v13, %s11332_s3  ;;  %v10020_v13 = vld [vmem:[#allocation2 + $0xab8] ss:$12 sps:$4 sm:$0xff]  }
 0x21b   :  { %3396 = vmatpush1.bf16.msra.mxu1 %v9959_v11  ;;  %3407 = vmatpush1.bf16.msra.mxu0 %v9962_v12  ;;  %v10002_v11 = vld [vmem:[#allocation2 + $0x800] ss:$12 sps:$4 sm:$0xff]   ;;  %v2672_v12 = vpop.permute.xlu0 %2671 }
 0x21c   :  { %3408 = vmatprep.subr.bf16.mxu0 %v9971_v33  ;;  %8734 = vmatprep.subr.bf16.mxu1 %v9972_v34  ;;  %v10005_v33 = vld [vmem:[#allocation2 + $0xb2c] ss:$12 sps:$4 sm:$0xff]  }
 0x21d   :  { %3438 = vmatprep.mubr.bf16.mxu0 %v11338_v45  ;;  %v10006_v34 = vld [vmem:[#allocation2 + $0x8d8] ss:$12 sps:$4 sm:$0xff]  }
 0x21e   :  { %3398 = vmatmul.mubr.bf16.vlgmr.msra.gmra.mrb[24].mxu1 %v11787_v57  ;;  %4050 = vrot.lane.b32.xlu1 %v3681_v22, %s11332_s3  ;;  %v10029_v22 = vld [vmem:[#allocation2 + $0xb00] ss:$12 sps:$4 sm:$0xff]  }
 0x21f   :  { %3409 = vmatpush1.bf16.msra.mxu0 %v9969_v42  ;;  %8735 = vmatpush3.bf16.msra.mxu1 %v9975_v37  ;;  %v10003_v37 = vld [vmem:[#allocation2 + $0xb28] ss:$12 sps:$4 sm:$0xff]   ;;  %v11806_v48 = vpop.permute.xlu0 %3774 }
 0x220   :  { %3479 = vmatprep.mubr.bf16.mxu1 %v11728_v17  ;;  %3410 = vmatprep.subr.bf16.mxu0 %v9980_v49  ;;  %v9992_v17 = vld [vmem:[#allocation2 + $0x7d0] ss:$12 sps:$4 sm:$0xff]  }
 0x221   :  { %8736 = vmatprep.subr.bf16.mxu1 %v9981_v51 }
 0x223   :  { %3411 = vmatpush1.bf16.msra.mxu0 %v9978_v58  ;;  %8737 = vmatpush3.bf16.msra.mxu1 %v9982_v60  ;;  %v10012_v58 = vld [vmem:[#allocation2 + $0x9e0] ss:$12 sps:$4 sm:$0xff]   ;;  %v11814_v60 = vpop.permute.xlu0 %3772 }
 0x224   :  { %3412 = vmatprep.subr.bf16.mxu0 %v9985_v4  ;;  %8738 = vmatprep.subr.bf16.mxu1 %v9986_v6  ;;  %v10014_v4 = vld [vmem:[#allocation2 + $0xa88] ss:$12 sps:$4 sm:$0xff]   ;;  %v10015_v6 = vld [vmem:[#allocation2 + $0x9f8] ss:$12 sps:$4 sm:$0xff]  }
 0x227   :  { %3413 = vmatpush1.bf16.msra.mxu0 %v9983_v8  ;;  %8739 = vmatpush3.bf16.msra.mxu1 %v9987_v10  ;;  %v10018_v8 = vld [vmem:[#allocation2 + $0xa10] ss:$12 sps:$4 sm:$0xff]  }
 0x228   :  { %3414 = vmatprep.subr.bf16.mxu0 %v9990_v14  ;;  %8740 = vmatprep.subr.bf16.mxu1 %v9991_v16  ;;  %v10019_v10 = vld [vmem:[#allocation2 + $0x950] ss:$12 sps:$4 sm:$0xff]   ;;  %v3671_v14 = vcombine.high %v11791_v63, %v11794_v0  ;;  %v10027_v63 = vld [vmem:[#allocation2 + $0xa58] ss:$12 sps:$4 sm:$0xff]  }
 0x229   :  { %v10028_v0 = vld [vmem:[#allocation2 + $0x998] ss:$12 sps:$4 sm:$0xff]  }
 0x22a   :  { %v3683_v16 = vpack.c.bf16 %v3671_v14, %v3671_v14 }
 0x22b   :  { %3415 = vmatpush1.bf16.msra.mxu0 %v9988_v21  ;;  %8741 = vmatpush3.bf16.msra.mxu1 %v9992_v17  ;;  %v10025_v21 = vld [vmem:[#allocation2 + $0x980] ss:$12 sps:$4 sm:$0xff]   ;;  %v10026_v17 = vld [vmem:[#allocation2 + $0xae8] ss:$12 sps:$4 sm:$0xff]  }
 0x22c   :  { %3416 = vmatprep.subr.bf16.mxu0 %v9995_v24  ;;  %8742 = vmatprep.subr.bf16.mxu1 %v9996_v25  ;;  %v10030_v24 = vld [vmem:[#allocation2 + $0xa70] ss:$12 sps:$4 sm:$0xff]  }
 0x22d   :  { %v8666_v1 = vpop.f32.mrb[8].mxu0  ;;  %4054 = vrot.lane.b32.xlu0 %v3683_v16, %s11332_s3  ;;  %v10031_v25 = vld [vmem:[#allocation2 + $0x9b0] ss:$12 sps:$4 sm:$0xff]  }
 0x22e   :  { %v8667_v32 = vpop.f32.mrb[9].mxu0  ;;  %v10423_v16 = vld [vmem:[#allocation2 + $0x5d0] ss:$12 sps:$4 sm:$0xff]  }
 0x22f   :  { %v8668_v38 = vadd.f32 %v8667_v32, %v8666_v1  ;;  %v8669_v23 = vpop.f32.mrb[10].mxu0  ;;  %3417 = vmatpush1.bf16.msra.mxu0 %v9993_v47  ;;  %8743 = vmatpush3.bf16.msra.mxu1 %v9997_v26  ;;  %v10032_v47 = vld [vmem:[#allocation2 + $0xb18] ss:$12 sps:$4 sm:$0xff]   ;;  %v10033_v26 = vld [vmem:[#allocation2 + $0xb30] ss:$12 sps:$4 sm:$0xff]  }
 0x230   :  { %v8670_v27 = vpop.f32.mrb[11].mxu0  ;;  %3418 = vmatprep.subr.bf16.mxu0 %v10000_v28  ;;  %8744 = vmatprep.subr.bf16.mxu1 %v10001_v29  ;;  %v10394_v28 = vld [vmem:[#allocation2 + $0x3c4] ss:$12 sps:$4 sm:$0xff]   ;;  %v11840_v29 = vsel %vm3784_vm3, %v11806_v48, %v11746_v2  ;;  %v10395_v1 = vld [vmem:[#allocation2 + $0x3c0] ss:$12 sps:$4 sm:$0xff]  }
 0x231   :  { %v1484_v39 = vadd.f32 %v8668_v38, %v11744_v30  ;;  %v1523_v42 = vpop.f32.mrb[8].mxu1  ;;  %v11812_v30 = vsel %vm2673_vm2, %v11719_v59, %v2672_v12  ;;  %v10016_v59 = vld [vmem:[#allocation2 + $0x938] ss:$12 sps:$4 sm:$0xff]   ;;  %v10399_v2 = vld [vmem:[#allocation2 + $0x540] ss:$12 sps:$4 sm:$0xff]  }
 0x232   :  { %v9260_v49 = vpop.f32.mrb[9].mxu1  ;;  %v10398_v12 = vld [vmem:[#allocation2 + $0x3d8] ss:$12 sps:$4 sm:$0xff]   ;;  %v10400_v32 = vld [vmem:[#allocation2 + $0x3f4] ss:$12 sps:$4 sm:$0xff]  }
 0x233   :  { %v11808_v51 = vadd.f32 %v1523_v42, %v1484_v39  ;;  %v1526_v62 = vpop.f32.mrb[10].mxu1  ;;  %3419 = vmatpush1.bf16.msra.mxu0 %v9998_v31  ;;  %8745 = vmatpush3.bf16.msra.mxu1 %v10002_v11  ;;  %v3783_v35 = vpop.permute.xlu0 %3782  ;;  %v10396_v31 = vld [vmem:[#allocation2 + $0x3dc] ss:$12 sps:$4 sm:$0xff]   ;;  %v10397_v11 = vld [vmem:[#allocation2 + $0x544] ss:$12 sps:$4 sm:$0xff]  }
 0x234   :  { %v9261_v53 = vpop.f32.mrb[11].mxu1  ;;  %3420 = vmatprep.subr.bf16.mxu0 %v10005_v33  ;;  %8746 = vmatprep.subr.bf16.mxu1 %v10006_v34  ;;  %v11820_v52 = vsel %vm3784_vm3, %v11748_v36, %v3783_v35  ;;  %v10401_v33 = vld [vmem:[#allocation2 + $0x55c] ss:$12 sps:$4 sm:$0xff]   ;;  %v10403_v38 = vld [vmem:[#allocation2 + $0x558] ss:$12 sps:$4 sm:$0xff]  }
 0x235   :  { %v10402_v34 = vld [vmem:[#allocation2 + $0x3f0] ss:$12 sps:$4 sm:$0xff]   ;;  %v10404_v23 = vld [vmem:[#allocation2 + $0x40c] ss:$12 sps:$4 sm:$0xff]   ;;  %v10405_v27 = vld [vmem:[#allocation2 + $0x574] ss:$12 sps:$4 sm:$0xff]  }
 0x236   :  { %v10408_v39 = vld [vmem:[#allocation2 + $0x424] ss:$12 sps:$4 sm:$0xff]   ;;  %v10409_v42 = vld [vmem:[#allocation2 + $0x58c] ss:$12 sps:$4 sm:$0xff]   ;;  %v10412_v49 = vld [vmem:[#allocation2 + $0x43c] ss:$12 sps:$4 sm:$0xff]  }
 0x237   :  { %3421 = vmatpush1.bf16.msra.mxu0 %v10003_v37  ;;  %8747 = vmatpush3.bf16.msra.mxu1 %v10007_v44  ;;  %v10410_v37 = vld [vmem:[#allocation2 + $0x420] ss:$12 sps:$4 sm:$0xff]   ;;  %v10411_v44 = vld [vmem:[#allocation2 + $0x588] ss:$12 sps:$4 sm:$0xff]  }
 0x238   :  { %8748 = vmatprep.subr.bf16.mxu1 %v10008_v50  ;;  %8756 = vmatprep.subr.bf16.mxu0 %v10009_v46  ;;  %v10413_v50 = vld [vmem:[#allocation2 + $0x5a4] ss:$12 sps:$4 sm:$0xff]  }
 0x23a   :  { %3439 = vmatmul.mubr.bf16.vlgmr.msra.gmra.mrb[28].mxu0 %v11812_v30 }
 0x23b   :  { %8749 = vmatpush3.bf16.msra.mxu1 %v10010_v54  ;;  %8757 = vmatpush3.bf16.msra.mxu0 %v10011_v56 }
 0x23c   :  { %3519 = vmatprep.mubr.bf16.mxu0 %v11737_v9  ;;  %8758 = vmatprep.subr.bf16.mxu0 %v10012_v58  ;;  %v10021_v9 = vld [vmem:[#allocation2 + $0xa28] ss:$12 sps:$4 sm:$0xff]   ;;  %v10414_v58 = vld [vmem:[#allocation2 + $0x438] ss:$12 sps:$4 sm:$0xff]  }
 0x23d   :  { %9282 = vmatprep.subr.bf16.mxu1 %v11340_v43 }
 0x23e   :  { %3480 = vmatmul.mubr.bf16.vlgmr.msra.gmra.mrb[28].mxu1 %v11764_v40  ;;  %v10022_v40 = vld [vmem:[#allocation2 + $0x968] ss:$12 sps:$4 sm:$0xff]  }
 0x23f   :  { %8759 = vmatpush3.bf16.msra.mxu0 %v10013_v61  ;;  %9283 = vmatpush3.bf16.msra.mxu1 %v10014_v4  ;;  %v10416_v4 = vld [vmem:[#allocation2 + $0x454] ss:$12 sps:$4 sm:$0xff]  }
 0x240   :  { %8760 = vmatprep.subr.bf16.mxu0 %v10015_v6  ;;  %9284 = vmatprep.subr.bf16.mxu1 %v11340_v43  ;;  %v10417_v6 = vld [vmem:[#allocation2 + $0x5bc] ss:$12 sps:$4 sm:$0xff]  }
 0x241   :  { %9298 = vmatprep.mubr.msk.bf16.mxu1 %vm11341_vm1, %v11340_v43 }
 0x243   :  { %8761 = vmatpush3.bf16.msra.mxu0 %v10016_v59  ;;  %9285 = vmatpush3.bf16.msra.mxu1 %v10017_v7 }
 0x244   :  { %8762 = vmatprep.subr.bf16.mxu0 %v10018_v8  ;;  %9286 = vmatprep.subr.bf16.mxu1 %v11340_v43 }
 0x247   :  { %8763 = vmatpush3.bf16.msra.mxu0 %v10019_v10  ;;  %9287 = vmatpush3.bf16.msra.mxu1 %v10020_v13  ;;  %v10418_v10 = vld [vmem:[#allocation2 + $0x450] ss:$12 sps:$4 sm:$0xff]  }
 0x248   :  { %8764 = vmatprep.subr.bf16.mxu0 %v10021_v9  ;;  %9288 = vmatprep.subr.bf16.mxu1 %v11340_v43  ;;  %v10421_v9 = vld [vmem:[#allocation2 + $0x5d4] ss:$12 sps:$4 sm:$0xff]  }
 0x24b   :  { %8765 = vmatpush3.bf16.msra.mxu0 %v10022_v40  ;;  %9289 = vmatpush3.bf16.msra.mxu1 %v10023_v18  ;;  %v10422_v40 = vld [vmem:[#allocation2 + $0x468] ss:$12 sps:$4 sm:$0xff]   ;;  %v10424_v18 = vld [vmem:[#allocation2 + $0x484] ss:$12 sps:$4 sm:$0xff]  }
 0x24c   :  { %8766 = vmatprep.subr.bf16.mxu0 %v10024_v19  ;;  %9290 = vmatprep.subr.bf16.mxu1 %v11340_v43  ;;  %v10425_v19 = vld [vmem:[#allocation2 + $0x5ec] ss:$12 sps:$4 sm:$0xff]  }
 0x24f   :  { %8767 = vmatpush3.bf16.msra.mxu0 %v10025_v21  ;;  %9291 = vmatpush3.bf16.msra.mxu1 %v10026_v17  ;;  %v10426_v21 = vld [vmem:[#allocation2 + $0x480] ss:$12 sps:$4 sm:$0xff]   ;;  %v10427_v17 = vld [vmem:[#allocation2 + $0x5e8] ss:$12 sps:$4 sm:$0xff]  }
 0x250   :  { %8768 = vmatprep.subr.bf16.mxu0 %v10027_v63  ;;  %9292 = vmatprep.subr.bf16.mxu1 %v11340_v43  ;;  %v10428_v63 = vld [vmem:[#allocation2 + $0x49c] ss:$12 sps:$4 sm:$0xff]  }
 0x253   :  { %8769 = vmatpush3.bf16.msra.mxu0 %v10028_v0  ;;  %9293 = vmatpush3.bf16.msra.mxu1 %v10029_v22  ;;  %v10429_v0 = vld [vmem:[#allocation2 + $0x604] ss:$12 sps:$4 sm:$0xff]  }
 0x254   :  { %8770 = vmatprep.subr.bf16.mxu0 %v10030_v24  ;;  %9294 = vmatprep.subr.bf16.mxu1 %v11340_v43  ;;  %v10430_v22 = vld [vmem:[#allocation2 + $0x498] ss:$12 sps:$4 sm:$0xff]   ;;  %v10431_v24 = vld [vmem:[#allocation2 + $0x600] ss:$12 sps:$4 sm:$0xff]  }
 0x257   :  { %8771 = vmatpush3.bf16.msra.mxu0 %v10031_v25  ;;  %9295 = vmatpush3.bf16.msra.mxu1 %v10032_v47  ;;  %v10432_v25 = vld [vmem:[#allocation2 + $0x4b4] ss:$12 sps:$4 sm:$0xff]   ;;  %v10433_v47 = vld [vmem:[#allocation2 + $0x61c] ss:$12 sps:$4 sm:$0xff]  }
 0x258   :  { %9296 = vmatprep.subr.bf16.mxu1 %v11340_v43  ;;  %3795 = vmatprep.subr.bf16.mxu0 %v10394_v28  ;;  %v10435_v28 = vld [vmem:[#allocation2 + $0x618] ss:$12 sps:$4 sm:$0xff]  }
 0x25a   :  { %3520 = vmatmul.mubr.bf16.vlgmr.msra.gmra.mrb[32].mxu0 %v11787_v57  ;;  %v11847_v57 = vsel %vm3784_vm3, %v11771_v41, %v11748_v36  ;;  %v10406_v36 = vld [vmem:[#allocation2 + $0x408] ss:$12 sps:$4 sm:$0xff]   ;;  %v10407_v41 = vld [vmem:[#allocation2 + $0x570] ss:$12 sps:$4 sm:$0xff]  }
 0x25b   :  { %9297 = vmatpush3.bf16.msra.mxu1 %v10033_v26  ;;  %3796 = vmatpush1.bf16.msra.mxu0 %v10395_v1  ;;  %v10434_v26 = vld [vmem:[#allocation2 + $0x4b0] ss:$12 sps:$4 sm:$0xff]   ;;  %v10436_v1 = vld [vmem:[#allocation2 + $0x4cc] ss:$12 sps:$4 sm:$0xff]  }
 0x25c   :  { %3797 = vmatprep.subr.bf16.mxu0 %v10396_v31  ;;  %3836 = vmatprep.subr.bf16.mxu1 %v10397_v11  ;;  %v10437_v31 = vld [vmem:[#allocation2 + $0x634] ss:$12 sps:$4 sm:$0xff]  }
 0x25d   :  { %3827 = vmatprep.mubr.bf16.mxu0 %v11840_v29  ;;  %v10438_v11 = vld [vmem:[#allocation2 + $0x4c8] ss:$12 sps:$4 sm:$0xff]  }
 0x25e   :  { %9299 = vmatmul.mubr.bf16.vlgmr.msra.gmra.mrb[32].mxu1 %v11812_v30  ;;  %v10415_v30 = vld [vmem:[#allocation2 + $0x5a0] ss:$12 sps:$4 sm:$0xff]  }
 0x25f   :  { %3798 = vmatpush1.bf16.msra.mxu0 %v10398_v12  ;;  %3837 = vmatpush1.bf16.msra.mxu1 %v10399_v2  ;;  %v10439_v12 = vld [vmem:[#allocation2 + $0x630] ss:$12 sps:$4 sm:$0xff]  }
 0x260   :  { %3799 = vmatprep.subr.bf16.mxu0 %v10400_v32  ;;  %3838 = vmatprep.subr.bf16.mxu1 %v10401_v33  ;;  %v10440_v2 = vld [vmem:[#allocation2 + $0x4e4] ss:$12 sps:$4 sm:$0xff]   ;;  %v10441_v32 = vld [vmem:[#allocation2 + $0x64c] ss:$12 sps:$4 sm:$0xff]  }
 0x261   :  { %3868 = vmatprep.mubr.bf16.mxu1 %v11847_v57  ;;  %v10442_v33 = vld [vmem:[#allocation2 + $0x4e0] ss:$12 sps:$4 sm:$0xff]  }
 0x263   :  { %3800 = vmatpush1.bf16.msra.mxu0 %v10402_v34  ;;  %3839 = vmatpush1.bf16.msra.mxu1 %v10403_v38  ;;  %v10443_v34 = vld [vmem:[#allocation2 + $0x648] ss:$12 sps:$4 sm:$0xff]  }
 0x264   :  { %3801 = vmatprep.subr.bf16.mxu0 %v10404_v23  ;;  %3840 = vmatprep.subr.bf16.mxu1 %v10405_v27  ;;  %v10444_v38 = vld [vmem:[#allocation2 + $0x4fc] ss:$12 sps:$4 sm:$0xff]   ;;  %v10445_v23 = vld [vmem:[#allocation2 + $0x664] ss:$12 sps:$4 sm:$0xff]  }
 0x267   :  { %3802 = vmatpush1.bf16.msra.mxu0 %v10406_v36  ;;  %3841 = vmatpush1.bf16.msra.mxu1 %v10407_v41 }
 0x268   :  { %3803 = vmatprep.subr.bf16.mxu0 %v10408_v39  ;;  %3842 = vmatprep.subr.bf16.mxu1 %v10409_v42 }
 0x26b   :  { %3804 = vmatpush1.bf16.msra.mxu0 %v10410_v37  ;;  %3843 = vmatpush1.bf16.msra.mxu1 %v10411_v44  ;;  %v10446_v37 = vld [vmem:[#allocation2 + $0x4f8] ss:$12 sps:$4 sm:$0xff]   ;;  %v10447_v44 = vld [vmem:[#allocation2 + $0x660] ss:$12 sps:$4 sm:$0xff]  }
 0x26c   :  { %3805 = vmatprep.subr.bf16.mxu0 %v10412_v49  ;;  %3844 = vmatprep.subr.bf16.mxu1 %v10413_v50  ;;  %v10448_v50 = vld [vmem:[#allocation2 + $0x514] ss:$12 sps:$4 sm:$0xff]  }
 0x26d   :  { %v2203_v46 = vpop.f32.mrb[12].mxu0 }
 0x26e   :  { %v2204_v62 = vadd.f32 %v2203_v46, %v11740_v15  ;;  %v2205_v53 = vpop.f32.mrb[13].mxu0  ;;  %v10419_v15 = vld [vmem:[#allocation2 + $0x5b8] ss:$12 sps:$4 sm:$0xff]   ;;  %v10449_v46 = vld [vmem:[#allocation2 + $0x67c] ss:$12 sps:$4 sm:$0xff]  }
 0x26f   :  { %v2206_v54 = vadd.f32 %v2205_v53, %v11742_v20  ;;  %v2207_v56 = vpop.f32.mrb[14].mxu0  ;;  %3806 = vmatpush1.bf16.msra.mxu0 %v10414_v58  ;;  %3845 = vmatpush1.bf16.msra.mxu1 %v10415_v30  ;;  %v10420_v20 = vld [vmem:[#allocation2 + $0x46c] ss:$12 sps:$4 sm:$0xff]  }
 0x270   :  { %v2208_v61 = vpop.f32.mrb[15].mxu0  ;;  %3807 = vmatprep.subr.bf16.mxu0 %v10416_v4  ;;  %3846 = vmatprep.subr.bf16.mxu1 %v10417_v6  ;;  %v10450_v56 = vld [vmem:[#allocation2 + $0x510] ss:$12 sps:$4 sm:$0xff]   ;;  %v10451_v58 = vld [vmem:[#allocation2 + $0x678] ss:$12 sps:$4 sm:$0xff]  }
 0x271   :  { %v2244_v35 = vpop.f32.mrb[12].mxu1  ;;  %v10452_v4 = vld [vmem:[#allocation2 + $0x52c] ss:$12 sps:$4 sm:$0xff]   ;;  %v10453_v6 = vld [vmem:[#allocation2 + $0x694] ss:$12 sps:$4 sm:$0xff]  }
 0x272   :  { %v2245_v59 = vadd.f32 %v2244_v35, %v2204_v62  ;;  %v2246_v7 = vpop.f32.mrb[13].mxu1 }
 0x273   :  { %v2247_v8 = vadd.f32 %v2246_v7, %v2206_v54  ;;  %3808 = vmatpush1.bf16.msra.mxu0 %v10418_v10  ;;  %3847 = vmatpush1.bf16.msra.mxu1 %v10419_v15  ;;  %v2248_v13 = vpop.f32.mrb[14].mxu1  ;;  %v10454_v7 = vld [vmem:[#allocation2 + $0x528] ss:$12 sps:$4 sm:$0xff]   ;;  %v10042_v15 = vld [vmem:[%s12482_s0 + $0x38] ss:$72 sps:$4 sm:$0xff]  }
 0x274   :  { %3809 = vmatprep.subr.bf16.mxu0 %v10420_v20  ;;  %3848 = vmatprep.subr.bf16.mxu1 %v10421_v9  ;;  %v2249_v14 = vpop.f32.mrb[15].mxu1  ;;  %v10044_v13 = vld [vmem:[%s12482_s0 + $0xc8] ss:$72 sps:$4 sm:$0xff]   ;;  %v10456_v20 = vld [vmem:[#allocation2 + $0x6ac] ss:$12 sps:$4 sm:$0xff]  }
 0x275   :  { %v10457_v9 = vld [vmem:[#allocation2 + $0x6c4] ss:$12 sps:$4 sm:$0xff]  }
 0x276   :  { %v10047_v14 = vld [vmem:[%s12482_s0 + $0xc4] ss:$72 sps:$4 sm:$0xff]  }
 0x277   :  { %3810 = vmatpush1.bf16.msra.mxu0 %v10422_v40  ;;  %3849 = vmatpush1.bf16.msra.mxu1 %v10423_v16  ;;  %v11878_v40 = vsel %vm3784_vm3, %v11814_v60, %v11806_v48  ;;  %v4343_v16 = vrot.slane %v10042_v15, %v11513_v5  ;;  %v10048_v48 = vld [vmem:[%s12482_s0 + $0x3c] ss:$72 sps:$4 sm:$0xff]   ;;  %v10049_v60 = vld [vmem:[%s12482_s0 + $0xcc] ss:$72 sps:$4 sm:$0xff]  }
 0x278   :  { %3811 = vmatprep.subr.bf16.mxu0 %v10424_v18  ;;  %3850 = vmatprep.subr.bf16.mxu1 %v10425_v19  ;;  %v4357_v18 = vrot.slane %v10044_v13, %v11513_v5  ;;  %v10479_v15 = vld [vmem:[#allocation2 + $0x428] ss:$12 sps:$4 sm:$0xff]  }
 0x27b   :  { %3812 = vmatpush1.bf16.msra.mxu0 %v10426_v21  ;;  %3851 = vmatpush1.bf16.msra.mxu1 %v10427_v17  ;;  %v4350_v21 = vrot.slane %v10047_v14, %v11513_v5  ;;  %v10458_v17 = vld [vmem:[#allocation2 + $0x6a8] ss:$12 sps:$4 sm:$0xff]  }
 0x27c   :  { %3813 = vmatprep.subr.bf16.mxu0 %v10428_v63  ;;  %3852 = vmatprep.subr.bf16.mxu1 %v10429_v0  ;;  %v10459_v63 = vld [vmem:[#allocation2 + $0x6c0] ss:$12 sps:$4 sm:$0xff]  }
 0x27f   :  { %3814 = vmatpush1.bf16.msra.mxu0 %v10430_v22  ;;  %3853 = vmatpush1.bf16.msra.mxu1 %v10431_v24  ;;  %v4360_v22 = vcombine.low %v4343_v16, %v4357_v18  ;;  %v10460_v24 = vld [vmem:[#allocation2 + $0x6dc] ss:$12 sps:$4 sm:$0xff]  }
 0x280   :  { %3815 = vmatprep.subr.bf16.mxu0 %v10432_v25  ;;  %3854 = vmatprep.subr.bf16.mxu1 %v10433_v47  ;;  %v10461_v25 = vld [vmem:[#allocation2 + $0x488] ss:$12 sps:$4 sm:$0xff]  }
 0x283   :  { %3816 = vmatpush1.bf16.msra.mxu0 %v10434_v26  ;;  %3855 = vmatpush1.bf16.msra.mxu1 %v10435_v28  ;;  %v4388_v28 = vpack.c.bf16 %v4360_v22, %v4360_v22  ;;  %v10484_v22 = vld [vmem:[#allocation2 + $0x76c] ss:$12 sps:$4 sm:$0xff]  }
 0x284   :  { %3817 = vmatprep.subr.bf16.mxu0 %v10436_v1  ;;  %3856 = vmatprep.subr.bf16.mxu1 %v10437_v31  ;;  %v11900_v1 = vrot.slane %v10048_v48, %v11513_v5  ;;  %v11903_v31 = vrot.slane %v10049_v60, %v11513_v5  ;;  %v10485_v48 = vld [vmem:[#allocation2 + $0x518] ss:$12 sps:$4 sm:$0xff]  }
 0x285   :  { %4402 = vrot.lane.b32.xlu1 %v4388_v28, %s11343_s11  ;;  %v10489_v28 = vld [vmem:[#allocation2 + $0x608] ss:$12 sps:$4 sm:$0xff]  }
 0x287   :  { %3818 = vmatpush1.bf16.msra.mxu0 %v10438_v11  ;;  %3857 = vmatpush1.bf16.msra.mxu1 %v10439_v12  ;;  %v10462_v12 = vld [vmem:[#allocation2 + $0x6d8] ss:$12 sps:$4 sm:$0xff]  }
 0x288   :  { %3819 = vmatprep.subr.bf16.mxu0 %v10440_v2  ;;  %3858 = vmatprep.subr.bf16.mxu1 %v10441_v32  ;;  %v11856_v61 = vpop.permute.xlu1 %4048  ;;  %v10463_v2 = vld [vmem:[#allocation2 + $0x3c8] ss:$12 sps:$4 sm:$0xff]   ;;  %v4378_v32 = vcombine.low %v11900_v1, %v11903_v31 }
 0x28b   :  { %3820 = vmatpush1.bf16.msra.mxu0 %v10442_v33  ;;  %3859 = vmatpush1.bf16.msra.mxu1 %v10443_v34  ;;  %v10464_v33 = vld [vmem:[#allocation2 + $0x6f4] ss:$12 sps:$4 sm:$0xff]  }
 0x28c   :  { %3821 = vmatprep.subr.bf16.mxu0 %v10444_v38  ;;  %3860 = vmatprep.subr.bf16.mxu1 %v10445_v23  ;;  %v11861_v10 = vpop.permute.xlu1 %4052  ;;  %v10465_v38 = vld [vmem:[#allocation2 + $0x4a0] ss:$12 sps:$4 sm:$0xff]   ;;  %v4390_v23 = vpack.c.bf16 %v4378_v32, %v4378_v32 }
 0x28d   :  { %v2285_v27 = vpop.f32.mrb[16].mxu0  ;;  %v10492_v32 = vld [vmem:[#allocation2 + $0x620] ss:$12 sps:$4 sm:$0xff]  }
 0x28e   :  { %v11852_v36 = vadd.f32 %v2285_v27, %v2245_v59  ;;  %v2287_v41 = vpop.f32.mrb[17].mxu0  ;;  %4406 = vrot.lane.b32.xlu1 %v4390_v23, %s11343_s11  ;;  %v10495_v23 = vld [vmem:[#allocation2 + $0x638] ss:$12 sps:$4 sm:$0xff]  }
 0x28f   :  { %v11854_v39 = vadd.f32 %v2287_v41, %v2247_v8  ;;  %v2289_v42 = vpop.f32.mrb[18].mxu0  ;;  %3822 = vmatpush1.bf16.msra.mxu0 %v10446_v37  ;;  %3861 = vmatpush1.bf16.msra.mxu1 %v10447_v44  ;;  %v10455_v8 = vld [vmem:[#allocation2 + $0x690] ss:$12 sps:$4 sm:$0xff]   ;;  %v4361_v37 = vcombine.high %v4343_v16, %v4357_v18  ;;  %v10468_v44 = vld [vmem:[#allocation2 + $0x70c] ss:$12 sps:$4 sm:$0xff]   ;;  %v11915_v16 = vpop.permute.xlu0 %4046 }
 0x290   :  { %v2290_v49 = vpop.f32.mrb[19].mxu0  ;;  %3823 = vmatprep.subr.bf16.mxu0 %v10448_v50  ;;  %3862 = vmatprep.subr.bf16.mxu1 %v10449_v46  ;;  %v11885_v0 = vpop.permute.xlu1 %4050  ;;  %v10466_v41 = vld [vmem:[#allocation2 + $0x6f0] ss:$12 sps:$4 sm:$0xff]   ;;  %v10467_v42 = vld [vmem:[#allocation2 + $0x3e0] ss:$12 sps:$4 sm:$0xff]  }
 0x291   :  { %v8697_v62 = vpop.f32.mrb[16].mxu1  ;;  %v11896_v47 = vsel %vm4056_vm4, %v11856_v61, %v11885_v0  ;;  %v4389_v49 = vpack.c.bf16 %v4361_v37, %v4361_v37  ;;  %v10470_v50 = vld [vmem:[#allocation2 + $0x708] ss:$12 sps:$4 sm:$0xff]   ;;  %v10471_v46 = vld [vmem:[#allocation2 + $0x3f8] ss:$12 sps:$4 sm:$0xff]  }
 0x292   :  { %v8698_v53 = vpop.f32.mrb[17].mxu1  ;;  %v10499_v37 = vld [vmem:[#allocation2 + $0x590] ss:$12 sps:$4 sm:$0xff]  }
 0x293   :  { %v8699_v54 = vadd.f32 %v8698_v53, %v8697_v62  ;;  %3824 = vmatpush1.bf16.msra.mxu0 %v10450_v56  ;;  %3863 = vmatpush1.bf16.msra.mxu1 %v10451_v58  ;;  %v8700_v30 = vpop.f32.mrb[18].mxu1  ;;  %v10472_v62 = vld [vmem:[#allocation2 + $0x724] ss:$12 sps:$4 sm:$0xff]   ;;  %v10476_v58 = vld [vmem:[#allocation2 + $0x73c] ss:$12 sps:$4 sm:$0xff]  }
 0x294   :  { %3825 = vmatprep.subr.bf16.mxu0 %v10452_v4  ;;  %3864 = vmatprep.subr.bf16.mxu1 %v10453_v6  ;;  %v8701_v35 = vpop.f32.mrb[19].mxu1  ;;  %v10473_v53 = vld [vmem:[#allocation2 + $0x4d0] ss:$12 sps:$4 sm:$0xff]   ;;  %v10477_v30 = vld [vmem:[#allocation2 + $0x4e8] ss:$12 sps:$4 sm:$0xff]  }
 0x295   :  { %v11859_v59 = vadd.f32 %v8699_v54, %v11808_v51  ;;  %v10046_v51 = vld [vmem:[%s12482_s0 + $0x34] ss:$72 sps:$4 sm:$0xff]   ;;  %4404 = vrot.lane.b32.xlu1 %v4389_v49, %s11343_s11  ;;  %v10474_v54 = vld [vmem:[#allocation2 + $0x720] ss:$12 sps:$4 sm:$0xff]  }
 0x296   :  { %v4336_v19 = vrot.slane %v10046_v51, %v11513_v5  ;;  %v10475_v56 = vld [vmem:[#allocation2 + $0x410] ss:$12 sps:$4 sm:$0xff]   ;;  %v10502_v49 = vld [vmem:[#allocation2 + $0x5a8] ss:$12 sps:$4 sm:$0xff]  }
 0x297   :  { %3826 = vmatpush1.bf16.msra.mxu0 %v10454_v7  ;;  %3865 = vmatpush1.bf16.msra.mxu1 %v10455_v8  ;;  %v10478_v8 = vld [vmem:[#allocation2 + $0x738] ss:$12 sps:$4 sm:$0xff]  }
 0x298   :  { %3866 = vmatprep.subr.bf16.mxu1 %v10456_v20  ;;  %3877 = vmatprep.subr.bf16.mxu0 %v10457_v9  ;;  %v4359_v26 = vcombine.high %v4336_v19, %v4350_v21  ;;  %v4358_v34 = vcombine.low %v4336_v19, %v4350_v21  ;;  %v10480_v20 = vld [vmem:[#allocation2 + $0x754] ss:$12 sps:$4 sm:$0xff]   ;;  %v10482_v21 = vld [vmem:[#allocation2 + $0x750] ss:$12 sps:$4 sm:$0xff]  }
 0x299   :  { %v10481_v9 = vld [vmem:[#allocation2 + $0x500] ss:$12 sps:$4 sm:$0xff]  }
 0x29a   :  { %3828 = vmatmul.mubr.bf16.vlgmr.msra.gmra.mrb[36].mxu0 %v11878_v40  ;;  %v4387_v11 = vpack.c.bf16 %v4359_v26, %v4359_v26  ;;  %v4386_v27 = vpack.c.bf16 %v4358_v34, %v4358_v34  ;;  %v10488_v26 = vld [vmem:[#allocation2 + $0x530] ss:$12 sps:$4 sm:$0xff]   ;;  %v10493_v34 = vld [vmem:[#allocation2 + $0x560] ss:$12 sps:$4 sm:$0xff]  }
 0x29b   :  { %3867 = vmatpush1.bf16.msra.mxu1 %v10458_v17  ;;  %3878 = vmatpush1.bf16.msra.mxu0 %v10459_v63  ;;  %v10483_v17 = vld [vmem:[#allocation2 + $0x440] ss:$12 sps:$4 sm:$0xff]  }
 0x29c   :  { %3879 = vmatprep.subr.bf16.mxu0 %v10460_v24  ;;  %8787 = vmatprep.subr.bf16.mxu1 %v10461_v25  ;;  %v10486_v24 = vld [vmem:[#allocation2 + $0x768] ss:$12 sps:$4 sm:$0xff]   ;;  %v10487_v25 = vld [vmem:[#allocation2 + $0x458] ss:$12 sps:$4 sm:$0xff]  }
 0x29d   :  { %3909 = vmatprep.mubr.bf16.mxu0 %v11338_v45  ;;  %4400 = vrot.lane.b32.xlu0 %v4387_v11, %s11343_s11  ;;  %v10490_v11 = vld [vmem:[#allocation2 + $0x470] ss:$12 sps:$4 sm:$0xff]  }
 0x29e   :  { %3869 = vmatmul.mubr.bf16.vlgmr.msra.gmra.mrb[36].mxu1 %v11782_v55 }
 0x29f   :  { %3880 = vmatpush1.bf16.msra.mxu0 %v10462_v12  ;;  %8788 = vmatpush3.bf16.msra.mxu1 %v10463_v2  ;;  %v10491_v12 = vld [vmem:[#allocation2 + $0x548] ss:$12 sps:$4 sm:$0xff]  }
 0x2a0   :  { %3950 = vmatprep.mubr.bf16.mxu1 %v11840_v29  ;;  %3881 = vmatprep.subr.bf16.mxu0 %v10464_v33  ;;  %v10469_v29 = vld [vmem:[#allocation2 + $0x4b8] ss:$12 sps:$4 sm:$0xff]  }
 0x2a1   :  { %8789 = vmatprep.subr.bf16.mxu1 %v10465_v38  ;;  %4398 = vrot.lane.b32.xlu0 %v4386_v27, %s11343_s11  ;;  %v10494_v38 = vld [vmem:[#allocation2 + $0x6c8] ss:$12 sps:$4 sm:$0xff]   ;;  %v10497_v27 = vld [vmem:[#allocation2 + $0x6e0] ss:$12 sps:$4 sm:$0xff]  }
 0x2a3   :  { %3882 = vmatpush1.bf16.msra.mxu0 %v10466_v41  ;;  %8790 = vmatpush3.bf16.msra.mxu1 %v10467_v42  ;;  %v4379_v41 = vcombine.high %v11900_v1, %v11903_v31  ;;  %v10498_v42 = vld [vmem:[#allocation2 + $0x650] ss:$12 sps:$4 sm:$0xff]   ;;  %v10504_v1 = vld [vmem:[#allocation2 + $0x680] ss:$12 sps:$4 sm:$0xff]  }
 0x2a4   :  { %3883 = vmatprep.subr.bf16.mxu0 %v10468_v44  ;;  %8791 = vmatprep.subr.bf16.mxu1 %v10469_v29  ;;  %v10500_v44 = vld [vmem:[#allocation2 + $0x6f8] ss:$12 sps:$4 sm:$0xff]   ;;  %v10501_v29 = vld [vmem:[#allocation2 + $0x668] ss:$12 sps:$4 sm:$0xff]   ;;  %v10505_v31 = vld [vmem:[#allocation2 + $0x5c0] ss:$12 sps:$4 sm:$0xff]  }
 0x2a7   :  { %3884 = vmatpush1.bf16.msra.mxu0 %v10470_v50  ;;  %8792 = vmatpush3.bf16.msra.mxu1 %v10471_v46  ;;  %v10503_v50 = vld [vmem:[#allocation2 + $0x710] ss:$12 sps:$4 sm:$0xff]   ;;  %v10506_v46 = vld [vmem:[#allocation2 + $0x728] ss:$12 sps:$4 sm:$0xff]  }
 0x2a8   :  { %3885 = vmatprep.subr.bf16.mxu0 %v10472_v62  ;;  %8793 = vmatprep.subr.bf16.mxu1 %v10473_v53  ;;  %v10507_v62 = vld [vmem:[#allocation2 + $0x698] ss:$12 sps:$4 sm:$0xff]  }
 0x2a9   :  { %v10508_v53 = vld [vmem:[#allocation2 + $0x5d8] ss:$12 sps:$4 sm:$0xff]  }
 0x2ab   :  { %3886 = vmatpush1.bf16.msra.mxu0 %v10474_v54  ;;  %8794 = vmatpush3.bf16.msra.mxu1 %v10475_v56  ;;  %v10509_v54 = vld [vmem:[#allocation2 + $0x740] ss:$12 sps:$4 sm:$0xff]   ;;  %v10510_v56 = vld [vmem:[#allocation2 + $0x6b0] ss:$12 sps:$4 sm:$0xff]  }
 0x2ac   :  { %3887 = vmatprep.subr.bf16.mxu0 %v10476_v58  ;;  %8795 = vmatprep.subr.bf16.mxu1 %v10477_v30  ;;  %v10511_v58 = vld [vmem:[#allocation2 + $0x5f0] ss:$12 sps:$4 sm:$0xff]   ;;  %v10512_v30 = vld [vmem:[#allocation2 + $0x758] ss:$12 sps:$4 sm:$0xff]  }
 0x2ad   :  { %v8719_v4 = vpop.f32.mrb[20].mxu0 }
 0x2ae   :  { %v8720_v6 = vpop.f32.mrb[21].mxu0 }
 0x2af   :  { %v8721_v35 = vadd.f32 %v8720_v6, %v8719_v4  ;;  %v8722_v7 = vpop.f32.mrb[22].mxu0  ;;  %3888 = vmatpush1.bf16.msra.mxu0 %v10478_v8  ;;  %8796 = vmatpush3.bf16.msra.mxu1 %v10479_v15  ;;  %v10513_v4 = vld [vmem:[#allocation2 + $0x4] ss:$12 sps:$4 sm:$0xff]   ;;  %v11945_v6 = vsel %vm4056_vm4, %v11915_v16, %v11856_v61  ;;  %v10516_v8 = vld [vmem:[#allocation2 + $0x1c] ss:$12 sps:$4 sm:$0xff]  }
 0x2b0   :  { %v8723_v13 = vpop.f32.mrb[23].mxu0  ;;  %3889 = vmatprep.subr.bf16.mxu0 %v10480_v20  ;;  %8797 = vmatprep.subr.bf16.mxu1 %v10481_v9  ;;  %v10515_v7 = vld [vmem:[#allocation2] ss:$12 sps:$4 sm:$0xff]   ;;  %v10517_v15 = vld [vmem:[#allocation2 + $0x184] ss:$12 sps:$4 sm:$0xff]  }
 0x2b1   :  { %v2367_v51 = vadd.f32 %v8721_v35, %v11859_v59  ;;  %v2406_v14 = vpop.f32.mrb[20].mxu1  ;;  %v11919_v59 = vpop.permute.xlu0 %4044  ;;  %v10514_v35 = vld [vmem:[#allocation2 + $0x770] ss:$12 sps:$4 sm:$0xff]   ;;  %v10518_v13 = vld [vmem:[#allocation2 + $0x18] ss:$12 sps:$4 sm:$0xff]  }
 0x2b2   :  { %v9280_v18 = vpop.f32.mrb[21].mxu1  ;;  %v10519_v61 = vld [vmem:[#allocation2 + $0x180] ss:$12 sps:$4 sm:$0xff]   ;;  %v10521_v9 = vld [vmem:[#allocation2 + $0x19c] ss:$12 sps:$4 sm:$0xff]  }
 0x2b3   :  { %v11917_v19 = vadd.f32 %v2406_v14, %v2367_v51  ;;  %3890 = vmatpush1.bf16.msra.mxu0 %v10482_v21  ;;  %8798 = vmatpush3.bf16.msra.mxu1 %v10483_v17  ;;  %v2409_v63 = vpop.f32.mrb[22].mxu1  ;;  %v10520_v20 = vld [vmem:[#allocation2 + $0x34] ss:$12 sps:$4 sm:$0xff]   ;;  %v10522_v51 = vld [vmem:[#allocation2 + $0x30] ss:$12 sps:$4 sm:$0xff]  }
 0x2b4   :  { %3891 = vmatprep.subr.bf16.mxu0 %v10484_v22  ;;  %8799 = vmatprep.subr.bf16.mxu1 %v10485_v48  ;;  %v9281_v60 = vpop.f32.mrb[23].mxu1  ;;  %v10523_v14 = vld [vmem:[#allocation2 + $0x198] ss:$12 sps:$4 sm:$0xff]   ;;  %v10525_v18 = vld [vmem:[#allocation2 + $0x1b4] ss:$12 sps:$4 sm:$0xff]  }
 0x2b5   :  { %v4055_v2 = vpop.permute.xlu0 %4054  ;;  %v10528_v21 = vld [vmem:[#allocation2 + $0x64] ss:$12 sps:$4 sm:$0xff]   ;;  %v10529_v17 = vld [vmem:[#allocation2 + $0x1cc] ss:$12 sps:$4 sm:$0xff]   ;;  %v10531_v22 = vld [vmem:[#allocation2 + $0x1c8] ss:$12 sps:$4 sm:$0xff]  }
 0x2b6   :  { %v11925_v33 = vsel %vm4056_vm4, %v11861_v10, %v4055_v2  ;;  %v10530_v63 = vld [vmem:[#allocation2 + $0x60] ss:$12 sps:$4 sm:$0xff]   ;;  %v10532_v48 = vld [vmem:[#allocation2 + $0x7c] ss:$12 sps:$4 sm:$0xff]   ;;  %v10533_v60 = vld [vmem:[#allocation2 + $0x1e4] ss:$12 sps:$4 sm:$0xff]  }
 0x2b7   :  { %3892 = vmatpush1.bf16.msra.mxu0 %v10486_v24  ;;  %8800 = vmatpush3.bf16.msra.mxu1 %v10487_v25  ;;  %v10536_v2 = vld [vmem:[#allocation2 + $0x94] ss:$12 sps:$4 sm:$0xff]  }
 0x2b8   :  { %8801 = vmatprep.subr.bf16.mxu1 %v10488_v26  ;;  %8809 = vmatprep.subr.bf16.mxu0 %v10489_v28  ;;  %v10534_v28 = vld [vmem:[#allocation2 + $0x78] ss:$12 sps:$4 sm:$0xff]  }
 0x2ba   :  { %3910 = vmatmul.mubr.bf16.vlgmr.msra.gmra.mrb[40].mxu0 %v11820_v52 }
 0x2bb   :  { %8802 = vmatpush3.bf16.msra.mxu1 %v10490_v11  ;;  %8810 = vmatpush3.bf16.msra.mxu0 %v10491_v12  ;;  %v10535_v11 = vld [vmem:[#allocation2 + $0x1e0] ss:$12 sps:$4 sm:$0xff]  }
 0x2bc   :  { %3990 = vmatprep.mubr.bf16.mxu0 %v11847_v57  ;;  %8811 = vmatprep.subr.bf16.mxu0 %v10492_v32  ;;  %v10496_v57 = vld [vmem:[#allocation2 + $0x578] ss:$12 sps:$4 sm:$0xff]   ;;  %v10537_v32 = vld [vmem:[#allocation2 + $0x1fc] ss:$12 sps:$4 sm:$0xff]  }
 0x2bd   :  { %9302 = vmatprep.subr.bf16.mxu1 %v11340_v43 }
 0x2be   :  { %3951 = vmatmul.mubr.bf16.vlgmr.msra.gmra.mrb[40].mxu1 %v11878_v40  ;;  %v4391_v40 = vpack.c.bf16 %v4379_v41, %v4379_v41  ;;  %v10538_v41 = vld [vmem:[#allocation2 + $0x90] ss:$12 sps:$4 sm:$0xff]  }
 0x2bf   :  { %8812 = vmatpush3.bf16.msra.mxu0 %v10493_v34  ;;  %9303 = vmatpush3.bf16.msra.mxu1 %v10494_v38 }
 0x2c0   :  { %8813 = vmatprep.subr.bf16.mxu0 %v10495_v23  ;;  %9304 = vmatprep.subr.bf16.mxu1 %v11340_v43 }
 0x2c1   :  { %9318 = vmatprep.mubr.msk.bf16.mxu1 %vm11341_vm1, %v11340_v43  ;;  %4408 = vrot.lane.b32.xlu0 %v4391_v40, %s11343_s11 }
 0x2c3   :  { %8814 = vmatpush3.bf16.msra.mxu0 %v10496_v57  ;;  %9305 = vmatpush3.bf16.msra.mxu1 %v10497_v27 }
 0x2c4   :  { %8815 = vmatprep.subr.bf16.mxu0 %v10498_v42  ;;  %9306 = vmatprep.subr.bf16.mxu1 %v11340_v43  ;;  %v10539_v42 = vld [vmem:[#allocation2 + $0x1f8] ss:$12 sps:$4 sm:$0xff]  }
 0x2c7   :  { %8816 = vmatpush3.bf16.msra.mxu0 %v10499_v37  ;;  %9307 = vmatpush3.bf16.msra.mxu1 %v10500_v44  ;;  %v10540_v37 = vld [vmem:[#allocation2 + $0xac] ss:$12 sps:$4 sm:$0xff]   ;;  %v10541_v44 = vld [vmem:[#allocation2 + $0x214] ss:$12 sps:$4 sm:$0xff]  }
 0x2c8   :  { %8817 = vmatprep.subr.bf16.mxu0 %v10501_v29  ;;  %9308 = vmatprep.subr.bf16.mxu1 %v11340_v43  ;;  %v10542_v29 = vld [vmem:[#allocation2 + $0xa8] ss:$12 sps:$4 sm:$0xff]  }
 0x2cb   :  { %8818 = vmatpush3.bf16.msra.mxu0 %v10502_v49  ;;  %9309 = vmatpush3.bf16.msra.mxu1 %v10503_v50  ;;  %v10543_v49 = vld [vmem:[#allocation2 + $0x210] ss:$12 sps:$4 sm:$0xff]  }
 0x2cc   :  { %8819 = vmatprep.subr.bf16.mxu0 %v10504_v1  ;;  %9310 = vmatprep.subr.bf16.mxu1 %v11340_v43  ;;  %v10544_v50 = vld [vmem:[#allocation2 + $0xc4] ss:$12 sps:$4 sm:$0xff]   ;;  %v10545_v1 = vld [vmem:[#allocation2 + $0x22c] ss:$12 sps:$4 sm:$0xff]  }
 0x2cf   :  { %8820 = vmatpush3.bf16.msra.mxu0 %v10505_v31  ;;  %9311 = vmatpush3.bf16.msra.mxu1 %v10506_v46  ;;  %v10546_v31 = vld [vmem:[#allocation2 + $0xc0] ss:$12 sps:$4 sm:$0xff]   ;;  %v10547_v46 = vld [vmem:[#allocation2 + $0x228] ss:$12 sps:$4 sm:$0xff]  }
 0x2d0   :  { %8821 = vmatprep.subr.bf16.mxu0 %v10507_v62  ;;  %9312 = vmatprep.subr.bf16.mxu1 %v11340_v43  ;;  %v10548_v62 = vld [vmem:[#allocation2 + $0xdc] ss:$12 sps:$4 sm:$0xff]  }
 0x2d3   :  { %8822 = vmatpush3.bf16.msra.mxu0 %v10508_v53  ;;  %9313 = vmatpush3.bf16.msra.mxu1 %v10509_v54  ;;  %v10549_v53 = vld [vmem:[#allocation2 + $0x244] ss:$12 sps:$4 sm:$0xff]  }
 0x2d4   :  { %8823 = vmatprep.subr.bf16.mxu0 %v10510_v56  ;;  %9314 = vmatprep.subr.bf16.mxu1 %v11340_v43  ;;  %v10550_v54 = vld [vmem:[#allocation2 + $0xd8] ss:$12 sps:$4 sm:$0xff]   ;;  %v10551_v56 = vld [vmem:[#allocation2 + $0x240] ss:$12 sps:$4 sm:$0xff]  }
 0x2d7   :  { %8824 = vmatpush3.bf16.msra.mxu0 %v10511_v58  ;;  %9315 = vmatpush3.bf16.msra.mxu1 %v10512_v30  ;;  %v10552_v58 = vld [vmem:[#allocation2 + $0xf4] ss:$12 sps:$4 sm:$0xff]   ;;  %v10553_v30 = vld [vmem:[#allocation2 + $0x25c] ss:$12 sps:$4 sm:$0xff]  }
 0x2d8   :  { %9316 = vmatprep.subr.bf16.mxu1 %v11340_v43  ;;  %4067 = vmatprep.subr.bf16.mxu0 %v10513_v4  ;;  %v10554_v4 = vld [vmem:[#allocation2 + $0xf0] ss:$12 sps:$4 sm:$0xff]  }
 0x2da   :  { %3991 = vmatmul.mubr.bf16.vlgmr.msra.gmra.mrb[44].mxu0 %v11782_v55  ;;  %v11952_v55 = vsel %vm4056_vm4, %v11885_v0, %v11861_v10  ;;  %v10526_v10 = vld [vmem:[#allocation2 + $0x48] ss:$12 sps:$4 sm:$0xff]   ;;  %v10527_v0 = vld [vmem:[#allocation2 + $0x1b0] ss:$12 sps:$4 sm:$0xff]  }
 0x2db   :  { %9317 = vmatpush3.bf16.msra.mxu1 %v10514_v35  ;;  %4068 = vmatpush1.bf16.msra.mxu0 %v10515_v7  ;;  %v10555_v35 = vld [vmem:[#allocation2 + $0x258] ss:$12 sps:$4 sm:$0xff]  }
 0x2dc   :  { %4069 = vmatprep.subr.bf16.mxu0 %v10516_v8  ;;  %4108 = vmatprep.subr.bf16.mxu1 %v10517_v15  ;;  %v10556_v7 = vld [vmem:[#allocation2 + $0x10c] ss:$12 sps:$4 sm:$0xff]   ;;  %v10557_v8 = vld [vmem:[#allocation2 + $0x274] ss:$12 sps:$4 sm:$0xff]  }
 0x2dd   :  { %4099 = vmatprep.mubr.bf16.mxu0 %v11945_v6  ;;  %v10558_v15 = vld [vmem:[#allocation2 + $0x108] ss:$12 sps:$4 sm:$0xff]  }
 0x2de   :  { %9319 = vmatmul.mubr.bf16.vlgmr.msra.gmra.mrb[44].mxu1 %v11820_v52  ;;  %v10524_v52 = vld [vmem:[#allocation2 + $0x4c] ss:$12 sps:$4 sm:$0xff]  }
 0x2df   :  { %4070 = vmatpush1.bf16.msra.mxu0 %v10518_v13  ;;  %4109 = vmatpush1.bf16.msra.mxu1 %v10519_v61  ;;  %v10559_v13 = vld [vmem:[#allocation2 + $0x270] ss:$12 sps:$4 sm:$0xff]  }
 0x2e0   :  { %4071 = vmatprep.subr.bf16.mxu0 %v10520_v20  ;;  %4110 = vmatprep.subr.bf16.mxu1 %v10521_v9  ;;  %v10560_v61 = vld [vmem:[#allocation2 + $0x124] ss:$12 sps:$4 sm:$0xff]   ;;  %v10561_v20 = vld [vmem:[#allocation2 + $0x28c] ss:$12 sps:$4 sm:$0xff]  }
 0x2e1   :  { %4140 = vmatprep.mubr.bf16.mxu1 %v11952_v55  ;;  %v10562_v9 = vld [vmem:[#allocation2 + $0x120] ss:$12 sps:$4 sm:$0xff]  }
 0x2e3   :  { %4072 = vmatpush1.bf16.msra.mxu0 %v10522_v51  ;;  %4111 = vmatpush1.bf16.msra.mxu1 %v10523_v14  ;;  %v10563_v51 = vld [vmem:[#allocation2 + $0x288] ss:$12 sps:$4 sm:$0xff]  }
 0x2e4   :  { %4073 = vmatprep.subr.bf16.mxu0 %v10524_v52  ;;  %4112 = vmatprep.subr.bf16.mxu1 %v10525_v18  ;;  %v10564_v14 = vld [vmem:[#allocation2 + $0x13c] ss:$12 sps:$4 sm:$0xff]   ;;  %v10565_v52 = vld [vmem:[#allocation2 + $0x2a4] ss:$12 sps:$4 sm:$0xff]  }
 0x2e7   :  { %4074 = vmatpush1.bf16.msra.mxu0 %v10526_v10  ;;  %4113 = vmatpush1.bf16.msra.mxu1 %v10527_v0 }
 0x2e8   :  { %4075 = vmatprep.subr.bf16.mxu0 %v10528_v21  ;;  %4114 = vmatprep.subr.bf16.mxu1 %v10529_v17 }
 0x2eb   :  { %4076 = vmatpush1.bf16.msra.mxu0 %v10530_v63  ;;  %4115 = vmatpush1.bf16.msra.mxu1 %v10531_v22  ;;  %v10566_v63 = vld [vmem:[#allocation2 + $0x138] ss:$12 sps:$4 sm:$0xff]   ;;  %v10567_v22 = vld [vmem:[#allocation2 + $0x2a0] ss:$12 sps:$4 sm:$0xff]  }
 0x2ec   :  { %4077 = vmatprep.subr.bf16.mxu0 %v10532_v48  ;;  %4116 = vmatprep.subr.bf16.mxu1 %v10533_v60 }
 0x2ed   :  { %v3358_v24 = vpop.f32.mrb[24].mxu0 }
 0x2ee   :  { %v3360_v25 = vpop.f32.mrb[25].mxu0 }
 0x2ef   :  { %v3362_v26 = vpop.f32.mrb[26].mxu0  ;;  %4078 = vmatpush1.bf16.msra.mxu0 %v10534_v28  ;;  %4117 = vmatpush1.bf16.msra.mxu1 %v10535_v11 }
 0x2f0   :  { %v3363_v12 = vpop.f32.mrb[27].mxu0  ;;  %4079 = vmatprep.subr.bf16.mxu0 %v10536_v2  ;;  %4118 = vmatprep.subr.bf16.mxu1 %v10537_v32  ;;  %v10570_v32 = vld [vmem:[#allocation2 + $0x150] ss:$12 sps:$4 sm:$0xff]  }
 0x2f1   :  { %v3399_v34 = vpop.f32.mrb[24].mxu1 }
 0x2f2   :  { %v3400_v38 = vadd.f32 %v3399_v34, %v3358_v24  ;;  %v3401_v23 = vpop.f32.mrb[25].mxu1  ;;  %v10568_v24 = vld [vmem:[#allocation2 + $0x154] ss:$12 sps:$4 sm:$0xff]   ;;  %v10571_v34 = vld [vmem:[#allocation2 + $0x2b8] ss:$12 sps:$4 sm:$0xff]  }
 0x2f3   :  { %v3402_v57 = vadd.f32 %v3401_v23, %v3360_v25  ;;  %v3403_v27 = vpop.f32.mrb[26].mxu1  ;;  %4080 = vmatpush1.bf16.msra.mxu0 %v10538_v41  ;;  %4119 = vmatpush1.bf16.msra.mxu1 %v10539_v42  ;;  %v10569_v25 = vld [vmem:[#allocation2 + $0x2bc] ss:$12 sps:$4 sm:$0xff]   ;;  %v10572_v23 = vld [vmem:[#allocation2 + $0x16c] ss:$12 sps:$4 sm:$0xff]  }
 0x2f4   :  { %v3404_v40 = vpop.f32.mrb[27].mxu1  ;;  %4081 = vmatprep.subr.bf16.mxu0 %v10540_v37  ;;  %4120 = vmatprep.subr.bf16.mxu1 %v10541_v44  ;;  %v10574_v27 = vld [vmem:[#allocation2 + $0x168] ss:$12 sps:$4 sm:$0xff]   ;;  %v10050_v42 = vld [vmem:[%s12482_s0 + $0x24] ss:$72 sps:$4 sm:$0xff]  }
 0x2f5   :  { %v10052_v40 = vld [vmem:[%s12482_s0 + $0xb4] ss:$72 sps:$4 sm:$0xff]   ;;  %v10576_v37 = vld [vmem:[#allocation2 + $0x2ec] ss:$12 sps:$4 sm:$0xff]   ;;  %v10577_v44 = vld [vmem:[#allocation2 + $0x304] ss:$12 sps:$4 sm:$0xff]  }
 0x2f7   :  { %4082 = vmatpush1.bf16.msra.mxu0 %v10542_v29  ;;  %4121 = vmatpush1.bf16.msra.mxu1 %v10543_v49  ;;  %v10054_v29 = vld [vmem:[%s12482_s0 + $0x20] ss:$72 sps:$4 sm:$0xff]   ;;  %v10055_v49 = vld [vmem:[%s12482_s0 + $0xb0] ss:$72 sps:$4 sm:$0xff]  }
 0x2f8   :  { %4083 = vmatprep.subr.bf16.mxu0 %v10544_v50  ;;  %4122 = vmatprep.subr.bf16.mxu1 %v10545_v1  ;;  %v11982_v50 = vsel %vm4056_vm4, %v11919_v59, %v11915_v16  ;;  %v4794_v1 = vrot.slane %v10050_v42, %v11513_v5  ;;  %v10056_v16 = vld [vmem:[%s12482_s0 + $0x28] ss:$72 sps:$4 sm:$0xff]   ;;  %v10057_v59 = vld [vmem:[%s12482_s0 + $0xb8] ss:$72 sps:$4 sm:$0xff]  }
 0x2f9   :  { %v10598_v42 = vld [vmem:[#allocation2 + $0x378] ss:$12 sps:$4 sm:$0xff]  }
 0x2fb   :  { %4084 = vmatpush1.bf16.msra.mxu0 %v10546_v31  ;;  %4123 = vmatpush1.bf16.msra.mxu1 %v10547_v46  ;;  %v4808_v31 = vrot.slane %v10052_v40, %v11513_v5  ;;  %v4787_v46 = vrot.slane %v10054_v29, %v11513_v5  ;;  %v10599_v40 = vld [vmem:[#allocation2 + $0x68] ss:$12 sps:$4 sm:$0xff]   ;;  %v10601_v29 = vld [vmem:[#allocation2 + $0x140] ss:$12 sps:$4 sm:$0xff]  }
 0x2fc   :  { %4085 = vmatprep.subr.bf16.mxu0 %v10548_v62  ;;  %4124 = vmatprep.subr.bf16.mxu1 %v10549_v53  ;;  %v4801_v62 = vrot.slane %v10055_v49, %v11513_v5  ;;  %v10578_v53 = vld [vmem:[#allocation2 + $0x2e8] ss:$12 sps:$4 sm:$0xff]  }
 0x2ff   :  { %4086 = vmatpush1.bf16.msra.mxu0 %v10550_v54  ;;  %4125 = vmatpush1.bf16.msra.mxu1 %v10551_v56  ;;  %v10579_v54 = vld [vmem:[#allocation2 + $0x300] ss:$12 sps:$4 sm:$0xff]  }
 0x300   :  { %4087 = vmatprep.subr.bf16.mxu0 %v10552_v58  ;;  %4126 = vmatprep.subr.bf16.mxu1 %v10553_v30  ;;  %v4811_v58 = vcombine.low %v4794_v1, %v4808_v31  ;;  %v10580_v30 = vld [vmem:[#allocation2 + $0x31c] ss:$12 sps:$4 sm:$0xff]  }
 0x303   :  { %4088 = vmatpush1.bf16.msra.mxu0 %v10554_v4  ;;  %4127 = vmatpush1.bf16.msra.mxu1 %v10555_v35  ;;  %v10581_v4 = vld [vmem:[#allocation2 + $0xc8] ss:$12 sps:$4 sm:$0xff]  }
 0x304   :  { %4089 = vmatprep.subr.bf16.mxu0 %v10556_v7  ;;  %4128 = vmatprep.subr.bf16.mxu1 %v10557_v8  ;;  %v4810_v7 = vcombine.high %v4787_v46, %v4801_v62  ;;  %v4839_v8 = vpack.c.bf16 %v4811_v58, %v4811_v58  ;;  %v10603_v58 = vld [vmem:[#allocation2 + $0x80] ss:$12 sps:$4 sm:$0xff]  }
 0x306   :  { %4853 = vrot.lane.b32.xlu1 %v4839_v8, %s11337_s26 }
 0x307   :  { %4090 = vmatpush1.bf16.msra.mxu0 %v10558_v15  ;;  %4129 = vmatpush1.bf16.msra.mxu1 %v10559_v13  ;;  %v12004_v15 = vrot.slane %v10056_v16, %v11513_v5  ;;  %v12007_v13 = vrot.slane %v10057_v59, %v11513_v5  ;;  %v10604_v59 = vld [vmem:[#allocation2 + $0x3ac] ss:$12 sps:$4 sm:$0xff]  }
 0x308   :  { %4091 = vmatprep.subr.bf16.mxu0 %v10560_v61  ;;  %4130 = vmatprep.subr.bf16.mxu1 %v10561_v20  ;;  %v4838_v61 = vpack.c.bf16 %v4810_v7, %v4810_v7  ;;  %v10582_v20 = vld [vmem:[#allocation2 + $0x318] ss:$12 sps:$4 sm:$0xff]   ;;  %v10606_v7 = vld [vmem:[#allocation2 + $0x3a8] ss:$12 sps:$4 sm:$0xff]  }
 0x30a   :  { %4851 = vrot.lane.b32.xlu0 %v4838_v61, %s11337_s26  ;;  %v10608_v61 = vld [vmem:[#allocation2 + $0x170] ss:$12 sps:$4 sm:$0xff]  }
 0x30b   :  { %4092 = vmatpush1.bf16.msra.mxu0 %v10562_v9  ;;  %4131 = vmatpush1.bf16.msra.mxu1 %v10563_v51  ;;  %v10583_v9 = vld [vmem:[#allocation2 + $0x8] ss:$12 sps:$4 sm:$0xff]   ;;  %v4829_v51 = vcombine.low %v12004_v15, %v12007_v13 }
 0x30c   :  { %4093 = vmatprep.subr.bf16.mxu0 %v10564_v14  ;;  %4132 = vmatprep.subr.bf16.mxu1 %v10565_v52  ;;  %v10584_v14 = vld [vmem:[#allocation2 + $0x334] ss:$12 sps:$4 sm:$0xff]   ;;  %v4809_v52 = vcombine.low %v4787_v46, %v4801_v62 }
 0x30d   :  { %v3440_v18 = vpop.f32.mrb[28].mxu0 }
 0x30e   :  { %v3441_v10 = vadd.f32 %v3440_v18, %v3400_v38  ;;  %v3442_v0 = vpop.f32.mrb[29].mxu0  ;;  %v11963_v38 = vpop.permute.xlu1 %4402  ;;  %v10585_v18 = vld [vmem:[#allocation2 + $0xe0] ss:$12 sps:$4 sm:$0xff]  }
 0x30f   :  { %v3443_v21 = vadd.f32 %v3442_v0, %v3402_v57  ;;  %v3444_v17 = vpop.f32.mrb[30].mxu0  ;;  %4094 = vmatpush1.bf16.msra.mxu0 %v10566_v63  ;;  %4133 = vmatpush1.bf16.msra.mxu1 %v10567_v22  ;;  %v10573_v57 = vld [vmem:[#allocation2 + $0x2d4] ss:$12 sps:$4 sm:$0xff]   ;;  %v4837_v0 = vpack.c.bf16 %v4809_v52, %v4809_v52  ;;  %v4812_v63 = vcombine.high %v4794_v1, %v4808_v31  ;;  %v10588_v22 = vld [vmem:[#allocation2 + $0x34c] ss:$12 sps:$4 sm:$0xff]   ;;  %v12019_v31 = vpop.permute.xlu0 %4400 }
 0x310   :  { %v11956_v48 = vadd.f32 %v3441_v10, %v11852_v36  ;;  %v3445_v60 = vpop.f32.mrb[31].mxu0  ;;  %4095 = vmatprep.subr.bf16.mxu0 %v10568_v24  ;;  %4134 = vmatprep.subr.bf16.mxu1 %v10569_v25  ;;  %v4841_v10 = vpack.c.bf16 %v4829_v51, %v4829_v51  ;;  %v10587_v17 = vld [vmem:[#allocation2 + $0x20] ss:$12 sps:$4 sm:$0xff]   ;;  %v10590_v24 = vld [vmem:[#allocation2 + $0x348] ss:$12 sps:$4 sm:$0xff]  }
 0x311   :  { %v11959_v26 = vadd.f32 %v3443_v21, %v11854_v39  ;;  %v8750_v28 = vpop.f32.mrb[28].mxu1  ;;  %v10575_v39 = vld [vmem:[#allocation2 + $0x2d0] ss:$12 sps:$4 sm:$0xff]   ;;  %v10589_v60 = vld [vmem:[#allocation2 + $0xf8] ss:$12 sps:$4 sm:$0xff]   ;;  %4849 = vrot.lane.b32.xlu0 %v4837_v0, %s11337_s26 }
 0x312   :  { %v8751_v11 = vpop.f32.mrb[29].mxu1  ;;  %v11965_v41 = vpop.permute.xlu1 %4406  ;;  %v10586_v21 = vld [vmem:[#allocation2 + $0x330] ss:$12 sps:$4 sm:$0xff]   ;;  %4857 = vrot.lane.b32.xlu1 %v4841_v10, %s11337_s26  ;;  %v10591_v25 = vld [vmem:[#allocation2 + $0x38] ss:$12 sps:$4 sm:$0xff]  }
 0x313   :  { %v11961_v12 = vadd.f32 %v8751_v11, %v8750_v28  ;;  %v8753_v2 = vpop.f32.mrb[30].mxu1  ;;  %4096 = vmatpush1.bf16.msra.mxu0 %v10570_v32  ;;  %4135 = vmatpush1.bf16.msra.mxu1 %v10571_v34  ;;  %v10592_v28 = vld [vmem:[#allocation2 + $0x364] ss:$12 sps:$4 sm:$0xff]   ;;  %v10596_v34 = vld [vmem:[#allocation2 + $0x37c] ss:$12 sps:$4 sm:$0xff]   ;;  %v12024_v8 = vpop.permute.xlu0 %4398 }
 0x314   :  { %v8754_v36 = vpop.f32.mrb[31].mxu1  ;;  %4097 = vmatprep.subr.bf16.mxu0 %v10572_v23  ;;  %4136 = vmatprep.subr.bf16.mxu1 %v10573_v57  ;;  %v10593_v11 = vld [vmem:[#allocation2 + $0x110] ss:$12 sps:$4 sm:$0xff]   ;;  %v10594_v2 = vld [vmem:[#allocation2 + $0x360] ss:$12 sps:$4 sm:$0xff]  }
 0x315   :  { %v10595_v32 = vld [vmem:[#allocation2 + $0x50] ss:$12 sps:$4 sm:$0xff]   ;;  %v10597_v36 = vld [vmem:[#allocation2 + $0x128] ss:$12 sps:$4 sm:$0xff]   ;;  %v10615_v0 = vld [vmem:[#allocation2 + $0x278] ss:$12 sps:$4 sm:$0xff]  }
 0x316   :  { %v11989_v56 = vpop.permute.xlu1 %4404  ;;  %v10611_v51 = vld [vmem:[#allocation2 + $0x188] ss:$12 sps:$4 sm:$0xff]  }
 0x317   :  { %4098 = vmatpush1.bf16.msra.mxu0 %v10574_v27  ;;  %4137 = vmatpush1.bf16.msra.mxu1 %v10575_v39  ;;  %v12000_v35 = vsel %vm4410_vm5, %v11963_v38, %v11989_v56  ;;  %v10614_v10 = vld [vmem:[#allocation2 + $0x308] ss:$12 sps:$4 sm:$0xff]  }
 0x318   :  { %4138 = vmatprep.subr.bf16.mxu1 %v10576_v37  ;;  %4149 = vmatprep.subr.bf16.mxu0 %v10577_v44  ;;  %v10600_v44 = vld [vmem:[#allocation2 + $0x394] ss:$12 sps:$4 sm:$0xff]  }
 0x31a   :  { %4100 = vmatmul.mubr.bf16.vlgmr.msra.gmra.mrb[48].mxu0 %v11982_v50 }
 0x31b   :  { %4139 = vmatpush1.bf16.msra.mxu1 %v10578_v53  ;;  %4150 = vmatpush1.bf16.msra.mxu0 %v10579_v54  ;;  %v10602_v54 = vld [vmem:[#allocation2 + $0x390] ss:$12 sps:$4 sm:$0xff]  }
 0x31c   :  { %4151 = vmatprep.subr.bf16.mxu0 %v10580_v30  ;;  %8840 = vmatprep.subr.bf16.mxu1 %v10581_v4  ;;  %v10605_v30 = vld [vmem:[#allocation2 + $0x158] ss:$12 sps:$4 sm:$0xff]  }
 0x31d   :  { %4181 = vmatprep.mubr.bf16.mxu0 %v11338_v45 }
 0x31e   :  { %4141 = vmatmul.mubr.bf16.vlgmr.msra.gmra.mrb[48].mxu1 %v11896_v47 }
 0x31f   :  { %4152 = vmatpush1.bf16.msra.mxu0 %v10582_v20  ;;  %8841 = vmatpush3.bf16.msra.mxu1 %v10583_v9  ;;  %v10609_v20 = vld [vmem:[#allocation2 + $0x248] ss:$12 sps:$4 sm:$0xff]   ;;  %v10610_v9 = vld [vmem:[#allocation2 + $0xb0] ss:$12 sps:$4 sm:$0xff]  }
 0x320   :  { %4222 = vmatprep.mubr.bf16.mxu1 %v11945_v6  ;;  %4153 = vmatprep.subr.bf16.mxu0 %v10584_v14  ;;  %v4840_v6 = vpack.c.bf16 %v4812_v63, %v4812_v63  ;;  %v10618_v63 = vld [vmem:[#allocation2 + $0x290] ss:$12 sps:$4 sm:$0xff]  }
 0x321   :  { %8842 = vmatprep.subr.bf16.mxu1 %v10585_v18  ;;  %v10613_v18 = vld [vmem:[#allocation2 + $0x1a0] ss:$12 sps:$4 sm:$0xff]  }
 0x322   :  { %4855 = vrot.lane.b32.xlu1 %v4840_v6, %s11337_s26  ;;  %v10621_v6 = vld [vmem:[#allocation2 + $0x2a8] ss:$12 sps:$4 sm:$0xff]  }
 0x323   :  { %4154 = vmatpush1.bf16.msra.mxu0 %v10586_v21  ;;  %8843 = vmatpush3.bf16.msra.mxu1 %v10587_v17  ;;  %v10617_v21 = vld [vmem:[#allocation2 + $0x320] ss:$12 sps:$4 sm:$0xff]   ;;  %v4830_v17 = vcombine.high %v12004_v15, %v12007_v13 }
 0x324   :  { %4155 = vmatprep.subr.bf16.mxu0 %v10588_v22  ;;  %8844 = vmatprep.subr.bf16.mxu1 %v10589_v60  ;;  %v10619_v22 = vld [vmem:[#allocation2 + $0x1d0] ss:$12 sps:$4 sm:$0xff]   ;;  %v10620_v60 = vld [vmem:[#allocation2 + $0x338] ss:$12 sps:$4 sm:$0xff]   ;;  %v10624_v15 = vld [vmem:[#allocation2 + $0x2c0] ss:$12 sps:$4 sm:$0xff]  }
 0x325   :  { %v10625_v13 = vld [vmem:[#allocation2 + $0x200] ss:$12 sps:$4 sm:$0xff]  }
 0x327   :  { %4156 = vmatpush1.bf16.msra.mxu0 %v10590_v24  ;;  %8845 = vmatpush3.bf16.msra.mxu1 %v10591_v25  ;;  %v10622_v24 = vld [vmem:[#allocation2 + $0x1e8] ss:$12 sps:$4 sm:$0xff]   ;;  %v10623_v25 = vld [vmem:[#allocation2 + $0x350] ss:$12 sps:$4 sm:$0xff]  }
 0x328   :  { %4157 = vmatprep.subr.bf16.mxu0 %v10592_v28  ;;  %8846 = vmatprep.subr.bf16.mxu1 %v10593_v11  ;;  %v10626_v28 = vld [vmem:[#allocation2 + $0x368] ss:$12 sps:$4 sm:$0xff]   ;;  %v10627_v11 = vld [vmem:[#allocation2 + $0x2d8] ss:$12 sps:$4 sm:$0xff]  }
 0x32b   :  { %4158 = vmatpush1.bf16.msra.mxu0 %v10594_v2  ;;  %8847 = vmatpush3.bf16.msra.mxu1 %v10595_v32  ;;  %v10628_v2 = vld [vmem:[#allocation2 + $0x218] ss:$12 sps:$4 sm:$0xff]   ;;  %v10629_v32 = vld [vmem:[#allocation2 + $0x380] ss:$12 sps:$4 sm:$0xff]  }
 0x32c   :  { %4159 = vmatprep.subr.bf16.mxu0 %v10596_v34  ;;  %8848 = vmatprep.subr.bf16.mxu1 %v10597_v36  ;;  %v10630_v34 = vld [vmem:[#allocation2 + $0x2f0] ss:$12 sps:$4 sm:$0xff]  }
 0x32d   :  { %v8772_v23 = vpop.f32.mrb[32].mxu0  ;;  %v10631_v36 = vld [vmem:[#allocation2 + $0x230] ss:$12 sps:$4 sm:$0xff]  }
 0x32e   :  { %v8773_v57 = vpop.f32.mrb[33].mxu0 }
 0x32f   :  { %v8774_v27 = vadd.f32 %v8773_v57, %v8772_v23  ;;  %v8775_v39 = vpop.f32.mrb[34].mxu0  ;;  %4160 = vmatpush1.bf16.msra.mxu0 %v10598_v42  ;;  %8849 = vmatpush3.bf16.msra.mxu1 %v10599_v40  ;;  %v10632_v23 = vld [vmem:[#allocation2 + $0x398] ss:$12 sps:$4 sm:$0xff]   ;;  %v10635_v42 = vld [vmem:[#allocation2 + $0x780] ss:$12 sps:$4 sm:$0xff]  }
 0x330   :  { %v8776_v37 = vpop.f32.mrb[35].mxu0  ;;  %4161 = vmatprep.subr.bf16.mxu0 %v10600_v44  ;;  %8850 = vmatprep.subr.bf16.mxu1 %v10601_v29  ;;  %v10633_v57 = vld [vmem:[#allocation2 + $0x784] ss:$12 sps:$4 sm:$0xff]   ;;  %v10636_v40 = vld [vmem:[#allocation2 + $0x79c] ss:$12 sps:$4 sm:$0xff]  }
 0x331   :  { %v3522_v49 = vadd.f32 %v8774_v27, %v11961_v12  ;;  %v3561_v1 = vpop.f32.mrb[32].mxu1  ;;  %v10607_v12 = vld [vmem:[#allocation2 + $0x98] ss:$12 sps:$4 sm:$0xff]   ;;  %v12050_v27 = vsel %vm4410_vm5, %v12019_v31, %v11963_v38  ;;  %v10634_v39 = vld [vmem:[#allocation2 + $0x3b0] ss:$12 sps:$4 sm:$0xff]  }
 0x332   :  { %v9300_v46 = vpop.f32.mrb[33].mxu1  ;;  %v10637_v37 = vld [vmem:[#allocation2 + $0x904] ss:$12 sps:$4 sm:$0xff]   ;;  %v10639_v38 = vld [vmem:[#allocation2 + $0x900] ss:$12 sps:$4 sm:$0xff]  }
 0x333   :  { %v3562_v62 = vadd.f32 %v3561_v1, %v3522_v49  ;;  %v3564_v53 = vpop.f32.mrb[34].mxu1  ;;  %4162 = vmatpush1.bf16.msra.mxu0 %v10602_v54  ;;  %8851 = vmatpush3.bf16.msra.mxu1 %v10603_v58  ;;  %v4409_v14 = vpop.permute.xlu0 %4408  ;;  %v10638_v44 = vld [vmem:[#allocation2 + $0x798] ss:$12 sps:$4 sm:$0xff]   ;;  %v10640_v29 = vld [vmem:[#allocation2 + $0x7b4] ss:$12 sps:$4 sm:$0xff]  }
 0x334   :  { %v9301_v16 = vpop.f32.mrb[35].mxu1  ;;  %4163 = vmatprep.subr.bf16.mxu0 %v10604_v59  ;;  %8852 = vmatprep.subr.bf16.mxu1 %v10605_v30  ;;  %v12030_v52 = vsel %vm4410_vm5, %v11965_v41, %v4409_v14  ;;  %v10641_v49 = vld [vmem:[#allocation2 + $0x91c] ss:$12 sps:$4 sm:$0xff]   ;;  %v10643_v46 = vld [vmem:[#allocation2 + $0x918] ss:$12 sps:$4 sm:$0xff]  }
 0x335   :  { %v12022_v4 = vadd.f32 %v3562_v62, %v11917_v19  ;;  %v10612_v19 = vld [vmem:[#allocation2 + $0x260] ss:$12 sps:$4 sm:$0xff]   ;;  %v10642_v1 = vld [vmem:[#allocation2 + $0x7b0] ss:$12 sps:$4 sm:$0xff]   ;;  %v10651_v16 = vld [vmem:[#allocation2 + $0x948] ss:$12 sps:$4 sm:$0xff]  }
 0x336   :  { %v10645_v62 = vld [vmem:[#allocation2 + $0x934] ss:$12 sps:$4 sm:$0xff]   ;;  %v10648_v53 = vld [vmem:[#allocation2 + $0x7e4] ss:$12 sps:$4 sm:$0xff]   ;;  %v10649_v54 = vld [vmem:[#allocation2 + $0x94c] ss:$12 sps:$4 sm:$0xff]  }
 0x337   :  { %4164 = vmatpush1.bf16.msra.mxu0 %v10606_v7  ;;  %8853 = vmatpush3.bf16.msra.mxu1 %v10607_v12  ;;  %v10650_v58 = vld [vmem:[#allocation2 + $0x7e0] ss:$12 sps:$4 sm:$0xff]   ;;  %v10652_v59 = vld [vmem:[#allocation2 + $0x7fc] ss:$12 sps:$4 sm:$0xff]   ;;  %v10653_v30 = vld [vmem:[#allocation2 + $0x964] ss:$12 sps:$4 sm:$0xff]  }
 0x338   :  { %8854 = vmatprep.subr.bf16.mxu1 %v10608_v61  ;;  %8862 = vmatprep.subr.bf16.mxu0 %v10609_v20  ;;  %v10654_v20 = vld [vmem:[#allocation2 + $0x7f8] ss:$12 sps:$4 sm:$0xff]   ;;  %v10656_v14 = vld [vmem:[#allocation2 + $0x814] ss:$12 sps:$4 sm:$0xff]  }
 0x33a   :  { %4182 = vmatmul.mubr.bf16.vlgmr.msra.gmra.mrb[52].mxu0 %v11925_v33 }
 0x33b   :  { %8855 = vmatpush3.bf16.msra.mxu1 %v10610_v9  ;;  %8863 = vmatpush3.bf16.msra.mxu0 %v10611_v51  ;;  %v10655_v9 = vld [vmem:[#allocation2 + $0x960] ss:$12 sps:$4 sm:$0xff]  }
 0x33c   :  { %4262 = vmatprep.mubr.bf16.mxu0 %v11952_v55  ;;  %8864 = vmatprep.subr.bf16.mxu0 %v10612_v19  ;;  %v10616_v55 = vld [vmem:[#allocation2 + $0x1b8] ss:$12 sps:$4 sm:$0xff]   ;;  %v10657_v19 = vld [vmem:[#allocation2 + $0x97c] ss:$12 sps:$4 sm:$0xff]  }
 0x33d   :  { %9322 = vmatprep.subr.bf16.mxu1 %v11340_v43 }
 0x33e   :  { %4223 = vmatmul.mubr.bf16.vlgmr.msra.gmra.mrb[52].mxu1 %v11982_v50  ;;  %v4842_v50 = vpack.c.bf16 %v4830_v17, %v4830_v17  ;;  %v10658_v17 = vld [vmem:[#allocation2 + $0x810] ss:$12 sps:$4 sm:$0xff]  }
 0x33f   :  { %8865 = vmatpush3.bf16.msra.mxu0 %v10613_v18  ;;  %9323 = vmatpush3.bf16.msra.mxu1 %v10614_v10 }
 0x340   :  { %8866 = vmatprep.subr.bf16.mxu0 %v10615_v0  ;;  %9324 = vmatprep.subr.bf16.mxu1 %v11340_v43 }
 0x341   :  { %9338 = vmatprep.mubr.msk.bf16.mxu1 %vm11341_vm1, %v11340_v43  ;;  %4859 = vrot.lane.b32.xlu0 %v4842_v50, %s11337_s26 }
 0x343   :  { %8867 = vmatpush3.bf16.msra.mxu0 %v10616_v55  ;;  %9325 = vmatpush3.bf16.msra.mxu1 %v10617_v21 }
 0x344   :  { %8868 = vmatprep.subr.bf16.mxu0 %v10618_v63  ;;  %9326 = vmatprep.subr.bf16.mxu1 %v11340_v43  ;;  %v10659_v63 = vld [vmem:[#allocation2 + $0x978] ss:$12 sps:$4 sm:$0xff]  }
 0x347   :  { %8869 = vmatpush3.bf16.msra.mxu0 %v10619_v22  ;;  %9327 = vmatpush3.bf16.msra.mxu1 %v10620_v60  ;;  %v10660_v22 = vld [vmem:[#allocation2 + $0x82c] ss:$12 sps:$4 sm:$0xff]   ;;  %v10661_v60 = vld [vmem:[#allocation2 + $0x994] ss:$12 sps:$4 sm:$0xff]  }
 0x348   :  { %8870 = vmatprep.subr.bf16.mxu0 %v10621_v6  ;;  %9328 = vmatprep.subr.bf16.mxu1 %v11340_v43  ;;  %v10662_v6 = vld [vmem:[#allocation2 + $0x828] ss:$12 sps:$4 sm:$0xff]  }
 0x34b   :  { %8871 = vmatpush3.bf16.msra.mxu0 %v10622_v24  ;;  %9329 = vmatpush3.bf16.msra.mxu1 %v10623_v25  ;;  %v10663_v24 = vld [vmem:[#allocation2 + $0x990] ss:$12 sps:$4 sm:$0xff]  }
 0x34c   :  { %8872 = vmatprep.subr.bf16.mxu0 %v10624_v15  ;;  %9330 = vmatprep.subr.bf16.mxu1 %v11340_v43  ;;  %v10664_v25 = vld [vmem:[#allocation2 + $0x844] ss:$12 sps:$4 sm:$0xff]   ;;  %v10665_v15 = vld [vmem:[#allocation2 + $0x9ac] ss:$12 sps:$4 sm:$0xff]  }
 0x34f   :  { %8873 = vmatpush3.bf16.msra.mxu0 %v10625_v13  ;;  %9331 = vmatpush3.bf16.msra.mxu1 %v10626_v28  ;;  %v10666_v13 = vld [vmem:[#allocation2 + $0x840] ss:$12 sps:$4 sm:$0xff]   ;;  %v10667_v28 = vld [vmem:[#allocation2 + $0x9a8] ss:$12 sps:$4 sm:$0xff]  }
 0x350   :  { %8874 = vmatprep.subr.bf16.mxu0 %v10627_v11  ;;  %9332 = vmatprep.subr.bf16.mxu1 %v11340_v43  ;;  %v10668_v11 = vld [vmem:[#allocation2 + $0x85c] ss:$12 sps:$4 sm:$0xff]  }
 0x353   :  { %8875 = vmatpush3.bf16.msra.mxu0 %v10628_v2  ;;  %9333 = vmatpush3.bf16.msra.mxu1 %v10629_v32  ;;  %v10669_v2 = vld [vmem:[#allocation2 + $0x9c4] ss:$12 sps:$4 sm:$0xff]  }
 0x354   :  { %8876 = vmatprep.subr.bf16.mxu0 %v10630_v34  ;;  %9334 = vmatprep.subr.bf16.mxu1 %v11340_v43  ;;  %v10670_v32 = vld [vmem:[#allocation2 + $0x858] ss:$12 sps:$4 sm:$0xff]   ;;  %v10671_v34 = vld [vmem:[#allocation2 + $0x9c0] ss:$12 sps:$4 sm:$0xff]  }
 0x357   :  { %8877 = vmatpush3.bf16.msra.mxu0 %v10631_v36  ;;  %9335 = vmatpush3.bf16.msra.mxu1 %v10632_v23  ;;  %v10672_v36 = vld [vmem:[#allocation2 + $0x874] ss:$12 sps:$4 sm:$0xff]   ;;  %v10673_v23 = vld [vmem:[#allocation2 + $0x9dc] ss:$12 sps:$4 sm:$0xff]  }
 0x358   :  { %9336 = vmatprep.subr.bf16.mxu1 %v11340_v43  ;;  %4421 = vmatprep.subr.bf16.mxu0 %v10633_v57  ;;  %v10674_v57 = vld [vmem:[#allocation2 + $0x870] ss:$12 sps:$4 sm:$0xff]  }
 0x35a   :  { %4263 = vmatmul.mubr.bf16.vlgmr.msra.gmra.mrb[56].mxu0 %v11896_v47  ;;  %v12057_v47 = vsel %vm4410_vm5, %v11989_v56, %v11965_v41  ;;  %v10646_v41 = vld [vmem:[#allocation2 + $0x7c8] ss:$12 sps:$4 sm:$0xff]   ;;  %v10647_v56 = vld [vmem:[#allocation2 + $0x930] ss:$12 sps:$4 sm:$0xff]  }
 0x35b   :  { %9337 = vmatpush3.bf16.msra.mxu1 %v10634_v39  ;;  %4422 = vmatpush1.bf16.msra.mxu0 %v10635_v42  ;;  %v10675_v39 = vld [vmem:[#allocation2 + $0x9d8] ss:$12 sps:$4 sm:$0xff]  }
 0x35c   :  { %4423 = vmatprep.subr.bf16.mxu0 %v10636_v40  ;;  %4462 = vmatprep.subr.bf16.mxu1 %v10637_v37  ;;  %v10676_v42 = vld [vmem:[#allocation2 + $0x88c] ss:$12 sps:$4 sm:$0xff]   ;;  %v10677_v40 = vld [vmem:[#allocation2 + $0x9f4] ss:$12 sps:$4 sm:$0xff]  }
 0x35d   :  { %4453 = vmatprep.mubr.bf16.mxu0 %v12050_v27  ;;  %v10678_v37 = vld [vmem:[#allocation2 + $0x888] ss:$12 sps:$4 sm:$0xff]  }
 0x35e   :  { %9339 = vmatmul.mubr.bf16.vlgmr.msra.gmra.mrb[56].mxu1 %v11925_v33  ;;  %v10644_v33 = vld [vmem:[#allocation2 + $0x7cc] ss:$12 sps:$4 sm:$0xff]  }
 0x35f   :  { %4424 = vmatpush1.bf16.msra.mxu0 %v10638_v44  ;;  %4463 = vmatpush1.bf16.msra.mxu1 %v10639_v38  ;;  %v10679_v44 = vld [vmem:[#allocation2 + $0x9f0] ss:$12 sps:$4 sm:$0xff]  }
 0x360   :  { %4425 = vmatprep.subr.bf16.mxu0 %v10640_v29  ;;  %4464 = vmatprep.subr.bf16.mxu1 %v10641_v49  ;;  %v10680_v38 = vld [vmem:[#allocation2 + $0x8a4] ss:$12 sps:$4 sm:$0xff]   ;;  %v10681_v29 = vld [vmem:[#allocation2 + $0xa0c] ss:$12 sps:$4 sm:$0xff]  }
 0x361   :  { %4494 = vmatprep.mubr.bf16.mxu1 %v12057_v47  ;;  %v10682_v49 = vld [vmem:[#allocation2 + $0x8a0] ss:$12 sps:$4 sm:$0xff]  }
 0x363   :  { %4426 = vmatpush1.bf16.msra.mxu0 %v10642_v1  ;;  %4465 = vmatpush1.bf16.msra.mxu1 %v10643_v46  ;;  %v10683_v1 = vld [vmem:[#allocation2 + $0xa08] ss:$12 sps:$4 sm:$0xff]  }
 0x364   :  { %4427 = vmatprep.subr.bf16.mxu0 %v10644_v33  ;;  %4466 = vmatprep.subr.bf16.mxu1 %v10645_v62  ;;  %v10684_v46 = vld [vmem:[#allocation2 + $0x8bc] ss:$12 sps:$4 sm:$0xff]   ;;  %v10685_v33 = vld [vmem:[#allocation2 + $0xa24] ss:$12 sps:$4 sm:$0xff]  }
 0x367   :  { %4428 = vmatpush1.bf16.msra.mxu0 %v10646_v41  ;;  %4467 = vmatpush1.bf16.msra.mxu1 %v10647_v56 }
 0x368   :  { %4429 = vmatprep.subr.bf16.mxu0 %v10648_v53  ;;  %4468 = vmatprep.subr.bf16.mxu1 %v10649_v54 }
 0x36b   :  { %4430 = vmatpush1.bf16.msra.mxu0 %v10650_v58  ;;  %4469 = vmatpush1.bf16.msra.mxu1 %v10651_v16  ;;  %v10686_v58 = vld [vmem:[#allocation2 + $0x8b8] ss:$12 sps:$4 sm:$0xff]   ;;  %v10687_v16 = vld [vmem:[#allocation2 + $0xa20] ss:$12 sps:$4 sm:$0xff]  }
 0x36c   :  { %4431 = vmatprep.subr.bf16.mxu0 %v10652_v59  ;;  %4470 = vmatprep.subr.bf16.mxu1 %v10653_v30  ;;  %v10688_v30 = vld [vmem:[#allocation2 + $0x8d4] ss:$12 sps:$4 sm:$0xff]  }
 0x36d   :  { %v3829_v7 = vpop.f32.mrb[36].mxu0 }
 0x36e   :  { %v3831_v12 = vpop.f32.mrb[37].mxu0 }
 0x36f   :  { %v3833_v61 = vpop.f32.mrb[38].mxu0  ;;  %4432 = vmatpush1.bf16.msra.mxu0 %v10654_v20  ;;  %4471 = vmatpush1.bf16.msra.mxu1 %v10655_v9 }
 0x370   :  { %v3834_v51 = vpop.f32.mrb[39].mxu0  ;;  %4433 = vmatprep.subr.bf16.mxu0 %v10656_v14  ;;  %4472 = vmatprep.subr.bf16.mxu1 %v10657_v19  ;;  %v10691_v14 = vld [vmem:[#allocation2 + $0xa38] ss:$12 sps:$4 sm:$0xff]  }
 0x371   :  { %v3870_v18 = vpop.f32.mrb[36].mxu1  ;;  %v10690_v51 = vld [vmem:[#allocation2 + $0x8d0] ss:$12 sps:$4 sm:$0xff]  }
 0x372   :  { %v3871_v10 = vadd.f32 %v3870_v18, %v3829_v7  ;;  %v3872_v0 = vpop.f32.mrb[37].mxu1  ;;  %v10689_v7 = vld [vmem:[#allocation2 + $0xa3c] ss:$12 sps:$4 sm:$0xff]   ;;  %v10692_v18 = vld [vmem:[#allocation2 + $0x8ec] ss:$12 sps:$4 sm:$0xff]  }
 0x373   :  { %v3873_v55 = vadd.f32 %v3872_v0, %v3831_v12  ;;  %v3874_v21 = vpop.f32.mrb[38].mxu1  ;;  %4434 = vmatpush1.bf16.msra.mxu0 %v10658_v17  ;;  %4473 = vmatpush1.bf16.msra.mxu1 %v10659_v63  ;;  %v10694_v0 = vld [vmem:[#allocation2 + $0x8e8] ss:$12 sps:$4 sm:$0xff]   ;;  %v10697_v17 = vld [vmem:[#allocation2 + $0xa84] ss:$12 sps:$4 sm:$0xff]   ;;  %v12069_v63 = vsel %vm4410_vm5, %v12024_v8, %v12019_v31 }
 0x374   :  { %v3875_v50 = vpop.f32.mrb[39].mxu1  ;;  %4435 = vmatprep.subr.bf16.mxu0 %v10660_v22  ;;  %4474 = vmatprep.subr.bf16.mxu1 %v10661_v60  ;;  %v10696_v21 = vld [vmem:[#allocation2 + $0xa6c] ss:$12 sps:$4 sm:$0xff]   ;;  %v10700_v60 = vld [vmem:[#allocation2 + $0xa9c] ss:$12 sps:$4 sm:$0xff]  }
 0x375   :  { %v10698_v50 = vld [vmem:[#allocation2 + $0xa68] ss:$12 sps:$4 sm:$0xff]   ;;  %v10699_v22 = vld [vmem:[#allocation2 + $0xa80] ss:$12 sps:$4 sm:$0xff]  }
 0x376   :  { %v10704_v31 = vld [vmem:[#allocation2 + $0xab4] ss:$12 sps:$4 sm:$0xff]  }
 0x377   :  { %4436 = vmatpush1.bf16.msra.mxu0 %v10662_v6  ;;  %4475 = vmatpush1.bf16.msra.mxu1 %v10663_v24  ;;  %v10701_v6 = vld [vmem:[#allocation2 + $0x848] ss:$12 sps:$4 sm:$0xff]   ;;  %v10702_v24 = vld [vmem:[#allocation2 + $0xa98] ss:$12 sps:$4 sm:$0xff]   ;;  %v10705_v8 = vld [vmem:[#allocation2 + $0x860] ss:$12 sps:$4 sm:$0xff]  }
 0x378   :  { %4437 = vmatprep.subr.bf16.mxu0 %v10664_v25  ;;  %4476 = vmatprep.subr.bf16.mxu1 %v10665_v15  ;;  %v10703_v25 = vld [vmem:[#allocation2 + $0x788] ss:$12 sps:$4 sm:$0xff]   ;;  %v10706_v15 = vld [vmem:[#allocation2 + $0xab0] ss:$12 sps:$4 sm:$0xff]  }
 0x37b   :  { %4438 = vmatpush1.bf16.msra.mxu0 %v10666_v13  ;;  %4477 = vmatpush1.bf16.msra.mxu1 %v10667_v28  ;;  %v10707_v13 = vld [vmem:[#allocation2 + $0x7a0] ss:$12 sps:$4 sm:$0xff]  }
 0x37c   :  { %4439 = vmatprep.subr.bf16.mxu0 %v10668_v11  ;;  %4478 = vmatprep.subr.bf16.mxu1 %v10669_v2  ;;  %v10708_v28 = vld [vmem:[#allocation2 + $0xacc] ss:$12 sps:$4 sm:$0xff]   ;;  %v10710_v2 = vld [vmem:[#allocation2 + $0xac8] ss:$12 sps:$4 sm:$0xff]  }
 0x37d   :  { %v10709_v11 = vld [vmem:[#allocation2 + $0x878] ss:$12 sps:$4 sm:$0xff]  }
 0x37f   :  { %4440 = vmatpush1.bf16.msra.mxu0 %v10670_v32  ;;  %4479 = vmatpush1.bf16.msra.mxu1 %v10671_v34  ;;  %v10711_v32 = vld [vmem:[#allocation2 + $0x7b8] ss:$12 sps:$4 sm:$0xff]  }
 0x380   :  { %4441 = vmatprep.subr.bf16.mxu0 %v10672_v36  ;;  %4480 = vmatprep.subr.bf16.mxu1 %v10673_v23  ;;  %v10712_v34 = vld [vmem:[#allocation2 + $0xae4] ss:$12 sps:$4 sm:$0xff]  }
 0x381   :  { %v10713_v36 = vld [vmem:[#allocation2 + $0x890] ss:$12 sps:$4 sm:$0xff]  }
 0x382   :  { %v10715_v23 = vld [vmem:[#allocation2 + $0x7d0] ss:$12 sps:$4 sm:$0xff]  }
 0x383   :  { %4442 = vmatpush1.bf16.msra.mxu0 %v10674_v57  ;;  %4481 = vmatpush1.bf16.msra.mxu1 %v10675_v39  ;;  %v10716_v57 = vld [vmem:[#allocation2 + $0xafc] ss:$12 sps:$4 sm:$0xff]  }
 0x384   :  { %4443 = vmatprep.subr.bf16.mxu0 %v10676_v42  ;;  %4482 = vmatprep.subr.bf16.mxu1 %v10677_v40  ;;  %v10717_v39 = vld [vmem:[#allocation2 + $0x8a8] ss:$12 sps:$4 sm:$0xff]  }
 0x387   :  { %4444 = vmatpush1.bf16.msra.mxu0 %v10678_v37  ;;  %4483 = vmatpush1.bf16.msra.mxu1 %v10679_v44 }
 0x388   :  { %4445 = vmatprep.subr.bf16.mxu0 %v10680_v38  ;;  %4484 = vmatprep.subr.bf16.mxu1 %v10681_v29  ;;  %v10718_v38 = vld [vmem:[#allocation2 + $0xaf8] ss:$12 sps:$4 sm:$0xff]   ;;  %v10719_v29 = vld [vmem:[#allocation2 + $0x7e8] ss:$12 sps:$4 sm:$0xff]  }
 0x38b   :  { %4446 = vmatpush1.bf16.msra.mxu0 %v10682_v49  ;;  %4485 = vmatpush1.bf16.msra.mxu1 %v10683_v1  ;;  %v10720_v1 = vld [vmem:[#allocation2 + $0xb14] ss:$12 sps:$4 sm:$0xff]  }
 0x38c   :  { %4447 = vmatprep.subr.bf16.mxu0 %v10684_v46  ;;  %4486 = vmatprep.subr.bf16.mxu1 %v10685_v33  ;;  %v10721_v46 = vld [vmem:[#allocation2 + $0x8c0] ss:$12 sps:$4 sm:$0xff]  }
 0x38d   :  { %v3911_v62 = vpop.f32.mrb[40].mxu0 }
 0x38e   :  { %v12060_v41 = vadd.f32 %v3911_v62, %v3871_v10  ;;  %v3913_v56 = vpop.f32.mrb[41].mxu0  ;;  %v10693_v10 = vld [vmem:[#allocation2 + $0xa54] ss:$12 sps:$4 sm:$0xff]  }
 0x38f   :  { %v12062_v53 = vadd.f32 %v3913_v56, %v3873_v55  ;;  %v3915_v54 = vpop.f32.mrb[42].mxu0  ;;  %4448 = vmatpush1.bf16.msra.mxu0 %v10686_v58  ;;  %4487 = vmatpush1.bf16.msra.mxu1 %v10687_v16  ;;  %v10695_v55 = vld [vmem:[#allocation2 + $0xa50] ss:$12 sps:$4 sm:$0xff]  }
 0x390   :  { %v3916_v59 = vpop.f32.mrb[43].mxu0  ;;  %4449 = vmatprep.subr.bf16.mxu0 %v10688_v30  ;;  %4488 = vmatprep.subr.bf16.mxu1 %v10689_v7  ;;  %v10722_v16 = vld [vmem:[#allocation2 + $0xb10] ss:$12 sps:$4 sm:$0xff]   ;;  %v10724_v7 = vld [vmem:[#allocation2 + $0xb2c] ss:$12 sps:$4 sm:$0xff]  }
 0x391   :  { %v8803_v12 = vpop.f32.mrb[40].mxu1  ;;  %v10723_v59 = vld [vmem:[#allocation2 + $0x800] ss:$12 sps:$4 sm:$0xff]  }
 0x392   :  { %v8804_v61 = vpop.f32.mrb[41].mxu1 }
 0x393   :  { %v12064_v20 = vadd.f32 %v8804_v61, %v8803_v12  ;;  %v8806_v9 = vpop.f32.mrb[42].mxu1  ;;  %4450 = vmatpush1.bf16.msra.mxu0 %v10690_v51  ;;  %4489 = vmatpush1.bf16.msra.mxu1 %v10691_v14  ;;  %v10725_v12 = vld [vmem:[#allocation2 + $0x8d8] ss:$12 sps:$4 sm:$0xff]   ;;  %v10726_v61 = vld [vmem:[#allocation2 + $0xb28] ss:$12 sps:$4 sm:$0xff]  }
 0x394   :  { %v8807_v19 = vpop.f32.mrb[43].mxu1  ;;  %4451 = vmatprep.subr.bf16.mxu0 %v10692_v18  ;;  %4490 = vmatprep.subr.bf16.mxu1 %v10693_v10  ;;  %v10727_v9 = vld [vmem:[#allocation2 + $0x818] ss:$12 sps:$4 sm:$0xff]   ;;  %v10728_v51 = vld [vmem:[#allocation2 + $0x8f0] ss:$12 sps:$4 sm:$0xff]  }
 0x395   :  { %v10730_v14 = vld [vmem:[#allocation2 + $0x830] ss:$12 sps:$4 sm:$0xff]   ;;  %v10731_v19 = vld [vmem:[#allocation2 + $0x908] ss:$12 sps:$4 sm:$0xff]   ;;  %v10732_v18 = vld [vmem:[#allocation2 + $0x9e0] ss:$12 sps:$4 sm:$0xff]  }
 0x396   :  { %v10733_v10 = vld [vmem:[#allocation2 + $0x920] ss:$12 sps:$4 sm:$0xff]  }
 0x397   :  { %4452 = vmatpush1.bf16.msra.mxu0 %v10694_v0  ;;  %4491 = vmatpush1.bf16.msra.mxu1 %v10695_v55  ;;  %v10734_v0 = vld [vmem:[#allocation2 + $0xa88] ss:$12 sps:$4 sm:$0xff]   ;;  %v10735_v55 = vld [vmem:[#allocation2 + $0x9f8] ss:$12 sps:$4 sm:$0xff]  }
 0x398   :  { %4492 = vmatprep.subr.bf16.mxu1 %v10696_v21  ;;  %4503 = vmatprep.subr.bf16.mxu0 %v10697_v17  ;;  %v10736_v21 = vld [vmem:[#allocation2 + $0x938] ss:$12 sps:$4 sm:$0xff]   ;;  %v10738_v17 = vld [vmem:[#allocation2 + $0xa10] ss:$12 sps:$4 sm:$0xff]  }
 0x39a   :  { %4454 = vmatmul.mubr.bf16.vlgmr.msra.gmra.mrb[60].mxu0 %v12069_v63 }
 0x39b   :  { %4493 = vmatpush1.bf16.msra.mxu1 %v10698_v50  ;;  %4504 = vmatpush1.bf16.msra.mxu0 %v10699_v22  ;;  %v10740_v50 = vld [vmem:[#allocation2 + $0xab8] ss:$12 sps:$4 sm:$0xff]   ;;  %v10741_v22 = vld [vmem:[#allocation2 + $0xa28] ss:$12 sps:$4 sm:$0xff]  }
 0x39c   :  { %4505 = vmatprep.subr.bf16.mxu0 %v10700_v60  ;;  %8893 = vmatprep.subr.bf16.mxu1 %v10701_v6  ;;  %v10742_v60 = vld [vmem:[#allocation2 + $0x968] ss:$12 sps:$4 sm:$0xff]   ;;  %v10743_v6 = vld [vmem:[#allocation2 + $0xad0] ss:$12 sps:$4 sm:$0xff]  }
 0x39d   :  { %4535 = vmatprep.mubr.bf16.mxu0 %v11338_v45 }
 0x39e   :  { %4495 = vmatmul.mubr.bf16.vlgmr.msra.gmra.mrb[60].mxu1 %v12000_v35 }
 0x39f   :  { %4506 = vmatpush1.bf16.msra.mxu0 %v10702_v24  ;;  %8894 = vmatpush3.bf16.msra.mxu1 %v10703_v25  ;;  %v10744_v24 = vld [vmem:[#allocation2 + $0xa40] ss:$12 sps:$4 sm:$0xff]  }
 0x3a0   :  { %4576 = vmatprep.mubr.bf16.mxu1 %v12050_v27  ;;  %4507 = vmatprep.subr.bf16.mxu0 %v10704_v31  ;;  %v10714_v27 = vld [vmem:[#allocation2 + $0xae0] ss:$12 sps:$4 sm:$0xff]   ;;  %v10746_v31 = vld [vmem:[#allocation2 + $0xae8] ss:$12 sps:$4 sm:$0xff]  }
 0x3a1   :  { %8895 = vmatprep.subr.bf16.mxu1 %v10705_v8  ;;  %v10745_v25 = vld [vmem:[#allocation2 + $0x980] ss:$12 sps:$4 sm:$0xff]   ;;  %v10747_v8 = vld [vmem:[#allocation2 + $0xa58] ss:$12 sps:$4 sm:$0xff]  }
 0x3a3   :  { %4508 = vmatpush1.bf16.msra.mxu0 %v10706_v15  ;;  %8896 = vmatpush3.bf16.msra.mxu1 %v10707_v13  ;;  %v12089_v15 = vpop.permute.xlu1 %4853  ;;  %v10748_v13 = vld [vmem:[#allocation2 + $0x998] ss:$12 sps:$4 sm:$0xff]  }
 0x3a4   :  { %4509 = vmatprep.subr.bf16.mxu0 %v10708_v28  ;;  %8897 = vmatprep.subr.bf16.mxu1 %v10709_v11  ;;  %v10749_v28 = vld [vmem:[#allocation2 + $0xb00] ss:$12 sps:$4 sm:$0xff]   ;;  %v10750_v11 = vld [vmem:[#allocation2 + $0xa70] ss:$12 sps:$4 sm:$0xff]  }
 0x3a7   :  { %4510 = vmatpush1.bf16.msra.mxu0 %v10710_v2  ;;  %8898 = vmatpush3.bf16.msra.mxu1 %v10711_v32  ;;  %v10751_v2 = vld [vmem:[#allocation2 + $0x9b0] ss:$12 sps:$4 sm:$0xff]   ;;  %v10752_v32 = vld [vmem:[#allocation2 + $0xb18] ss:$12 sps:$4 sm:$0xff]  }
 0x3a8   :  { %4511 = vmatprep.subr.bf16.mxu0 %v10712_v34  ;;  %8899 = vmatprep.subr.bf16.mxu1 %v10713_v36  ;;  %v12092_v34 = vpop.permute.xlu1 %4857  ;;  %v10753_v36 = vld [vmem:[#allocation2 + $0x3c4] ss:$12 sps:$4 sm:$0xff]  }
 0x3ab   :  { %4512 = vmatpush1.bf16.msra.mxu0 %v10714_v27  ;;  %8900 = vmatpush3.bf16.msra.mxu1 %v10715_v23  ;;  %v12095_v27 = vpop.permute.xlu0 %4851 }
 0x3ac   :  { %4513 = vmatprep.subr.bf16.mxu0 %v10716_v57  ;;  %8901 = vmatprep.subr.bf16.mxu1 %v10717_v39  ;;  %v12101_v23 = vsel %vm635_vm0, %v12095_v27, %v12089_v15  ;;  %v10754_v57 = vld [vmem:[#allocation2 + $0xb30] ss:$12 sps:$4 sm:$0xff]   ;;  %v10755_v39 = vld [vmem:[#allocation2 + $0x3c0] ss:$12 sps:$4 sm:$0xff]  }
 0x3ad   :  { %v8825_v42 = vpop.f32.mrb[44].mxu0 }
 0x3ae   :  { %v8826_v40 = vpop.f32.mrb[45].mxu0 }
 0x3af   :  { %v8827_v37 = vadd.f32 %v8826_v40, %v8825_v42  ;;  %v8828_v44 = vpop.f32.mrb[46].mxu0  ;;  %4514 = vmatpush1.bf16.msra.mxu0 %v10718_v38  ;;  %8902 = vmatpush3.bf16.msra.mxu1 %v10719_v29  ;;  %v10756_v42 = vld [vmem:[#allocation2 + $0x3dc] ss:$12 sps:$4 sm:$0xff]   ;;  %v10757_v40 = vld [vmem:[#allocation2 + $0x544] ss:$12 sps:$4 sm:$0xff]  }
 0x3b0   :  { %v8829_v49 = vpop.f32.mrb[47].mxu0  ;;  %4515 = vmatprep.subr.bf16.mxu0 %v10720_v1  ;;  %8903 = vmatprep.subr.bf16.mxu1 %v10721_v46  ;;  %v10758_v44 = vld [vmem:[#allocation2 + $0x3d8] ss:$12 sps:$4 sm:$0xff]   ;;  %v10759_v38 = vld [vmem:[#allocation2 + $0x540] ss:$12 sps:$4 sm:$0xff]  }
 0x3b1   :  { %v3993_v33 = vadd.f32 %v8827_v37, %v12064_v20  ;;  %v4032_v62 = vpop.f32.mrb[44].mxu1  ;;  %v10729_v20 = vld [vmem:[#allocation2 + $0x9c8] ss:$12 sps:$4 sm:$0xff]   ;;  %v12104_v37 = vpop.permute.xlu1 %4855  ;;  %v10762_v1 = vld [vmem:[#allocation2 + $0x3f0] ss:$12 sps:$4 sm:$0xff]  }
 0x3b2   :  { %v9320_v56 = vpop.f32.mrb[45].mxu1  ;;  %v10760_v29 = vld [vmem:[#allocation2 + $0x3f4] ss:$12 sps:$4 sm:$0xff]   ;;  %v10761_v49 = vld [vmem:[#allocation2 + $0x55c] ss:$12 sps:$4 sm:$0xff]  }
 0x3b3   :  { %v12076_v54 = vadd.f32 %v4032_v62, %v3993_v33  ;;  %v4035_v58 = vpop.f32.mrb[46].mxu1  ;;  %4516 = vmatpush1.bf16.msra.mxu0 %v10722_v16  ;;  %8904 = vmatpush3.bf16.msra.mxu1 %v10723_v59  ;;  %v10763_v46 = vld [vmem:[#allocation2 + $0x558] ss:$12 sps:$4 sm:$0xff]   ;;  %v10765_v33 = vld [vmem:[#allocation2 + $0x574] ss:$12 sps:$4 sm:$0xff]  }
 0x3b4   :  { %v9321_v30 = vpop.f32.mrb[47].mxu1  ;;  %4517 = vmatprep.subr.bf16.mxu0 %v10724_v7  ;;  %8905 = vmatprep.subr.bf16.mxu1 %v10725_v12  ;;  %v10766_v62 = vld [vmem:[#allocation2 + $0x408] ss:$12 sps:$4 sm:$0xff]   ;;  %v10767_v56 = vld [vmem:[#allocation2 + $0x570] ss:$12 sps:$4 sm:$0xff]  }
 0x3b5   :  { %v10768_v58 = vld [vmem:[#allocation2 + $0x424] ss:$12 sps:$4 sm:$0xff]   ;;  %v10769_v16 = vld [vmem:[#allocation2 + $0x58c] ss:$12 sps:$4 sm:$0xff]   ;;  %v10771_v30 = vld [vmem:[#allocation2 + $0x588] ss:$12 sps:$4 sm:$0xff]  }
 0x3b6   :  { %v10770_v59 = vld [vmem:[#allocation2 + $0x420] ss:$12 sps:$4 sm:$0xff]   ;;  %v10772_v7 = vld [vmem:[#allocation2 + $0x43c] ss:$12 sps:$4 sm:$0xff]   ;;  %v10773_v12 = vld [vmem:[#allocation2 + $0x5a4] ss:$12 sps:$4 sm:$0xff]  }
 0x3b7   :  { %4518 = vmatpush1.bf16.msra.mxu0 %v10726_v61  ;;  %8906 = vmatpush3.bf16.msra.mxu1 %v10727_v9 }
 0x3b8   :  { %8907 = vmatprep.subr.bf16.mxu1 %v10728_v51  ;;  %8915 = vmatprep.subr.bf16.mxu0 %v10729_v20 }
 0x3ba   :  { %4536 = vmatmul.mubr.bf16.vlgmr.msra.gmra.mrb[64].mxu0 %v12030_v52 }
 0x3bb   :  { %8908 = vmatpush3.bf16.msra.mxu1 %v10730_v14  ;;  %8916 = vmatpush3.bf16.msra.mxu0 %v10731_v19  ;;  %v10774_v19 = vld [vmem:[#allocation2 + $0x438] ss:$12 sps:$4 sm:$0xff]  }
 0x3bc   :  { %4616 = vmatprep.mubr.bf16.mxu0 %v12057_v47  ;;  %8917 = vmatprep.subr.bf16.mxu0 %v10732_v18  ;;  %v10737_v47 = vld [vmem:[#allocation2 + $0xaa0] ss:$12 sps:$4 sm:$0xff]  }
 0x3bd   :  { %9342 = vmatprep.subr.bf16.mxu1 %v11340_v43  ;;  %v10775_v18 = vld [vmem:[#allocation2 + $0x5a0] ss:$12 sps:$4 sm:$0xff]  }
 0x3be   :  { %4577 = vmatmul.mubr.bf16.vlgmr.msra.gmra.mrb[64].mxu1 %v12069_v63  ;;  %v10739_v63 = vld [vmem:[#allocation2 + $0x950] ss:$12 sps:$4 sm:$0xff]  }
 0x3bf   :  { %8918 = vmatpush3.bf16.msra.mxu0 %v10733_v10  ;;  %9343 = vmatpush3.bf16.msra.mxu1 %v10734_v0  ;;  %v10776_v0 = vld [vmem:[#allocation2 + $0x454] ss:$12 sps:$4 sm:$0xff]  }
 0x3c0   :  { %8919 = vmatprep.subr.bf16.mxu0 %v10735_v55  ;;  %9344 = vmatprep.subr.bf16.mxu1 %v11340_v43  ;;  %v10777_v55 = vld [vmem:[#allocation2 + $0x5bc] ss:$12 sps:$4 sm:$0xff]  }
 0x3c1   :  { %9358 = vmatprep.mubr.msk.bf16.mxu1 %vm11341_vm1, %v11340_v43 }
 0x3c3   :  { %8920 = vmatpush3.bf16.msra.mxu0 %v10736_v21  ;;  %9345 = vmatpush3.bf16.msra.mxu1 %v10737_v47 }
 0x3c4   :  { %8921 = vmatprep.subr.bf16.mxu0 %v10738_v17  ;;  %9346 = vmatprep.subr.bf16.mxu1 %v11340_v43 }
 0x3c7   :  { %8922 = vmatpush3.bf16.msra.mxu0 %v10739_v63  ;;  %9347 = vmatpush3.bf16.msra.mxu1 %v10740_v50 }
 0x3c8   :  { %8923 = vmatprep.subr.bf16.mxu0 %v10741_v22  ;;  %9348 = vmatprep.subr.bf16.mxu1 %v11340_v43  ;;  %v10778_v22 = vld [vmem:[#allocation2 + $0x450] ss:$12 sps:$4 sm:$0xff]  }
 0x3cb   :  { %8924 = vmatpush3.bf16.msra.mxu0 %v10742_v60  ;;  %9349 = vmatpush3.bf16.msra.mxu1 %v10743_v6  ;;  %v10780_v60 = vld [vmem:[#allocation2 + $0x46c] ss:$12 sps:$4 sm:$0xff]   ;;  %v10781_v6 = vld [vmem:[#allocation2 + $0x5d4] ss:$12 sps:$4 sm:$0xff]  }
 0x3cc   :  { %8925 = vmatprep.subr.bf16.mxu0 %v10744_v24  ;;  %9350 = vmatprep.subr.bf16.mxu1 %v11340_v43  ;;  %v10782_v24 = vld [vmem:[#allocation2 + $0x468] ss:$12 sps:$4 sm:$0xff]  }
 0x3cf   :  { %8926 = vmatpush3.bf16.msra.mxu0 %v10745_v25  ;;  %9351 = vmatpush3.bf16.msra.mxu1 %v10746_v31  ;;  %v10783_v25 = vld [vmem:[#allocation2 + $0x5d0] ss:$12 sps:$4 sm:$0xff]  }
 0x3d0   :  { %8927 = vmatprep.subr.bf16.mxu0 %v10747_v8  ;;  %9352 = vmatprep.subr.bf16.mxu1 %v11340_v43  ;;  %v10784_v31 = vld [vmem:[#allocation2 + $0x484] ss:$12 sps:$4 sm:$0xff]   ;;  %v10785_v8 = vld [vmem:[#allocation2 + $0x5ec] ss:$12 sps:$4 sm:$0xff]  }
 0x3d3   :  { %8928 = vmatpush3.bf16.msra.mxu0 %v10748_v13  ;;  %9353 = vmatpush3.bf16.msra.mxu1 %v10749_v28  ;;  %v10786_v13 = vld [vmem:[#allocation2 + $0x480] ss:$12 sps:$4 sm:$0xff]   ;;  %v10787_v28 = vld [vmem:[#allocation2 + $0x5e8] ss:$12 sps:$4 sm:$0xff]  }
 0x3d4   :  { %8929 = vmatprep.subr.bf16.mxu0 %v10750_v11  ;;  %9354 = vmatprep.subr.bf16.mxu1 %v11340_v43  ;;  %v10788_v11 = vld [vmem:[#allocation2 + $0x49c] ss:$12 sps:$4 sm:$0xff]  }
 0x3d7   :  { %8930 = vmatpush3.bf16.msra.mxu0 %v10751_v2  ;;  %9355 = vmatpush3.bf16.msra.mxu1 %v10752_v32  ;;  %v10789_v2 = vld [vmem:[#allocation2 + $0x604] ss:$12 sps:$4 sm:$0xff]  }
 0x3d8   :  { %9356 = vmatprep.subr.bf16.mxu1 %v11340_v43  ;;  %4871 = vmatprep.subr.bf16.mxu0 %v10753_v36  ;;  %v10790_v32 = vld [vmem:[#allocation2 + $0x498] ss:$12 sps:$4 sm:$0xff]   ;;  %v10791_v36 = vld [vmem:[#allocation2 + $0x600] ss:$12 sps:$4 sm:$0xff]  }
 0x3da   :  { %4617 = vmatmul.mubr.bf16.vlgmr.msra.gmra.mrb[68].mxu0 %v12000_v35  ;;  %v12110_v35 = vsel %vm635_vm0, %v12104_v37, %v12092_v34 }
 0x3db   :  { %9357 = vmatpush3.bf16.msra.mxu1 %v10754_v57  ;;  %4872 = vmatpush1.bf16.msra.mxu0 %v10755_v39  ;;  %v10792_v57 = vld [vmem:[#allocation2 + $0x4b4] ss:$12 sps:$4 sm:$0xff]   ;;  %v10793_v39 = vld [vmem:[#allocation2 + $0x61c] ss:$12 sps:$4 sm:$0xff]  }
 0x3dc   :  { %4873 = vmatprep.subr.bf16.mxu0 %v10756_v42  ;;  %4912 = vmatprep.subr.bf16.mxu1 %v10757_v40  ;;  %v10794_v42 = vld [vmem:[#allocation2 + $0x4b0] ss:$12 sps:$4 sm:$0xff]   ;;  %v10795_v40 = vld [vmem:[#allocation2 + $0x618] ss:$12 sps:$4 sm:$0xff]  }
 0x3dd   :  { %4903 = vmatprep.mubr.bf16.mxu0 %v12101_v23 }
 0x3de   :  { %9359 = vmatmul.mubr.bf16.vlgmr.msra.gmra.mrb[68].mxu1 %v12030_v52  ;;  %v10764_v52 = vld [vmem:[#allocation2 + $0x40c] ss:$12 sps:$4 sm:$0xff]  }
 0x3df   :  { %4874 = vmatpush1.bf16.msra.mxu0 %v10758_v44  ;;  %4913 = vmatpush1.bf16.msra.mxu1 %v10759_v38  ;;  %v10796_v44 = vld [vmem:[#allocation2 + $0x4cc] ss:$12 sps:$4 sm:$0xff]   ;;  %v10797_v38 = vld [vmem:[#allocation2 + $0x634] ss:$12 sps:$4 sm:$0xff]  }
 0x3e0   :  { %4875 = vmatprep.subr.bf16.mxu0 %v10760_v29  ;;  %4914 = vmatprep.subr.bf16.mxu1 %v10761_v49  ;;  %v10798_v29 = vld [vmem:[#allocation2 + $0x4c8] ss:$12 sps:$4 sm:$0xff]   ;;  %v10799_v49 = vld [vmem:[#allocation2 + $0x630] ss:$12 sps:$4 sm:$0xff]  }
 0x3e1   :  { %4944 = vmatprep.mubr.bf16.mxu1 %v12110_v35 }
 0x3e3   :  { %4876 = vmatpush1.bf16.msra.mxu0 %v10762_v1  ;;  %4915 = vmatpush1.bf16.msra.mxu1 %v10763_v46  ;;  %v10800_v1 = vld [vmem:[#allocation2 + $0x4e4] ss:$12 sps:$4 sm:$0xff]   ;;  %v10801_v46 = vld [vmem:[#allocation2 + $0x64c] ss:$12 sps:$4 sm:$0xff]  }
 0x3e4   :  { %4877 = vmatprep.subr.bf16.mxu0 %v10764_v52  ;;  %4916 = vmatprep.subr.bf16.mxu1 %v10765_v33  ;;  %v10802_v52 = vld [vmem:[#allocation2 + $0x4e0] ss:$12 sps:$4 sm:$0xff]   ;;  %v10803_v33 = vld [vmem:[#allocation2 + $0x648] ss:$12 sps:$4 sm:$0xff]  }
 0x3e7   :  { %4878 = vmatpush1.bf16.msra.mxu0 %v10766_v62  ;;  %4917 = vmatpush1.bf16.msra.mxu1 %v10767_v56  ;;  %v10804_v62 = vld [vmem:[#allocation2 + $0x4fc] ss:$12 sps:$4 sm:$0xff]   ;;  %v10805_v56 = vld [vmem:[#allocation2 + $0x664] ss:$12 sps:$4 sm:$0xff]  }
 0x3e8   :  { %4879 = vmatprep.subr.bf16.mxu0 %v10768_v58  ;;  %4918 = vmatprep.subr.bf16.mxu1 %v10769_v16 }
 0x3eb   :  { %4880 = vmatpush1.bf16.msra.mxu0 %v10770_v59  ;;  %4919 = vmatpush1.bf16.msra.mxu1 %v10771_v30 }
 0x3ec   :  { %4881 = vmatprep.subr.bf16.mxu0 %v10772_v7  ;;  %4920 = vmatprep.subr.bf16.mxu1 %v10773_v12  ;;  %v10806_v12 = vld [vmem:[#allocation2 + $0x4f8] ss:$12 sps:$4 sm:$0xff]  }
 0x3ed   :  { %v4101_v61 = vpop.f32.mrb[48].mxu0 }
 0x3ee   :  { %v4102_v9 = vadd.f32 %v4101_v61, %v12060_v41  ;;  %v4103_v51 = vpop.f32.mrb[49].mxu0  ;;  %v10779_v41 = vld [vmem:[#allocation2 + $0x5b8] ss:$12 sps:$4 sm:$0xff]   ;;  %v10807_v61 = vld [vmem:[#allocation2 + $0x660] ss:$12 sps:$4 sm:$0xff]  }
 0x3ef   :  { %v4104_v20 = vadd.f32 %v4103_v51, %v12062_v53  ;;  %v4105_v14 = vpop.f32.mrb[50].mxu0  ;;  %4882 = vmatpush1.bf16.msra.mxu0 %v10774_v19  ;;  %4921 = vmatpush1.bf16.msra.mxu1 %v10775_v18  ;;  %v10808_v51 = vld [vmem:[#allocation2 + $0x514] ss:$12 sps:$4 sm:$0xff]  }
 0x3f0   :  { %v4106_v10 = vpop.f32.mrb[51].mxu0  ;;  %4883 = vmatprep.subr.bf16.mxu0 %v10776_v0  ;;  %4922 = vmatprep.subr.bf16.mxu1 %v10777_v55  ;;  %v10810_v0 = vld [vmem:[#allocation2 + $0x510] ss:$12 sps:$4 sm:$0xff]   ;;  %v10811_v55 = vld [vmem:[#allocation2 + $0x678] ss:$12 sps:$4 sm:$0xff]  }
 0x3f1   :  { %v4142_v21 = vpop.f32.mrb[48].mxu1 }
 0x3f2   :  { %v4143_v47 = vadd.f32 %v4142_v21, %v4102_v9  ;;  %v4144_v17 = vpop.f32.mrb[49].mxu1 }
 0x3f3   :  { %v4145_v63 = vadd.f32 %v4144_v17, %v4104_v20  ;;  %v4146_v50 = vpop.f32.mrb[50].mxu1  ;;  %4884 = vmatpush1.bf16.msra.mxu0 %v10778_v22  ;;  %4923 = vmatpush1.bf16.msra.mxu1 %v10779_v41  ;;  %v10809_v20 = vld [vmem:[#allocation2 + $0x67c] ss:$12 sps:$4 sm:$0xff]   ;;  %v10813_v17 = vld [vmem:[#allocation2 + $0x694] ss:$12 sps:$4 sm:$0xff]  }
 0x3f4   :  { %v4147_v53 = vpop.f32.mrb[51].mxu1  ;;  %4885 = vmatprep.subr.bf16.mxu0 %v10780_v60  ;;  %4924 = vmatprep.subr.bf16.mxu1 %v10781_v6  ;;  %v4850_v50 = vpop.permute.xlu0 %4849  ;;  %v10814_v22 = vld [vmem:[#allocation2 + $0x528] ss:$12 sps:$4 sm:$0xff]   ;;  %v10815_v41 = vld [vmem:[#allocation2 + $0x690] ss:$12 sps:$4 sm:$0xff]  }
 0x3f5   :  { %v10064_v53 = vld [vmem:[%s12482_s0 + $0x3c] ss:$72 sps:$4 sm:$0xff]   ;;  %v10066_v60 = vld [vmem:[%s12482_s0 + $0xcc] ss:$72 sps:$4 sm:$0xff]  }
 0x3f6   :  { %v10816_v6 = vld [vmem:[#allocation2 + $0x6ac] ss:$12 sps:$4 sm:$0xff]  }
 0x3f7   :  { %4886 = vmatpush1.bf16.msra.mxu0 %v10782_v24  ;;  %4925 = vmatpush1.bf16.msra.mxu1 %v10783_v25  ;;  %v10817_v24 = vld [vmem:[#allocation2 + $0x6c4] ss:$12 sps:$4 sm:$0xff]  }
 0x3f8   :  { %4887 = vmatprep.subr.bf16.mxu0 %v10784_v31  ;;  %4926 = vmatprep.subr.bf16.mxu1 %v10785_v8  ;;  %v10069_v25 = vld [vmem:[%s12482_s0 + $0xc8] ss:$72 sps:$4 sm:$0xff]   ;;  %v12136_v31 = vsel %vm635_vm0, %v4850_v50, %v12095_v27  ;;  %v5390_v8 = vrot.slane %v10064_v53, %v11513_v5 }
 0x3f9   :  { %v10070_v27 = vld [vmem:[%s12482_s0 + $0x40] ss:$72 sps:$4 sm:$0xff]  }
 0x3fb   :  { %4888 = vmatpush1.bf16.msra.mxu0 %v10786_v13  ;;  %4927 = vmatpush1.bf16.msra.mxu1 %v10787_v28  ;;  %v5404_v13 = vrot.slane %v10066_v60, %v11513_v5  ;;  %v10840_v60 = vld [vmem:[#allocation2 + $0x754] ss:$12 sps:$4 sm:$0xff]  }
 0x3fc   :  { %4889 = vmatprep.subr.bf16.mxu0 %v10788_v11  ;;  %4928 = vmatprep.subr.bf16.mxu1 %v10789_v2  ;;  %v5397_v11 = vrot.slane %v10069_v25, %v11513_v5  ;;  %v10818_v2 = vld [vmem:[#allocation2 + $0x6a8] ss:$12 sps:$4 sm:$0xff]  }
 0x3ff   :  { %4890 = vmatpush1.bf16.msra.mxu0 %v10790_v32  ;;  %4929 = vmatpush1.bf16.msra.mxu1 %v10791_v36  ;;  %v10819_v32 = vld [vmem:[#allocation2 + $0x6c0] ss:$12 sps:$4 sm:$0xff]   ;;  %v5407_v36 = vcombine.low %v5390_v8, %v5404_v13 }
 0x400   :  { %4891 = vmatprep.subr.bf16.mxu0 %v10792_v57  ;;  %4930 = vmatprep.subr.bf16.mxu1 %v10793_v39  ;;  %v10071_v57 = vld [vmem:[%s12482_s0 + $0xd0] ss:$72 sps:$4 sm:$0xff]   ;;  %v10820_v39 = vld [vmem:[#allocation2 + $0x6dc] ss:$12 sps:$4 sm:$0xff]  }
 0x403   :  { %4892 = vmatpush1.bf16.msra.mxu0 %v10794_v42  ;;  %4931 = vmatpush1.bf16.msra.mxu1 %v10795_v40  ;;  %v10821_v42 = vld [vmem:[#allocation2 + $0x488] ss:$12 sps:$4 sm:$0xff]  }
 0x404   :  { %4893 = vmatprep.subr.bf16.mxu0 %v10796_v44  ;;  %4932 = vmatprep.subr.bf16.mxu1 %v10797_v38  ;;  %v12152_v44 = vsel %vm635_vm0, %v12089_v15, %v12104_v37  ;;  %v5435_v38 = vpack.c.bf16 %v5407_v36, %v5407_v36  ;;  %v10824_v37 = vld [vmem:[#allocation2 + $0x6f4] ss:$12 sps:$4 sm:$0xff]   ;;  %v10845_v36 = vld [vmem:[#allocation2 + $0x518] ss:$12 sps:$4 sm:$0xff]  }
 0x406   :  { %5449 = vrot.lane.b32.xlu1 %v5435_v38, %s11339_s15  ;;  %v10850_v38 = vld [vmem:[#allocation2 + $0x470] ss:$12 sps:$4 sm:$0xff]  }
 0x407   :  { %4894 = vmatpush1.bf16.msra.mxu0 %v10798_v29  ;;  %4933 = vmatpush1.bf16.msra.mxu1 %v10799_v49  ;;  %v12156_v29 = vrot.slane %v10070_v27, %v11513_v5  ;;  %v12159_v49 = vrot.slane %v10071_v57, %v11513_v5  ;;  %v4860_v27 = vpop.permute.xlu0 %4859  ;;  %v10846_v57 = vld [vmem:[#allocation2 + $0x768] ss:$12 sps:$4 sm:$0xff]  }
 0x408   :  { %4895 = vmatprep.subr.bf16.mxu0 %v10800_v1  ;;  %4934 = vmatprep.subr.bf16.mxu1 %v10801_v46  ;;  %v10822_v46 = vld [vmem:[#allocation2 + $0x6d8] ss:$12 sps:$4 sm:$0xff]  }
 0x409   :  { %v5425_v15 = vcombine.low %v12156_v29, %v12159_v49 }
 0x40b   :  { %4896 = vmatpush1.bf16.msra.mxu0 %v10802_v52  ;;  %4935 = vmatpush1.bf16.msra.mxu1 %v10803_v33  ;;  %v10823_v52 = vld [vmem:[#allocation2 + $0x3c8] ss:$12 sps:$4 sm:$0xff]  }
 0x40c   :  { %4897 = vmatprep.subr.bf16.mxu0 %v10804_v62  ;;  %4936 = vmatprep.subr.bf16.mxu1 %v10805_v56  ;;  %v10825_v62 = vld [vmem:[#allocation2 + $0x4a0] ss:$12 sps:$4 sm:$0xff]   ;;  %v5437_v56 = vpack.c.bf16 %v5425_v15, %v5425_v15  ;;  %v10855_v15 = vld [vmem:[#allocation2 + $0x638] ss:$12 sps:$4 sm:$0xff]  }
 0x40d   :  { %v4183_v58 = vpop.f32.mrb[52].mxu0 }
 0x40e   :  { %v12115_v16 = vadd.f32 %v4183_v58, %v4143_v47  ;;  %v4185_v59 = vpop.f32.mrb[53].mxu0  ;;  %v10812_v47 = vld [vmem:[#allocation2 + $0x52c] ss:$12 sps:$4 sm:$0xff]   ;;  %5453 = vrot.lane.b32.xlu1 %v5437_v56, %s11339_s15  ;;  %v10859_v56 = vld [vmem:[#allocation2 + $0x590] ss:$12 sps:$4 sm:$0xff]  }
 0x40f   :  { %v12117_v30 = vadd.f32 %v4185_v59, %v4145_v63  ;;  %v4187_v7 = vpop.f32.mrb[54].mxu0  ;;  %4898 = vmatpush1.bf16.msra.mxu0 %v10806_v12  ;;  %4937 = vmatpush1.bf16.msra.mxu1 %v10807_v61  ;;  %v10826_v59 = vld [vmem:[#allocation2 + $0x6f0] ss:$12 sps:$4 sm:$0xff]   ;;  %v5408_v12 = vcombine.high %v5390_v8, %v5404_v13  ;;  %v10828_v61 = vld [vmem:[#allocation2 + $0x70c] ss:$12 sps:$4 sm:$0xff]  }
 0x410   :  { %v4188_v9 = vpop.f32.mrb[55].mxu0  ;;  %4899 = vmatprep.subr.bf16.mxu0 %v10808_v51  ;;  %4938 = vmatprep.subr.bf16.mxu1 %v10809_v20  ;;  %v10827_v7 = vld [vmem:[#allocation2 + $0x3e0] ss:$12 sps:$4 sm:$0xff]   ;;  %v10830_v51 = vld [vmem:[#allocation2 + $0x708] ss:$12 sps:$4 sm:$0xff]  }
 0x411   :  { %v8856_v14 = vpop.f32.mrb[52].mxu1  ;;  %v10829_v9 = vld [vmem:[#allocation2 + $0x4b8] ss:$12 sps:$4 sm:$0xff]  }
 0x412   :  { %v8857_v19 = vpop.f32.mrb[53].mxu1  ;;  %v10831_v20 = vld [vmem:[#allocation2 + $0x3f8] ss:$12 sps:$4 sm:$0xff]  }
 0x413   :  { %v8858_v18 = vadd.f32 %v8857_v19, %v8856_v14  ;;  %v8859_v10 = vpop.f32.mrb[54].mxu1  ;;  %4900 = vmatpush1.bf16.msra.mxu0 %v10810_v0  ;;  %4939 = vmatpush1.bf16.msra.mxu1 %v10811_v55  ;;  %v10832_v14 = vld [vmem:[#allocation2 + $0x724] ss:$12 sps:$4 sm:$0xff]   ;;  %v10836_v0 = vld [vmem:[#allocation2 + $0x73c] ss:$12 sps:$4 sm:$0xff]  }
 0x414   :  { %v8860_v21 = vpop.f32.mrb[55].mxu1  ;;  %4901 = vmatprep.subr.bf16.mxu0 %v10812_v47  ;;  %4940 = vmatprep.subr.bf16.mxu1 %v10813_v17  ;;  %v10833_v19 = vld [vmem:[#allocation2 + $0x4d0] ss:$12 sps:$4 sm:$0xff]   ;;  %v10837_v55 = vld [vmem:[#allocation2 + $0x4e8] ss:$12 sps:$4 sm:$0xff]  }
 0x415   :  { %v12120_v63 = vadd.f32 %v8858_v18, %v12076_v54  ;;  %v10068_v54 = vld [vmem:[%s12482_s0 + $0x38] ss:$72 sps:$4 sm:$0xff]   ;;  %v10835_v10 = vld [vmem:[#allocation2 + $0x410] ss:$12 sps:$4 sm:$0xff]  }
 0x416   :  { %v5383_v28 = vrot.slane %v10068_v54, %v11513_v5  ;;  %v10834_v18 = vld [vmem:[#allocation2 + $0x720] ss:$12 sps:$4 sm:$0xff]  }
 0x417   :  { %4902 = vmatpush1.bf16.msra.mxu0 %v10814_v22  ;;  %4941 = vmatpush1.bf16.msra.mxu1 %v10815_v41  ;;  %v10838_v22 = vld [vmem:[#allocation2 + $0x738] ss:$12 sps:$4 sm:$0xff]   ;;  %v10839_v41 = vld [vmem:[#allocation2 + $0x428] ss:$12 sps:$4 sm:$0xff]  }
 0x418   :  { %4942 = vmatprep.subr.bf16.mxu1 %v10816_v6  ;;  %4953 = vmatprep.subr.bf16.mxu0 %v10817_v24  ;;  %v5406_v40 = vcombine.high %v5383_v28, %v5397_v11  ;;  %v5405_v33 = vcombine.low %v5383_v28, %v5397_v11  ;;  %v10841_v6 = vld [vmem:[#allocation2 + $0x500] ss:$12 sps:$4 sm:$0xff]   ;;  %v10842_v28 = vld [vmem:[#allocation2 + $0x750] ss:$12 sps:$4 sm:$0xff]  }
 0x419   :  { %v10843_v11 = vld [vmem:[#allocation2 + $0x440] ss:$12 sps:$4 sm:$0xff]  }
 0x41a   :  { %4904 = vmatmul.mubr.bf16.vlgmr.msra.gmra.mrb[72].mxu0 %v12136_v31  ;;  %v5434_v1 = vpack.c.bf16 %v5406_v40, %v5406_v40  ;;  %v5433_v58 = vpack.c.bf16 %v5405_v33, %v5405_v33  ;;  %v10849_v40 = vld [vmem:[#allocation2 + $0x608] ss:$12 sps:$4 sm:$0xff]   ;;  %v5426_v33 = vcombine.high %v12156_v29, %v12159_v49  ;;  %v10864_v29 = vld [vmem:[#allocation2 + $0x680] ss:$12 sps:$4 sm:$0xff]  }
 0x41b   :  { %4943 = vmatpush1.bf16.msra.mxu1 %v10818_v2  ;;  %4954 = vmatpush1.bf16.msra.mxu0 %v10819_v32  ;;  %v10844_v32 = vld [vmem:[#allocation2 + $0x76c] ss:$12 sps:$4 sm:$0xff]  }
 0x41c   :  { %4955 = vmatprep.subr.bf16.mxu0 %v10820_v39  ;;  %8946 = vmatprep.subr.bf16.mxu1 %v10821_v42  ;;  %v10847_v39 = vld [vmem:[#allocation2 + $0x458] ss:$12 sps:$4 sm:$0xff]   ;;  %v10848_v42 = vld [vmem:[#allocation2 + $0x530] ss:$12 sps:$4 sm:$0xff]  }
 0x41d   :  { %4985 = vmatprep.mubr.bf16.mxu0 %v11338_v45  ;;  %5447 = vrot.lane.b32.xlu0 %v5434_v1, %s11339_s15  ;;  %v10851_v1 = vld [vmem:[#allocation2 + $0x548] ss:$12 sps:$4 sm:$0xff]  }
 0x41e   :  { %4945 = vmatmul.mubr.bf16.vlgmr.msra.gmra.mrb[72].mxu1 %v12152_v44  ;;  %v10058_v49 = vld [vmem:[%s12482_s0 + $0xa] ss:$72 sps:$4 sm:$0xff]  }
 0x41f   :  { %4956 = vmatpush1.bf16.msra.mxu0 %v10822_v46  ;;  %8947 = vmatpush3.bf16.msra.mxu1 %v10823_v52  ;;  %v10852_v46 = vld [vmem:[#allocation2 + $0x620] ss:$12 sps:$4 sm:$0xff]   ;;  %v10854_v52 = vld [vmem:[#allocation2 + $0x6c8] ss:$12 sps:$4 sm:$0xff]  }
 0x420   :  { %5026 = vmatprep.mubr.bf16.mxu1 %v12101_v23  ;;  %4957 = vmatprep.subr.bf16.mxu0 %v10824_v37  ;;  %v5436_v23 = vpack.c.bf16 %v5408_v12, %v5408_v12  ;;  %v10856_v37 = vld [vmem:[#allocation2 + $0x578] ss:$12 sps:$4 sm:$0xff]   ;;  %v10863_v12 = vld [vmem:[#allocation2 + $0x710] ss:$12 sps:$4 sm:$0xff]  }
 0x421   :  { %8948 = vmatprep.subr.bf16.mxu1 %v10825_v62  ;;  %5445 = vrot.lane.b32.xlu0 %v5433_v58, %s11339_s15  ;;  %v10858_v62 = vld [vmem:[#allocation2 + $0x650] ss:$12 sps:$4 sm:$0xff]   ;;  %v10860_v58 = vld [vmem:[#allocation2 + $0x6f8] ss:$12 sps:$4 sm:$0xff]  }
 0x422   :  { %5451 = vrot.lane.b32.xlu1 %v5436_v23, %s11339_s15  ;;  %v10866_v23 = vld [vmem:[#allocation2 + $0x728] ss:$12 sps:$4 sm:$0xff]  }
 0x423   :  { %4958 = vmatpush1.bf16.msra.mxu0 %v10826_v59  ;;  %8949 = vmatpush3.bf16.msra.mxu1 %v10827_v7  ;;  %v10861_v59 = vld [vmem:[#allocation2 + $0x668] ss:$12 sps:$4 sm:$0xff]  }
 0x424   :  { %4959 = vmatprep.subr.bf16.mxu0 %v10828_v61  ;;  %8950 = vmatprep.subr.bf16.mxu1 %v10829_v9  ;;  %v10862_v7 = vld [vmem:[#allocation2 + $0x5a8] ss:$12 sps:$4 sm:$0xff]   ;;  %v10060_v61 = vld [vmem:[%s12482_s0 + $0x9a] ss:$72 sps:$4 sm:$0xff]  }
 0x425   :  { %v10865_v9 = vld [vmem:[#allocation2 + $0x5c0] ss:$12 sps:$4 sm:$0xff]  }
 0x427   :  { %4960 = vmatpush1.bf16.msra.mxu0 %v10830_v51  ;;  %8951 = vmatpush3.bf16.msra.mxu1 %v10831_v20  ;;  %v10867_v51 = vld [vmem:[#allocation2 + $0x698] ss:$12 sps:$4 sm:$0xff]   ;;  %v12198_v20 = vrot.slane %v10058_v49, %v11513_v5  ;;  %v10898_v49 = vld [vmem:[#allocation2 + $0x90] ss:$12 sps:$4 sm:$0xff]  }
 0x428   :  { %4961 = vmatprep.subr.bf16.mxu0 %v10832_v14  ;;  %8952 = vmatprep.subr.bf16.mxu1 %v10833_v19  ;;  %v12201_v14 = vrot.slane %v10060_v61, %v11513_v5  ;;  %v10062_v19 = vld [vmem:[%s12482_s0 + $0xe] ss:$72 sps:$4 sm:$0xff]  }
 0x429   :  { %v10899_v61 = vld [vmem:[#allocation2 + $0x1f8] ss:$12 sps:$4 sm:$0xff]  }
 0x42b   :  { %4962 = vmatpush1.bf16.msra.mxu0 %v10834_v18  ;;  %8953 = vmatpush3.bf16.msra.mxu1 %v10835_v10  ;;  %v10063_v18 = vld [vmem:[%s12482_s0 + $0x9e] ss:$72 sps:$4 sm:$0xff]  }
 0x42c   :  { %4963 = vmatprep.subr.bf16.mxu0 %v10836_v0  ;;  %8954 = vmatprep.subr.bf16.mxu1 %v10837_v55  ;;  %v10868_v10 = vld [vmem:[#allocation2 + $0x5d8] ss:$12 sps:$4 sm:$0xff]   ;;  %v10869_v0 = vld [vmem:[#allocation2 + $0x740] ss:$12 sps:$4 sm:$0xff]   ;;  %v10870_v55 = vld [vmem:[#allocation2 + $0x6b0] ss:$12 sps:$4 sm:$0xff]  }
 0x42d   :  { %v8878_v21 = vpop.f32.mrb[56].mxu0 }
 0x42e   :  { %v8879_v47 = vpop.f32.mrb[57].mxu0 }
 0x42f   :  { %v8880_v17 = vadd.f32 %v8879_v47, %v8878_v21  ;;  %v8881_v50 = vpop.f32.mrb[58].mxu0  ;;  %4964 = vmatpush1.bf16.msra.mxu0 %v10838_v22  ;;  %8955 = vmatpush3.bf16.msra.mxu1 %v10839_v41  ;;  %v4731_v21 = vcombine.high %v12198_v20, %v12201_v14  ;;  %v12213_v47 = vrot.slane %v10062_v19, %v11513_v5  ;;  %v10872_v22 = vld [vmem:[#allocation2 + $0x758] ss:$12 sps:$4 sm:$0xff]   ;;  %v10902_v19 = vld [vmem:[#allocation2 + $0xa8] ss:$12 sps:$4 sm:$0xff]  }
 0x430   :  { %v8882_v53 = vpop.f32.mrb[59].mxu0  ;;  %4965 = vmatprep.subr.bf16.mxu0 %v10840_v60  ;;  %8956 = vmatprep.subr.bf16.mxu1 %v10841_v6  ;;  %v10871_v50 = vld [vmem:[#allocation2 + $0x5f0] ss:$12 sps:$4 sm:$0xff]  }
 0x431   :  { %v4265_v24 = vadd.f32 %v8880_v17, %v12120_v63  ;;  %v4304_v54 = vpop.f32.mrb[56].mxu1  ;;  %v12175_v63 = vsel %vm635_vm0, %v12092_v34, %v4860_v27  ;;  %v10853_v34 = vld [vmem:[#allocation2 + $0x560] ss:$12 sps:$4 sm:$0xff]   ;;  %v12216_v17 = vrot.slane %v10063_v18, %v11513_v5  ;;  %v10873_v41 = vld [vmem:[#allocation2 + $0x4] ss:$12 sps:$4 sm:$0xff]   ;;  %v12219_v53 = vpack.c.bf16 %v4731_v21, %v4731_v21 }
 0x432   :  { %v9340_v25 = vpop.f32.mrb[57].mxu1  ;;  %v10874_v6 = vld [vmem:[#allocation2 + $0x770] ss:$12 sps:$4 sm:$0xff]   ;;  %v10884_v27 = vld [vmem:[#allocation2 + $0x4c] ss:$12 sps:$4 sm:$0xff]  }
 0x433   :  { %v12171_v8 = vadd.f32 %v4304_v54, %v4265_v24  ;;  %v4307_v13 = vpop.f32.mrb[58].mxu1  ;;  %4966 = vmatpush1.bf16.msra.mxu0 %v10842_v28  ;;  %8957 = vmatpush3.bf16.msra.mxu1 %v10843_v11  ;;  %v4733_v60 = vcombine.high %v12213_v47, %v12216_v17  ;;  %v10875_v24 = vld [vmem:[#allocation2] ss:$12 sps:$4 sm:$0xff]   ;;  %v10876_v54 = vld [vmem:[#allocation2 + $0x1c] ss:$12 sps:$4 sm:$0xff]  }
 0x434   :  { %v9341_v2 = vpop.f32.mrb[59].mxu1  ;;  %4967 = vmatprep.subr.bf16.mxu0 %v10844_v32  ;;  %8958 = vmatprep.subr.bf16.mxu1 %v10845_v36  ;;  %v10877_v25 = vld [vmem:[#allocation2 + $0x184] ss:$12 sps:$4 sm:$0xff]   ;;  %v10879_v11 = vld [vmem:[#allocation2 + $0x180] ss:$12 sps:$4 sm:$0xff]  }
 0x435   :  { %v12225_v13 = vpack.c.bf16 %v4733_v60, %v4733_v60  ;;  %v10878_v28 = vld [vmem:[#allocation2 + $0x18] ss:$12 sps:$4 sm:$0xff]   ;;  %v10880_v2 = vld [vmem:[#allocation2 + $0x34] ss:$12 sps:$4 sm:$0xff]   ;;  %v10882_v32 = vld [vmem:[#allocation2 + $0x30] ss:$12 sps:$4 sm:$0xff]  }
 0x436   :  { %v10883_v36 = vld [vmem:[#allocation2 + $0x198] ss:$12 sps:$4 sm:$0xff]   ;;  %v10903_v18 = vld [vmem:[#allocation2 + $0x210] ss:$12 sps:$4 sm:$0xff]   ;;  %v10907_v21 = vld [vmem:[#allocation2 + $0x228] ss:$12 sps:$4 sm:$0xff]  }
 0x437   :  { %4968 = vmatpush1.bf16.msra.mxu0 %v10846_v57  ;;  %8959 = vmatpush3.bf16.msra.mxu1 %v10847_v39  ;;  %v10885_v57 = vld [vmem:[#allocation2 + $0x1b4] ss:$12 sps:$4 sm:$0xff]  }
 0x438   :  { %8960 = vmatprep.subr.bf16.mxu1 %v10848_v42  ;;  %8968 = vmatprep.subr.bf16.mxu0 %v10849_v40  ;;  %v10886_v39 = vld [vmem:[#allocation2 + $0x48] ss:$12 sps:$4 sm:$0xff]   ;;  %v10888_v42 = vld [vmem:[#allocation2 + $0x64] ss:$12 sps:$4 sm:$0xff]   ;;  %v10889_v40 = vld [vmem:[#allocation2 + $0x1cc] ss:$12 sps:$4 sm:$0xff]  }
 0x439   :  { %v10911_v60 = vld [vmem:[#allocation2 + $0x240] ss:$12 sps:$4 sm:$0xff]  }
 0x43a   :  { %4986 = vmatmul.mubr.bf16.vlgmr.msra.gmra.mrb[76].mxu0 %v12175_v63 }
 0x43b   :  { %8961 = vmatpush3.bf16.msra.mxu1 %v10850_v38  ;;  %8969 = vmatpush3.bf16.msra.mxu0 %v10851_v1  ;;  %v10890_v38 = vld [vmem:[#allocation2 + $0x60] ss:$12 sps:$4 sm:$0xff]   ;;  %v10891_v1 = vld [vmem:[#allocation2 + $0x1c8] ss:$12 sps:$4 sm:$0xff]  }
 0x43c   :  { %5066 = vmatprep.mubr.bf16.mxu0 %v12110_v35  ;;  %8970 = vmatprep.subr.bf16.mxu0 %v10852_v46  ;;  %v10857_v35 = vld [vmem:[#allocation2 + $0x6e0] ss:$12 sps:$4 sm:$0xff]   ;;  %v10892_v46 = vld [vmem:[#allocation2 + $0x7c] ss:$12 sps:$4 sm:$0xff]  }
 0x43d   :  { %9362 = vmatprep.subr.bf16.mxu1 %v11340_v43 }
 0x43e   :  { %5027 = vmatmul.mubr.bf16.vlgmr.msra.gmra.mrb[76].mxu1 %v12136_v31  ;;  %v5438_v31 = vpack.c.bf16 %v5426_v33, %v5426_v33  ;;  %v10895_v33 = vld [vmem:[#allocation2 + $0x1e0] ss:$12 sps:$4 sm:$0xff]  }
 0x43f   :  { %8971 = vmatpush3.bf16.msra.mxu0 %v10853_v34  ;;  %9363 = vmatpush3.bf16.msra.mxu1 %v10854_v52  ;;  %v10893_v34 = vld [vmem:[#allocation2 + $0x1e4] ss:$12 sps:$4 sm:$0xff]  }
 0x440   :  { %8972 = vmatprep.subr.bf16.mxu0 %v10855_v15  ;;  %9364 = vmatprep.subr.bf16.mxu1 %v11340_v43 }
 0x441   :  { %9378 = vmatprep.mubr.msk.bf16.mxu1 %vm11341_vm1, %v11340_v43  ;;  %5455 = vrot.lane.b32.xlu0 %v5438_v31, %s11339_s15  ;;  %v10896_v31 = vld [vmem:[#allocation2 + $0x94] ss:$12 sps:$4 sm:$0xff]  }
 0x443   :  { %8973 = vmatpush3.bf16.msra.mxu0 %v10856_v37  ;;  %9365 = vmatpush3.bf16.msra.mxu1 %v10857_v35  ;;  %v10894_v35 = vld [vmem:[#allocation2 + $0x78] ss:$12 sps:$4 sm:$0xff]  }
 0x444   :  { %8974 = vmatprep.subr.bf16.mxu0 %v10858_v62  ;;  %9366 = vmatprep.subr.bf16.mxu1 %v11340_v43 }
 0x447   :  { %8975 = vmatpush3.bf16.msra.mxu0 %v10859_v56  ;;  %9367 = vmatpush3.bf16.msra.mxu1 %v10860_v58  ;;  %v10897_v56 = vld [vmem:[#allocation2 + $0x1fc] ss:$12 sps:$4 sm:$0xff]  }
 0x448   :  { %8976 = vmatprep.subr.bf16.mxu0 %v10861_v59  ;;  %9368 = vmatprep.subr.bf16.mxu1 %v11340_v43 }
 0x44b   :  { %8977 = vmatpush3.bf16.msra.mxu0 %v10862_v7  ;;  %9369 = vmatpush3.bf16.msra.mxu1 %v10863_v12 }
 0x44c   :  { %8978 = vmatprep.subr.bf16.mxu0 %v10864_v29  ;;  %9370 = vmatprep.subr.bf16.mxu1 %v11340_v43 }
 0x44f   :  { %8979 = vmatpush3.bf16.msra.mxu0 %v10865_v9  ;;  %9371 = vmatpush3.bf16.msra.mxu1 %v10866_v23  ;;  %v10900_v23 = vld [vmem:[#allocation2 + $0xac] ss:$12 sps:$4 sm:$0xff]  }
 0x450   :  { %8980 = vmatprep.subr.bf16.mxu0 %v10867_v51  ;;  %9372 = vmatprep.subr.bf16.mxu1 %v11340_v43  ;;  %v10901_v51 = vld [vmem:[#allocation2 + $0x214] ss:$12 sps:$4 sm:$0xff]  }
 0x453   :  { %8981 = vmatpush3.bf16.msra.mxu0 %v10868_v10  ;;  %9373 = vmatpush3.bf16.msra.mxu1 %v10869_v0  ;;  %v10904_v10 = vld [vmem:[#allocation2 + $0xc4] ss:$12 sps:$4 sm:$0xff]   ;;  %v10905_v0 = vld [vmem:[#allocation2 + $0x22c] ss:$12 sps:$4 sm:$0xff]  }
 0x454   :  { %8982 = vmatprep.subr.bf16.mxu0 %v10870_v55  ;;  %9374 = vmatprep.subr.bf16.mxu1 %v11340_v43  ;;  %v10906_v55 = vld [vmem:[#allocation2 + $0xc0] ss:$12 sps:$4 sm:$0xff]  }
 0x457   :  { %8983 = vmatpush3.bf16.msra.mxu0 %v10871_v50  ;;  %9375 = vmatpush3.bf16.msra.mxu1 %v10872_v22  ;;  %v10908_v50 = vld [vmem:[#allocation2 + $0xdc] ss:$12 sps:$4 sm:$0xff]   ;;  %v10909_v22 = vld [vmem:[#allocation2 + $0x244] ss:$12 sps:$4 sm:$0xff]  }
 0x458   :  { %9376 = vmatprep.subr.bf16.mxu1 %v11340_v43  ;;  %5114 = vmatprep.subr.bf16.mxu0 %v10873_v41  ;;  %v10910_v41 = vld [vmem:[#allocation2 + $0xd8] ss:$12 sps:$4 sm:$0xff]  }
 0x45a   :  { %5067 = vmatmul.mubr.bf16.vlgmr.msra.gmra.mrb[80].mxu0 %v12152_v44  ;;  %v10881_v44 = vld [vmem:[#allocation2 + $0x19c] ss:$12 sps:$4 sm:$0xff]  }
 0x45b   :  { %9377 = vmatpush3.bf16.msra.mxu1 %v10874_v6  ;;  %5115 = vmatpush1.bf16.msra.mxu0 %v10875_v24  ;;  %v10912_v6 = vld [vmem:[#allocation2 + $0xf4] ss:$12 sps:$4 sm:$0xff]   ;;  %v10913_v24 = vld [vmem:[#allocation2 + $0x25c] ss:$12 sps:$4 sm:$0xff]  }
 0x45c   :  { %5116 = vmatprep.subr.bf16.mxu0 %v10876_v54  ;;  %5155 = vmatprep.subr.bf16.mxu1 %v10877_v25  ;;  %v10914_v54 = vld [vmem:[#allocation2 + $0xf0] ss:$12 sps:$4 sm:$0xff]   ;;  %v10915_v25 = vld [vmem:[#allocation2 + $0x258] ss:$12 sps:$4 sm:$0xff]  }
 0x45d   :  { %5146 = vmatprep.mubr.bf16.mxu0 %v12219_v53 }
 0x45e   :  { %9379 = vmatmul.mubr.bf16.vlgmr.msra.gmra.mrb[80].mxu1 %v12175_v63  ;;  %v10887_v63 = vld [vmem:[#allocation2 + $0x1b0] ss:$12 sps:$4 sm:$0xff]  }
 0x45f   :  { %5117 = vmatpush1.bf16.msra.mxu0 %v10878_v28  ;;  %5156 = vmatpush1.bf16.msra.mxu1 %v10879_v11  ;;  %v10916_v28 = vld [vmem:[#allocation2 + $0x10c] ss:$12 sps:$4 sm:$0xff]   ;;  %v10917_v11 = vld [vmem:[#allocation2 + $0x274] ss:$12 sps:$4 sm:$0xff]  }
 0x460   :  { %5118 = vmatprep.subr.bf16.mxu0 %v10880_v2  ;;  %5157 = vmatprep.subr.bf16.mxu1 %v10881_v44  ;;  %v10918_v2 = vld [vmem:[#allocation2 + $0x108] ss:$12 sps:$4 sm:$0xff]   ;;  %v10919_v44 = vld [vmem:[#allocation2 + $0x270] ss:$12 sps:$4 sm:$0xff]  }
 0x461   :  { %5187 = vmatprep.mubr.bf16.mxu1 %v12225_v13 }
 0x463   :  { %5119 = vmatpush1.bf16.msra.mxu0 %v10882_v32  ;;  %5158 = vmatpush1.bf16.msra.mxu1 %v10883_v36  ;;  %v10920_v32 = vld [vmem:[#allocation2 + $0x124] ss:$12 sps:$4 sm:$0xff]   ;;  %v10921_v36 = vld [vmem:[#allocation2 + $0x28c] ss:$12 sps:$4 sm:$0xff]  }
 0x464   :  { %5120 = vmatprep.subr.bf16.mxu0 %v10884_v27  ;;  %5159 = vmatprep.subr.bf16.mxu1 %v10885_v57  ;;  %v10922_v27 = vld [vmem:[#allocation2 + $0x120] ss:$12 sps:$4 sm:$0xff]   ;;  %v10923_v57 = vld [vmem:[#allocation2 + $0x288] ss:$12 sps:$4 sm:$0xff]  }
 0x467   :  { %5121 = vmatpush1.bf16.msra.mxu0 %v10886_v39  ;;  %5160 = vmatpush1.bf16.msra.mxu1 %v10887_v63  ;;  %v10924_v39 = vld [vmem:[#allocation2 + $0x13c] ss:$12 sps:$4 sm:$0xff]   ;;  %v10925_v63 = vld [vmem:[#allocation2 + $0x2a4] ss:$12 sps:$4 sm:$0xff]  }
 0x468   :  { %5122 = vmatprep.subr.bf16.mxu0 %v10888_v42  ;;  %5161 = vmatprep.subr.bf16.mxu1 %v10889_v40 }
 0x46b   :  { %5123 = vmatpush1.bf16.msra.mxu0 %v10890_v38  ;;  %5162 = vmatpush1.bf16.msra.mxu1 %v10891_v1 }
 0x46c   :  { %5124 = vmatprep.subr.bf16.mxu0 %v10892_v46  ;;  %5163 = vmatprep.subr.bf16.mxu1 %v10893_v34  ;;  %v10926_v34 = vld [vmem:[#allocation2 + $0x138] ss:$12 sps:$4 sm:$0xff]  }
 0x46d   :  { %v4455_v52 = vpop.f32.mrb[60].mxu0 }
 0x46e   :  { %v4457_v15 = vpop.f32.mrb[61].mxu0 }
 0x46f   :  { %v4459_v37 = vpop.f32.mrb[62].mxu0  ;;  %5125 = vmatpush1.bf16.msra.mxu0 %v10894_v35  ;;  %5164 = vmatpush1.bf16.msra.mxu1 %v10895_v33  ;;  %v10928_v35 = vld [vmem:[#allocation2 + $0x154] ss:$12 sps:$4 sm:$0xff]   ;;  %v10929_v33 = vld [vmem:[#allocation2 + $0x2bc] ss:$12 sps:$4 sm:$0xff]  }
 0x470   :  { %v4460_v62 = vpop.f32.mrb[63].mxu0  ;;  %5126 = vmatprep.subr.bf16.mxu0 %v10896_v31  ;;  %5165 = vmatprep.subr.bf16.mxu1 %v10897_v56 }
 0x471   :  { %v4496_v58 = vpop.f32.mrb[60].mxu1 }
 0x472   :  { %v4497_v59 = vadd.f32 %v4496_v58, %v4455_v52  ;;  %v4498_v7 = vpop.f32.mrb[61].mxu1  ;;  %v10927_v52 = vld [vmem:[#allocation2 + $0x2a0] ss:$12 sps:$4 sm:$0xff]   ;;  %v4730_v58 = vcombine.low %v12198_v20, %v12201_v14  ;;  %v10935_v20 = vld [vmem:[#allocation2 + $0x2d0] ss:$12 sps:$4 sm:$0xff]  }
 0x473   :  { %v4499_v12 = vadd.f32 %v4498_v7, %v4457_v15  ;;  %v4500_v29 = vpop.f32.mrb[62].mxu1  ;;  %5127 = vmatpush1.bf16.msra.mxu0 %v10898_v49  ;;  %5166 = vmatpush1.bf16.msra.mxu1 %v10899_v61  ;;  %v10932_v49 = vld [vmem:[#allocation2 + $0x16c] ss:$12 sps:$4 sm:$0xff]   ;;  %v10933_v61 = vld [vmem:[#allocation2 + $0x2d4] ss:$12 sps:$4 sm:$0xff]  }
 0x474   :  { %v4501_v9 = vpop.f32.mrb[63].mxu1  ;;  %5128 = vmatprep.subr.bf16.mxu0 %v10900_v23  ;;  %5167 = vmatprep.subr.bf16.mxu1 %v10901_v51  ;;  %v10934_v23 = vld [vmem:[#allocation2 + $0x168] ss:$12 sps:$4 sm:$0xff]   ;;  %v10936_v14 = vld [vmem:[#allocation2 + $0x2ec] ss:$12 sps:$4 sm:$0xff]  }
 0x475   :  { %v12239_v9 = vpack.c.bf16 %v4730_v58, %v4730_v58  ;;  %v10937_v51 = vld [vmem:[#allocation2 + $0x304] ss:$12 sps:$4 sm:$0xff]  }
 0x477   :  { %5129 = vmatpush1.bf16.msra.mxu0 %v10902_v19  ;;  %5168 = vmatpush1.bf16.msra.mxu1 %v10903_v18  ;;  %v10938_v18 = vld [vmem:[#allocation2 + $0x2e8] ss:$12 sps:$4 sm:$0xff]  }
 0x478   :  { %5130 = vmatprep.subr.bf16.mxu0 %v10904_v10  ;;  %5169 = vmatprep.subr.bf16.mxu1 %v10905_v0  ;;  %v10939_v10 = vld [vmem:[#allocation2 + $0x300] ss:$12 sps:$4 sm:$0xff]   ;;  %v10940_v0 = vld [vmem:[#allocation2 + $0x31c] ss:$12 sps:$4 sm:$0xff]  }
 0x47b   :  { %5131 = vmatpush1.bf16.msra.mxu0 %v10906_v55  ;;  %5170 = vmatpush1.bf16.msra.mxu1 %v10907_v21  ;;  %v10941_v55 = vld [vmem:[#allocation2 + $0xc8] ss:$12 sps:$4 sm:$0xff]  }
 0x47c   :  { %5132 = vmatprep.subr.bf16.mxu0 %v10908_v50  ;;  %5171 = vmatprep.subr.bf16.mxu1 %v10909_v22  ;;  %v10944_v21 = vld [vmem:[#allocation2 + $0x334] ss:$12 sps:$4 sm:$0xff]   ;;  %v10946_v22 = vld [vmem:[#allocation2 + $0x330] ss:$12 sps:$4 sm:$0xff]  }
 0x47d   :  { %v10945_v50 = vld [vmem:[#allocation2 + $0xe0] ss:$12 sps:$4 sm:$0xff]  }
 0x47f   :  { %5133 = vmatpush1.bf16.msra.mxu0 %v10910_v41  ;;  %5172 = vmatpush1.bf16.msra.mxu1 %v10911_v60  ;;  %v10947_v41 = vld [vmem:[#allocation2 + $0x20] ss:$12 sps:$4 sm:$0xff]  }
 0x480   :  { %5134 = vmatprep.subr.bf16.mxu0 %v10912_v6  ;;  %5173 = vmatprep.subr.bf16.mxu1 %v10913_v24  ;;  %v10948_v60 = vld [vmem:[#allocation2 + $0x34c] ss:$12 sps:$4 sm:$0xff]   ;;  %v10950_v24 = vld [vmem:[#allocation2 + $0x348] ss:$12 sps:$4 sm:$0xff]  }
 0x481   :  { %v10949_v6 = vld [vmem:[#allocation2 + $0xf8] ss:$12 sps:$4 sm:$0xff]  }
 0x483   :  { %5135 = vmatpush1.bf16.msra.mxu0 %v10914_v54  ;;  %5174 = vmatpush1.bf16.msra.mxu1 %v10915_v25  ;;  %v10951_v54 = vld [vmem:[#allocation2 + $0x38] ss:$12 sps:$4 sm:$0xff]  }
 0x484   :  { %5136 = vmatprep.subr.bf16.mxu0 %v10916_v28  ;;  %5175 = vmatprep.subr.bf16.mxu1 %v10917_v11  ;;  %v10952_v25 = vld [vmem:[#allocation2 + $0x364] ss:$12 sps:$4 sm:$0xff]   ;;  %v10073_v11 = vld [vmem:[%s12482_s0 + $0xa2] ss:$72 sps:$4 sm:$0x33]  }
 0x485   :  { %v10953_v28 = vld [vmem:[#allocation2 + $0x110] ss:$12 sps:$4 sm:$0xff]  }
 0x487   :  { %5137 = vmatpush1.bf16.msra.mxu0 %v10918_v2  ;;  %5176 = vmatpush1.bf16.msra.mxu1 %v10919_v44  ;;  %v10954_v2 = vld [vmem:[#allocation2 + $0x360] ss:$12 sps:$4 sm:$0xff]   ;;  %v10955_v44 = vld [vmem:[#allocation2 + $0x50] ss:$12 sps:$4 sm:$0xff]  }
 0x488   :  { %5138 = vmatprep.subr.bf16.mxu0 %v10920_v32  ;;  %5177 = vmatprep.subr.bf16.mxu1 %v10921_v36  ;;  %v10956_v32 = vld [vmem:[#allocation2 + $0x37c] ss:$12 sps:$4 sm:$0xff]  }
 0x489   :  { %v10957_v36 = vld [vmem:[#allocation2 + $0x128] ss:$12 sps:$4 sm:$0xff]  }
 0x48b   :  { %5139 = vmatpush1.bf16.msra.mxu0 %v10922_v27  ;;  %5178 = vmatpush1.bf16.msra.mxu1 %v10923_v57 }
 0x48c   :  { %5140 = vmatprep.subr.bf16.mxu0 %v10924_v39  ;;  %5179 = vmatprep.subr.bf16.mxu1 %v10925_v63  ;;  %v4749_v63 = vrot.slane %v10073_v11, %v11513_v5  ;;  %v10991_v11 = vld [vmem:[#allocation2 + $0x230] ss:$12 sps:$4 sm:$0xff]  }
 0x48d   :  { %v4537_v42 = vpop.f32.mrb[64].mxu0 }
 0x48e   :  { %v4538_v40 = vadd.f32 %v4537_v42, %v4497_v59  ;;  %v4539_v38 = vpop.f32.mrb[65].mxu0 }
 0x48f   :  { %v4540_v1 = vadd.f32 %v4539_v38, %v4499_v12  ;;  %v4541_v46 = vpop.f32.mrb[66].mxu0  ;;  %5141 = vmatpush1.bf16.msra.mxu0 %v10926_v34  ;;  %5180 = vmatpush1.bf16.msra.mxu1 %v10927_v52  ;;  %v10930_v12 = vld [vmem:[#allocation2 + $0x150] ss:$12 sps:$4 sm:$0xff]   ;;  %v10958_v38 = vld [vmem:[#allocation2 + $0x378] ss:$12 sps:$4 sm:$0xff]  }
 0x490   :  { %v12230_v15 = vadd.f32 %v4538_v40, %v12115_v16  ;;  %v4542_v37 = vpop.f32.mrb[67].mxu0  ;;  %5142 = vmatprep.subr.bf16.mxu0 %v10928_v35  ;;  %5181 = vmatprep.subr.bf16.mxu1 %v10929_v33  ;;  %v10931_v16 = vld [vmem:[#allocation2 + $0x2b8] ss:$12 sps:$4 sm:$0xff]   ;;  %v10960_v34 = vld [vmem:[#allocation2 + $0x394] ss:$12 sps:$4 sm:$0xff]  }
 0x491   :  { %v12233_v62 = vadd.f32 %v4540_v1, %v12117_v30  ;;  %v8909_v31 = vpop.f32.mrb[64].mxu1  ;;  %v4732_v30 = vcombine.low %v12213_v47, %v12216_v17  ;;  %v10942_v47 = vld [vmem:[#allocation2 + $0x318] ss:$12 sps:$4 sm:$0xff]   ;;  %v10943_v17 = vld [vmem:[#allocation2 + $0x8] ss:$12 sps:$4 sm:$0xff]  }
 0x492   :  { %v8910_v56 = vpop.f32.mrb[65].mxu1  ;;  %v10959_v1 = vld [vmem:[#allocation2 + $0x68] ss:$12 sps:$4 sm:$0xff]   ;;  %v10961_v52 = vld [vmem:[#allocation2 + $0x140] ss:$12 sps:$4 sm:$0xff]  }
 0x493   :  { %v12237_v59 = vadd.f32 %v8910_v56, %v8909_v31  ;;  %v8912_v7 = vpop.f32.mrb[66].mxu1  ;;  %5143 = vmatpush1.bf16.msra.mxu0 %v10930_v12  ;;  %5182 = vmatpush1.bf16.msra.mxu1 %v10931_v16  ;;  %v12244_v19 = vpack.c.bf16 %v4732_v30, %v4732_v30  ;;  %v10964_v16 = vld [vmem:[#allocation2 + $0x3ac] ss:$12 sps:$4 sm:$0xff]  }
 0x494   :  { %v8913_v29 = vpop.f32.mrb[67].mxu1  ;;  %5144 = vmatprep.subr.bf16.mxu0 %v10932_v49  ;;  %5183 = vmatprep.subr.bf16.mxu1 %v10933_v61  ;;  %v10962_v7 = vld [vmem:[#allocation2 + $0x390] ss:$12 sps:$4 sm:$0xff]   ;;  %v10967_v30 = vld [vmem:[#allocation2 + $0x98] ss:$12 sps:$4 sm:$0xff]  }
 0x495   :  { %v10965_v29 = vld [vmem:[#allocation2 + $0x158] ss:$12 sps:$4 sm:$0xff]  }
 0x497   :  { %5145 = vmatpush1.bf16.msra.mxu0 %v10934_v23  ;;  %5184 = vmatpush1.bf16.msra.mxu1 %v10935_v20  ;;  %v10968_v23 = vld [vmem:[#allocation2 + $0x170] ss:$12 sps:$4 sm:$0xff]   ;;  %v10969_v20 = vld [vmem:[#allocation2 + $0x248] ss:$12 sps:$4 sm:$0xff]  }
 0x498   :  { %5185 = vmatprep.subr.bf16.mxu1 %v10936_v14  ;;  %5196 = vmatprep.subr.bf16.mxu0 %v10937_v51  ;;  %v10970_v14 = vld [vmem:[#allocation2 + $0xb0] ss:$12 sps:$4 sm:$0xff]   ;;  %v10971_v51 = vld [vmem:[#allocation2 + $0x188] ss:$12 sps:$4 sm:$0xff]  }
 0x49a   :  { %5147 = vmatmul.mubr.bf16.vlgmr.msra.gmra.mrb[84].mxu0 %v12239_v9 }
 0x49b   :  { %5186 = vmatpush1.bf16.msra.mxu1 %v10938_v18  ;;  %5197 = vmatpush1.bf16.msra.mxu0 %v10939_v10  ;;  %v10972_v18 = vld [vmem:[#allocation2 + $0x260] ss:$12 sps:$4 sm:$0xff]   ;;  %v10974_v10 = vld [vmem:[#allocation2 + $0x308] ss:$12 sps:$4 sm:$0xff]  }
 0x49c   :  { %5198 = vmatprep.subr.bf16.mxu0 %v10940_v0  ;;  %8999 = vmatprep.subr.bf16.mxu1 %v10941_v55  ;;  %v10975_v0 = vld [vmem:[#allocation2 + $0x278] ss:$12 sps:$4 sm:$0xff]  }
 0x49d   :  { %5228 = vmatprep.mubr.bf16.mxu0 %v11338_v45  ;;  %v10976_v55 = vld [vmem:[#allocation2 + $0x1b8] ss:$12 sps:$4 sm:$0xff]  }
 0x49e   :  { %5188 = vmatmul.mubr.bf16.vlgmr.msra.gmra.mrb[84].mxu1 %v12244_v19 }
 0x49f   :  { %5199 = vmatpush1.bf16.msra.mxu0 %v10942_v47  ;;  %9000 = vmatpush3.bf16.msra.mxu1 %v10943_v17  ;;  %v10977_v47 = vld [vmem:[#allocation2 + $0x320] ss:$12 sps:$4 sm:$0xff]   ;;  %v10978_v17 = vld [vmem:[#allocation2 + $0x290] ss:$12 sps:$4 sm:$0xff]  }
 0x4a0   :  { %5200 = vmatprep.subr.bf16.mxu0 %v10944_v21  ;;  %9001 = vmatprep.subr.bf16.mxu1 %v10945_v50  ;;  %v10981_v21 = vld [vmem:[#allocation2 + $0x2a8] ss:$12 sps:$4 sm:$0xff]  }
 0x4a1   :  { %5269 = vmatprep.mubr.bf16.mxu1 %v12219_v53  ;;  %v10072_v53 = vld [vmem:[%s12482_s0 + $0x12] ss:$72 sps:$4 sm:$0x33]   ;;  %v10982_v50 = vld [vmem:[#allocation2 + $0x1e8] ss:$12 sps:$4 sm:$0xff]  }
 0x4a2   :  { %v4742_v39 = vrot.slane %v10072_v53, %v11513_v5  ;;  %v10963_v5 = vld [vmem:[#allocation2 + $0x80] ss:$12 sps:$4 sm:$0xff]   ;;  %v10990_v53 = vld [vmem:[#allocation2 + $0x2f0] ss:$12 sps:$4 sm:$0xff]  }
 0x4a3   :  { %5201 = vmatpush1.bf16.msra.mxu0 %v10946_v22  ;;  %9002 = vmatpush3.bf16.msra.mxu1 %v10947_v41  ;;  %v10983_v22 = vld [vmem:[#allocation2 + $0x350] ss:$12 sps:$4 sm:$0xff]   ;;  %v10984_v41 = vld [vmem:[#allocation2 + $0x2c0] ss:$12 sps:$4 sm:$0xff]  }
 0x4a4   :  { %5202 = vmatprep.subr.bf16.mxu0 %v10948_v60  ;;  %9003 = vmatprep.subr.bf16.mxu1 %v10949_v6  ;;  %v4750_v31 = vcombine.low %v4742_v39, %v4749_v63  ;;  %v10985_v60 = vld [vmem:[#allocation2 + $0x200] ss:$12 sps:$4 sm:$0xff]   ;;  %v10986_v6 = vld [vmem:[#allocation2 + $0x368] ss:$12 sps:$4 sm:$0xff]  }
 0x4a5   :  { %v10995_v39 = vld [vmem:[#allocation2 + $0x780] ss:$12 sps:$4 sm:$0xff]   ;;  %v10996_v63 = vld [vmem:[#allocation2 + $0x79c] ss:$12 sps:$4 sm:$0xff]  }
 0x4a6   :  { %v12261_v61 = vpack.c.bf16 %v4750_v31, %v4750_v31  ;;  %v11006_v31 = vld [vmem:[#allocation2 + $0x7c8] ss:$12 sps:$4 sm:$0xff]  }
 0x4a7   :  { %5203 = vmatpush1.bf16.msra.mxu0 %v10950_v24  ;;  %9004 = vmatpush3.bf16.msra.mxu1 %v10951_v54  ;;  %v10987_v24 = vld [vmem:[#allocation2 + $0x2d8] ss:$12 sps:$4 sm:$0xff]   ;;  %v12274_v54 = vpop.permute.xlu1 %5449 }
 0x4a8   :  { %5204 = vmatprep.subr.bf16.mxu0 %v10952_v25  ;;  %9005 = vmatprep.subr.bf16.mxu1 %v10953_v28  ;;  %v10988_v25 = vld [vmem:[#allocation2 + $0x218] ss:$12 sps:$4 sm:$0xff]   ;;  %v10989_v28 = vld [vmem:[#allocation2 + $0x380] ss:$12 sps:$4 sm:$0xff]  }
 0x4ab   :  { %5205 = vmatpush1.bf16.msra.mxu0 %v10954_v2  ;;  %9006 = vmatpush3.bf16.msra.mxu1 %v10955_v44  ;;  %v10992_v2 = vld [vmem:[#allocation2 + $0x398] ss:$12 sps:$4 sm:$0xff]   ;;  %v12277_v44 = vpop.permute.xlu1 %5453 }
 0x4ac   :  { %5206 = vmatprep.subr.bf16.mxu0 %v10956_v32  ;;  %9007 = vmatprep.subr.bf16.mxu1 %v10957_v36  ;;  %v10993_v32 = vld [vmem:[#allocation2 + $0x784] ss:$12 sps:$4 sm:$0xff]   ;;  %v12280_v36 = vpop.permute.xlu0 %5447 }
 0x4ad   :  { %v8931_v27 = vpop.f32.mrb[68].mxu0 }
 0x4ae   :  { %v8932_v57 = vpop.f32.mrb[69].mxu0 }
 0x4af   :  { %v8933_v42 = vadd.f32 %v8932_v57, %v8931_v27  ;;  %v8934_v40 = vpop.f32.mrb[70].mxu0  ;;  %5207 = vmatpush1.bf16.msra.mxu0 %v10958_v38  ;;  %9008 = vmatpush3.bf16.msra.mxu1 %v10959_v1  ;;  %v12286_v27 = vsel %vm2673_vm2, %v12280_v36, %v12274_v54  ;;  %v10994_v57 = vld [vmem:[#allocation2 + $0x3b0] ss:$12 sps:$4 sm:$0xff]   ;;  %v10998_v38 = vld [vmem:[#allocation2 + $0x798] ss:$12 sps:$4 sm:$0xff]  }
 0x4b0   :  { %v8935_v46 = vpop.f32.mrb[71].mxu0  ;;  %5208 = vmatprep.subr.bf16.mxu0 %v10960_v34  ;;  %9009 = vmatprep.subr.bf16.mxu1 %v10961_v52  ;;  %v12289_v40 = vpop.permute.xlu1 %5451  ;;  %v10999_v1 = vld [vmem:[#allocation2 + $0x900] ss:$12 sps:$4 sm:$0xff]   ;;  %v11001_v34 = vld [vmem:[#allocation2 + $0x91c] ss:$12 sps:$4 sm:$0xff]  }
 0x4b1   :  { %v4619_v37 = vadd.f32 %v8933_v42, %v12237_v59  ;;  %v4658_v35 = vpop.f32.mrb[68].mxu1  ;;  %v10966_v59 = vld [vmem:[#allocation2 + $0x3a8] ss:$12 sps:$4 sm:$0xff]   ;;  %v10997_v42 = vld [vmem:[#allocation2 + $0x904] ss:$12 sps:$4 sm:$0xff]  }
 0x4b2   :  { %v9360_v33 = vpop.f32.mrb[69].mxu1  ;;  %v11000_v46 = vld [vmem:[#allocation2 + $0x7b4] ss:$12 sps:$4 sm:$0xff]   ;;  %v11002_v52 = vld [vmem:[#allocation2 + $0x7b0] ss:$12 sps:$4 sm:$0xff]  }
 0x4b3   :  { %v4659_v56 = vadd.f32 %v4658_v35, %v4619_v37  ;;  %v4661_v58 = vpop.f32.mrb[70].mxu1  ;;  %5209 = vmatpush1.bf16.msra.mxu0 %v10962_v7  ;;  %9010 = vmatpush3.bf16.msra.mxu1 %v10963_v5  ;;  %v11003_v37 = vld [vmem:[#allocation2 + $0x918] ss:$12 sps:$4 sm:$0xff]   ;;  %v11005_v33 = vld [vmem:[#allocation2 + $0x934] ss:$12 sps:$4 sm:$0xff]  }
 0x4b4   :  { %v9361_v12 = vpop.f32.mrb[71].mxu1  ;;  %5210 = vmatprep.subr.bf16.mxu0 %v10964_v16  ;;  %9011 = vmatprep.subr.bf16.mxu1 %v10965_v29  ;;  %v11004_v35 = vld [vmem:[#allocation2 + $0x7cc] ss:$12 sps:$4 sm:$0xff]   ;;  %v11008_v58 = vld [vmem:[#allocation2 + $0x7e4] ss:$12 sps:$4 sm:$0xff]  }
 0x4b5   :  { %v12259_v49 = vadd.f32 %v4659_v56, %v12171_v8  ;;  %v10973_v8 = vld [vmem:[#allocation2 + $0x1a0] ss:$12 sps:$4 sm:$0xff]   ;;  %v11007_v56 = vld [vmem:[#allocation2 + $0x930] ss:$12 sps:$4 sm:$0xff]   ;;  %v11011_v12 = vld [vmem:[#allocation2 + $0x948] ss:$12 sps:$4 sm:$0xff]  }
 0x4b6   :  { %v11009_v7 = vld [vmem:[#allocation2 + $0x94c] ss:$12 sps:$4 sm:$0xff]   ;;  %v11012_v16 = vld [vmem:[#allocation2 + $0x7fc] ss:$12 sps:$4 sm:$0xff]   ;;  %v11013_v29 = vld [vmem:[#allocation2 + $0x964] ss:$12 sps:$4 sm:$0xff]  }
 0x4b7   :  { %5211 = vmatpush1.bf16.msra.mxu0 %v10966_v59  ;;  %9012 = vmatpush3.bf16.msra.mxu1 %v10967_v30  ;;  %v11010_v5 = vld [vmem:[#allocation2 + $0x7e0] ss:$12 sps:$4 sm:$0xff]  }
 0x4b8   :  { %9013 = vmatprep.subr.bf16.mxu1 %v10968_v23  ;;  %9021 = vmatprep.subr.bf16.mxu0 %v10969_v20  ;;  %v11014_v23 = vld [vmem:[#allocation2 + $0x7f8] ss:$12 sps:$4 sm:$0xff]   ;;  %v11015_v20 = vld [vmem:[#allocation2 + $0x960] ss:$12 sps:$4 sm:$0xff]  }
 0x4ba   :  { %5229 = vmatmul.mubr.bf16.vlgmr.msra.gmra.mrb[88].mxu0 %v12261_v61 }
 0x4bb   :  { %9014 = vmatpush3.bf16.msra.mxu1 %v10970_v14  ;;  %9022 = vmatpush3.bf16.msra.mxu0 %v10971_v51  ;;  %v11016_v51 = vld [vmem:[#allocation2 + $0x814] ss:$12 sps:$4 sm:$0xff]  }
 0x4bc   :  { %9023 = vmatprep.subr.bf16.mxu0 %v10972_v18  ;;  %9382 = vmatprep.subr.bf16.mxu1 %v11340_v43  ;;  %v11017_v18 = vld [vmem:[#allocation2 + $0x97c] ss:$12 sps:$4 sm:$0xff]  }
 0x4bd   :  { %5309 = vmatprep.mubr.bf16.mxu0 %v12225_v13  ;;  %v10979_v13 = vld [vmem:[#allocation2 + $0x1d0] ss:$12 sps:$4 sm:$0xff]  }
 0x4be   :  { %5270 = vmatmul.mubr.bf16.vlgmr.msra.gmra.mrb[88].mxu1 %v12239_v9  ;;  %v10980_v9 = vld [vmem:[#allocation2 + $0x338] ss:$12 sps:$4 sm:$0xff]  }
 0x4bf   :  { %9024 = vmatpush3.bf16.msra.mxu0 %v10973_v8  ;;  %9383 = vmatpush3.bf16.msra.mxu1 %v10974_v10 }
 0x4c0   :  { %9025 = vmatprep.subr.bf16.mxu0 %v10975_v0  ;;  %9384 = vmatprep.subr.bf16.mxu1 %v11340_v43 }
 0x4c1   :  { %9398 = vmatprep.mubr.msk.bf16.mxu1 %vm11341_vm1, %v11340_v43 }
 0x4c3   :  { %9026 = vmatpush3.bf16.msra.mxu0 %v10976_v55  ;;  %9385 = vmatpush3.bf16.msra.mxu1 %v10977_v47 }
 0x4c4   :  { %9027 = vmatprep.subr.bf16.mxu0 %v10978_v17  ;;  %9386 = vmatprep.subr.bf16.mxu1 %v11340_v43  ;;  %v11018_v17 = vld [vmem:[#allocation2 + $0x810] ss:$12 sps:$4 sm:$0xff]  }
 0x4c7   :  { %9028 = vmatpush3.bf16.msra.mxu0 %v10979_v13  ;;  %9387 = vmatpush3.bf16.msra.mxu1 %v10980_v9  ;;  %v11019_v13 = vld [vmem:[#allocation2 + $0x978] ss:$12 sps:$4 sm:$0xff]  }
 0x4c8   :  { %9029 = vmatprep.subr.bf16.mxu0 %v10981_v21  ;;  %9388 = vmatprep.subr.bf16.mxu1 %v11340_v43  ;;  %v11020_v21 = vld [vmem:[#allocation2 + $0x82c] ss:$12 sps:$4 sm:$0xff]  }
 0x4cb   :  { %9030 = vmatpush3.bf16.msra.mxu0 %v10982_v50  ;;  %9389 = vmatpush3.bf16.msra.mxu1 %v10983_v22  ;;  %v11021_v50 = vld [vmem:[#allocation2 + $0x994] ss:$12 sps:$4 sm:$0xff]  }
 0x4cc   :  { %9031 = vmatprep.subr.bf16.mxu0 %v10984_v41  ;;  %9390 = vmatprep.subr.bf16.mxu1 %v11340_v43  ;;  %v11022_v22 = vld [vmem:[#allocation2 + $0x828] ss:$12 sps:$4 sm:$0xff]   ;;  %v11023_v41 = vld [vmem:[#allocation2 + $0x990] ss:$12 sps:$4 sm:$0xff]  }
 0x4cf   :  { %9032 = vmatpush3.bf16.msra.mxu0 %v10985_v60  ;;  %9391 = vmatpush3.bf16.msra.mxu1 %v10986_v6  ;;  %v11024_v60 = vld [vmem:[#allocation2 + $0x844] ss:$12 sps:$4 sm:$0xff]   ;;  %v11025_v6 = vld [vmem:[#allocation2 + $0x9ac] ss:$12 sps:$4 sm:$0xff]  }
 0x4d0   :  { %9033 = vmatprep.subr.bf16.mxu0 %v10987_v24  ;;  %9392 = vmatprep.subr.bf16.mxu1 %v11340_v43  ;;  %v11026_v24 = vld [vmem:[#allocation2 + $0x840] ss:$12 sps:$4 sm:$0xff]  }
 0x4d3   :  { %9034 = vmatpush3.bf16.msra.mxu0 %v10988_v25  ;;  %9393 = vmatpush3.bf16.msra.mxu1 %v10989_v28  ;;  %v11027_v25 = vld [vmem:[#allocation2 + $0x9a8] ss:$12 sps:$4 sm:$0xff]  }
 0x4d4   :  { %9035 = vmatprep.subr.bf16.mxu0 %v10990_v53  ;;  %9394 = vmatprep.subr.bf16.mxu1 %v11340_v43  ;;  %v11028_v28 = vld [vmem:[#allocation2 + $0x85c] ss:$12 sps:$4 sm:$0xff]   ;;  %v11029_v53 = vld [vmem:[#allocation2 + $0x9c4] ss:$12 sps:$4 sm:$0xff]  }
 0x4d7   :  { %9036 = vmatpush3.bf16.msra.mxu0 %v10991_v11  ;;  %9395 = vmatpush3.bf16.msra.mxu1 %v10992_v2  ;;  %v11030_v11 = vld [vmem:[#allocation2 + $0x858] ss:$12 sps:$4 sm:$0xff]   ;;  %v11031_v2 = vld [vmem:[#allocation2 + $0x9c0] ss:$12 sps:$4 sm:$0xff]  }
 0x4d8   :  { %9396 = vmatprep.subr.bf16.mxu1 %v11340_v43  ;;  %5467 = vmatprep.subr.bf16.mxu0 %v10993_v32  ;;  %v11032_v32 = vld [vmem:[#allocation2 + $0x874] ss:$12 sps:$4 sm:$0xff]  }
 0x4da   :  { %5310 = vmatmul.mubr.bf16.vlgmr.msra.gmra.mrb[92].mxu0 %v12244_v19  ;;  %v12295_v19 = vsel %vm2673_vm2, %v12289_v40, %v12277_v44 }
 0x4db   :  { %9397 = vmatpush3.bf16.msra.mxu1 %v10994_v57  ;;  %5468 = vmatpush1.bf16.msra.mxu0 %v10995_v39  ;;  %v11033_v57 = vld [vmem:[#allocation2 + $0x9dc] ss:$12 sps:$4 sm:$0xff]  }
 0x4dc   :  { %5469 = vmatprep.subr.bf16.mxu0 %v10996_v63  ;;  %5508 = vmatprep.subr.bf16.mxu1 %v10997_v42  ;;  %v11034_v39 = vld [vmem:[#allocation2 + $0x870] ss:$12 sps:$4 sm:$0xff]   ;;  %v11035_v63 = vld [vmem:[#allocation2 + $0x9d8] ss:$12 sps:$4 sm:$0xff]  }
 0x4dd   :  { %5499 = vmatprep.mubr.bf16.mxu0 %v12286_v27  ;;  %v11036_v42 = vld [vmem:[#allocation2 + $0x88c] ss:$12 sps:$4 sm:$0xff]  }
 0x4de   :  { %9399 = vmatmul.mubr.bf16.vlgmr.msra.gmra.mrb[92].mxu1 %v12261_v61 }
 0x4df   :  { %5470 = vmatpush1.bf16.msra.mxu0 %v10998_v38  ;;  %5509 = vmatpush1.bf16.msra.mxu1 %v10999_v1  ;;  %v11037_v38 = vld [vmem:[#allocation2 + $0x9f4] ss:$12 sps:$4 sm:$0xff]  }
 0x4e0   :  { %5471 = vmatprep.subr.bf16.mxu0 %v11000_v46  ;;  %5510 = vmatprep.subr.bf16.mxu1 %v11001_v34  ;;  %v11038_v1 = vld [vmem:[#allocation2 + $0x888] ss:$12 sps:$4 sm:$0xff]   ;;  %v11039_v46 = vld [vmem:[#allocation2 + $0x9f0] ss:$12 sps:$4 sm:$0xff]  }
 0x4e1   :  { %5540 = vmatprep.mubr.bf16.mxu1 %v12295_v19  ;;  %v11040_v34 = vld [vmem:[#allocation2 + $0x8a4] ss:$12 sps:$4 sm:$0xff]  }
 0x4e3   :  { %5472 = vmatpush1.bf16.msra.mxu0 %v11002_v52  ;;  %5511 = vmatpush1.bf16.msra.mxu1 %v11003_v37  ;;  %v11041_v52 = vld [vmem:[#allocation2 + $0xa0c] ss:$12 sps:$4 sm:$0xff]  }
 0x4e4   :  { %5473 = vmatprep.subr.bf16.mxu0 %v11004_v35  ;;  %5512 = vmatprep.subr.bf16.mxu1 %v11005_v33  ;;  %v11042_v37 = vld [vmem:[#allocation2 + $0x8a0] ss:$12 sps:$4 sm:$0xff]   ;;  %v11043_v35 = vld [vmem:[#allocation2 + $0xa08] ss:$12 sps:$4 sm:$0xff]  }
 0x4e5   :  { %v11044_v33 = vld [vmem:[#allocation2 + $0x8bc] ss:$12 sps:$4 sm:$0xff]  }
 0x4e7   :  { %5474 = vmatpush1.bf16.msra.mxu0 %v11006_v31  ;;  %5513 = vmatpush1.bf16.msra.mxu1 %v11007_v56  ;;  %v11045_v31 = vld [vmem:[#allocation2 + $0xa24] ss:$12 sps:$4 sm:$0xff]  }
 0x4e8   :  { %5475 = vmatprep.subr.bf16.mxu0 %v11008_v58  ;;  %5514 = vmatprep.subr.bf16.mxu1 %v11009_v7 }
 0x4eb   :  { %5476 = vmatpush1.bf16.msra.mxu0 %v11010_v5  ;;  %5515 = vmatpush1.bf16.msra.mxu1 %v11011_v12 }
 0x4ec   :  { %5477 = vmatprep.subr.bf16.mxu0 %v11012_v16  ;;  %5516 = vmatprep.subr.bf16.mxu1 %v11013_v29  ;;  %v11046_v16 = vld [vmem:[#allocation2 + $0x8b8] ss:$12 sps:$4 sm:$0xff]   ;;  %v11047_v29 = vld [vmem:[#allocation2 + $0xa20] ss:$12 sps:$4 sm:$0xff]  }
 0x4ed   :  { %v4905_v61 = vpop.f32.mrb[72].mxu0 }
 0x4ee   :  { %v4907_v59 = vpop.f32.mrb[73].mxu0 }
 0x4ef   :  { %v4909_v30 = vpop.f32.mrb[74].mxu0  ;;  %5478 = vmatpush1.bf16.msra.mxu0 %v11014_v23  ;;  %5517 = vmatpush1.bf16.msra.mxu1 %v11015_v20 }
 0x4f0   :  { %v4910_v14 = vpop.f32.mrb[75].mxu0  ;;  %5479 = vmatprep.subr.bf16.mxu0 %v11016_v51  ;;  %5518 = vmatprep.subr.bf16.mxu1 %v11017_v18  ;;  %v11049_v30 = vld [vmem:[#allocation2 + $0xa3c] ss:$12 sps:$4 sm:$0xff]  }
 0x4f1   :  { %v4946_v8 = vpop.f32.mrb[72].mxu1  ;;  %v11050_v18 = vld [vmem:[#allocation2 + $0x8d0] ss:$12 sps:$4 sm:$0xff]  }
 0x4f2   :  { %v4947_v10 = vadd.f32 %v4946_v8, %v4905_v61  ;;  %v4948_v0 = vpop.f32.mrb[73].mxu1  ;;  %v11051_v8 = vld [vmem:[#allocation2 + $0xa38] ss:$12 sps:$4 sm:$0xff]  }
 0x4f3   :  { %v4949_v55 = vadd.f32 %v4948_v0, %v4907_v59  ;;  %v4950_v47 = vpop.f32.mrb[74].mxu1  ;;  %5480 = vmatpush1.bf16.msra.mxu0 %v11018_v17  ;;  %5519 = vmatpush1.bf16.msra.mxu1 %v11019_v13  ;;  %v11048_v59 = vld [vmem:[#allocation2 + $0x8d4] ss:$12 sps:$4 sm:$0xff]   ;;  %v11052_v0 = vld [vmem:[#allocation2 + $0x8ec] ss:$12 sps:$4 sm:$0xff]  }
 0x4f4   :  { %v4951_v9 = vpop.f32.mrb[75].mxu1  ;;  %5481 = vmatprep.subr.bf16.mxu0 %v11020_v21  ;;  %5520 = vmatprep.subr.bf16.mxu1 %v11021_v50  ;;  %v5446_v47 = vpop.permute.xlu0 %5445  ;;  %v11054_v17 = vld [vmem:[#allocation2 + $0x8e8] ss:$12 sps:$4 sm:$0xff]   ;;  %v11055_v13 = vld [vmem:[#allocation2 + $0xa50] ss:$12 sps:$4 sm:$0xff]  }
 0x4f5   :  { %v11056_v9 = vld [vmem:[#allocation2 + $0xa6c] ss:$12 sps:$4 sm:$0xff]   ;;  %v11057_v21 = vld [vmem:[#allocation2 + $0xa84] ss:$12 sps:$4 sm:$0xff]   ;;  %v12306_v50 = vsel %vm2673_vm2, %v5446_v47, %v12280_v36  ;;  %v11089_v47 = vld [vmem:[#allocation2 + $0x9c8] ss:$12 sps:$4 sm:$0xff]  }
 0x4f6   :  { %v11062_v36 = vld [vmem:[#allocation2 + $0xa98] ss:$12 sps:$4 sm:$0xff]  }
 0x4f7   :  { %5482 = vmatpush1.bf16.msra.mxu0 %v11022_v22  ;;  %5521 = vmatpush1.bf16.msra.mxu1 %v11023_v41  ;;  %v11058_v22 = vld [vmem:[#allocation2 + $0xa68] ss:$12 sps:$4 sm:$0xff]   ;;  %v11059_v41 = vld [vmem:[#allocation2 + $0xa80] ss:$12 sps:$4 sm:$0xff]  }
 0x4f8   :  { %5483 = vmatprep.subr.bf16.mxu0 %v11024_v60  ;;  %5522 = vmatprep.subr.bf16.mxu1 %v11025_v6  ;;  %v11060_v60 = vld [vmem:[#allocation2 + $0xa9c] ss:$12 sps:$4 sm:$0xff]  }
 0x4f9   :  { %v11061_v6 = vld [vmem:[#allocation2 + $0x848] ss:$12 sps:$4 sm:$0xff]  }
 0x4fb   :  { %5484 = vmatpush1.bf16.msra.mxu0 %v11026_v24  ;;  %5523 = vmatpush1.bf16.msra.mxu1 %v11027_v25  ;;  %v12312_v24 = vsel %vm2673_vm2, %v12274_v54, %v12289_v40  ;;  %v11063_v25 = vld [vmem:[#allocation2 + $0x788] ss:$12 sps:$4 sm:$0xff]   ;;  %v11068_v54 = vld [vmem:[#allocation2 + $0xacc] ss:$12 sps:$4 sm:$0xff]  }
 0x4fc   :  { %5485 = vmatprep.subr.bf16.mxu0 %v11028_v28  ;;  %5524 = vmatprep.subr.bf16.mxu1 %v11029_v53  ;;  %v11064_v28 = vld [vmem:[#allocation2 + $0xab4] ss:$12 sps:$4 sm:$0xff]   ;;  %v11069_v40 = vld [vmem:[#allocation2 + $0x878] ss:$12 sps:$4 sm:$0xff]  }
 0x4fd   :  { %v11065_v53 = vld [vmem:[#allocation2 + $0x860] ss:$12 sps:$4 sm:$0xff]  }
 0x4ff   :  { %5486 = vmatpush1.bf16.msra.mxu0 %v11030_v11  ;;  %5525 = vmatpush1.bf16.msra.mxu1 %v11031_v2  ;;  %v11066_v11 = vld [vmem:[#allocation2 + $0xab0] ss:$12 sps:$4 sm:$0xff]   ;;  %v11067_v2 = vld [vmem:[#allocation2 + $0x7a0] ss:$12 sps:$4 sm:$0xff]  }
 0x500   :  { %5487 = vmatprep.subr.bf16.mxu0 %v11032_v32  ;;  %5526 = vmatprep.subr.bf16.mxu1 %v11033_v57  ;;  %v11070_v32 = vld [vmem:[#allocation2 + $0xac8] ss:$12 sps:$4 sm:$0xff]   ;;  %v11071_v57 = vld [vmem:[#allocation2 + $0x7b8] ss:$12 sps:$4 sm:$0xff]  }
 0x503   :  { %5488 = vmatpush1.bf16.msra.mxu0 %v11034_v39  ;;  %5527 = vmatpush1.bf16.msra.mxu1 %v11035_v63  ;;  %v11072_v39 = vld [vmem:[#allocation2 + $0xae4] ss:$12 sps:$4 sm:$0xff]  }
 0x504   :  { %5489 = vmatprep.subr.bf16.mxu0 %v11036_v42  ;;  %5528 = vmatprep.subr.bf16.mxu1 %v11037_v38  ;;  %v11073_v63 = vld [vmem:[#allocation2 + $0x890] ss:$12 sps:$4 sm:$0xff]  }
 0x505   :  { %v11075_v42 = vld [vmem:[#allocation2 + $0x7d0] ss:$12 sps:$4 sm:$0xff]  }
 0x506   :  { %v11076_v38 = vld [vmem:[#allocation2 + $0xafc] ss:$12 sps:$4 sm:$0xff]  }
 0x507   :  { %5490 = vmatpush1.bf16.msra.mxu0 %v11038_v1  ;;  %5529 = vmatpush1.bf16.msra.mxu1 %v11039_v46  ;;  %v11077_v1 = vld [vmem:[#allocation2 + $0x8a8] ss:$12 sps:$4 sm:$0xff]  }
 0x508   :  { %5491 = vmatprep.subr.bf16.mxu0 %v11040_v34  ;;  %5530 = vmatprep.subr.bf16.mxu1 %v11041_v52 }
 0x50b   :  { %5492 = vmatpush1.bf16.msra.mxu0 %v11042_v37  ;;  %5531 = vmatpush1.bf16.msra.mxu1 %v11043_v35  ;;  %v11078_v35 = vld [vmem:[#allocation2 + $0xaf8] ss:$12 sps:$4 sm:$0xff]  }
 0x50c   :  { %5493 = vmatprep.subr.bf16.mxu0 %v11044_v33  ;;  %5532 = vmatprep.subr.bf16.mxu1 %v11045_v31  ;;  %v11079_v33 = vld [vmem:[#allocation2 + $0x7e8] ss:$12 sps:$4 sm:$0xff]  }
 0x50d   :  { %v4987_v56 = vpop.f32.mrb[76].mxu0 }
 0x50e   :  { %v12298_v58 = vadd.f32 %v4987_v56, %v4947_v10  ;;  %v4989_v7 = vpop.f32.mrb[77].mxu0  ;;  %v11080_v56 = vld [vmem:[#allocation2 + $0xb14] ss:$12 sps:$4 sm:$0xff]  }
 0x50f   :  { %v12300_v5 = vadd.f32 %v4989_v7, %v4949_v55  ;;  %v4991_v12 = vpop.f32.mrb[78].mxu0  ;;  %5494 = vmatpush1.bf16.msra.mxu0 %v11046_v16  ;;  %5533 = vmatpush1.bf16.msra.mxu1 %v11047_v29  ;;  %v11053_v55 = vld [vmem:[#allocation2 + $0xa54] ss:$12 sps:$4 sm:$0xff]  }
 0x510   :  { %v4992_v61 = vpop.f32.mrb[79].mxu0  ;;  %5495 = vmatprep.subr.bf16.mxu0 %v11048_v59  ;;  %5534 = vmatprep.subr.bf16.mxu1 %v11049_v30  ;;  %v11081_v7 = vld [vmem:[#allocation2 + $0x8c0] ss:$12 sps:$4 sm:$0xff]   ;;  %v11082_v30 = vld [vmem:[#allocation2 + $0xb10] ss:$12 sps:$4 sm:$0xff]  }
 0x511   :  { %v8962_v23 = vpop.f32.mrb[76].mxu1 }
 0x512   :  { %v8963_v20 = vpop.f32.mrb[77].mxu1 }
 0x513   :  { %v12302_v14 = vadd.f32 %v8963_v20, %v8962_v23  ;;  %v8965_v51 = vpop.f32.mrb[78].mxu1  ;;  %5496 = vmatpush1.bf16.msra.mxu0 %v11050_v18  ;;  %5535 = vmatpush1.bf16.msra.mxu1 %v11051_v8  ;;  %v11083_v23 = vld [vmem:[#allocation2 + $0x800] ss:$12 sps:$4 sm:$0xff]   ;;  %v11085_v18 = vld [vmem:[#allocation2 + $0x8d8] ss:$12 sps:$4 sm:$0xff]   ;;  %v5456_v8 = vpop.permute.xlu0 %5455 }
 0x514   :  { %v8966_v10 = vpop.f32.mrb[79].mxu1  ;;  %5497 = vmatprep.subr.bf16.mxu0 %v11052_v0  ;;  %5536 = vmatprep.subr.bf16.mxu1 %v11053_v55  ;;  %v11084_v51 = vld [vmem:[#allocation2 + $0xb2c] ss:$12 sps:$4 sm:$0xff]   ;;  %v11088_v55 = vld [vmem:[#allocation2 + $0x8f0] ss:$12 sps:$4 sm:$0xff]  }
 0x515   :  { %v11086_v10 = vld [vmem:[#allocation2 + $0xb28] ss:$12 sps:$4 sm:$0xff]   ;;  %v11087_v0 = vld [vmem:[#allocation2 + $0x818] ss:$12 sps:$4 sm:$0xff]  }
 0x517   :  { %5498 = vmatpush1.bf16.msra.mxu0 %v11054_v17  ;;  %5537 = vmatpush1.bf16.msra.mxu1 %v11055_v13  ;;  %v11090_v17 = vld [vmem:[#allocation2 + $0x830] ss:$12 sps:$4 sm:$0xff]   ;;  %v11091_v13 = vld [vmem:[#allocation2 + $0x908] ss:$12 sps:$4 sm:$0xff]  }
 0x518   :  { %5538 = vmatprep.subr.bf16.mxu1 %v11056_v9  ;;  %5549 = vmatprep.subr.bf16.mxu0 %v11057_v21  ;;  %v11092_v9 = vld [vmem:[#allocation2 + $0x9e0] ss:$12 sps:$4 sm:$0xff]   ;;  %v11094_v21 = vld [vmem:[#allocation2 + $0xa88] ss:$12 sps:$4 sm:$0xff]  }
 0x51a   :  { %5500 = vmatmul.mubr.bf16.vlgmr.msra.gmra.mrb[96].mxu0 %v12306_v50 }
 0x51b   :  { %5539 = vmatpush1.bf16.msra.mxu1 %v11058_v22  ;;  %5550 = vmatpush1.bf16.msra.mxu0 %v11059_v41  ;;  %v11095_v22 = vld [vmem:[#allocation2 + $0x9f8] ss:$12 sps:$4 sm:$0xff]  }
 0x51c   :  { %5551 = vmatprep.subr.bf16.mxu0 %v11060_v60  ;;  %9052 = vmatprep.subr.bf16.mxu1 %v11061_v6  ;;  %v11096_v41 = vld [vmem:[#allocation2 + $0x938] ss:$12 sps:$4 sm:$0xff]   ;;  %v11098_v60 = vld [vmem:[#allocation2 + $0xa10] ss:$12 sps:$4 sm:$0xff]  }
 0x51d   :  { %5581 = vmatprep.mubr.bf16.mxu0 %v11338_v45  ;;  %v11099_v6 = vld [vmem:[#allocation2 + $0x950] ss:$12 sps:$4 sm:$0xff]  }
 0x51e   :  { %5541 = vmatmul.mubr.bf16.vlgmr.msra.gmra.mrb[96].mxu1 %v12312_v24 }
 0x51f   :  { %5552 = vmatpush1.bf16.msra.mxu0 %v11062_v36  ;;  %9053 = vmatpush3.bf16.msra.mxu1 %v11063_v25  ;;  %v11100_v36 = vld [vmem:[#allocation2 + $0xab8] ss:$12 sps:$4 sm:$0xff]   ;;  %v12333_v25 = vld [vmem:[#allocation5] sm:$0x7] }
 0x520   :  { %5622 = vmatprep.mubr.bf16.mxu1 %v12286_v27  ;;  %5553 = vmatprep.subr.bf16.mxu0 %v11064_v28  ;;  %v11074_v27 = vld [vmem:[#allocation2 + $0xae0] ss:$12 sps:$4 sm:$0xff]   ;;  %v11101_v28 = vld [vmem:[#allocation2 + $0xa28] ss:$12 sps:$4 sm:$0xff]  }
 0x521   :  { %9054 = vmatprep.subr.bf16.mxu1 %v11065_v53 }
 0x523   :  { %5554 = vmatpush1.bf16.msra.mxu0 %v11066_v11  ;;  %9055 = vmatpush3.bf16.msra.mxu1 %v11067_v2  ;;  %v11102_v11 = vld [vmem:[#allocation2 + $0x968] ss:$12 sps:$4 sm:$0xff]   ;;  %v11103_v2 = vld [vmem:[#allocation2 + $0xad0] ss:$12 sps:$4 sm:$0xff]  }
 0x524   :  { %5555 = vmatprep.subr.bf16.mxu0 %v11068_v54  ;;  %9056 = vmatprep.subr.bf16.mxu1 %v11069_v40  ;;  %v11104_v54 = vld [vmem:[#allocation2 + $0xa40] ss:$12 sps:$4 sm:$0xff]  }
 0x527   :  { %5556 = vmatpush1.bf16.msra.mxu0 %v11070_v32  ;;  %9057 = vmatpush3.bf16.msra.mxu1 %v11071_v57  ;;  %v11105_v32 = vld [vmem:[#allocation2 + $0x980] ss:$12 sps:$4 sm:$0xff]   ;;  %v11106_v57 = vld [vmem:[#allocation2 + $0xae8] ss:$12 sps:$4 sm:$0xff]  }
 0x528   :  { %5557 = vmatprep.subr.bf16.mxu0 %v11072_v39  ;;  %9058 = vmatprep.subr.bf16.mxu1 %v11073_v63  ;;  %v11107_v39 = vld [vmem:[#allocation2 + $0xa58] ss:$12 sps:$4 sm:$0xff]  }
 0x529   :  { %v11108_v63 = vld [vmem:[#allocation2 + $0x998] ss:$12 sps:$4 sm:$0xff]  }
 0x52b   :  { %5558 = vmatpush1.bf16.msra.mxu0 %v11074_v27  ;;  %9059 = vmatpush3.bf16.msra.mxu1 %v11075_v42  ;;  %v11109_v27 = vld [vmem:[#allocation2 + $0xb00] ss:$12 sps:$4 sm:$0xff]  }
 0x52c   :  { %5559 = vmatprep.subr.bf16.mxu0 %v11076_v38  ;;  %9060 = vmatprep.subr.bf16.mxu1 %v11077_v1  ;;  %v11110_v38 = vld [vmem:[#allocation2 + $0xa70] ss:$12 sps:$4 sm:$0xff]   ;;  %v10076_v1 = vld [vmem:[#allocation7 + $0x4] ss:$12 sps:$4 sm:$0xff]  }
 0x52d   :  { %v8984_v46 = vpop.f32.mrb[80].mxu0 }
 0x52e   :  { %v8985_v34 = vpop.f32.mrb[81].mxu0 }
 0x52f   :  { %v8986_v52 = vadd.f32 %v8985_v34, %v8984_v46  ;;  %v8987_v37 = vpop.f32.mrb[82].mxu0  ;;  %5560 = vmatpush1.bf16.msra.mxu0 %v11078_v35  ;;  %9061 = vmatpush3.bf16.msra.mxu1 %v11079_v33  ;;  %v11112_v46 = vld [vmem:[#allocation2 + $0xb18] ss:$12 sps:$4 sm:$0xff]  }
 0x530   :  { %v8988_v31 = vpop.f32.mrb[83].mxu0  ;;  %5561 = vmatprep.subr.bf16.mxu0 %v11080_v56  ;;  %9062 = vmatprep.subr.bf16.mxu1 %v11081_v7  ;;  %v10074_v34 = vld [vmem:[#allocation7] ss:$12 sps:$4 sm:$0xff]   ;;  %v10079_v37 = vld [vmem:[#allocation7 + $0x1c] ss:$12 sps:$4 sm:$0xff]  }
 0x531   :  { %v5069_v12 = vadd.f32 %v8986_v52, %v12302_v14  ;;  %v5108_v16 = vpop.f32.mrb[80].mxu1  ;;  %v12322_v14 = vsel %vm2673_vm2, %v12277_v44, %v5456_v8  ;;  %v11093_v44 = vld [vmem:[#allocation2 + $0x920] ss:$12 sps:$4 sm:$0xff]   ;;  %v11113_v31 = vld [vmem:[#allocation2 + $0xb30] ss:$12 sps:$4 sm:$0xff]  }
 0x532   :  { %v9380_v29 = vpop.f32.mrb[81].mxu1  ;;  %v10080_v35 = vld [vmem:[#allocation7 + $0xc8] ss:$12 sps:$4 sm:$0xff]   ;;  %v10077_v56 = vld [vmem:[#allocation7 + $0x18] ss:$12 sps:$4 sm:$0xff]  }
 0x533   :  { %v12318_v61 = vadd.f32 %v5108_v16, %v5069_v12  ;;  %v5111_v59 = vpop.f32.mrb[82].mxu1  ;;  %5562 = vmatpush1.bf16.msra.mxu0 %v11082_v30  ;;  %9063 = vmatpush3.bf16.msra.mxu1 %v11083_v23  ;;  %v10081_v7 = vld [vmem:[#allocation7 + $0x8] ss:$12 sps:$4 sm:$0xff]   ;;  %v10085_v16 = vld [vmem:[#allocation7 + $0xe0] ss:$12 sps:$4 sm:$0xff]  }
 0x534   :  { %v9381_v20 = vpop.f32.mrb[83].mxu1  ;;  %5563 = vmatprep.subr.bf16.mxu0 %v11084_v51  ;;  %9064 = vmatprep.subr.bf16.mxu1 %v11085_v18  ;;  %v10084_v12 = vld [vmem:[#allocation7 + $0x34] ss:$12 sps:$4 sm:$0xff]   ;;  %v10082_v29 = vld [vmem:[#allocation7 + $0x30] ss:$12 sps:$4 sm:$0xff]  }
 0x535   :  { %v10086_v59 = vld [vmem:[#allocation7 + $0x20] ss:$12 sps:$4 sm:$0xff]   ;;  %v10090_v30 = vld [vmem:[#allocation7 + $0xf8] ss:$12 sps:$4 sm:$0xff]   ;;  %v10087_v23 = vld [vmem:[#allocation7 + $0x48] ss:$12 sps:$4 sm:$0xff]  }
 0x536   :  { %v10091_v20 = vld [vmem:[#allocation7 + $0x38] ss:$12 sps:$4 sm:$0xff]   ;;  %v10095_v18 = vld [vmem:[#allocation7 + $0x110] ss:$12 sps:$4 sm:$0xff]   ;;  %v10092_v8 = vld [vmem:[#allocation7 + $0x60] ss:$12 sps:$4 sm:$0xff]  }
 0x537   :  { %5564 = vmatpush1.bf16.msra.mxu0 %v11086_v10  ;;  %9065 = vmatpush3.bf16.msra.mxu1 %v11087_v0  ;;  %v10094_v51 = vld [vmem:[#allocation7 + $0x64] ss:$12 sps:$4 sm:$0xff]   ;;  %v10099_v0 = vld [vmem:[#allocation7 + $0x7c] ss:$12 sps:$4 sm:$0xff]  }
 0x538   :  { %9066 = vmatprep.subr.bf16.mxu1 %v11088_v55  ;;  %9074 = vmatprep.subr.bf16.mxu0 %v11089_v47  ;;  %v10096_v10 = vld [vmem:[#allocation7 + $0x50] ss:$12 sps:$4 sm:$0xff]   ;;  %v3574_v55 = vsub.s32 0, %v11510_v3  ;;  %v10097_v47 = vld [vmem:[#allocation7 + $0x78] ss:$12 sps:$4 sm:$0xff]  }
 0x53a   :  { %5582 = vmatmul.mubr.bf16.vlgmr.msra.gmra.mrb[100].mxu0 %v12322_v14 }
 0x53b   :  { %9067 = vmatpush3.bf16.msra.mxu1 %v11090_v17  ;;  %9075 = vmatpush3.bf16.msra.mxu0 %v11091_v13  ;;  %v10101_v17 = vld [vmem:[#allocation7 + $0x68] ss:$12 sps:$4 sm:$0xff]  }
 0x53c   :  { %5662 = vmatprep.mubr.bf16.mxu0 %v12295_v19  ;;  %9076 = vmatprep.subr.bf16.mxu0 %v11092_v9  ;;  %v11097_v19 = vld [vmem:[#allocation2 + $0xaa0] ss:$12 sps:$4 sm:$0xff]   ;;  %v10104_v13 = vld [vmem:[#allocation7 + $0x94] ss:$12 sps:$4 sm:$0xff]  }
 0x53d   :  { %9402 = vmatprep.subr.bf16.mxu1 %v11340_v43  ;;  %v10105_v9 = vld [vmem:[#allocation7 + $0x140] ss:$12 sps:$4 sm:$0xff]  }
 0x53e   :  { %5623 = vmatmul.mubr.bf16.vlgmr.msra.gmra.mrb[100].mxu1 %v12306_v50  ;;  %v3578_v50 = vsub.s32 1, %v11510_v3 }
 0x53f   :  { %9077 = vmatpush3.bf16.msra.mxu0 %v11093_v44  ;;  %9403 = vmatpush3.bf16.msra.mxu1 %v11094_v21  ;;  %v12353_v44 = vrot.slane %v12333_v25, %v3574_v55 }
 0x540   :  { %9078 = vmatprep.subr.bf16.mxu0 %v11095_v22  ;;  %9404 = vmatprep.subr.bf16.mxu1 %v11340_v43  ;;  %v12339_v53 = vrot.slane %v12333_v25, %v3578_v50 }
 0x541   :  { %9418 = vmatprep.mubr.msk.bf16.mxu1 %vm11341_vm1, %v11340_v43 }
 0x542   :  { %v3588_v40 = vadd.f32 %v12339_v53, %v11959_v26  ;;  %v11111_v26 = vld [vmem:[#allocation2 + $0x9b0] ss:$12 sps:$4 sm:$0xff]  }
 0x543   :  { %9079 = vmatpush3.bf16.msra.mxu0 %v11096_v41  ;;  %9405 = vmatpush3.bf16.msra.mxu1 %v11097_v19 }
 0x544   :  { %9080 = vmatprep.subr.bf16.mxu0 %v11098_v60  ;;  %9406 = vmatprep.subr.bf16.mxu1 %v11340_v43  ;;  %v3594_v42 = vmul.f32 0.01, %v3588_v40  ;;  %vm3591_vm6 = vcmp.ge.f32.partialorder %v3588_v40, 0.0 }
 0x546   :  { %v3597_v52 = vsel %vm3591_vm6, %v3588_v40, %v3594_v42  ;;  %v10114_v42 = vld [vmem:[#allocation7 + $0xc4] ss:$12 sps:$4 sm:$0xff]  }
 0x547   :  { %9081 = vmatpush3.bf16.msra.mxu0 %v11099_v6  ;;  %9407 = vmatpush3.bf16.msra.mxu1 %v11100_v36  ;;  %v3600_v33 = vpack.c.bf16 %v3597_v52, %v3597_v52  ;;  %v10102_v6 = vld [vmem:[#allocation7 + $0x90] ss:$12 sps:$4 sm:$0xff]   ;;  %v10106_v36 = vld [vmem:[#allocation7 + $0x80] ss:$12 sps:$4 sm:$0xff]   ;;  %v10120_v52 = vld [vmem:[#allocation7 + $0x248] ss:$12 sps:$4 sm:$0xff]  }
 0x548   :  { %9082 = vmatprep.subr.bf16.mxu0 %v11101_v28  ;;  %9408 = vmatprep.subr.bf16.mxu1 %v11340_v43 }
 0x54b   :  { %9083 = vmatpush3.bf16.msra.mxu0 %v11102_v11  ;;  %9409 = vmatpush3.bf16.msra.mxu1 %v11103_v2  ;;  %v10109_v11 = vld [vmem:[#allocation7 + $0xac] ss:$12 sps:$4 sm:$0xff]  }
 0x54c   :  { %9084 = vmatprep.subr.bf16.mxu0 %v11104_v54  ;;  %9410 = vmatprep.subr.bf16.mxu1 %v11340_v43  ;;  %v10110_v2 = vld [vmem:[#allocation7 + $0x158] ss:$12 sps:$4 sm:$0xff]   ;;  %v3587_v54 = vadd.f32 %v12353_v44, %v11956_v48 }
 0x54e   :  { %v3593_v48 = vmul.f32 0.01, %v3587_v54  ;;  %vm3590_vm7 = vcmp.ge.f32.partialorder %v3587_v54, 0.0 }
 0x54f   :  { %9085 = vmatpush3.bf16.msra.mxu0 %v11105_v32  ;;  %9411 = vmatpush3.bf16.msra.mxu1 %v11106_v57 }
 0x550   :  { %9086 = vmatprep.subr.bf16.mxu0 %v11107_v39  ;;  %9412 = vmatprep.subr.bf16.mxu1 %v11340_v43  ;;  %v10107_v39 = vld [vmem:[#allocation7 + $0xa8] ss:$12 sps:$4 sm:$0xff]  }
 0x553   :  { %9087 = vmatpush3.bf16.msra.mxu0 %v11108_v63  ;;  %9413 = vmatpush3.bf16.msra.mxu1 %v11109_v27  ;;  %v10111_v63 = vld [vmem:[#allocation7 + $0x98] ss:$12 sps:$4 sm:$0xff]  }
 0x554   :  { %9088 = vmatprep.subr.bf16.mxu0 %v11110_v38  ;;  %9414 = vmatprep.subr.bf16.mxu1 %v11340_v43  ;;  %v10115_v38 = vld [vmem:[#allocation7 + $0x170] ss:$12 sps:$4 sm:$0xff]  }
 0x557   :  { %9089 = vmatpush3.bf16.msra.mxu0 %v11111_v26  ;;  %9415 = vmatpush3.bf16.msra.mxu1 %v11112_v46  ;;  %v10112_v26 = vld [vmem:[#allocation7 + $0xc0] ss:$12 sps:$4 sm:$0xff]   ;;  %v10116_v46 = vld [vmem:[#allocation7 + $0xb0] ss:$12 sps:$4 sm:$0xff]  }
 0x558   :  { %9416 = vmatprep.subr.bf16.mxu1 %v11340_v43  ;;  %7185 = vmatprep.subr.bf16.mxu0 %v10076_v1 }
 0x55a   :  { %5663 = vmatmul.mubr.bf16.vlgmr.msra.gmra.mrb[104].mxu0 %v12312_v24  ;;  %v10089_v24 = vld [vmem:[#allocation7 + $0x4c] ss:$12 sps:$4 sm:$0xff]  }
 0x55b   :  { %9417 = vmatpush3.bf16.msra.mxu1 %v11113_v31  ;;  %7186 = vmatpush1.bf16.msra.mxu0 %v10074_v34 }
 0x55c   :  { %7217 = vmatprep.mubr.bf16.mxu0 %v3600_v33  ;;  %7187 = vmatprep.subr.bf16.mxu0 %v10079_v37  ;;  %v3596_v37 = vsel %vm3590_vm7, %v3587_v54, %v3593_v48  ;;  %v10149_v54 = vld [vmem:[#allocation7 + $0x16c] ss:$12 sps:$4 sm:$0xff]  }
 0x55d   :  { %9105 = vmatprep.subr.bf16.mxu1 %v10080_v35  ;;  %v10117_v35 = vld [vmem:[#allocation7 + $0xd8] ss:$12 sps:$4 sm:$0xff]  }
 0x55e   :  { %9419 = vmatmul.mubr.bf16.vlgmr.msra.gmra.mrb[104].mxu1 %v12322_v14  ;;  %v10100_v14 = vld [vmem:[#allocation7 + $0x128] ss:$12 sps:$4 sm:$0xff]  }
 0x55f   :  { %7188 = vmatpush1.bf16.msra.mxu0 %v10077_v56  ;;  %9106 = vmatpush3.bf16.msra.mxu1 %v10081_v7  ;;  %v12365_v56 = vpack.c.bf16 %v3596_v37, %v3596_v37  ;;  %v10124_v7 = vld [vmem:[#allocation7 + $0xf4] ss:$12 sps:$4 sm:$0xff]  }
 0x560   :  { %7422 = vmatprep.mubr.bf16.mxu1 %v3600_v33  ;;  %7189 = vmatprep.subr.bf16.mxu0 %v10084_v12  ;;  %v10121_v33 = vld [vmem:[#allocation7 + $0x188] ss:$12 sps:$4 sm:$0xff]   ;;  %v10125_v12 = vld [vmem:[#allocation7 + $0x260] ss:$12 sps:$4 sm:$0xff]  }
 0x561   :  { %9107 = vmatprep.subr.bf16.mxu1 %v10085_v16 }
 0x563   :  { %7190 = vmatpush1.bf16.msra.mxu0 %v10082_v29  ;;  %9108 = vmatpush3.bf16.msra.mxu1 %v10086_v59  ;;  %v10122_v29 = vld [vmem:[#allocation7 + $0xf0] ss:$12 sps:$4 sm:$0xff]   ;;  %v10126_v59 = vld [vmem:[#allocation7 + $0x1a0] ss:$12 sps:$4 sm:$0xff]  }
 0x564   :  { %7191 = vmatprep.subr.bf16.mxu0 %v10089_v24  ;;  %9109 = vmatprep.subr.bf16.mxu1 %v10090_v30  ;;  %v10129_v24 = vld [vmem:[#allocation7 + $0x10c] ss:$12 sps:$4 sm:$0xff]  }
 0x565   :  { %v10130_v30 = vld [vmem:[#allocation7 + $0x278] ss:$12 sps:$4 sm:$0xff]  }
 0x567   :  { %7192 = vmatpush1.bf16.msra.mxu0 %v10087_v23  ;;  %9110 = vmatpush3.bf16.msra.mxu1 %v10091_v20  ;;  %v10127_v23 = vld [vmem:[#allocation7 + $0x108] ss:$12 sps:$4 sm:$0xff]   ;;  %v10131_v20 = vld [vmem:[#allocation7 + $0x1b8] ss:$12 sps:$4 sm:$0xff]  }
 0x568   :  { %7193 = vmatprep.subr.bf16.mxu0 %v10094_v51  ;;  %9111 = vmatprep.subr.bf16.mxu1 %v10095_v18  ;;  %v10134_v51 = vld [vmem:[#allocation7 + $0x124] ss:$12 sps:$4 sm:$0xff]  }
 0x569   :  { %v10135_v18 = vld [vmem:[#allocation7 + $0x290] ss:$12 sps:$4 sm:$0xff]  }
 0x56b   :  { %7194 = vmatpush1.bf16.msra.mxu0 %v10092_v8  ;;  %9112 = vmatpush3.bf16.msra.mxu1 %v10096_v10  ;;  %v10132_v8 = vld [vmem:[#allocation7 + $0x120] ss:$12 sps:$4 sm:$0xff]   ;;  %v10136_v10 = vld [vmem:[#allocation7 + $0x1d0] ss:$12 sps:$4 sm:$0xff]  }
 0x56c   :  { %7195 = vmatprep.subr.bf16.mxu0 %v10099_v0  ;;  %9113 = vmatprep.subr.bf16.mxu1 %v10100_v14  ;;  %v10139_v0 = vld [vmem:[#allocation7 + $0x13c] ss:$12 sps:$4 sm:$0xff]  }
 0x56d   :  { %v5148_v21 = vpop.f32.mrb[84].mxu0  ;;  %v10140_v14 = vld [vmem:[#allocation7 + $0x2a8] ss:$12 sps:$4 sm:$0xff]  }
 0x56e   :  { %v5149_v22 = vadd.f32 %v5148_v21, %v12298_v58  ;;  %v5150_v41 = vpop.f32.mrb[85].mxu0  ;;  %v10145_v21 = vld [vmem:[#allocation7 + $0x2c0] ss:$12 sps:$4 sm:$0xff]  }
 0x56f   :  { %v5151_v19 = vadd.f32 %v5150_v41, %v12300_v5  ;;  %v5152_v60 = vpop.f32.mrb[86].mxu0  ;;  %7196 = vmatpush1.bf16.msra.mxu0 %v10097_v47  ;;  %9114 = vmatpush3.bf16.msra.mxu1 %v10101_v17  ;;  %v4667_v5 = vadd.f32 %v12230_v15, %v12353_v44  ;;  %v10119_v15 = vld [vmem:[#allocation7 + $0xdc] ss:$12 sps:$4 sm:$0xff]   ;;  %v3582_v47 = vsub.s32 2, %v11510_v3  ;;  %v10137_v17 = vld [vmem:[#allocation7 + $0x138] ss:$12 sps:$4 sm:$0xff]  }
 0x570   :  { %v5153_v28 = vpop.f32.mrb[87].mxu0  ;;  %7197 = vmatprep.subr.bf16.mxu0 %v10104_v13  ;;  %9115 = vmatprep.subr.bf16.mxu1 %v10105_v9  ;;  %v10141_v13 = vld [vmem:[#allocation7 + $0x1e8] ss:$12 sps:$4 sm:$0xff]   ;;  %v10379_v3 = vld [vmem:[#allocation10 + $0x88] sm:$0xff]  }
 0x571   :  { %v5189_v40 = vpop.f32.mrb[84].mxu1  ;;  %v4673_v34 = vmul.f32 0.01, %v4667_v5  ;;  %vm4670_vm8 = vcmp.ge.f32.partialorder %v4667_v5, 0.0  ;;  %v10144_v9 = vld [vmem:[#allocation7 + $0x154] ss:$12 sps:$4 sm:$0xff]   ;;  %v12375_v41 = vrot.slane %v12333_v25, %v3582_v47 }
 0x572   :  { %v12359_v32 = vadd.f32 %v5189_v40, %v5149_v22  ;;  %v5191_v58 = vpop.f32.mrb[85].mxu1  ;;  %v10142_v28 = vld [vmem:[#allocation7 + $0x150] ss:$12 sps:$4 sm:$0xff]   ;;  %v10150_v40 = vld [vmem:[#allocation7 + $0x2d8] ss:$12 sps:$4 sm:$0xff]  }
 0x573   :  { %v12363_v57 = vadd.f32 %v5191_v58, %v5151_v19  ;;  %7198 = vmatpush1.bf16.msra.mxu0 %v10102_v6  ;;  %9116 = vmatpush3.bf16.msra.mxu1 %v10106_v36  ;;  %v5193_v27 = vpop.f32.mrb[86].mxu1  ;;  %v4676_v31 = vsel %vm4670_vm8, %v4667_v5, %v4673_v34  ;;  %v3589_v25 = vadd.f32 %v12375_v41, %v12022_v4  ;;  %v10152_v4 = vld [vmem:[#allocation7 + $0x180] ss:$12 sps:$4 sm:$0xff]   ;;  %v10159_v34 = vld [vmem:[#allocation7 + $0x19c] ss:$12 sps:$4 sm:$0xff]  }
 0x574   :  { %7199 = vmatprep.subr.bf16.mxu0 %v10109_v11  ;;  %9117 = vmatprep.subr.bf16.mxu1 %v10110_v2  ;;  %v5194_v1 = vpop.f32.mrb[87].mxu1  ;;  %v12368_v16 = vpack.c.bf16 %v4676_v31, %v4676_v31  ;;  %v10146_v11 = vld [vmem:[#allocation7 + $0x200] ss:$12 sps:$4 sm:$0xff]   ;;  %v4669_v5 = vadd.f32 %v12259_v49, %v12375_v41 }
 0x575   :  { %vm3592_vm9 = vcmp.ge.f32.partialorder %v3589_v25, 0.0  ;;  %v10164_v31 = vld [vmem:[#allocation7 + $0x1b4] ss:$12 sps:$4 sm:$0xff]  }
 0x576   :  { %v4675_v49 = vmul.f32 0.01, %v4669_v5  ;;  %vm4672_vm10 = vcmp.ge.f32.partialorder %v4669_v5, 0.0 }
 0x577   :  { %7200 = vmatpush1.bf16.msra.mxu0 %v10107_v39  ;;  %9118 = vmatpush3.bf16.msra.mxu1 %v10111_v63  ;;  %v10147_v39 = vld [vmem:[#allocation7 + $0x168] ss:$12 sps:$4 sm:$0xff]   ;;  %v10151_v63 = vld [vmem:[#allocation7 + $0x218] ss:$12 sps:$4 sm:$0xff]  }
 0x578   :  { %7201 = vmatprep.subr.bf16.mxu0 %v10114_v42  ;;  %9119 = vmatprep.subr.bf16.mxu1 %v10115_v38  ;;  %v10154_v42 = vld [vmem:[#allocation7 + $0x184] ss:$12 sps:$4 sm:$0xff]   ;;  %v4678_v37 = vsel %vm4672_vm10, %v4669_v5, %v4675_v49 }
 0x579   :  { %v10155_v38 = vld [vmem:[#allocation7 + $0x2f0] ss:$12 sps:$4 sm:$0xff]  }
 0x57b   :  { %7202 = vmatpush1.bf16.msra.mxu0 %v10112_v26  ;;  %9120 = vmatpush3.bf16.msra.mxu1 %v10116_v46  ;;  %v3595_v26 = vmul.f32 0.01, %v3589_v25  ;;  %v10156_v46 = vld [vmem:[#allocation7 + $0x230] ss:$12 sps:$4 sm:$0xff]  }
 0x57c   :  { %7203 = vmatprep.subr.bf16.mxu0 %v10119_v15  ;;  %9127 = vmatprep.subr.bf16.mxu1 %v10120_v52  ;;  %v10160_v15 = vld [vmem:[#allocation7 + $0x3c8] ss:$12 sps:$4 sm:$0xff]  }
 0x57d   :  { %v3598_v52 = vsel %vm3592_vm9, %v3589_v25, %v3595_v26  ;;  %v4668_v25 = vadd.f32 %v12233_v62, %v12339_v53  ;;  %v10196_v62 = vld [vmem:[#allocation7 + $0x3b0] ss:$12 sps:$4 sm:$0xff]  }
 0x57e   :  { %7423 = vmatmul.mubr.bf16.vlgmr.msra.gmra.mrb[108].mxu1 %v12365_v56  ;;  %v10199_v26 = vld [vmem:[#allocation7 + $0x25c] ss:$12 sps:$4 sm:$0xff]  }
 0x57f   :  { %7204 = vmatpush1.bf16.msra.mxu0 %v10117_v35  ;;  %9128 = vmatpush3.bf16.msra.mxu1 %v10121_v33  ;;  %v10161_v35 = vld [vmem:[#allocation7 + $0x308] ss:$12 sps:$4 sm:$0xff]   ;;  %v12392_v33 = vpack.c.bf16 %v3598_v52, %v3598_v52  ;;  %vm4671_vm11 = vcmp.ge.f32.partialorder %v4668_v25, 0.0 }
 0x580   :  { %7462 = vmatprep.mubr.bf16.mxu1 %v12368_v16  ;;  %7205 = vmatprep.subr.bf16.mxu0 %v10124_v7  ;;  %v10165_v7 = vld [vmem:[#allocation7 + $0x3e0] ss:$12 sps:$4 sm:$0xff]  }
 0x581   :  { %9129 = vmatprep.subr.bf16.mxu1 %v10125_v12  ;;  %v12394_v12 = vpack.c.bf16 %v4678_v37, %v4678_v37  ;;  %v10200_v37 = vld [vmem:[#allocation7 + $0x270] ss:$12 sps:$4 sm:$0xff]  }
 0x583   :  { %7206 = vmatpush1.bf16.msra.mxu0 %v10122_v29  ;;  %9130 = vmatpush3.bf16.msra.mxu1 %v10126_v59  ;;  %v10169_v29 = vld [vmem:[#allocation7 + $0x1cc] ss:$12 sps:$4 sm:$0xff]  }
 0x584   :  { %7207 = vmatprep.subr.bf16.mxu0 %v10129_v24  ;;  %9131 = vmatprep.subr.bf16.mxu1 %v10130_v30  ;;  %v10170_v59 = vld [vmem:[#allocation7 + $0x3f8] ss:$12 sps:$4 sm:$0xff]   ;;  %v10167_v24 = vld [vmem:[#allocation7 + $0x1c8] ss:$12 sps:$4 sm:$0xff]  }
 0x585   :  { %v10171_v30 = vld [vmem:[#allocation7 + $0x338] ss:$12 sps:$4 sm:$0xff]  }
 0x587   :  { %7208 = vmatpush1.bf16.msra.mxu0 %v10127_v23  ;;  %9132 = vmatpush3.bf16.msra.mxu1 %v10131_v20  ;;  %v10174_v23 = vld [vmem:[#allocation7 + $0x1e4] ss:$12 sps:$4 sm:$0xff]  }
 0x588   :  { %7209 = vmatprep.subr.bf16.mxu0 %v10134_v51  ;;  %9133 = vmatprep.subr.bf16.mxu1 %v10135_v18  ;;  %v10175_v20 = vld [vmem:[#allocation7 + $0x410] ss:$12 sps:$4 sm:$0xff]   ;;  %v10172_v51 = vld [vmem:[#allocation7 + $0x1e0] ss:$12 sps:$4 sm:$0xff]  }
 0x589   :  { %v10176_v18 = vld [vmem:[#allocation7 + $0x350] ss:$12 sps:$4 sm:$0xff]  }
 0x58b   :  { %7210 = vmatpush1.bf16.msra.mxu0 %v10132_v8  ;;  %9134 = vmatpush3.bf16.msra.mxu1 %v10136_v10  ;;  %v10179_v8 = vld [vmem:[#allocation7 + $0x1fc] ss:$12 sps:$4 sm:$0xff]  }
 0x58c   :  { %7211 = vmatprep.subr.bf16.mxu0 %v10139_v0  ;;  %9135 = vmatprep.subr.bf16.mxu1 %v10140_v14  ;;  %v10180_v10 = vld [vmem:[#allocation7 + $0x428] ss:$12 sps:$4 sm:$0xff]   ;;  %v10177_v0 = vld [vmem:[#allocation7 + $0x1f8] ss:$12 sps:$4 sm:$0xff]  }
 0x58d   :  { %v5230_v22 = vpop.f32.mrb[88].mxu0  ;;  %v10181_v14 = vld [vmem:[#allocation7 + $0x368] ss:$12 sps:$4 sm:$0xff]  }
 0x58e   :  { %v12378_v19 = vadd.f32 %v5230_v22, %v12359_v32  ;;  %v5232_v60 = vpop.f32.mrb[89].mxu0 }
 0x58f   :  { %v12381_v6 = vadd.f32 %v5232_v60, %v12363_v57  ;;  %v5234_v36 = vpop.f32.mrb[90].mxu0  ;;  %7212 = vmatpush1.bf16.msra.mxu0 %v10137_v17  ;;  %9136 = vmatpush3.bf16.msra.mxu1 %v10141_v13  ;;  %v10184_v17 = vld [vmem:[#allocation7 + $0x214] ss:$12 sps:$4 sm:$0xff]  }
 0x590   :  { %v5235_v2 = vpop.f32.mrb[91].mxu0  ;;  %7213 = vmatprep.subr.bf16.mxu0 %v10144_v9  ;;  %9137 = vmatprep.subr.bf16.mxu1 %v10145_v21  ;;  %v10185_v9 = vld [vmem:[#allocation7 + $0x440] ss:$12 sps:$4 sm:$0xff]   ;;  %v10182_v36 = vld [vmem:[#allocation7 + $0x210] ss:$12 sps:$4 sm:$0xff]  }
 0x591   :  { %v9015_v58 = vpop.f32.mrb[88].mxu1  ;;  %v10189_v2 = vld [vmem:[#allocation7 + $0x22c] ss:$12 sps:$4 sm:$0xff]  }
 0x592   :  { %v9016_v32 = vpop.f32.mrb[89].mxu1 }
 0x593   :  { %v9017_v57 = vadd.f32 %v9016_v32, %v9015_v58  ;;  %7214 = vmatpush1.bf16.msra.mxu0 %v10142_v28  ;;  %9138 = vmatpush3.bf16.msra.mxu1 %v10146_v11  ;;  %v9018_v27 = vpop.f32.mrb[90].mxu1  ;;  %v10186_v11 = vld [vmem:[#allocation7 + $0x380] ss:$12 sps:$4 sm:$0xff]   ;;  %v10190_v58 = vld [vmem:[#allocation7 + $0x458] ss:$12 sps:$4 sm:$0xff]  }
 0x594   :  { %7215 = vmatprep.subr.bf16.mxu0 %v10149_v54  ;;  %9139 = vmatprep.subr.bf16.mxu1 %v10150_v40  ;;  %v9019_v1 = vpop.f32.mrb[91].mxu1  ;;  %v10194_v27 = vld [vmem:[#allocation7 + $0x244] ss:$12 sps:$4 sm:$0xff]  }
 0x595   :  { %v12388_v48 = vadd.f32 %v9017_v57, %v12318_v61  ;;  %v10157_v61 = vld [vmem:[#allocation7 + $0x198] ss:$12 sps:$4 sm:$0xff]   ;;  %v10187_v57 = vld [vmem:[#allocation7 + $0x228] ss:$12 sps:$4 sm:$0xff]   ;;  %v4674_v1 = vmul.f32 0.01, %v4668_v25 }
 0x597   :  { %7216 = vmatpush1.bf16.msra.mxu0 %v10147_v39  ;;  %9140 = vmatpush3.bf16.msra.mxu1 %v10151_v63  ;;  %v10191_v63 = vld [vmem:[#allocation7 + $0x398] ss:$12 sps:$4 sm:$0xff]   ;;  %v4677_v49 = vsel %vm4671_vm11, %v4668_v25, %v4674_v1  ;;  %v10227_v25 = vld [vmem:[#allocation7 + $0x348] ss:$12 sps:$4 sm:$0xff]  }
 0x598   :  { %7226 = vmatprep.subr.bf16.mxu0 %v10154_v42  ;;  %9141 = vmatprep.subr.bf16.mxu1 %v10155_v38  ;;  %v10195_v38 = vld [vmem:[#allocation7 + $0x470] ss:$12 sps:$4 sm:$0xff]   ;;  %v12403_v52 = vpack.c.bf16 %v4677_v49, %v4677_v49 }
 0x59a   :  { %7218 = vmatmul.mubr.bf16.vlgmr.msra.gmra.mrb[108].mxu0 %v12365_v56  ;;  %v10162_v56 = vld [vmem:[#allocation7 + $0x1b0] ss:$12 sps:$4 sm:$0xff]  }
 0x59b   :  { %7227 = vmatpush1.bf16.msra.mxu0 %v10152_v4  ;;  %7258 = vmatprep.mubr.bf16.mxu0 %v12368_v16  ;;  %v10166_v16 = vld [vmem:[#allocation7 + $0x320] ss:$12 sps:$4 sm:$0xff]   ;;  %v10245_v4 = vld [vmem:[#allocation7 + $0x548] ss:$12 sps:$4 sm:$0xff]  }
 0x59c   :  { %9142 = vmatpush3.bf16.msra.mxu1 %v10156_v46  ;;  %7228 = vmatprep.subr.bf16.mxu0 %v10159_v34  ;;  %v10197_v46 = vld [vmem:[#allocation7 + $0x258] ss:$12 sps:$4 sm:$0xff]   ;;  %v10202_v34 = vld [vmem:[#allocation7 + $0x274] ss:$12 sps:$4 sm:$0xff]  }
 0x59d   :  { %9149 = vmatprep.subr.bf16.mxu1 %v10160_v15  ;;  %v10246_v15 = vld [vmem:[#allocation7 + $0x488] ss:$12 sps:$4 sm:$0xff]  }
 0x59f   :  { %7463 = vmatmul.mubr.bf16.vlgmr.msra.gmra.mrb[112].mxu1 %v12392_v33  ;;  %7229 = vmatpush1.bf16.msra.mxu0 %v10157_v61  ;;  %v10250_v61 = vld [vmem:[#allocation7 + $0x560] ss:$12 sps:$4 sm:$0xff]  }
 0x5a0   :  { %9150 = vmatpush3.bf16.msra.mxu1 %v10161_v35  ;;  %7502 = vmatprep.mubr.bf16.mxu1 %v12394_v12  ;;  %v10205_v35 = vld [vmem:[#allocation7 + $0x28c] ss:$12 sps:$4 sm:$0xff]  }
 0x5a1   :  { %7230 = vmatprep.subr.bf16.mxu0 %v10164_v31  ;;  %9151 = vmatprep.subr.bf16.mxu1 %v10165_v7  ;;  %v10251_v31 = vld [vmem:[#allocation7 + $0x4a0] ss:$12 sps:$4 sm:$0xff]   ;;  %v10255_v7 = vld [vmem:[#allocation7 + $0x578] ss:$12 sps:$4 sm:$0xff]  }
 0x5a3   :  { %7231 = vmatpush1.bf16.msra.mxu0 %v10162_v56  ;;  %v10203_v56 = vld [vmem:[#allocation7 + $0x288] ss:$12 sps:$4 sm:$0xff]  }
 0x5a4   :  { %9152 = vmatpush3.bf16.msra.mxu1 %v10166_v16  ;;  %7232 = vmatprep.subr.bf16.mxu0 %v10169_v29  ;;  %v10208_v16 = vld [vmem:[#allocation7 + $0x2a4] ss:$12 sps:$4 sm:$0xff]  }
 0x5a5   :  { %9153 = vmatprep.subr.bf16.mxu1 %v10170_v59  ;;  %v10256_v29 = vld [vmem:[#allocation7 + $0x4b8] ss:$12 sps:$4 sm:$0xff]   ;;  %v10260_v59 = vld [vmem:[#allocation7 + $0x590] ss:$12 sps:$4 sm:$0xff]  }
 0x5a7   :  { %7233 = vmatpush1.bf16.msra.mxu0 %v10167_v24  ;;  %v10206_v24 = vld [vmem:[#allocation7 + $0x2a0] ss:$12 sps:$4 sm:$0xff]  }
 0x5a8   :  { %9154 = vmatpush3.bf16.msra.mxu1 %v10171_v30  ;;  %7234 = vmatprep.subr.bf16.mxu0 %v10174_v23  ;;  %v10211_v30 = vld [vmem:[#allocation7 + $0x2bc] ss:$12 sps:$4 sm:$0xff]  }
 0x5a9   :  { %9155 = vmatprep.subr.bf16.mxu1 %v10175_v20  ;;  %v10261_v23 = vld [vmem:[#allocation7 + $0x4d0] ss:$12 sps:$4 sm:$0xff]   ;;  %v10265_v20 = vld [vmem:[#allocation7 + $0x5a8] ss:$12 sps:$4 sm:$0xff]  }
 0x5ab   :  { %7235 = vmatpush1.bf16.msra.mxu0 %v10172_v51  ;;  %v10209_v51 = vld [vmem:[#allocation7 + $0x2b8] ss:$12 sps:$4 sm:$0xff]  }
 0x5ac   :  { %9156 = vmatpush3.bf16.msra.mxu1 %v10176_v18  ;;  %7236 = vmatprep.subr.bf16.mxu0 %v10179_v8  ;;  %v10214_v18 = vld [vmem:[#allocation7 + $0x2d4] ss:$12 sps:$4 sm:$0xff]  }
 0x5ad   :  { %v9037_v13 = vpop.f32.mrb[92].mxu0  ;;  %9157 = vmatprep.subr.bf16.mxu1 %v10180_v10  ;;  %v10266_v8 = vld [vmem:[#allocation7 + $0x4e8] ss:$12 sps:$4 sm:$0xff]   ;;  %v10270_v10 = vld [vmem:[#allocation7 + $0x5c0] ss:$12 sps:$4 sm:$0xff]  }
 0x5ae   :  { %v9038_v21 = vpop.f32.mrb[93].mxu0 }
 0x5af   :  { %v9039_v22 = vadd.f32 %v9038_v21, %v9037_v13  ;;  %v9040_v60 = vpop.f32.mrb[94].mxu0  ;;  %7237 = vmatpush1.bf16.msra.mxu0 %v10177_v0  ;;  %v10212_v0 = vld [vmem:[#allocation7 + $0x2d0] ss:$12 sps:$4 sm:$0xff]   ;;  %v10275_v13 = vld [vmem:[#allocation7 + $0x5d8] ss:$12 sps:$4 sm:$0xff]  }
 0x5b0   :  { %9158 = vmatpush3.bf16.msra.mxu1 %v10181_v14  ;;  %v9041_v28 = vpop.f32.mrb[95].mxu0  ;;  %7238 = vmatprep.subr.bf16.mxu0 %v10184_v17  ;;  %v10217_v14 = vld [vmem:[#allocation7 + $0x2ec] ss:$12 sps:$4 sm:$0xff]   ;;  %v10220_v21 = vld [vmem:[#allocation7 + $0x304] ss:$12 sps:$4 sm:$0xff]  }
 0x5b1   :  { %v5312_v54 = vadd.f32 %v9039_v22, %v12388_v48  ;;  %v5351_v40 = vpop.f32.mrb[92].mxu1  ;;  %9159 = vmatprep.subr.bf16.mxu1 %v10185_v9  ;;  %v10192_v48 = vld [vmem:[#allocation7 + $0x240] ss:$12 sps:$4 sm:$0xff]   ;;  %v10215_v9 = vld [vmem:[#allocation7 + $0x2e8] ss:$12 sps:$4 sm:$0xff]  }
 0x5b2   :  { %v9400_v32 = vpop.f32.mrb[93].mxu1  ;;  %v10271_v17 = vld [vmem:[#allocation7 + $0x500] ss:$12 sps:$4 sm:$0xff]   ;;  %v10276_v22 = vld [vmem:[#allocation7 + $0x518] ss:$12 sps:$4 sm:$0xff]  }
 0x5b3   :  { %v12401_v5 = vadd.f32 %v5351_v40, %v5312_v54  ;;  %7239 = vmatpush1.bf16.msra.mxu0 %v10182_v36  ;;  %v5354_v39 = vpop.f32.mrb[94].mxu1  ;;  %v10280_v60 = vld [vmem:[#allocation7 + $0x5f0] ss:$12 sps:$4 sm:$0xff]   ;;  %v10218_v36 = vld [vmem:[#allocation7 + $0x300] ss:$12 sps:$4 sm:$0xff]  }
 0x5b4   :  { %9160 = vmatpush3.bf16.msra.mxu1 %v10186_v11  ;;  %7240 = vmatprep.subr.bf16.mxu0 %v10189_v2  ;;  %v9401_v42 = vpop.f32.mrb[95].mxu1  ;;  %v10223_v28 = vld [vmem:[#allocation7 + $0x31c] ss:$12 sps:$4 sm:$0xff]   ;;  %v10221_v2 = vld [vmem:[#allocation7 + $0x318] ss:$12 sps:$4 sm:$0xff]  }
 0x5b5   :  { %9161 = vmatprep.subr.bf16.mxu1 %v10190_v58  ;;  %v10281_v11 = vld [vmem:[#allocation7 + $0x530] ss:$12 sps:$4 sm:$0xff]   ;;  %v10226_v54 = vld [vmem:[#allocation7 + $0x334] ss:$12 sps:$4 sm:$0xff]   ;;  %v10229_v58 = vld [vmem:[#allocation7 + $0x34c] ss:$12 sps:$4 sm:$0xff]  }
 0x5b6   :  { %v10224_v40 = vld [vmem:[#allocation7 + $0x330] ss:$12 sps:$4 sm:$0xff]   ;;  %v10238_v39 = vld [vmem:[#allocation7 + $0x394] ss:$12 sps:$4 sm:$0xff]  }
 0x5b7   :  { %7241 = vmatpush1.bf16.msra.mxu0 %v10187_v57  ;;  %v10232_v32 = vld [vmem:[#allocation7 + $0x364] ss:$12 sps:$4 sm:$0xff]   ;;  %v10230_v57 = vld [vmem:[#allocation7 + $0x360] ss:$12 sps:$4 sm:$0xff]  }
 0x5b8   :  { %9162 = vmatpush3.bf16.msra.mxu1 %v10191_v63  ;;  %7242 = vmatprep.subr.bf16.mxu0 %v10194_v27 }
 0x5b9   :  { %9163 = vmatprep.subr.bf16.mxu1 %v10195_v38  ;;  %v10236_v38 = vld [vmem:[#allocation7 + $0x390] ss:$12 sps:$4 sm:$0xff]  }
 0x5bb   :  { %7243 = vmatpush1.bf16.msra.mxu0 %v10192_v48  ;;  %v10241_v48 = vld [vmem:[#allocation7 + $0x3ac] ss:$12 sps:$4 sm:$0xff]  }
 0x5bc   :  { %9164 = vmatpush3.bf16.msra.mxu1 %v10196_v62  ;;  %7244 = vmatprep.subr.bf16.mxu0 %v10199_v26 }
 0x5bd   :  { %9171 = vmatprep.subr.bf16.mxu1 %v10245_v4 }
 0x5bf   :  { %7503 = vmatmul.mubr.bf16.vlgmr.msra.gmra.mrb[116].mxu1 %v12403_v52  ;;  %7245 = vmatpush1.bf16.msra.mxu0 %v10197_v46 }
 0x5c0   :  { %7246 = vmatprep.subr.bf16.mxu0 %v10202_v34  ;;  %9172 = vmatpush3.bf16.msra.mxu1 %v10246_v15  ;;  %v10239_v34 = vld [vmem:[#allocation7 + $0x3a8] ss:$12 sps:$4 sm:$0xff]  }
 0x5c1   :  { %9173 = vmatprep.subr.bf16.mxu1 %v10250_v61  ;;  %v10244_v61 = vld [vmem:[#allocation7 + $0x3c4] ss:$12 sps:$4 sm:$0xff]  }
 0x5c3   :  { %7247 = vmatpush1.bf16.msra.mxu0 %v10200_v37  ;;  %v10242_v37 = vld [vmem:[#allocation7 + $0x3c0] ss:$12 sps:$4 sm:$0xff]  }
 0x5c4   :  { %7248 = vmatprep.subr.bf16.mxu0 %v10205_v35  ;;  %9174 = vmatpush3.bf16.msra.mxu1 %v10251_v31  ;;  %v10249_v35 = vld [vmem:[#allocation7 + $0x3dc] ss:$12 sps:$4 sm:$0xff]   ;;  %v10247_v31 = vld [vmem:[#allocation7 + $0x3d8] ss:$12 sps:$4 sm:$0xff]  }
 0x5c5   :  { %9175 = vmatprep.subr.bf16.mxu1 %v10255_v7  ;;  %v10254_v7 = vld [vmem:[#allocation7 + $0x3f4] ss:$12 sps:$4 sm:$0xff]  }
 0x5c7   :  { %7249 = vmatpush1.bf16.msra.mxu0 %v10203_v56  ;;  %v10252_v56 = vld [vmem:[#allocation7 + $0x3f0] ss:$12 sps:$4 sm:$0xff]  }
 0x5c8   :  { %7250 = vmatprep.subr.bf16.mxu0 %v10208_v16  ;;  %9176 = vmatpush3.bf16.msra.mxu1 %v10256_v29  ;;  %v10259_v16 = vld [vmem:[#allocation7 + $0x40c] ss:$12 sps:$4 sm:$0xff]   ;;  %v10257_v29 = vld [vmem:[#allocation7 + $0x408] ss:$12 sps:$4 sm:$0xff]  }
 0x5c9   :  { %9177 = vmatprep.subr.bf16.mxu1 %v10260_v59  ;;  %v10264_v59 = vld [vmem:[#allocation7 + $0x424] ss:$12 sps:$4 sm:$0xff]  }
 0x5cb   :  { %7251 = vmatpush1.bf16.msra.mxu0 %v10206_v24  ;;  %v10262_v24 = vld [vmem:[#allocation7 + $0x420] ss:$12 sps:$4 sm:$0xff]  }
 0x5cc   :  { %7252 = vmatprep.subr.bf16.mxu0 %v10211_v30  ;;  %9178 = vmatpush3.bf16.msra.mxu1 %v10261_v23  ;;  %v10269_v30 = vld [vmem:[#allocation7 + $0x43c] ss:$12 sps:$4 sm:$0xff]   ;;  %v10267_v23 = vld [vmem:[#allocation7 + $0x438] ss:$12 sps:$4 sm:$0xff]  }
 0x5cd   :  { %9179 = vmatprep.subr.bf16.mxu1 %v10265_v20  ;;  %v10274_v20 = vld [vmem:[#allocation7 + $0x454] ss:$12 sps:$4 sm:$0xff]  }
 0x5cf   :  { %7253 = vmatpush1.bf16.msra.mxu0 %v10209_v51 }
 0x5d0   :  { %7254 = vmatprep.subr.bf16.mxu0 %v10214_v18  ;;  %9180 = vmatpush3.bf16.msra.mxu1 %v10266_v8 }
 0x5d1   :  { %9181 = vmatprep.subr.bf16.mxu1 %v10270_v10 }
 0x5d3   :  { %7255 = vmatpush1.bf16.msra.mxu0 %v10212_v0 }
 0x5d4   :  { %7256 = vmatprep.subr.bf16.mxu0 %v10217_v14  ;;  %9182 = vmatpush3.bf16.msra.mxu1 %v10271_v17  ;;  %v10272_v14 = vld [vmem:[#allocation7 + $0x450] ss:$12 sps:$4 sm:$0xff]  }
 0x5d5   :  { %9183 = vmatprep.subr.bf16.mxu1 %v10275_v13 }
 0x5d7   :  { %7257 = vmatpush1.bf16.msra.mxu0 %v10215_v9  ;;  %v10279_v9 = vld [vmem:[#allocation7 + $0x46c] ss:$12 sps:$4 sm:$0xff]  }
 0x5d8   :  { %7267 = vmatprep.subr.bf16.mxu0 %v10220_v21  ;;  %9184 = vmatpush3.bf16.msra.mxu1 %v10276_v22 }
 0x5d9   :  { %9185 = vmatprep.subr.bf16.mxu1 %v10280_v60 }
 0x5da   :  { %7259 = vmatmul.mubr.bf16.vlgmr.msra.gmra.mrb[108].mxu0 %v12392_v33  ;;  %v10235_v33 = vld [vmem:[#allocation7 + $0x37c] ss:$12 sps:$4 sm:$0xff]  }
 0x5db   :  { %7268 = vmatpush1.bf16.msra.mxu0 %v10218_v36  ;;  %7299 = vmatprep.mubr.bf16.mxu0 %v12394_v12  ;;  %v10233_v12 = vld [vmem:[#allocation7 + $0x378] ss:$12 sps:$4 sm:$0xff]  }
 0x5dc   :  { %7269 = vmatprep.subr.bf16.mxu0 %v10223_v28  ;;  %9186 = vmatpush3.bf16.msra.mxu1 %v10281_v11 }
 0x5dd   :  { %9422 = vmatprep.subr.bf16.mxu1 %v11340_v43 }
 0x5df   :  { %7270 = vmatpush1.bf16.msra.mxu0 %v10221_v2 }
 0x5e0   :  { %7271 = vmatprep.subr.bf16.mxu0 %v10226_v54  ;;  %v10277_v54 = vld [vmem:[#allocation7 + $0x468] ss:$12 sps:$4 sm:$0xff]  }
 0x5e3   :  { %7272 = vmatpush1.bf16.msra.mxu0 %v10224_v40 }
 0x5e4   :  { %7273 = vmatprep.subr.bf16.mxu0 %v10229_v58 }
 0x5e7   :  { %7274 = vmatpush1.bf16.msra.mxu0 %v10227_v25 }
 0x5e8   :  { %7275 = vmatprep.subr.bf16.mxu0 %v10232_v32 }
 0x5eb   :  { %7276 = vmatpush1.bf16.msra.mxu0 %v10230_v57 }
 0x5ec   :  { %7277 = vmatprep.subr.bf16.mxu0 %v10235_v33  ;;  %v10287_v33 = vld [vmem:[#allocation7 + $0x49c] ss:$12 sps:$4 sm:$0xff]  }
 0x5ed   :  { %v5501_v63 = vpop.f32.mrb[96].mxu0 }
 0x5ee   :  { %v5503_v27 = vpop.f32.mrb[97].mxu0 }
 0x5ef   :  { %v5505_v42 = vpop.f32.mrb[98].mxu0  ;;  %7278 = vmatpush1.bf16.msra.mxu0 %v10233_v12 }
 0x5f0   :  { %v5506_v1 = vpop.f32.mrb[99].mxu0  ;;  %7279 = vmatprep.subr.bf16.mxu0 %v10238_v39  ;;  %v10285_v39 = vld [vmem:[#allocation7 + $0x498] ss:$12 sps:$4 sm:$0xff]   ;;  %v10289_v42 = vld [vmem:[#allocation7 + $0x4b0] ss:$12 sps:$4 sm:$0xff]  }
 0x5f1   :  { %v5542_v62 = vpop.f32.mrb[96].mxu1  ;;  %v10293_v1 = vld [vmem:[#allocation7 + $0x4c8] ss:$12 sps:$4 sm:$0xff]  }
 0x5f2   :  { %v5543_v26 = vadd.f32 %v5542_v62, %v5501_v63  ;;  %v5544_v4 = vpop.f32.mrb[97].mxu1  ;;  %v10291_v63 = vld [vmem:[#allocation7 + $0x4b4] ss:$12 sps:$4 sm:$0xff]   ;;  %v10300_v62 = vld [vmem:[#allocation7 + $0x650] ss:$12 sps:$4 sm:$0xff]  }
 0x5f3   :  { %v5545_v49 = vadd.f32 %v5544_v4, %v5503_v27  ;;  %v5546_v46 = vpop.f32.mrb[98].mxu1  ;;  %7280 = vmatpush1.bf16.msra.mxu0 %v10236_v38  ;;  %v10292_v27 = vld [vmem:[#allocation7 + $0x620] ss:$12 sps:$4 sm:$0xff]   ;;  %v10296_v38 = vld [vmem:[#allocation7 + $0x638] ss:$12 sps:$4 sm:$0xff]  }
 0x5f4   :  { %v5547_v15 = vpop.f32.mrb[99].mxu1  ;;  %7281 = vmatprep.subr.bf16.mxu0 %v10241_v48  ;;  %v10299_v48 = vld [vmem:[#allocation7 + $0x4e4] ss:$12 sps:$4 sm:$0xff]   ;;  %v10303_v4 = vld [vmem:[#allocation7 + $0x4fc] ss:$12 sps:$4 sm:$0xff]  }
 0x5f5   :  { %v10301_v46 = vld [vmem:[#allocation7 + $0x4f8] ss:$12 sps:$4 sm:$0xff]  }
 0x5f7   :  { %7282 = vmatpush1.bf16.msra.mxu0 %v10239_v34  ;;  %v10307_v34 = vld [vmem:[#allocation7 + $0x514] ss:$12 sps:$4 sm:$0xff]  }
 0x5f8   :  { %7283 = vmatprep.subr.bf16.mxu0 %v10244_v61  ;;  %v10308_v61 = vld [vmem:[#allocation7 + $0x680] ss:$12 sps:$4 sm:$0xff]  }
 0x5fb   :  { %7284 = vmatpush1.bf16.msra.mxu0 %v10242_v37 }
 0x5fc   :  { %7285 = vmatprep.subr.bf16.mxu0 %v10249_v35 }
 0x5ff   :  { %7286 = vmatpush1.bf16.msra.mxu0 %v10247_v31 }
 0x600   :  { %7287 = vmatprep.subr.bf16.mxu0 %v10254_v7  ;;  %v10305_v7 = vld [vmem:[#allocation7 + $0x510] ss:$12 sps:$4 sm:$0xff]  }
 0x603   :  { %7288 = vmatpush1.bf16.msra.mxu0 %v10252_v56 }
 0x604   :  { %7289 = vmatprep.subr.bf16.mxu0 %v10259_v16  ;;  %v10311_v16 = vld [vmem:[#allocation7 + $0x52c] ss:$12 sps:$4 sm:$0xff]  }
 0x607   :  { %7290 = vmatpush1.bf16.msra.mxu0 %v10257_v29 }
 0x608   :  { %7291 = vmatprep.subr.bf16.mxu0 %v10264_v59 }
 0x60b   :  { %7292 = vmatpush1.bf16.msra.mxu0 %v10262_v24  ;;  %v10312_v24 = vld [vmem:[#allocation7 + $0x698] ss:$12 sps:$4 sm:$0xff]  }
 0x60c   :  { %7293 = vmatprep.subr.bf16.mxu0 %v10269_v30 }
 0x60d   :  { %v5583_v51 = vpop.f32.mrb[100].mxu0 }
 0x60e   :  { %v5584_v18 = vadd.f32 %v5583_v51, %v5543_v26  ;;  %v5585_v8 = vpop.f32.mrb[101].mxu0  ;;  %v10297_v26 = vld [vmem:[#allocation7 + $0x4e0] ss:$12 sps:$4 sm:$0xff]   ;;  %v10309_v51 = vld [vmem:[#allocation7 + $0x528] ss:$12 sps:$4 sm:$0xff]  }
 0x60f   :  { %v5586_v10 = vadd.f32 %v5585_v8, %v5545_v49  ;;  %v5587_v0 = vpop.f32.mrb[102].mxu0  ;;  %7294 = vmatpush1.bf16.msra.mxu0 %v10267_v23  ;;  %v10304_v49 = vld [vmem:[#allocation7 + $0x668] ss:$12 sps:$4 sm:$0xff]   ;;  %v10315_v8 = vld [vmem:[#allocation7 + $0x544] ss:$12 sps:$4 sm:$0xff]  }
 0x610   :  { %v5710_v17 = vadd.f32 %v5584_v18, %v12378_v19  ;;  %v5588_v13 = vpop.f32.mrb[103].mxu0  ;;  %7295 = vmatprep.subr.bf16.mxu0 %v10274_v20  ;;  %v10284_v19 = vld [vmem:[#allocation7 + $0x484] ss:$12 sps:$4 sm:$0xff]  }
 0x611   :  { %v5711_v21 = vadd.f32 %v5586_v10, %v12381_v6  ;;  %v9068_v22 = vpop.f32.mrb[100].mxu1  ;;  %v10282_v6 = vld [vmem:[#allocation7 + $0x480] ss:$12 sps:$4 sm:$0xff]   ;;  %v10316_v0 = vld [vmem:[#allocation7 + $0x6b0] ss:$12 sps:$4 sm:$0xff]  }
 0x612   :  { %v5713_v60 = vadd.f32 %v5710_v17, %v12353_v44  ;;  %v9069_v36 = vpop.f32.mrb[101].mxu1  ;;  %v10313_v17 = vld [vmem:[#allocation7 + $0x540] ss:$12 sps:$4 sm:$0xff]   ;;  %v10319_v13 = vld [vmem:[#allocation7 + $0x55c] ss:$12 sps:$4 sm:$0xff]  }
 0x613   :  { %v5714_v28 = vadd.f32 %v5711_v21, %v12339_v53  ;;  %v12413_v11 = vadd.f32 %v9069_v36, %v9068_v22  ;;  %v9071_v2 = vpop.f32.mrb[102].mxu1  ;;  %7296 = vmatpush1.bf16.msra.mxu0 %v10272_v14  ;;  %v10288_v53 = vld [vmem:[#allocation7 + $0x608] ss:$12 sps:$4 sm:$0xff]   ;;  %v10317_v21 = vld [vmem:[#allocation7 + $0x558] ss:$12 sps:$4 sm:$0xff]  }
 0x614   :  { %vm5716_vm12 = vcmp.ge.f32.partialorder %v5713_v60, 0.0  ;;  %v5719_v40 = vmul.f32 0.01, %v5713_v60  ;;  %v9072_v58 = vpop.f32.mrb[103].mxu1  ;;  %7297 = vmatprep.subr.bf16.mxu0 %v10279_v9  ;;  %v10320_v36 = vld [vmem:[#allocation7 + $0x570] ss:$12 sps:$4 sm:$0xff]  }
 0x615   :  { %vm5717_vm13 = vcmp.ge.f32.partialorder %v5714_v28, 0.0  ;;  %v5720_v25 = vmul.f32 0.01, %v5714_v28  ;;  %v10326_v2 = vld [vmem:[#allocation7 + $0x5a0] ss:$12 sps:$4 sm:$0xff]  }
 0x616   :  { %v5722_v57 = vsel %vm5716_vm12, %v5713_v60, %v5719_v40  ;;  %v10329_v40 = vld [vmem:[#allocation7 + $0x5b8] ss:$12 sps:$4 sm:$0xff]   ;;  %v10334_v58 = vld [vmem:[#allocation7 + $0x5d4] ss:$12 sps:$4 sm:$0xff]  }
 0x617   :  { %7298 = vmatpush1.bf16.msra.mxu0 %v10277_v54  ;;  %v5723_v32 = vsel %vm5717_vm13, %v5714_v28, %v5720_v25  ;;  %v12416_v12 = vpack.c.bf16 %v5722_v57, %v5722_v57  ;;  %v10323_v28 = vld [vmem:[#allocation7 + $0x588] ss:$12 sps:$4 sm:$0xff]   ;;  %v10337_v25 = vld [vmem:[#allocation7 + $0x5ec] ss:$12 sps:$4 sm:$0xff]  }
 0x618   :  { %7308 = vmatprep.subr.bf16.mxu0 %v10284_v19  ;;  %v5726_v44 = vpack.c.bf16 %v5723_v32, %v5723_v32  ;;  %v10331_v54 = vld [vmem:[#allocation7 + $0x5bc] ss:$12 sps:$4 sm:$0xff]  }
 0x619   :  { %v10332_v19 = vld [vmem:[#allocation7 + $0x5d0] ss:$12 sps:$4 sm:$0xff]  }
 0x61a   :  { %7300 = vmatmul.mubr.bf16.vlgmr.msra.gmra.mrb[108].mxu0 %v12403_v52  ;;  %7542 = vmatprep.mubr.bf16.mxu1 %v5726_v44  ;;  %v10295_v52 = vld [vmem:[#allocation7 + $0x4cc] ss:$12 sps:$4 sm:$0xff]  }
 0x61b   :  { %7309 = vmatpush1.bf16.msra.mxu0 %v10282_v6  ;;  %7340 = vmatprep.mubr.bf16.mxu0 %v5726_v44 }
 0x61c   :  { %7543 = vmatmul.mubr.bf16.vlgmr.msra.gmra.mrb[120].mxu1 %v12416_v12  ;;  %7310 = vmatprep.subr.bf16.mxu0 %v10287_v33  ;;  %v10335_v33 = vld [vmem:[#allocation7 + $0x5e8] ss:$12 sps:$4 sm:$0xff]  }
 0x61d   :  { %9423 = vmatpush3.bf16.msra.mxu1 %v10288_v53  ;;  %9438 = vmatprep.mubr.msk.bf16.mxu1 %vm11341_vm1, %v11340_v43 }
 0x61e   :  { %9424 = vmatprep.subr.bf16.mxu1 %v11340_v43 }
 0x61f   :  { %7311 = vmatpush1.bf16.msra.mxu0 %v10285_v39  ;;  %v10340_v39 = vld [vmem:[#allocation7 + $0x604] ss:$12 sps:$4 sm:$0xff]  }
 0x620   :  { %7312 = vmatprep.subr.bf16.mxu0 %v10291_v63  ;;  %v10338_v63 = vld [vmem:[#allocation7 + $0x600] ss:$12 sps:$4 sm:$0xff]  }
 0x621   :  { %9425 = vmatpush3.bf16.msra.mxu1 %v10292_v27  ;;  %v10343_v27 = vld [vmem:[#allocation7 + $0x61c] ss:$12 sps:$4 sm:$0xff]  }
 0x622   :  { %9426 = vmatprep.subr.bf16.mxu1 %v11340_v43 }
 0x623   :  { %7313 = vmatpush1.bf16.msra.mxu0 %v10289_v42  ;;  %v10341_v42 = vld [vmem:[#allocation7 + $0x618] ss:$12 sps:$4 sm:$0xff]  }
 0x624   :  { %7314 = vmatprep.subr.bf16.mxu0 %v10295_v52  ;;  %v10346_v52 = vld [vmem:[#allocation7 + $0x634] ss:$12 sps:$4 sm:$0xff]  }
 0x625   :  { %9427 = vmatpush3.bf16.msra.mxu1 %v10296_v38  ;;  %v10344_v38 = vld [vmem:[#allocation7 + $0x630] ss:$12 sps:$4 sm:$0xff]  }
 0x626   :  { %9428 = vmatprep.subr.bf16.mxu1 %v11340_v43 }
 0x627   :  { %7315 = vmatpush1.bf16.msra.mxu0 %v10293_v1  ;;  %v10349_v1 = vld [vmem:[#allocation7 + $0x64c] ss:$12 sps:$4 sm:$0xff]  }
 0x628   :  { %7316 = vmatprep.subr.bf16.mxu0 %v10299_v48  ;;  %v10347_v48 = vld [vmem:[#allocation7 + $0x648] ss:$12 sps:$4 sm:$0xff]  }
 0x629   :  { %9429 = vmatpush3.bf16.msra.mxu1 %v10300_v62  ;;  %v10352_v62 = vld [vmem:[#allocation7 + $0x664] ss:$12 sps:$4 sm:$0xff]  }
 0x62a   :  { %9430 = vmatprep.subr.bf16.mxu1 %v11340_v43 }
 0x62b   :  { %7317 = vmatpush1.bf16.msra.mxu0 %v10297_v26  ;;  %v10350_v26 = vld [vmem:[#allocation7 + $0x660] ss:$12 sps:$4 sm:$0xff]  }
 0x62c   :  { %7318 = vmatprep.subr.bf16.mxu0 %v10303_v4  ;;  %v10355_v4 = vld [vmem:[#allocation7 + $0x67c] ss:$12 sps:$4 sm:$0xff]  }
 0x62d   :  { %v9090_v15 = vpop.f32.mrb[104].mxu0  ;;  %9431 = vmatpush3.bf16.msra.mxu1 %v10304_v49  ;;  %v10358_v49 = vld [vmem:[#allocation7 + $0x694] ss:$12 sps:$4 sm:$0xff]  }
 0x62e   :  { %v9091_v37 = vpop.f32.mrb[105].mxu0  ;;  %9432 = vmatprep.subr.bf16.mxu1 %v11340_v43 }
 0x62f   :  { %v9092_v35 = vadd.f32 %v9091_v37, %v9090_v15  ;;  %v9093_v31 = vpop.f32.mrb[106].mxu0  ;;  %7319 = vmatpush1.bf16.msra.mxu0 %v10301_v46  ;;  %v12436_v46 = vld [vmem:[#allocation8] sm:$0x7]  ;;  %v10361_v15 = vld [vmem:[#allocation7 + $0x6ac] ss:$12 sps:$4 sm:$0xff]  }
 0x630   :  { %v9094_v56 = vpop.f32.mrb[107].mxu0  ;;  %7320 = vmatprep.subr.bf16.mxu0 %v10307_v34  ;;  %v6029_v34 = vrot.slane %v12436_v46, %v3582_v47 }
 0x631   :  { %v5665_v29 = vadd.f32 %v9092_v35, %v12413_v11  ;;  %v5704_v59 = vpop.f32.mrb[104].mxu1  ;;  %9433 = vmatpush3.bf16.msra.mxu1 %v10308_v61  ;;  %v10328_v11 = vld [vmem:[#allocation7 + $0x5a4] ss:$12 sps:$4 sm:$0xff]   ;;  %v10359_v35 = vld [vmem:[#allocation7 + $0x6a8] ss:$12 sps:$4 sm:$0xff]  }
 0x632   :  { %v9420_v30 = vpop.f32.mrb[105].mxu1  ;;  %9434 = vmatprep.subr.bf16.mxu1 %v11340_v43 }
 0x633   :  { %v5705_v23 = vadd.f32 %v5704_v59, %v5665_v29  ;;  %v5707_v20 = vpop.f32.mrb[106].mxu1  ;;  %7321 = vmatpush1.bf16.msra.mxu0 %v10305_v7 }
 0x634   :  { %v9421_v18 = vpop.f32.mrb[107].mxu1  ;;  %7322 = vmatprep.subr.bf16.mxu0 %v10311_v16 }
 0x635   :  { %v5712_v10 = vadd.f32 %v5705_v23, %v12401_v5  ;;  %9435 = vmatpush3.bf16.msra.mxu1 %v10312_v24  ;;  %v10322_v5 = vld [vmem:[#allocation7 + $0x574] ss:$12 sps:$4 sm:$0xff]   ;;  %v10363_v18 = vld [vmem:[#allocation10] sm:$0xff]  }
 0x636   :  { %9436 = vmatprep.subr.bf16.mxu1 %v11340_v43 }
 0x637   :  { %v5715_v14 = vadd.f32 %v5712_v10, %v12375_v41  ;;  %7323 = vmatpush1.bf16.msra.mxu0 %v10309_v51  ;;  %v10325_v41 = vld [vmem:[#allocation7 + $0x58c] ss:$12 sps:$4 sm:$0xff]   ;;  %v10362_v51 = vld [vmem:[#allocation10 + $0x40] sm:$0xff]  }
 0x638   :  { %7324 = vmatprep.subr.bf16.mxu0 %v10315_v8  ;;  %v10364_v8 = vld [vmem:[#allocation10 + $0x48] sm:$0xff]  }
 0x639   :  { %vm5718_vm14 = vcmp.ge.f32.partialorder %v5715_v14, 0.0  ;;  %v5721_v9 = vmul.f32 0.01, %v5715_v14  ;;  %9437 = vmatpush3.bf16.msra.mxu1 %v10316_v0  ;;  %v10365_v10 = vld [vmem:[#allocation10 + $0x8] sm:$0xff]   ;;  %v10366_v0 = vld [vmem:[#allocation10 + $0x50] sm:$0xff]  }
 0x63a   :  { %9202 = vmatprep.subr.bf16.mxu1 %v10362_v51 }
 0x63b   :  { %7325 = vmatpush1.bf16.msra.mxu0 %v10313_v17  ;;  %v5724_v22 = vsel %vm5718_vm14, %v5715_v14, %v5721_v9  ;;  %v10367_v14 = vld [vmem:[#allocation10 + $0x10] sm:$0xff]   ;;  %v10368_v17 = vld [vmem:[#allocation10 + $0x58] sm:$0xff]   ;;  %v10370_v9 = vld [vmem:[#allocation10 + $0x60] sm:$0xff]  }
 0x63c   :  { %7326 = vmatprep.subr.bf16.mxu0 %v10319_v13  ;;  %v12431_v60 = vpack.c.bf16 %v5724_v22, %v5724_v22  ;;  %v10369_v13 = vld [vmem:[#allocation10 + $0x18] sm:$0xff]   ;;  %v10372_v22 = vld [vmem:[#allocation10 + $0x68] sm:$0xff]  }
 0x63e   :  { %9439 = vmatmul.mubr.bf16.vlgmr.msra.gmra.mrb[124].mxu1 %v12431_v60 }
 0x63f   :  { %7327 = vmatpush1.bf16.msra.mxu0 %v10317_v21  ;;  %9203 = vmatpush3.bf16.msra.mxu1 %v10363_v18  ;;  %v10371_v21 = vld [vmem:[#allocation10 + $0x20] sm:$0xff]  }
 0x640   :  { %7328 = vmatprep.subr.bf16.mxu0 %v10322_v5  ;;  %9204 = vmatprep.subr.bf16.mxu1 %v10364_v8  ;;  %v10374_v5 = vld [vmem:[#allocation10 + $0x70] sm:$0xff]   ;;  %v8594_v8 = vld [vmem:[#allocation11] ss:$0 sm:$0xff] }
 0x643   :  { %7329 = vmatpush1.bf16.msra.mxu0 %v10320_v36  ;;  %9205 = vmatpush3.bf16.msra.mxu1 %v10365_v10  ;;  %v10375_v36 = vld [vmem:[#allocation10 + $0x30] sm:$0xff]  }
 0x644   :  { %7330 = vmatprep.subr.bf16.mxu0 %v10325_v41  ;;  %9206 = vmatprep.subr.bf16.mxu1 %v10366_v0  ;;  %v10376_v41 = vld [vmem:[#allocation10 + $0x78] sm:$0xff]  }
 0x647   :  { %7331 = vmatpush1.bf16.msra.mxu0 %v10323_v28  ;;  %9207 = vmatpush3.bf16.msra.mxu1 %v10367_v14  ;;  %v10377_v28 = vld [vmem:[#allocation10 + $0x38] sm:$0xff]  }
 0x648   :  { %7332 = vmatprep.subr.bf16.mxu0 %v10328_v11  ;;  %9208 = vmatprep.subr.bf16.mxu1 %v10368_v17 }
 0x64b   :  { %7333 = vmatpush1.bf16.msra.mxu0 %v10326_v2  ;;  %9209 = vmatpush3.bf16.msra.mxu1 %v10369_v13 }
 0x64c   :  { %7334 = vmatprep.subr.bf16.mxu0 %v10331_v54  ;;  %9210 = vmatprep.subr.bf16.mxu1 %v10370_v9 }
 0x64f   :  { %7335 = vmatpush1.bf16.msra.mxu0 %v10329_v40  ;;  %9211 = vmatpush3.bf16.msra.mxu1 %v10371_v21 }
 0x650   :  { %7336 = vmatprep.subr.bf16.mxu0 %v10334_v58  ;;  %9212 = vmatprep.subr.bf16.mxu1 %v10372_v22 }
 0x651   :  { %v9121_v6 = vpop.f32.mrb[108].mxu1 }
 0x652   :  { %v9122_v32 = vpop.f32.mrb[109].mxu1 }
 0x653   :  { %v9123_v57 = vadd.f32 %v9122_v32, %v9121_v6  ;;  %7337 = vmatpush1.bf16.msra.mxu0 %v10332_v19  ;;  %v9124_v44 = vpop.f32.mrb[110].mxu1 }
 0x654   :  { %v9125_v53 = vpop.f32.mrb[111].mxu1  ;;  %7338 = vmatprep.subr.bf16.mxu0 %v10337_v25 }
 0x655   :  { %v7425_v31 = vadd.f32 %v9123_v57, %v6029_v34  ;;  %v6025_v53 = vrot.slane %v12436_v46, %v3578_v50  ;;  %v10380_v50 = vld [vmem:[#allocation10 + $0x90] sm:$0xff]  }
 0x656   :  { %v10384_v34 = vld [vmem:[#allocation10 + $0xb0] sm:$0xff]  }
 0x657   :  { %7339 = vmatpush1.bf16.msra.mxu0 %v10335_v33  ;;  %v6021_v33 = vrot.slane %v12436_v46, %v3574_v55  ;;  %v10381_v55 = vld [vmem:[#allocation10 + $0x98] sm:$0xff]   ;;  %v10382_v46 = vld [vmem:[#allocation10 + $0xa0] sm:$0xff]  }
 0x658   :  { %7349 = vmatprep.subr.bf16.mxu0 %v10340_v39 }
 0x65a   :  { %7341 = vmatmul.mubr.bf16.vlgmr.msra.gmra.mrb[108].mxu0 %v12416_v12  ;;  %v10353_v12 = vld [vmem:[#allocation7 + $0x678] ss:$12 sps:$4 sm:$0xff]  }
 0x65b   :  { %7350 = vmatpush1.bf16.msra.mxu0 %v10338_v63  ;;  %7381 = vmatprep.mubr.bf16.mxu0 %v11338_v45  ;;  %v10356_v45 = vld [vmem:[#allocation7 + $0x690] ss:$12 sps:$4 sm:$0xff]  }
 0x65c   :  { %7351 = vmatprep.subr.bf16.mxu0 %v10343_v27 }
 0x65f   :  { %7352 = vmatpush1.bf16.msra.mxu0 %v10341_v42 }
 0x660   :  { %7353 = vmatprep.subr.bf16.mxu0 %v10346_v52 }
 0x663   :  { %7354 = vmatpush1.bf16.msra.mxu0 %v10344_v38 }
 0x664   :  { %7355 = vmatprep.subr.bf16.mxu0 %v10349_v1 }
 0x667   :  { %7356 = vmatpush1.bf16.msra.mxu0 %v10347_v48 }
 0x668   :  { %7357 = vmatprep.subr.bf16.mxu0 %v10352_v62 }
 0x66b   :  { %7358 = vmatpush1.bf16.msra.mxu0 %v10350_v26 }
 0x66c   :  { %7359 = vmatprep.subr.bf16.mxu0 %v10355_v4 }
 0x66f   :  { %7360 = vmatpush1.bf16.msra.mxu0 %v10353_v12  ;;  %v10378_v12 = vld [vmem:[#allocation10 + $0x80] sm:$0xff]  }
 0x670   :  { %7361 = vmatprep.subr.bf16.mxu0 %v10358_v49 }
 0x672   :  { %v9143_v61 = vpop.f32.mrb[112].mxu1 }
 0x673   :  { %v9144_v37 = vpop.f32.mrb[113].mxu1  ;;  %7362 = vmatpush1.bf16.msra.mxu0 %v10356_v45  ;;  %v10383_v45 = vld [vmem:[#allocation10 + $0xa8] sm:$0xff]  }
 0x674   :  { %v9145_v7 = vadd.f32 %v9144_v37, %v9143_v61  ;;  %v9146_v56 = vpop.f32.mrb[114].mxu1  ;;  %7363 = vmatprep.subr.bf16.mxu0 %v10361_v15  ;;  %v10385_v61 = vld [vmem:[#allocation10 + $0xb8] sm:$0xff]  }
 0x675   :  { %v9147_v16 = vpop.f32.mrb[115].mxu1  ;;  %v10388_v56 = vld [vmem:[#allocation13 + $0x10] sm:$0xff]  }
 0x676   :  { %v7465_v29 = vadd.f32 %v9145_v7, %v7425_v31  ;;  %v10386_v31 = vld [vmem:[#allocation13] sm:$0xff]   ;;  %v10387_v7 = vld [vmem:[#allocation13 + $0x8] sm:$0xff]   ;;  %v10389_v16 = vld [vmem:[#allocation13 + $0x18] sm:$0xff]  }
 0x677   :  { %7364 = vmatpush1.bf16.msra.mxu0 %v10359_v35 }
 0x67a   :  { %7382 = vmatmul.mubr.bf16.vlgmr.msra.gmra.mrb[108].mxu0 %v12431_v60  ;;  %v10373_v60 = vld [vmem:[#allocation10 + $0x28] sm:$0xff]  }
 0x67b   :  { %9213 = vmatpush3.bf16.msra.mxu1 %v10373_v60 }
 0x67c   :  { %9214 = vmatprep.subr.bf16.mxu1 %v10374_v5 }
 0x67f   :  { %9215 = vmatpush3.bf16.msra.mxu1 %v10375_v36 }
 0x680   :  { %9216 = vmatprep.subr.bf16.mxu1 %v10376_v41 }
 0x683   :  { %9217 = vmatpush3.bf16.msra.mxu1 %v10377_v28 }
 0x684   :  { %9442 = vmatprep.subr.bf16.mxu1 %v11340_v43 }
 0x692   :  { %v9165_v59 = vpop.f32.mrb[116].mxu1 }
 0x693   :  { %v9166_v24 = vpop.f32.mrb[117].mxu1 }
 0x694   :  { %v9167_v30 = vadd.f32 %v9166_v24, %v9165_v59  ;;  %v9168_v23 = vpop.f32.mrb[118].mxu1  ;;  %v10391_v59 = vld [vmem:[#allocation13 + $0x28] sm:$0xff]   ;;  %v10392_v24 = vld [vmem:[#allocation13 + $0x30] sm:$0xff]  }
 0x695   :  { %v9169_v47 = vpop.f32.mrb[119].mxu1 }
 0x696   :  { %v7505_v20 = vadd.f32 %v9167_v30, %v7465_v29  ;;  %v10390_v29 = vld [vmem:[#allocation13 + $0x20] sm:$0xff]   ;;  %v10393_v30 = vld [vmem:[#allocation13 + $0x38] sm:$0xff]  }
 0x6ef   :  { %v9187_v11 = vpop.f32.mrb[120].mxu1 }
 0x6f0   :  { %v9188_v2 = vpop.f32.mrb[121].mxu1 }
 0x6f1   :  { %v9189_v54 = vadd.f32 %v9188_v2, %v9187_v11  ;;  %v9190_v40 = vpop.f32.mrb[122].mxu1 }
 0x6f2   :  { %v9191_v58 = vpop.f32.mrb[123].mxu1 }
 0x6f3   :  { %v7545_v19 = vadd.f32 %v9189_v54, %v7505_v20 }
 0x711   :  { %v7584_v25 = vpop.f32.mrb[124].mxu1 }
 0x712   :  { %v7585_v6 = vadd.f32 %v7584_v25, %v7545_v19  ;;  %v9440_v32 = vpop.f32.mrb[125].mxu1 }
 0x713   :  { %v7587_v57 = vpop.f32.mrb[126].mxu1 }
 0x714   :  { %v9441_v44 = vpop.f32.mrb[127].mxu1  ;;  %v7595_v15 = vmul.f32 0.01, %v7585_v6  ;;  %vm7592_vm2 = vcmp.ge.f32.partialorder %v7585_v6, 0.0 }
 0x716   :  { %v7598_v37 = vsel %vm7592_vm2, %v7585_v6, %v7595_v15 }
 0x717   :  { %v7601_v35 = vpack.c.bf16 %v7598_v37, %v7598_v37 }
 0x74d   :  { %v7383_v39 = vpop.f32.mrb[108].mxu0 }
 0x74e   :  { %v9482_v63 = vadd.f32 %v7383_v39, %v6021_v33  ;;  %v7385_v27 = vpop.f32.mrb[109].mxu0 }
 0x74f   :  { %v9483_v42 = vadd.f32 %v7385_v27, %v6025_v53  ;;  %v7387_v52 = vpop.f32.mrb[110].mxu0 }
 0x750   :  { %vm7590_vm15 = vcmp.ge.f32.partialorder %v9482_v63, 0.0  ;;  %v7593_v38 = vmul.f32 0.01, %v9482_v63  ;;  %v7388_v1 = vpop.f32.mrb[111].mxu0 }
 0x751   :  { %vm7591_vm0 = vcmp.ge.f32.partialorder %v9483_v42, 0.0  ;;  %v7594_v48 = vmul.f32 0.01, %v9483_v42 }
 0x752   :  { %v7596_v62 = vsel %vm7590_vm15, %v9482_v63, %v7593_v38 }
 0x753   :  { %v7597_v26 = vsel %vm7591_vm0, %v9483_v42, %v7594_v48  ;;  %v7599_v49 = vpack.c.bf16 %v7596_v62, %v7596_v62 }
 0x754   :  { %v7600_v4 = vpack.c.bf16 %v7597_v26, %v7597_v26 }
 0x756   :  { %7833 = vmatprep.mubr.bf16.mxu1 %v7600_v4 }
 0x757   :  { %7834 = vmatmul.mubr.bf16.vlgmr.msra.gmra.mrb[128].mxu1 %v7599_v49 }
 0x758   :  { %9443 = vmatpush3.bf16.msra.mxu1 %v10378_v12  ;;  %9458 = vmatprep.mubr.msk.bf16.mxu1 %vm11341_vm1, %v11340_v43 }
 0x759   :  { %9444 = vmatprep.subr.bf16.mxu1 %v11340_v43 }
 0x75c   :  { %9445 = vmatpush3.bf16.msra.mxu1 %v10379_v3 }
 0x75d   :  { %9446 = vmatprep.subr.bf16.mxu1 %v11340_v43 }
 0x760   :  { %9447 = vmatpush3.bf16.msra.mxu1 %v10380_v50 }
 0x761   :  { %9448 = vmatprep.subr.bf16.mxu1 %v11340_v43 }
 0x764   :  { %9449 = vmatpush3.bf16.msra.mxu1 %v10381_v55 }
 0x765   :  { %9450 = vmatprep.subr.bf16.mxu1 %v11340_v43 }
 0x768   :  { %9451 = vmatpush3.bf16.msra.mxu1 %v10382_v46 }
 0x769   :  { %9452 = vmatprep.subr.bf16.mxu1 %v11340_v43 }
 0x76c   :  { %9453 = vmatpush3.bf16.msra.mxu1 %v10383_v45 }
 0x76d   :  { %9454 = vmatprep.subr.bf16.mxu1 %v11340_v43 }
 0x770   :  { %9455 = vmatpush3.bf16.msra.mxu1 %v10384_v34 }
 0x771   :  { %9456 = vmatprep.subr.bf16.mxu1 %v11340_v43 }
 0x774   :  { %9457 = vmatpush3.bf16.msra.mxu1 %v10385_v61 }
 0x775   :  { %9462 = vmatprep.subr.bf16.mxu1 %v11340_v43 }
 0x777   :  { %9459 = vmatmul.mubr.bf16.vlgmr.msra.gmra.mrb[132].mxu1 %v7601_v35 }
 0x778   :  { %9478 = vmatprep.mubr.msk.bf16.mxu1 %vm11341_vm1, %v11340_v43  ;;  %9463 = vmatpush3.bf16.msra.mxu1 %v10386_v31 }
 0x779   :  { %9464 = vmatprep.subr.bf16.mxu1 %v11340_v43 }
 0x77c   :  { %9465 = vmatpush3.bf16.msra.mxu1 %v10387_v7 }
 0x77d   :  { %9466 = vmatprep.subr.bf16.mxu1 %v11340_v43 }
 0x780   :  { %9467 = vmatpush3.bf16.msra.mxu1 %v10388_v56 }
 0x781   :  { %9468 = vmatprep.subr.bf16.mxu1 %v11340_v43 }
 0x784   :  { %9469 = vmatpush3.bf16.msra.mxu1 %v10389_v16 }
 0x785   :  { %9470 = vmatprep.subr.bf16.mxu1 %v11340_v43 }
 0x788   :  { %9471 = vmatpush3.bf16.msra.mxu1 %v10390_v29 }
 0x789   :  { %9472 = vmatprep.subr.bf16.mxu1 %v11340_v43 }
 0x78c   :  { %9473 = vmatpush3.bf16.msra.mxu1 %v10391_v59 }
 0x78d   :  { %9474 = vmatprep.subr.bf16.mxu1 %v11340_v43 }
 0x790   :  { %9475 = vmatpush3.bf16.msra.mxu1 %v10392_v24 }
 0x791   :  { %9476 = vmatprep.subr.bf16.mxu1 %v11340_v43  ;;  %v8619_v43 = vld [vmem:[#allocation14] ss:$0 sm:$0xff] }
 0x794   :  { %9477 = vmatpush3.bf16.msra.mxu1 %v10393_v30 }
 0x82a   :  { %v9218_v23 = vpop.f32.mrb[128].mxu1 }
 0x82b   :  { %v9219_v47 = vpop.f32.mrb[129].mxu1 }
 0x82c   :  { %v9220_v20 = vadd.f32 %v9219_v47, %v9218_v23  ;;  %v9221_v51 = vpop.f32.mrb[130].mxu1 }
 0x82d   :  { %v9222_v18 = vpop.f32.mrb[131].mxu1 }
 0x82e   :  { %v7836_v10 = vadd.f32 %v9220_v20, %v8594_v8 }
 0x84a   :  { %v7875_v0 = vpop.f32.mrb[132].mxu1 }
 0x84b   :  { %v7876_v14 = vadd.f32 %v7875_v0, %v7836_v10  ;;  %v9460_v17 = vpop.f32.mrb[133].mxu1 }
 0x84c   :  { %v7878_v13 = vpop.f32.mrb[134].mxu1 }
 0x84d   :  { %vm7881_vm1 = vcmp.ge.f32.partialorder %v7876_v14, 0.0  ;;  %v7882_v9 = vmul.f32 0.01, %v7876_v14  ;;  %v9461_v21 = vpop.f32.mrb[135].mxu1 }
 0x84f   :  { %v7883_v22 = vsel %vm7881_vm1, %v7876_v14, %v7882_v9 }
 0x850   :  { %v7884_v60 = vpack.c.bf16 %v7883_v22, %v7883_v22 }
 0x852   :  { %9479 = vmatmul.mubr.bf16.vlgmr.msra.gmra.mrb[136].mxu1 %v7884_v60 }
 0x925   :  { %v7990_v5 = vpop.f32.mrb[136].mxu1 }
 0x926   :  { %v7991_v36 = vadd.f32 %v8619_v43, %v7990_v5  ;;  %v9480_v41 = vpop.f32.mrb[137].mxu1 }
 0x927   :  { %v7993_v28 = vpop.f32.mrb[138].mxu1 }
 0x928   :  { %7996 = vst [vmem:[#allocation16] sm:$0xff] %v7991_v36  ;;  %v9481_v11 = vpop.f32.mrb[139].mxu1 }
 0x929   :  { %8001 = vsyncadd [#allocation4], 96  ;;  %s11344_s0 = smov [#allocation16]  }
 0x92a   :  { %s8002_s18 = sshll.u32 %s11344_s0, 4  ;;  %s8003_s18 = int_to_ptr.vmem [resolvable:$true] %s8002_s18 }
 0x92b   :  { %s11290_s19 = scalar_lea.vmem %s8003_s18, 32  ;;  %s11294_s20 = scalar_lea.vmem %s8003_s18, 128 }
 0x92c   :  { %p11291_p8 = scmp.ne.s32.totalorder %s8003_s18, %s11290_s19  ;;  %p11295_p9 = scmp.lt.s32.totalorder %s8003_s18, %s8003_s18 }
 0x92d   :  { %p11296_p10 = scmp.lt.s32.totalorder %s11294_s20, %s11290_s19 }
 0x92f   :  { %p11297_p11 = por %p11296_p10, %p11295_p9 }
 0x931   :  { %p11298_p12 = pnand %p11297_p11, %p11291_p8 }
 0x933   :  { %11301 = shalt.err (!%p11298_p12)
}
 0x934   :  { %s11302_s23 = scalar_lea.hbm %s12491_s9, 32 }
 0x935   :  { %p11303_p13 = scmp.ne.s32.totalorder %s12491_s9, %s11302_s23  ;;  %p11306_p0 = scmp.lt.u32.totalorder %s11302_s23, %s12491_s9 }
 0x937   :  { %p11308_p1 = pnand %p11306_p0, %p11303_p13 }
 0x939   :  { %11311 = shalt.err (!%p11308_p1)
}
 0x93a   :  { %s11345_s25 = smov 2  }
 0x93b   :  { %8008 = dma.vmem_to_hbm [thread:$0]  %s8003_s18, 32, %s12491_s9, [#allocation4], %s11339_s15, %s11339_s15, %s11345_s25  }
 0x93c   :  { %11322 = dma.done.wait [#allocation4], 128  }
 0x93d   :  { %11323 = vsyncadd [#allocation4], 4294967168 }
 0x93e   :  { %8012 = vsyncpa [#allocation3], 1 }
 0x93f   :  { %8013 = vsyncpa [#allocation6], 1 }
 0x940   :  { %8014 = vsyncpa [#allocation9], 1 }
 0x941   :  { %8015 = vsyncpa [#allocation12], 1 }
 0x942   :  { %8016 = vsyncpa [#allocation15], 1 }
 0x943   :  { %8017 = vsyncpa [#allocation4], 1 }

</bundles_post_ra>
